<compile_context>
chip_gen: v5e
topology: v5e:2x2
jax: 0.10.0
libtpu: 0.0.40
codegen_flags: <defaults>
</compile_context>

<pallas_src>
import jax
import jax.numpy as jnp
import numpy as np
from jax.experimental import pallas as pl
from jax.experimental.pallas import tpu as pltpu

# --- model dimensions implied by GNNML3.__init__ and the SpectralDesign transform ---
NE = 11        # edge_attr2.shape[1]: nfreq=10 spectral supports + adjacency (addadj=True)
NINP0 = 2      # dataset.num_features: 1 raw node feature + degree (adddegree=True)
NOUT1 = 16
NOUT2 = 16
NIN = NOUT1 + NOUT2   # 32
NHID = 32
NLAYERS = 5


# ---------------------------------------------------------------------------
# Kernel 1: all-layers edge MLP, lane-dense.
#   input  c     : [NE, N*N]           (per graph; (i,j) pairs on lanes)
#   output cn    : [NLAYERS*NE, N*N]   rows ordered (layer, out-channel)
#   e1 = relu(W11t @ c), e2 = tanh(W12t @ c)   with W11t/W12t = layer-stacked [5*2NE, NE]
#   cn = relu(W13at_bd @ e1 + W13bt_bd @ e2)   with block-diagonal [5*NE, 5*2NE] weights
# ---------------------------------------------------------------------------
def edge_mlp_kernel(c_ref, w11t_ref, w12t_ref, w13at_ref, w13bt_ref, o_ref):
    c = c_ref[...]                                                        # [NE, N*N]
    e1 = jnp.maximum(jnp.dot(w11t_ref[...], c,
                             preferred_element_type=jnp.float32), 0.0)    # [5*2NE, N*N]
    e2 = jnp.tanh(jnp.dot(w12t_ref[...], c,
                          preferred_element_type=jnp.float32))            # [5*2NE, N*N]
    t = (jnp.dot(w13at_ref[...], e1, preferred_element_type=jnp.float32)
         + jnp.dot(w13bt_ref[...], e2, preferred_element_type=jnp.float32))  # [5*NE, N*N]
    o_ref[...] = jnp.maximum(t, 0.0)


def edge_mlp_all_layers(ct, w11t, w12t, w13at_bd, w13bt_bd):
    B, ne, nn = ct.shape
    nl_ne = w13at_bd.shape[0]            # NLAYERS * NE
    return pl.pallas_call(
        edge_mlp_kernel,
        out_shape=jax.ShapeDtypeStruct((B, nl_ne, nn), jnp.float32),
        grid_spec=pltpu.PrefetchScalarGridSpec(
            num_scalar_prefetch=0,
            grid=(B,),
            in_specs=[
                pl.BlockSpec((None, ne, nn), lambda b: (b, 0, 0)),
                pl.BlockSpec(w11t.shape, lambda b: (0, 0)),
                pl.BlockSpec(w12t.shape, lambda b: (0, 0)),
                pl.BlockSpec(w13at_bd.shape, lambda b: (0, 0)),
                pl.BlockSpec(w13bt_bd.shape, lambda b: (0, 0)),
            ],
            out_specs=pl.BlockSpec((None, nl_ne, nn), lambda b: (b, 0, 0)),
        ),
        compiler_params=pltpu.CompilerParams(dimension_semantics=("parallel",)),
    )(ct, w11t, w12t, w13at_bd, w13bt_bd)


# ---------------------------------------------------------------------------
# Kernel 2: 5 fused spectral layers + gates + masked global_add_pool + MLP head.
# One graph per grid step; h [N, NIN] stays resident across all layers.
#   cn_ref : [NLAYERS, NE*N, N]  rows of each layer ordered (k, i), lanes = j
#   per layer:
#     hs  = cn_l @ h                 [NE*N, NIN]   (all 11 A_k @ h stacked in one matmul)
#     h_t = regroup rows->lanes      [N, NE*NIN]   (static slices + lane concat)
#     conv = h_t @ Wsp2d + bsp       [N, NOUT1]
#     h = cat[relu(conv), tanh(h@W11+b11)*tanh(h@W12+b12)]
#   head (no M=1 matmuls): pooled matmul is folded through linearity of fc1.
# ---------------------------------------------------------------------------
def make_stack_kernel(nlayers, ne, n):
    def stack_kernel(cn_ref, x_ref, m_ref, wsp_ref, bsp_ref,
                     w11_ref, b11_ref, w12_ref, b12_ref,
                     wf1_ref, bf1_ref, wf2t_ref, bf2_ref, o_ref):
        h = x_ref[...]                                                    # [N, NIN]
        for l in range(nlayers):
            cn2d = cn_ref[l]                                              # [NE*N, N]
            hs = jnp.dot(cn2d, h, preferred_element_type=jnp.float32)     # [NE*N, NIN]
            h_t = jnp.concatenate(
                [hs[k * n:(k + 1) * n, :] for k in range(ne)], axis=1)    # [N, NE*NIN]
            conv = (jnp.dot(h_t, wsp_ref[l], preferred_element_type=jnp.float32)
                    + bsp_ref[l])                                         # [N, NOUT1]
            g1 = jnp.tanh(jnp.dot(h, w11_ref[l],
                                  preferred_element_type=jnp.float32) + b11_ref[l])
            g2 = jnp.tanh(jnp.dot(h, w12_ref[l],
                                  preferred_element_type=jnp.float32) + b12_ref[l])
            h = jnp.concatenate([jnp.maximum(conv, 0.0), g1 * g2], axis=1)  # [N, NIN]
        # masked global_add_pool + fc1(relu) + fc2, with the pooling reduction pushed
        # through the (linear) fc1 matmul to keep all matmuls M >= N.
        hm = h * m_ref[...]                                               # [N, NIN]
        t = jnp.dot(hm, wf1_ref[...], preferred_element_type=jnp.float32)  # [N, NHID]
        hid = jnp.maximum(jnp.sum(t, axis=0, keepdims=True) + bf1_ref[...], 0.0)  # [1,NHID]
        res = jnp.sum(hid * wf2t_ref[...], axis=1, keepdims=True) + bf2_ref[...]  # [1, 1]
        o_ref[...] = res
    return stack_kernel


def spect_stack(cn5, x0p, mask3, wsp_s, bsp_s, w11_s, b11_s, w12_s, b12_s,
                wf1, bf1, wf2t, bf2):
    B, nl, nen, n = cn5.shape
    ne = nen // n
    nin = x0p.shape[-1]
    kernel = make_stack_kernel(nl, ne, n)
    out = pl.pallas_call(
        kernel,
        out_shape=jax.ShapeDtypeStruct((B, 1, 1), jnp.float32),
        grid_spec=pltpu.PrefetchScalarGridSpec(
            num_scalar_prefetch=0,
            grid=(B,),
            in_specs=[
                pl.BlockSpec((None, nl, nen, n), lambda b: (b, 0, 0, 0)),
                pl.BlockSpec((None, n, nin), lambda b: (b, 0, 0)),
                pl.BlockSpec((None, n, 1), lambda b: (b, 0, 0)),
                pl.BlockSpec(wsp_s.shape, lambda b: (0, 0, 0)),
                pl.BlockSpec(bsp_s.shape, lambda b: (0, 0, 0)),
                pl.BlockSpec(w11_s.shape, lambda b: (0, 0, 0)),
                pl.BlockSpec(b11_s.shape, lambda b: (0, 0, 0)),
                pl.BlockSpec(w12_s.shape, lambda b: (0, 0, 0)),
                pl.BlockSpec(b12_s.shape, lambda b: (0, 0, 0)),
                pl.BlockSpec(wf1.shape, lambda b: (0, 0)),
                pl.BlockSpec(bf1.shape, lambda b: (0, 0)),
                pl.BlockSpec(wf2t.shape, lambda b: (0, 0)),
                pl.BlockSpec(bf2.shape, lambda b: (0, 0)),
            ],
            out_specs=pl.BlockSpec((None, 1, 1), lambda b: (b, 0, 0)),
        ),
        compiler_params=pltpu.CompilerParams(dimension_semantics=("parallel",)),
    )(cn5, x0p, mask3, wsp_s, bsp_s, w11_s, b11_s, w12_s, b12_s, wf1, bf1, wf2t, bf2)
    return out.reshape(B, 1)


# ---------------------------------------------------------------------------
# Full forward (JAX glue: one layer-invariant relayout of the supports + weight packing)
# ---------------------------------------------------------------------------
def gnnml3_forward(x, c_dense, node_mask, params):
    B, N, _, ne = c_dense.shape
    layers = params["layers"]
    nl = len(layers)

    # lane-dense support layout [B, NE, N*N]: ct[b, k, i*N+j] = c_dense[b, i, j, k]
    ct = c_dense.transpose(0, 3, 1, 2).reshape(B, ne, N * N)

    # --- pack edge-MLP weights (layer-stacked / block-diagonal, transposed) ---
    w11t = jnp.concatenate([p["w1_1"].T for p in layers], axis=0)          # [5*2NE, NE]
    w12t = jnp.concatenate([p["w1_2"].T for p in layers], axis=0)          # [5*2NE, NE]
    w13at_bd = jax.scipy.linalg.block_diag(
        *[p["w1_3"][:2 * ne, :].T for p in layers])                        # [5*NE, 5*2NE]
    w13bt_bd = jax.scipy.linalg.block_diag(
        *[p["w1_3"][2 * ne:, :].T for p in layers])                        # [5*NE, 5*2NE]

    # --- pack per-layer node-path weights, zero-padding layer-1 input channels to NIN ---
    def pad_in(w):
        return jnp.pad(w, ((0, NIN - w.shape[0]), (0, 0)))
    wsp_s = jnp.stack([
        jnp.pad(p["wsp"], ((0, 0), (0, NIN - p["wsp"].shape[1]), (0, 0)))
        .reshape(ne * NIN, NOUT1) for p in layers])                        # [5, NE*NIN, NOUT1]
    bsp_s = jnp.stack([p["bsp"] for p in layers])                          # [5, 1, NOUT1]
    w11_s = jnp.stack([pad_in(p["w11"]) for p in layers])                  # [5, NIN, NOUT2]
    b11_s = jnp.stack([p["b11"] for p in layers])                          # [5, 1, NOUT2]
    w12_s = jnp.stack([pad_in(p["w12"]) for p in layers])                  # [5, NIN, NOUT2]
    b12_s = jnp.stack([p["b12"] for p in layers])                          # [5, 1, NOUT2]

    x0p = jnp.pad(x, ((0, 0), (0, 0), (0, NIN - x.shape[-1])))             # [B, N, NIN]
    mask3 = node_mask[:, :, None]                                          # [B, N, 1]
    wf2t = params["wf2"].T                                                 # [1, NHID]

    # kernel 1: all 5 layers' learned supports in one lane-dense kernel
    cn_all = edge_mlp_all_layers(ct, w11t, w12t, w13at_bd, w13bt_bd)       # [B, 5*NE, N*N]
    cn5 = cn_all.reshape(B, nl, ne * N, N)                                 # [B, 5, NE*N, N]

    # kernel 2: 5 spectral layers + gates + pooled head, fused
    return spect_stack(cn5, x0p, mask3, wsp_s, bsp_s, w11_s, b11_s, w12_s, b12_s,
                       params["wf1"], params["bf1"], wf2t, params["bf2"])


# pure-JAX reference (same math, XLA ops) for correctness check
def reference_forward(x, c_dense, node_mask, params):
    h = x
    for p in params["layers"]:
        e1 = jax.nn.relu(jnp.einsum("bijk,kl->bijl", c_dense, p["w1_1"]))
        e2 = jnp.tanh(jnp.einsum("bijk,kl->bijl", c_dense, p["w1_2"]))
        cn = jax.nn.relu(jnp.einsum("bijk,kl->bijl",
                                    jnp.concatenate([e1, e2], -1), p["w1_3"]))
        conv = jnp.einsum("bijk,bjc,kco->bio", cn, h, p["wsp"]) + p["bsp"][0]
        g = jnp.tanh(h @ p["w11"] + p["b11"][0]) * jnp.tanh(h @ p["w12"] + p["b12"][0])
        h = jnp.concatenate([jax.nn.relu(conv), g], axis=-1)
    pooled = jnp.sum(h * node_mask[:, :, None], axis=1)
    hid = jax.nn.relu(pooled @ params["wf1"] + params["bf1"][0])
    return hid @ params["wf2"] + params["bf2"][0]


def init_params(key):
    def nrm(k, shape, scale):
        return scale * jax.random.normal(k, shape, dtype=jnp.float32)
    keys = iter(jax.random.split(key, 64))
    layers = []
    ninp = NINP0
    for _ in range(NLAYERS):
        layers.append({
            "w1_1": nrm(next(keys), (NE, 2 * NE), 0.2),
            "w1_2": nrm(next(keys), (NE, 2 * NE), 0.2),
            "w1_3": nrm(next(keys), (4 * NE, NE), 0.1),
            "wsp":  nrm(next(keys), (NE, ninp, NOUT1), 0.05),
            "bsp":  nrm(next(keys), (1, NOUT1), 0.05),
            "w11":  nrm(next(keys), (ninp, NOUT2), 0.1),
            "b11":  nrm(next(keys), (1, NOUT2), 0.05),
            "w12":  nrm(next(keys), (ninp, NOUT2), 0.1),
            "b12":  nrm(next(keys), (1, NOUT2), 0.05),
        })
        ninp = NIN
    return {
        "layers": layers,
        "wf1": nrm(next(keys), (NIN, NHID), 0.1),
        "bf1": nrm(next(keys), (1, NHID), 0.05),
        "wf2": nrm(next(keys), (NHID, 1), 0.1),
        "bf2": nrm(next(keys), (1, 1), 0.05),
    }


if __name__ == "__main__":
    key = jax.random.PRNGKey(0)
    B, NMAX = 2, 32                       # nmax=30 graphs, padded to 32 for alignment
    n_nodes = jnp.array([30, 24])
    k1, k2, k3, kp = jax.random.split(key, 4)

    node_mask = (jnp.arange(NMAX)[None, :] < n_nodes[:, None]).astype(jnp.float32)   # [B, NMAX]
    adj = (jax.random.uniform(k1, (B, NMAX, NMAX)) < 0.25).astype(jnp.float32)
    adj = jnp.maximum(adj, adj.transpose(0, 2, 1)) * (1.0 - jnp.eye(NMAX)[None])
    adj = adj * node_mask[:, :, None] * node_mask[:, None, :]
    # dense padded edge supports (edge_attr2 scattered at (target, source)); zero = no edge
    c_dense = 0.5 * jax.random.normal(k2, (B, NMAX, NMAX, NE)) * adj[..., None]       # [B,N,N,NE]
    x0 = jax.random.normal(k3, (B, NMAX, NINP0)) * node_mask[..., None]               # [B,N,F]

    params = init_params(kp)

    out = jax.jit(gnnml3_forward)(x0, c_dense, node_mask, params)
    out = jax.block_until_ready(out)

    ref = np.asarray(reference_forward(x0, c_dense, node_mask, params))
    err = np.max(np.abs(np.asarray(out) - ref)) / (np.max(np.abs(ref)) + 1e-6)
    assert out.shape == (B, 1), out.shape
    assert err < 3e-2, f"relative error too large: {err}"
    print("KERNEL_OK")
</pallas_src>

<mosaic_0001>
module attributes {stable_mosaic.version = 11 : i64} {
  func.func @edge_mlp_kernel(%arg0: i32, %arg1: memref<1x11x1024xf32, #tpu.memory_space<vmem>>, %arg2: memref<110x11xf32, #tpu.memory_space<vmem>>, %arg3: memref<110x11xf32, #tpu.memory_space<vmem>>, %arg4: memref<55x110xf32, #tpu.memory_space<vmem>>, %arg5: memref<55x110xf32, #tpu.memory_space<vmem>>, %arg6: memref<1x55x1024xf32, #tpu.memory_space<vmem>>) attributes {dimension_semantics = [#tpu.dimension_semantics<parallel>], iteration_bounds = array<i64: 2>, scalar_prefetch = 0 : i64, scratch_operands = 0 : i64, tpu.core_type = #tpu.core_type<tc>, window_params = [{transform_indices = @transform_0, window_bounds = array<i64: 1, 11, 1024>}, {pipeline_mode = #tpu.pipeline_mode<synchronous>, transform_indices = @transform_1, window_bounds = array<i64: 110, 11>}, {pipeline_mode = #tpu.pipeline_mode<synchronous>, transform_indices = @transform_2, window_bounds = array<i64: 110, 11>}, {pipeline_mode = #tpu.pipeline_mode<synchronous>, transform_indices = @transform_3, window_bounds = array<i64: 55, 110>}, {pipeline_mode = #tpu.pipeline_mode<synchronous>, transform_indices = @transform_4, window_bounds = array<i64: 55, 110>}, {transform_indices = @transform_5, window_bounds = array<i64: 1, 55, 1024>}]} {
    %c0 = arith.constant 0 : index
    %c0_0 = arith.constant 0 : index
    %c0_1 = arith.constant 0 : index
    %0 = vector.load %arg1[%c0, %c0_0, %c0_1] : memref<1x11x1024xf32, #tpu.memory_space<vmem>>, vector<1x11x1024xf32>
    %1 = vector.shape_cast %0 : vector<1x11x1024xf32> to vector<11x1024xf32>
    %c0_2 = arith.constant 0 : index
    %c0_3 = arith.constant 0 : index
    %2 = vector.load %arg2[%c0_2, %c0_3] : memref<110x11xf32, #tpu.memory_space<vmem>>, vector<110x11xf32>
    %cst = arith.constant dense<0.000000e+00> : vector<110x1024xf32>
    %3 = tpu.matmul %2, %1, %cst {dimension_numbers = #tpu.dot_dimension_numbers<[1], [0], [0], [1], [0, 0, 1, 1], [], []>} : vector<110x11xf32>, vector<11x1024xf32>, vector<110x1024xf32> -> vector<110x1024xf32>
    %cst_4 = arith.constant 0.000000e+00 : f32
    %4 = vector.broadcast %cst_4 : f32 to vector<110x1024xf32>
    %5 = arith.maximumf %3, %4 : vector<110x1024xf32>
    %c0_5 = arith.constant 0 : index
    %c0_6 = arith.constant 0 : index
    %6 = vector.load %arg3[%c0_5, %c0_6] : memref<110x11xf32, #tpu.memory_space<vmem>>, vector<110x11xf32>
    %cst_7 = arith.constant dense<0.000000e+00> : vector<110x1024xf32>
    %7 = tpu.matmul %6, %1, %cst_7 {dimension_numbers = #tpu.dot_dimension_numbers<[1], [0], [0], [1], [0, 0, 1, 1], [], []>} : vector<110x11xf32>, vector<11x1024xf32>, vector<110x1024xf32> -> vector<110x1024xf32>
    %8 = math.tanh %7 : vector<110x1024xf32>
    %c0_8 = arith.constant 0 : index
    %c0_9 = arith.constant 0 : index
    %9 = vector.load %arg4[%c0_8, %c0_9] : memref<55x110xf32, #tpu.memory_space<vmem>>, vector<55x110xf32>
    %cst_10 = arith.constant dense<0.000000e+00> : vector<55x1024xf32>
    %10 = tpu.matmul %9, %5, %cst_10 {dimension_numbers = #tpu.dot_dimension_numbers<[1], [0], [0], [1], [0, 0, 1, 1], [], []>} : vector<55x110xf32>, vector<110x1024xf32>, vector<55x1024xf32> -> vector<55x1024xf32>
    %c0_11 = arith.constant 0 : index
    %c0_12 = arith.constant 0 : index
    %11 = vector.load %arg5[%c0_11, %c0_12] : memref<55x110xf32, #tpu.memory_space<vmem>>, vector<55x110xf32>
    %cst_13 = arith.constant dense<0.000000e+00> : vector<55x1024xf32>
    %12 = tpu.matmul %11, %8, %cst_13 {dimension_numbers = #tpu.dot_dimension_numbers<[1], [0], [0], [1], [0, 0, 1, 1], [], []>} : vector<55x110xf32>, vector<110x1024xf32>, vector<55x1024xf32> -> vector<55x1024xf32>
    %13 = arith.addf %10, %12 : vector<55x1024xf32>
    %cst_14 = arith.constant 0.000000e+00 : f32
    %14 = vector.broadcast %cst_14 : f32 to vector<55x1024xf32>
    %15 = arith.maximumf %13, %14 : vector<55x1024xf32>
    %c0_15 = arith.constant 0 : index
    %c0_16 = arith.constant 0 : index
    %c0_17 = arith.constant 0 : index
    %16 = vector.load %arg6[%c0_15, %c0_16, %c0_17] : memref<1x55x1024xf32, #tpu.memory_space<vmem>>, vector<1x55x1024xf32>
    %17 = vector.shape_cast %16 : vector<1x55x1024xf32> to vector<55x1024xf32>
    %18 = vector.shape_cast %15 : vector<55x1024xf32> to vector<1x55x1024xf32>
    tpu.vector_store %arg6[%c0_15, %c0_16, %c0_17], %18 {strides = array<i32>} : memref<1x55x1024xf32, #tpu.memory_space<vmem>>, vector<1x55x1024xf32>,
    return
  }
  func.func @transform_0(%arg0: i32) -> (i32, i32, i32) {
    %c0_i32 = arith.constant 0 : i32
    %c0_i32_0 = arith.constant 0 : i32
    %c0_i32_1 = arith.constant 0 : i32
    return %arg0, %c0_i32, %c0_i32_0 : i32, i32, i32
  }
  func.func @transform_1(%arg0: i32) -> (i32, i32) {
    %c0_i32 = arith.constant 0 : i32
    %c0_i32_0 = arith.constant 0 : i32
    %c0_i32_1 = arith.constant 0 : i32
    return %c0_i32, %c0_i32_0 : i32, i32
  }
  func.func @transform_2(%arg0: i32) -> (i32, i32) {
    %c0_i32 = arith.constant 0 : i32
    %c0_i32_0 = arith.constant 0 : i32
    %c0_i32_1 = arith.constant 0 : i32
    return %c0_i32, %c0_i32_0 : i32, i32
  }
  func.func @transform_3(%arg0: i32) -> (i32, i32) {
    %c0_i32 = arith.constant 0 : i32
    %c0_i32_0 = arith.constant 0 : i32
    %c0_i32_1 = arith.constant 0 : i32
    return %c0_i32, %c0_i32_0 : i32, i32
  }
  func.func @transform_4(%arg0: i32) -> (i32, i32) {
    %c0_i32 = arith.constant 0 : i32
    %c0_i32_0 = arith.constant 0 : i32
    %c0_i32_1 = arith.constant 0 : i32
    return %c0_i32, %c0_i32_0 : i32, i32
  }
  func.func @transform_5(%arg0: i32) -> (i32, i32, i32) {
    %c0_i32 = arith.constant 0 : i32
    %c0_i32_0 = arith.constant 0 : i32
    %c0_i32_1 = arith.constant 0 : i32
    return %arg0, %c0_i32, %c0_i32_0 : i32, i32, i32
  }
}

module attributes {stable_mosaic.version = 11 : i64} {
  func.func @stack_kernel(%arg0: i32, %arg1: memref<1x5x352x32xf32, #tpu.memory_space<vmem>>, %arg2: memref<1x32x32xf32, #tpu.memory_space<vmem>>, %arg3: memref<1x32x1xf32, #tpu.memory_space<vmem>>, %arg4: memref<5x352x16xf32, #tpu.memory_space<vmem>>, %arg5: memref<5x1x16xf32, #tpu.memory_space<vmem>>, %arg6: memref<5x32x16xf32, #tpu.memory_space<vmem>>, %arg7: memref<5x1x16xf32, #tpu.memory_space<vmem>>, %arg8: memref<5x32x16xf32, #tpu.memory_space<vmem>>, %arg9: memref<5x1x16xf32, #tpu.memory_space<vmem>>, %arg10: memref<32x32xf32, #tpu.memory_space<vmem>>, %arg11: memref<1x32xf32, #tpu.memory_space<vmem>>, %arg12: memref<1x32xf32, #tpu.memory_space<vmem>>, %arg13: memref<1x1xf32, #tpu.memory_space<vmem>>, %arg14: memref<1x1x1xf32, #tpu.memory_space<vmem>>) attributes {dimension_semantics = [#tpu.dimension_semantics<parallel>], iteration_bounds = array<i64: 2>, scalar_prefetch = 0 : i64, scratch_operands = 0 : i64, tpu.core_type = #tpu.core_type<tc>, window_params = [{transform_indices = @transform_0, window_bounds = array<i64: 1, 5, 352, 32>}, {transform_indices = @transform_1, window_bounds = array<i64: 1, 32, 32>}, {transform_indices = @transform_2, window_bounds = array<i64: 1, 32, 1>}, {pipeline_mode = #tpu.pipeline_mode<synchronous>, transform_indices = @transform_3, window_bounds = array<i64: 5, 352, 16>}, {pipeline_mode = #tpu.pipeline_mode<synchronous>, transform_indices = @transform_4, window_bounds = array<i64: 5, 1, 16>}, {pipeline_mode = #tpu.pipeline_mode<synchronous>, transform_indices = @transform_5, window_bounds = array<i64: 5, 32, 16>}, {pipeline_mode = #tpu.pipeline_mode<synchronous>, transform_indices = @transform_6, window_bounds = array<i64: 5, 1, 16>}, {pipeline_mode = #tpu.pipeline_mode<synchronous>, transform_indices = @transform_7, window_bounds = array<i64: 5, 32, 16>}, {pipeline_mode = #tpu.pipeline_mode<synchronous>, transform_indices = @transform_8, window_bounds = array<i64: 5, 1, 16>}, {pipeline_mode = #tpu.pipeline_mode<synchronous>, transform_indices = @transform_9, window_bounds = array<i64: 32, 32>}, {pipeline_mode = #tpu.pipeline_mode<synchronous>, transform_indices = @transform_10, window_bounds = array<i64: 1, 32>}, {pipeline_mode = #tpu.pipeline_mode<synchronous>, transform_indices = @transform_11, window_bounds = array<i64: 1, 32>}, {pipeline_mode = #tpu.pipeline_mode<synchronous>, transform_indices = @transform_12, window_bounds = array<i64: 1, 1>}, {transform_indices = @transform_13, window_bounds = array<i64: 1, 1, 1>}]} {
    %c0 = arith.constant 0 : index
    %c0_0 = arith.constant 0 : index
    %c0_1 = arith.constant 0 : index
    %0 = vector.load %arg2[%c0, %c0_0, %c0_1] : memref<1x32x32xf32, #tpu.memory_space<vmem>>, vector<1x32x32xf32>
    %1 = vector.shape_cast %0 : vector<1x32x32xf32> to vector<32x32xf32>
    %c0_2 = arith.constant 0 : index
    %c0_3 = arith.constant 0 : index
    %c0_4 = arith.constant 0 : index
    %c0_5 = arith.constant 0 : index
    %2 = vector.load %arg1[%c0_2, %c0_3, %c0_4, %c0_5] : memref<1x5x352x32xf32, #tpu.memory_space<vmem>>, vector<1x1x352x32xf32>
    %3 = vector.shape_cast %2 : vector<1x1x352x32xf32> to vector<352x32xf32>
    %cst = arith.constant dense<0.000000e+00> : vector<352x32xf32>
    %4 = tpu.matmul %3, %1, %cst {dimension_numbers = #tpu.dot_dimension_numbers<[1], [0], [0], [1], [0, 0, 1, 1], [], []>} : vector<352x32xf32>, vector<32x32xf32>, vector<352x32xf32> -> vector<352x32xf32>
    %5 = vector.extract_strided_slice %4 {offsets = [0, 0], sizes = [32, 32], strides = [1, 1]} : vector<352x32xf32> to vector<32x32xf32>
    %6 = vector.extract_strided_slice %4 {offsets = [32, 0], sizes = [32, 32], strides = [1, 1]} : vector<352x32xf32> to vector<32x32xf32>
    %7 = vector.extract_strided_slice %4 {offsets = [64, 0], sizes = [32, 32], strides = [1, 1]} : vector<352x32xf32> to vector<32x32xf32>
    %8 = vector.extract_strided_slice %4 {offsets = [96, 0], sizes = [32, 32], strides = [1, 1]} : vector<352x32xf32> to vector<32x32xf32>
    %9 = vector.extract_strided_slice %4 {offsets = [128, 0], sizes = [32, 32], strides = [1, 1]} : vector<352x32xf32> to vector<32x32xf32>
    %10 = vector.extract_strided_slice %4 {offsets = [160, 0], sizes = [32, 32], strides = [1, 1]} : vector<352x32xf32> to vector<32x32xf32>
    %11 = vector.extract_strided_slice %4 {offsets = [192, 0], sizes = [32, 32], strides = [1, 1]} : vector<352x32xf32> to vector<32x32xf32>
    %12 = vector.extract_strided_slice %4 {offsets = [224, 0], sizes = [32, 32], strides = [1, 1]} : vector<352x32xf32> to vector<32x32xf32>
    %13 = vector.extract_strided_slice %4 {offsets = [256, 0], sizes = [32, 32], strides = [1, 1]} : vector<352x32xf32> to vector<32x32xf32>
    %14 = vector.extract_strided_slice %4 {offsets = [288, 0], sizes = [32, 32], strides = [1, 1]} : vector<352x32xf32> to vector<32x32xf32>
    %15 = vector.extract_strided_slice %4 {offsets = [320, 0], sizes = [32, 32], strides = [1, 1]} : vector<352x32xf32> to vector<32x32xf32>
    %16 = tpu.concatenate %5, %6, %7, %8, %9, %10, %11, %12, %13, %14, %15 in 1 : vector<32x32xf32>, vector<32x32xf32>, vector<32x32xf32>, vector<32x32xf32>, vector<32x32xf32>, vector<32x32xf32>, vector<32x32xf32>, vector<32x32xf32>, vector<32x32xf32>, vector<32x32xf32>, vector<32x32xf32> -> vector<32x352xf32>
    %c0_6 = arith.constant 0 : index
    %c0_7 = arith.constant 0 : index
    %c0_8 = arith.constant 0 : index
    %17 = vector.load %arg4[%c0_6, %c0_7, %c0_8] : memref<5x352x16xf32, #tpu.memory_space<vmem>>, vector<1x352x16xf32>
    %18 = vector.shape_cast %17 : vector<1x352x16xf32> to vector<352x16xf32>
    %cst_9 = arith.constant dense<0.000000e+00> : vector<32x16xf32>
    %19 = tpu.matmul %16, %18, %cst_9 {dimension_numbers = #tpu.dot_dimension_numbers<[1], [0], [0], [1], [0, 0, 1, 1], [], []>} : vector<32x352xf32>, vector<352x16xf32>, vector<32x16xf32> -> vector<32x16xf32>
    %c0_10 = arith.constant 0 : index
    %c0_11 = arith.constant 0 : index
    %c0_12 = arith.constant 0 : index
    %20 = vector.load %arg5[%c0_10, %c0_11, %c0_12] : memref<5x1x16xf32, #tpu.memory_space<vmem>>, vector<1x1x16xf32>
    %21 = vector.shape_cast %20 : vector<1x1x16xf32> to vector<1x16xf32>
    %22 = vector.broadcast %21 : vector<1x16xf32> to vector<32x16xf32>
    %23 = arith.addf %19, %22 : vector<32x16xf32>
    %c0_13 = arith.constant 0 : index
    %c0_14 = arith.constant 0 : index
    %c0_15 = arith.constant 0 : index
    %24 = vector.load %arg6[%c0_13, %c0_14, %c0_15] : memref<5x32x16xf32, #tpu.memory_space<vmem>>, vector<1x32x16xf32>
    %25 = vector.shape_cast %24 : vector<1x32x16xf32> to vector<32x16xf32>
    %cst_16 = arith.constant dense<0.000000e+00> : vector<32x16xf32>
    %26 = tpu.matmul %1, %25, %cst_16 {dimension_numbers = #tpu.dot_dimension_numbers<[1], [0], [0], [1], [0, 0, 1, 1], [], []>} : vector<32x32xf32>, vector<32x16xf32>, vector<32x16xf32> -> vector<32x16xf32>
    %c0_17 = arith.constant 0 : index
    %c0_18 = arith.constant 0 : index
    %c0_19 = arith.constant 0 : index
    %27 = vector.load %arg7[%c0_17, %c0_18, %c0_19] : memref<5x1x16xf32, #tpu.memory_space<vmem>>, vector<1x1x16xf32>
    %28 = vector.shape_cast %27 : vector<1x1x16xf32> to vector<1x16xf32>
    %29 = vector.broadcast %28 : vector<1x16xf32> to vector<32x16xf32>
    %30 = arith.addf %26, %29 : vector<32x16xf32>
    %31 = math.tanh %30 : vector<32x16xf32>
    %c0_20 = arith.constant 0 : index
    %c0_21 = arith.constant 0 : index
    %c0_22 = arith.constant 0 : index
    %32 = vector.load %arg8[%c0_20, %c0_21, %c0_22] : memref<5x32x16xf32, #tpu.memory_space<vmem>>, vector<1x32x16xf32>
    %33 = vector.shape_cast %32 : vector<1x32x16xf32> to vector<32x16xf32>
    %cst_23 = arith.constant dense<0.000000e+00> : vector<32x16xf32>
    %34 = tpu.matmul %1, %33, %cst_23 {dimension_numbers = #tpu.dot_dimension_numbers<[1], [0], [0], [1], [0, 0, 1, 1], [], []>} : vector<32x32xf32>, vector<32x16xf32>, vector<32x16xf32> -> vector<32x16xf32>
    %c0_24 = arith.constant 0 : index
    %c0_25 = arith.constant 0 : index
    %c0_26 = arith.constant 0 : index
    %35 = vector.load %arg9[%c0_24, %c0_25, %c0_26] : memref<5x1x16xf32, #tpu.memory_space<vmem>>, vector<1x1x16xf32>
    %36 = vector.shape_cast %35 : vector<1x1x16xf32> to vector<1x16xf32>
    %37 = vector.broadcast %36 : vector<1x16xf32> to vector<32x16xf32>
    %38 = arith.addf %34, %37 : vector<32x16xf32>
    %39 = math.tanh %38 : vector<32x16xf32>
    %cst_27 = arith.constant 0.000000e+00 : f32
    %40 = vector.broadcast %cst_27 : f32 to vector<32x16xf32>
    %41 = arith.maximumf %23, %40 : vector<32x16xf32>
    %42 = arith.mulf %31, %39 : vector<32x16xf32>
    %43 = tpu.concatenate %41, %42 in 1 : vector<32x16xf32>, vector<32x16xf32> -> vector<32x32xf32>
    %c0_28 = arith.constant 0 : index
    %c1 = arith.constant 1 : index
    %c0_29 = arith.constant 0 : index
    %c0_30 = arith.constant 0 : index
    %44 = vector.load %arg1[%c0_28, %c1, %c0_29, %c0_30] : memref<1x5x352x32xf32, #tpu.memory_space<vmem>>, vector<1x1x352x32xf32>
    %45 = vector.shape_cast %44 : vector<1x1x352x32xf32> to vector<352x32xf32>
    %cst_31 = arith.constant dense<0.000000e+00> : vector<352x32xf32>
    %46 = tpu.matmul %45, %43, %cst_31 {dimension_numbers = #tpu.dot_dimension_numbers<[1], [0], [0], [1], [0, 0, 1, 1], [], []>} : vector<352x32xf32>, vector<32x32xf32>, vector<352x32xf32> -> vector<352x32xf32>
    %47 = vector.extract_strided_slice %46 {offsets = [0, 0], sizes = [32, 32], strides = [1, 1]} : vector<352x32xf32> to vector<32x32xf32>
    %48 = vector.extract_strided_slice %46 {offsets = [32, 0], sizes = [32, 32], strides = [1, 1]} : vector<352x32xf32> to vector<32x32xf32>
    %49 = vector.extract_strided_slice %46 {offsets = [64, 0], sizes = [32, 32], strides = [1, 1]} : vector<352x32xf32> to vector<32x32xf32>
    %50 = vector.extract_strided_slice %46 {offsets = [96, 0], sizes = [32, 32], strides = [1, 1]} : vector<352x32xf32> to vector<32x32xf32>
    %51 = vector.extract_strided_slice %46 {offsets = [128, 0], sizes = [32, 32], strides = [1, 1]} : vector<352x32xf32> to vector<32x32xf32>
    %52 = vector.extract_strided_slice %46 {offsets = [160, 0], sizes = [32, 32], strides = [1, 1]} : vector<352x32xf32> to vector<32x32xf32>
    %53 = vector.extract_strided_slice %46 {offsets = [192, 0], sizes = [32, 32], strides = [1, 1]} : vector<352x32xf32> to vector<32x32xf32>
    %54 = vector.extract_strided_slice %46 {offsets = [224, 0], sizes = [32, 32], strides = [1, 1]} : vector<352x32xf32> to vector<32x32xf32>
    %55 = vector.extract_strided_slice %46 {offsets = [256, 0], sizes = [32, 32], strides = [1, 1]} : vector<352x32xf32> to vector<32x32xf32>
    %56 = vector.extract_strided_slice %46 {offsets = [288, 0], sizes = [32, 32], strides = [1, 1]} : vector<352x32xf32> to vector<32x32xf32>
    %57 = vector.extract_strided_slice %46 {offsets = [320, 0], sizes = [32, 32], strides = [1, 1]} : vector<352x32xf32> to vector<32x32xf32>
    %58 = tpu.concatenate %47, %48, %49, %50, %51, %52, %53, %54, %55, %56, %57 in 1 : vector<32x32xf32>, vector<32x32xf32>, vector<32x32xf32>, vector<32x32xf32>, vector<32x32xf32>, vector<32x32xf32>, vector<32x32xf32>, vector<32x32xf32>, vector<32x32xf32>, vector<32x32xf32>, vector<32x32xf32> -> vector<32x352xf32>
    %c1_32 = arith.constant 1 : index
    %c0_33 = arith.constant 0 : index
    %c0_34 = arith.constant 0 : index
    %59 = vector.load %arg4[%c1_32, %c0_33, %c0_34] : memref<5x352x16xf32, #tpu.memory_space<vmem>>, vector<1x352x16xf32>
    %60 = vector.shape_cast %59 : vector<1x352x16xf32> to vector<352x16xf32>
    %cst_35 = arith.constant dense<0.000000e+00> : vector<32x16xf32>
    %61 = tpu.matmul %58, %60, %cst_35 {dimension_numbers = #tpu.dot_dimension_numbers<[1], [0], [0], [1], [0, 0, 1, 1], [], []>} : vector<32x352xf32>, vector<352x16xf32>, vector<32x16xf32> -> vector<32x16xf32>
    %c1_36 = arith.constant 1 : index
    %c0_37 = arith.constant 0 : index
    %c0_38 = arith.constant 0 : index
    %62 = vector.load %arg5[%c1_36, %c0_37, %c0_38] : memref<5x1x16xf32, #tpu.memory_space<vmem>>, vector<1x1x16xf32>
    %63 = vector.shape_cast %62 : vector<1x1x16xf32> to vector<1x16xf32>
    %64 = vector.broadcast %63 : vector<1x16xf32> to vector<32x16xf32>
    %65 = arith.addf %61, %64 : vector<32x16xf32>
    %c1_39 = arith.constant 1 : index
    %c0_40 = arith.constant 0 : index
    %c0_41 = arith.constant 0 : index
    %66 = vector.load %arg6[%c1_39, %c0_40, %c0_41] : memref<5x32x16xf32, #tpu.memory_space<vmem>>, vector<1x32x16xf32>
    %67 = vector.shape_cast %66 : vector<1x32x16xf32> to vector<32x16xf32>
    %cst_42 = arith.constant dense<0.000000e+00> : vector<32x16xf32>
    %68 = tpu.matmul %43, %67, %cst_42 {dimension_numbers = #tpu.dot_dimension_numbers<[1], [0], [0], [1], [0, 0, 1, 1], [], []>} : vector<32x32xf32>, vector<32x16xf32>, vector<32x16xf32> -> vector<32x16xf32>
    %c1_43 = arith.constant 1 : index
    %c0_44 = arith.constant 0 : index
    %c0_45 = arith.constant 0 : index
    %69 = vector.load %arg7[%c1_43, %c0_44, %c0_45] : memref<5x1x16xf32, #tpu.memory_space<vmem>>, vector<1x1x16xf32>
    %70 = vector.shape_cast %69 : vector<1x1x16xf32> to vector<1x16xf32>
    %71 = vector.broadcast %70 : vector<1x16xf32> to vector<32x16xf32>
    %72 = arith.addf %68, %71 : vector<32x16xf32>
    %73 = math.tanh %72 : vector<32x16xf32>
    %c1_46 = arith.constant 1 : index
    %c0_47 = arith.constant 0 : index
    %c0_48 = arith.constant 0 : index
    %74 = vector.load %arg8[%c1_46, %c0_47, %c0_48] : memref<5x32x16xf32, #tpu.memory_space<vmem>>, vector<1x32x16xf32>
    %75 = vector.shape_cast %74 : vector<1x32x16xf32> to vector<32x16xf32>
    %cst_49 = arith.constant dense<0.000000e+00> : vector<32x16xf32>
    %76 = tpu.matmul %43, %75, %cst_49 {dimension_numbers = #tpu.dot_dimension_numbers<[1], [0], [0], [1], [0, 0, 1, 1], [], []>} : vector<32x32xf32>, vector<32x16xf32>, vector<32x16xf32> -> vector<32x16xf32>
    %c1_50 = arith.constant 1 : index
    %c0_51 = arith.constant 0 : index
    %c0_52 = arith.constant 0 : index
    %77 = vector.load %arg9[%c1_50, %c0_51, %c0_52] : memref<5x1x16xf32, #tpu.memory_space<vmem>>, vector<1x1x16xf32>
    %78 = vector.shape_cast %77 : vector<1x1x16xf32> to vector<1x16xf32>
    %79 = vector.broadcast %78 : vector<1x16xf32> to vector<32x16xf32>
    %80 = arith.addf %76, %79 : vector<32x16xf32>
    %81 = math.tanh %80 : vector<32x16xf32>
    %cst_53 = arith.constant 0.000000e+00 : f32
    %82 = vector.broadcast %cst_53 : f32 to vector<32x16xf32>
    %83 = arith.maximumf %65, %82 : vector<32x16xf32>
    %84 = arith.mulf %73, %81 : vector<32x16xf32>
    %85 = tpu.concatenate %83, %84 in 1 : vector<32x16xf32>, vector<32x16xf32> -> vector<32x32xf32>
    %c0_54 = arith.constant 0 : index
    %c2 = arith.constant 2 : index
    %c0_55 = arith.constant 0 : index
    %c0_56 = arith.constant 0 : index
    %86 = vector.load %arg1[%c0_54, %c2, %c0_55, %c0_56] : memref<1x5x352x32xf32, #tpu.memory_space<vmem>>, vector<1x1x352x32xf32>
    %87 = vector.shape_cast %86 : vector<1x1x352x32xf32> to vector<352x32xf32>
    %cst_57 = arith.constant dense<0.000000e+00> : vector<352x32xf32>
    %88 = tpu.matmul %87, %85, %cst_57 {dimension_numbers = #tpu.dot_dimension_numbers<[1], [0], [0], [1], [0, 0, 1, 1], [], []>} : vector<352x32xf32>, vector<32x32xf32>, vector<352x32xf32> -> vector<352x32xf32>
    %89 = vector.extract_strided_slice %88 {offsets = [0, 0], sizes = [32, 32], strides = [1, 1]} : vector<352x32xf32> to vector<32x32xf32>
    %90 = vector.extract_strided_slice %88 {offsets = [32, 0], sizes = [32, 32], strides = [1, 1]} : vector<352x32xf32> to vector<32x32xf32>
    %91 = vector.extract_strided_slice %88 {offsets = [64, 0], sizes = [32, 32], strides = [1, 1]} : vector<352x32xf32> to vector<32x32xf32>
    %92 = vector.extract_strided_slice %88 {offsets = [96, 0], sizes = [32, 32], strides = [1, 1]} : vector<352x32xf32> to vector<32x32xf32>
    %93 = vector.extract_strided_slice %88 {offsets = [128, 0], sizes = [32, 32], strides = [1, 1]} : vector<352x32xf32> to vector<32x32xf32>
    %94 = vector.extract_strided_slice %88 {offsets = [160, 0], sizes = [32, 32], strides = [1, 1]} : vector<352x32xf32> to vector<32x32xf32>
    %95 = vector.extract_strided_slice %88 {offsets = [192, 0], sizes = [32, 32], strides = [1, 1]} : vector<352x32xf32> to vector<32x32xf32>
    %96 = vector.extract_strided_slice %88 {offsets = [224, 0], sizes = [32, 32], strides = [1, 1]} : vector<352x32xf32> to vector<32x32xf32>
    %97 = vector.extract_strided_slice %88 {offsets = [256, 0], sizes = [32, 32], strides = [1, 1]} : vector<352x32xf32> to vector<32x32xf32>
    %98 = vector.extract_strided_slice %88 {offsets = [288, 0], sizes = [32, 32], strides = [1, 1]} : vector<352x32xf32> to vector<32x32xf32>
    %99 = vector.extract_strided_slice %88 {offsets = [320, 0], sizes = [32, 32], strides = [1, 1]} : vector<352x32xf32> to vector<32x32xf32>
    %100 = tpu.concatenate %89, %90, %91, %92, %93, %94, %95, %96, %97, %98, %99 in 1 : vector<32x32xf32>, vector<32x32xf32>, vector<32x32xf32>, vector<32x32xf32>, vector<32x32xf32>, vector<32x32xf32>, vector<32x32xf32>, vector<32x32xf32>, vector<32x32xf32>, vector<32x32xf32>, vector<32x32xf32> -> vector<32x352xf32>
    %c2_58 = arith.constant 2 : index
    %c0_59 = arith.constant 0 : index
    %c0_60 = arith.constant 0 : index
    %101 = vector.load %arg4[%c2_58, %c0_59, %c0_60] : memref<5x352x16xf32, #tpu.memory_space<vmem>>, vector<1x352x16xf32>
    %102 = vector.shape_cast %101 : vector<1x352x16xf32> to vector<352x16xf32>
    %cst_61 = arith.constant dense<0.000000e+00> : vector<32x16xf32>
    %103 = tpu.matmul %100, %102, %cst_61 {dimension_numbers = #tpu.dot_dimension_numbers<[1], [0], [0], [1], [0, 0, 1, 1], [], []>} : vector<32x352xf32>, vector<352x16xf32>, vector<32x16xf32> -> vector<32x16xf32>
    %c2_62 = arith.constant 2 : index
    %c0_63 = arith.constant 0 : index
    %c0_64 = arith.constant 0 : index
    %104 = vector.load %arg5[%c2_62, %c0_63, %c0_64] : memref<5x1x16xf32, #tpu.memory_space<vmem>>, vector<1x1x16xf32>
    %105 = vector.shape_cast %104 : vector<1x1x16xf32> to vector<1x16xf32>
    %106 = vector.broadcast %105 : vector<1x16xf32> to vector<32x16xf32>
    %107 = arith.addf %103, %106 : vector<32x16xf32>
    %c2_65 = arith.constant 2 : index
    %c0_66 = arith.constant 0 : index
    %c0_67 = arith.constant 0 : index
    %108 = vector.load %arg6[%c2_65, %c0_66, %c0_67] : memref<5x32x16xf32, #tpu.memory_space<vmem>>, vector<1x32x16xf32>
    %109 = vector.shape_cast %108 : vector<1x32x16xf32> to vector<32x16xf32>
    %cst_68 = arith.constant dense<0.000000e+00> : vector<32x16xf32>
    %110 = tpu.matmul %85, %109, %cst_68 {dimension_numbers = #tpu.dot_dimension_numbers<[1], [0], [0], [1], [0, 0, 1, 1], [], []>} : vector<32x32xf32>, vector<32x16xf32>, vector<32x16xf32> -> vector<32x16xf32>
    %c2_69 = arith.constant 2 : index
    %c0_70 = arith.constant 0 : index
    %c0_71 = arith.constant 0 : index
    %111 = vector.load %arg7[%c2_69, %c0_70, %c0_71] : memref<5x1x16xf32, #tpu.memory_space<vmem>>, vector<1x1x16xf32>
    %112 = vector.shape_cast %111 : vector<1x1x16xf32> to vector<1x16xf32>
    %113 = vector.broadcast %112 : vector<1x16xf32> to vector<32x16xf32>
    %114 = arith.addf %110, %113 : vector<32x16xf32>
    %115 = math.tanh %114 : vector<32x16xf32>
    %c2_72 = arith.constant 2 : index
    %c0_73 = arith.constant 0 : index
    %c0_74 = arith.constant 0 : index
    %116 = vector.load %arg8[%c2_72, %c0_73, %c0_74] : memref<5x32x16xf32, #tpu.memory_space<vmem>>, vector<1x32x16xf32>
    %117 = vector.shape_cast %116 : vector<1x32x16xf32> to vector<32x16xf32>
    %cst_75 = arith.constant dense<0.000000e+00> : vector<32x16xf32>
    %118 = tpu.matmul %85, %117, %cst_75 {dimension_numbers = #tpu.dot_dimension_numbers<[1], [0], [0], [1], [0, 0, 1, 1], [], []>} : vector<32x32xf32>, vector<32x16xf32>, vector<32x16xf32> -> vector<32x16xf32>
    %c2_76 = arith.constant 2 : index
    %c0_77 = arith.constant 0 : index
    %c0_78 = arith.constant 0 : index
    %119 = vector.load %arg9[%c2_76, %c0_77, %c0_78] : memref<5x1x16xf32, #tpu.memory_space<vmem>>, vector<1x1x16xf32>
    %120 = vector.shape_cast %119 : vector<1x1x16xf32> to vector<1x16xf32>
    %121 = vector.broadcast %120 : vector<1x16xf32> to vector<32x16xf32>
    %122 = arith.addf %118, %121 : vector<32x16xf32>
    %123 = math.tanh %122 : vector<32x16xf32>
    %cst_79 = arith.constant 0.000000e+00 : f32
    %124 = vector.broadcast %cst_79 : f32 to vector<32x16xf32>
    %125 = arith.maximumf %107, %124 : vector<32x16xf32>
    %126 = arith.mulf %115, %123 : vector<32x16xf32>
    %127 = tpu.concatenate %125, %126 in 1 : vector<32x16xf32>, vector<32x16xf32> -> vector<32x32xf32>
    %c0_80 = arith.constant 0 : index
    %c3 = arith.constant 3 : index
    %c0_81 = arith.constant 0 : index
    %c0_82 = arith.constant 0 : index
    %128 = vector.load %arg1[%c0_80, %c3, %c0_81, %c0_82] : memref<1x5x352x32xf32, #tpu.memory_space<vmem>>, vector<1x1x352x32xf32>
    %129 = vector.shape_cast %128 : vector<1x1x352x32xf32> to vector<352x32xf32>
    %cst_83 = arith.constant dense<0.000000e+00> : vector<352x32xf32>
    %130 = tpu.matmul %129, %127, %cst_83 {dimension_numbers = #tpu.dot_dimension_numbers<[1], [0], [0], [1], [0, 0, 1, 1], [], []>} : vector<352x32xf32>, vector<32x32xf32>, vector<352x32xf32> -> vector<352x32xf32>
    %131 = vector.extract_strided_slice %130 {offsets = [0, 0], sizes = [32, 32], strides = [1, 1]} : vector<352x32xf32> to vector<32x32xf32>
    %132 = vector.extract_strided_slice %130 {offsets = [32, 0], sizes = [32, 32], strides = [1, 1]} : vector<352x32xf32> to vector<32x32xf32>
    %133 = vector.extract_strided_slice %130 {offsets = [64, 0], sizes = [32, 32], strides = [1, 1]} : vector<352x32xf32> to vector<32x32xf32>
    %134 = vector.extract_strided_slice %130 {offsets = [96, 0], sizes = [32, 32], strides = [1, 1]} : vector<352x32xf32> to vector<32x32xf32>
    %135 = vector.extract_strided_slice %130 {offsets = [128, 0], sizes = [32, 32], strides = [1, 1]} : vector<352x32xf32> to vector<32x32xf32>
    %136 = vector.extract_strided_slice %130 {offsets = [160, 0], sizes = [32, 32], strides = [1, 1]} : vector<352x32xf32> to vector<32x32xf32>
    %137 = vector.extract_strided_slice %130 {offsets = [192, 0], sizes = [32, 32], strides = [1, 1]} : vector<352x32xf32> to vector<32x32xf32>
    %138 = vector.extract_strided_slice %130 {offsets = [224, 0], sizes = [32, 32], strides = [1, 1]} : vector<352x32xf32> to vector<32x32xf32>
    %139 = vector.extract_strided_slice %130 {offsets = [256, 0], sizes = [32, 32], strides = [1, 1]} : vector<352x32xf32> to vector<32x32xf32>
    %140 = vector.extract_strided_slice %130 {offsets = [288, 0], sizes = [32, 32], strides = [1, 1]} : vector<352x32xf32> to vector<32x32xf32>
    %141 = vector.extract_strided_slice %130 {offsets = [320, 0], sizes = [32, 32], strides = [1, 1]} : vector<352x32xf32> to vector<32x32xf32>
    %142 = tpu.concatenate %131, %132, %133, %134, %135, %136, %137, %138, %139, %140, %141 in 1 : vector<32x32xf32>, vector<32x32xf32>, vector<32x32xf32>, vector<32x32xf32>, vector<32x32xf32>, vector<32x32xf32>, vector<32x32xf32>, vector<32x32xf32>, vector<32x32xf32>, vector<32x32xf32>, vector<32x32xf32> -> vector<32x352xf32>
    %c3_84 = arith.constant 3 : index
    %c0_85 = arith.constant 0 : index
    %c0_86 = arith.constant 0 : index
    %143 = vector.load %arg4[%c3_84, %c0_85, %c0_86] : memref<5x352x16xf32, #tpu.memory_space<vmem>>, vector<1x352x16xf32>
    %144 = vector.shape_cast %143 : vector<1x352x16xf32> to vector<352x16xf32>
    %cst_87 = arith.constant dense<0.000000e+00> : vector<32x16xf32>
    %145 = tpu.matmul %142, %144, %cst_87 {dimension_numbers = #tpu.dot_dimension_numbers<[1], [0], [0], [1], [0, 0, 1, 1], [], []>} : vector<32x352xf32>, vector<352x16xf32>, vector<32x16xf32> -> vector<32x16xf32>
    %c3_88 = arith.constant 3 : index
    %c0_89 = arith.constant 0 : index
    %c0_90 = arith.constant 0 : index
    %146 = vector.load %arg5[%c3_88, %c0_89, %c0_90] : memref<5x1x16xf32, #tpu.memory_space<vmem>>, vector<1x1x16xf32>
    %147 = vector.shape_cast %146 : vector<1x1x16xf32> to vector<1x16xf32>
    %148 = vector.broadcast %147 : vector<1x16xf32> to vector<32x16xf32>
    %149 = arith.addf %145, %148 : vector<32x16xf32>
    %c3_91 = arith.constant 3 : index
    %c0_92 = arith.constant 0 : index
    %c0_93 = arith.constant 0 : index
    %150 = vector.load %arg6[%c3_91, %c0_92, %c0_93] : memref<5x32x16xf32, #tpu.memory_space<vmem>>, vector<1x32x16xf32>
    %151 = vector.shape_cast %150 : vector<1x32x16xf32> to vector<32x16xf32>
    %cst_94 = arith.constant dense<0.000000e+00> : vector<32x16xf32>
    %152 = tpu.matmul %127, %151, %cst_94 {dimension_numbers = #tpu.dot_dimension_numbers<[1], [0], [0], [1], [0, 0, 1, 1], [], []>} : vector<32x32xf32>, vector<32x16xf32>, vector<32x16xf32> -> vector<32x16xf32>
    %c3_95 = arith.constant 3 : index
    %c0_96 = arith.constant 0 : index
    %c0_97 = arith.constant 0 : index
    %153 = vector.load %arg7[%c3_95, %c0_96, %c0_97] : memref<5x1x16xf32, #tpu.memory_space<vmem>>, vector<1x1x16xf32>
    %154 = vector.shape_cast %153 : vector<1x1x16xf32> to vector<1x16xf32>
    %155 = vector.broadcast %154 : vector<1x16xf32> to vector<32x16xf32>
    %156 = arith.addf %152, %155 : vector<32x16xf32>
    %157 = math.tanh %156 : vector<32x16xf32>
    %c3_98 = arith.constant 3 : index
    %c0_99 = arith.constant 0 : index
    %c0_100 = arith.constant 0 : index
    %158 = vector.load %arg8[%c3_98, %c0_99, %c0_100] : memref<5x32x16xf32, #tpu.memory_space<vmem>>, vector<1x32x16xf32>
    %159 = vector.shape_cast %158 : vector<1x32x16xf32> to vector<32x16xf32>
    %cst_101 = arith.constant dense<0.000000e+00> : vector<32x16xf32>
    %160 = tpu.matmul %127, %159, %cst_101 {dimension_numbers = #tpu.dot_dimension_numbers<[1], [0], [0], [1], [0, 0, 1, 1], [], []>} : vector<32x32xf32>, vector<32x16xf32>, vector<32x16xf32> -> vector<32x16xf32>
    %c3_102 = arith.constant 3 : index
    %c0_103 = arith.constant 0 : index
    %c0_104 = arith.constant 0 : index
    %161 = vector.load %arg9[%c3_102, %c0_103, %c0_104] : memref<5x1x16xf32, #tpu.memory_space<vmem>>, vector<1x1x16xf32>
    %162 = vector.shape_cast %161 : vector<1x1x16xf32> to vector<1x16xf32>
    %163 = vector.broadcast %162 : vector<1x16xf32> to vector<32x16xf32>
    %164 = arith.addf %160, %163 : vector<32x16xf32>
    %165 = math.tanh %164 : vector<32x16xf32>
    %cst_105 = arith.constant 0.000000e+00 : f32
    %166 = vector.broadcast %cst_105 : f32 to vector<32x16xf32>
    %167 = arith.maximumf %149, %166 : vector<32x16xf32>
    %168 = arith.mulf %157, %165 : vector<32x16xf32>
    %169 = tpu.concatenate %167, %168 in 1 : vector<32x16xf32>, vector<32x16xf32> -> vector<32x32xf32>
    %c0_106 = arith.constant 0 : index
    %c4 = arith.constant 4 : index
    %c0_107 = arith.constant 0 : index
    %c0_108 = arith.constant 0 : index
    %170 = vector.load %arg1[%c0_106, %c4, %c0_107, %c0_108] : memref<1x5x352x32xf32, #tpu.memory_space<vmem>>, vector<1x1x352x32xf32>
    %171 = vector.shape_cast %170 : vector<1x1x352x32xf32> to vector<352x32xf32>
    %cst_109 = arith.constant dense<0.000000e+00> : vector<352x32xf32>
    %172 = tpu.matmul %171, %169, %cst_109 {dimension_numbers = #tpu.dot_dimension_numbers<[1], [0], [0], [1], [0, 0, 1, 1], [], []>} : vector<352x32xf32>, vector<32x32xf32>, vector<352x32xf32> -> vector<352x32xf32>
    %173 = vector.extract_strided_slice %172 {offsets = [0, 0], sizes = [32, 32], strides = [1, 1]} : vector<352x32xf32> to vector<32x32xf32>
    %174 = vector.extract_strided_slice %172 {offsets = [32, 0], sizes = [32, 32], strides = [1, 1]} : vector<352x32xf32> to vector<32x32xf32>
    %175 = vector.extract_strided_slice %172 {offsets = [64, 0], sizes = [32, 32], strides = [1, 1]} : vector<352x32xf32> to vector<32x32xf32>
    %176 = vector.extract_strided_slice %172 {offsets = [96, 0], sizes = [32, 32], strides = [1, 1]} : vector<352x32xf32> to vector<32x32xf32>
    %177 = vector.extract_strided_slice %172 {offsets = [128, 0], sizes = [32, 32], strides = [1, 1]} : vector<352x32xf32> to vector<32x32xf32>
    %178 = vector.extract_strided_slice %172 {offsets = [160, 0], sizes = [32, 32], strides = [1, 1]} : vector<352x32xf32> to vector<32x32xf32>
    %179 = vector.extract_strided_slice %172 {offsets = [192, 0], sizes = [32, 32], strides = [1, 1]} : vector<352x32xf32> to vector<32x32xf32>
    %180 = vector.extract_strided_slice %172 {offsets = [224, 0], sizes = [32, 32], strides = [1, 1]} : vector<352x32xf32> to vector<32x32xf32>
    %181 = vector.extract_strided_slice %172 {offsets = [256, 0], sizes = [32, 32], strides = [1, 1]} : vector<352x32xf32> to vector<32x32xf32>
    %182 = vector.extract_strided_slice %172 {offsets = [288, 0], sizes = [32, 32], strides = [1, 1]} : vector<352x32xf32> to vector<32x32xf32>
    %183 = vector.extract_strided_slice %172 {offsets = [320, 0], sizes = [32, 32], strides = [1, 1]} : vector<352x32xf32> to vector<32x32xf32>
    %184 = tpu.concatenate %173, %174, %175, %176, %177, %178, %179, %180, %181, %182, %183 in 1 : vector<32x32xf32>, vector<32x32xf32>, vector<32x32xf32>, vector<32x32xf32>, vector<32x32xf32>, vector<32x32xf32>, vector<32x32xf32>, vector<32x32xf32>, vector<32x32xf32>, vector<32x32xf32>, vector<32x32xf32> -> vector<32x352xf32>
    %c4_110 = arith.constant 4 : index
    %c0_111 = arith.constant 0 : index
    %c0_112 = arith.constant 0 : index
    %185 = vector.load %arg4[%c4_110, %c0_111, %c0_112] : memref<5x352x16xf32, #tpu.memory_space<vmem>>, vector<1x352x16xf32>
    %186 = vector.shape_cast %185 : vector<1x352x16xf32> to vector<352x16xf32>
    %cst_113 = arith.constant dense<0.000000e+00> : vector<32x16xf32>
    %187 = tpu.matmul %184, %186, %cst_113 {dimension_numbers = #tpu.dot_dimension_numbers<[1], [0], [0], [1], [0, 0, 1, 1], [], []>} : vector<32x352xf32>, vector<352x16xf32>, vector<32x16xf32> -> vector<32x16xf32>
    %c4_114 = arith.constant 4 : index
    %c0_115 = arith.constant 0 : index
    %c0_116 = arith.constant 0 : index
    %188 = vector.load %arg5[%c4_114, %c0_115, %c0_116] : memref<5x1x16xf32, #tpu.memory_space<vmem>>, vector<1x1x16xf32>
    %189 = vector.shape_cast %188 : vector<1x1x16xf32> to vector<1x16xf32>
    %190 = vector.broadcast %189 : vector<1x16xf32> to vector<32x16xf32>
    %191 = arith.addf %187, %190 : vector<32x16xf32>
    %c4_117 = arith.constant 4 : index
    %c0_118 = arith.constant 0 : index
    %c0_119 = arith.constant 0 : index
    %192 = vector.load %arg6[%c4_117, %c0_118, %c0_119] : memref<5x32x16xf32, #tpu.memory_space<vmem>>, vector<1x32x16xf32>
    %193 = vector.shape_cast %192 : vector<1x32x16xf32> to vector<32x16xf32>
    %cst_120 = arith.constant dense<0.000000e+00> : vector<32x16xf32>
    %194 = tpu.matmul %169, %193, %cst_120 {dimension_numbers = #tpu.dot_dimension_numbers<[1], [0], [0], [1], [0, 0, 1, 1], [], []>} : vector<32x32xf32>, vector<32x16xf32>, vector<32x16xf32> -> vector<32x16xf32>
    %c4_121 = arith.constant 4 : index
    %c0_122 = arith.constant 0 : index
    %c0_123 = arith.constant 0 : index
    %195 = vector.load %arg7[%c4_121, %c0_122, %c0_123] : memref<5x1x16xf32, #tpu.memory_space<vmem>>, vector<1x1x16xf32>
    %196 = vector.shape_cast %195 : vector<1x1x16xf32> to vector<1x16xf32>
    %197 = vector.broadcast %196 : vector<1x16xf32> to vector<32x16xf32>
    %198 = arith.addf %194, %197 : vector<32x16xf32>
    %199 = math.tanh %198 : vector<32x16xf32>
    %c4_124 = arith.constant 4 : index
    %c0_125 = arith.constant 0 : index
    %c0_126 = arith.constant 0 : index
    %200 = vector.load %arg8[%c4_124, %c0_125, %c0_126] : memref<5x32x16xf32, #tpu.memory_space<vmem>>, vector<1x32x16xf32>
    %201 = vector.shape_cast %200 : vector<1x32x16xf32> to vector<32x16xf32>
    %cst_127 = arith.constant dense<0.000000e+00> : vector<32x16xf32>
    %202 = tpu.matmul %169, %201, %cst_127 {dimension_numbers = #tpu.dot_dimension_numbers<[1], [0], [0], [1], [0, 0, 1, 1], [], []>} : vector<32x32xf32>, vector<32x16xf32>, vector<32x16xf32> -> vector<32x16xf32>
    %c4_128 = arith.constant 4 : index
    %c0_129 = arith.constant 0 : index
    %c0_130 = arith.constant 0 : index
    %203 = vector.load %arg9[%c4_128, %c0_129, %c0_130] : memref<5x1x16xf32, #tpu.memory_space<vmem>>, vector<1x1x16xf32>
    %204 = vector.shape_cast %203 : vector<1x1x16xf32> to vector<1x16xf32>
    %205 = vector.broadcast %204 : vector<1x16xf32> to vector<32x16xf32>
    %206 = arith.addf %202, %205 : vector<32x16xf32>
    %207 = math.tanh %206 : vector<32x16xf32>
    %cst_131 = arith.constant 0.000000e+00 : f32
    %208 = vector.broadcast %cst_131 : f32 to vector<32x16xf32>
    %209 = arith.maximumf %191, %208 : vector<32x16xf32>
    %210 = arith.mulf %199, %207 : vector<32x16xf32>
    %211 = tpu.concatenate %209, %210 in 1 : vector<32x16xf32>, vector<32x16xf32> -> vector<32x32xf32>
    %c0_132 = arith.constant 0 : index
    %c0_133 = arith.constant 0 : index
    %c0_134 = arith.constant 0 : index
    %212 = vector.load %arg3[%c0_132, %c0_133, %c0_134] : memref<1x32x1xf32, #tpu.memory_space<vmem>>, vector<1x32x1xf32>
    %213 = vector.shape_cast %212 : vector<1x32x1xf32> to vector<32x1xf32>
    %214 = vector.broadcast %213 : vector<32x1xf32> to vector<32x32xf32>
    %215 = arith.mulf %211, %214 : vector<32x32xf32>
    %c0_135 = arith.constant 0 : index
    %c0_136 = arith.constant 0 : index
    %216 = vector.load %arg10[%c0_135, %c0_136] : memref<32x32xf32, #tpu.memory_space<vmem>>, vector<32x32xf32>
    %cst_137 = arith.constant dense<0.000000e+00> : vector<32x32xf32>
    %217 = tpu.matmul %215, %216, %cst_137 {dimension_numbers = #tpu.dot_dimension_numbers<[1], [0], [0], [1], [0, 0, 1, 1], [], []>} : vector<32x32xf32>, vector<32x32xf32>, vector<32x32xf32> -> vector<32x32xf32>
    %cst_138 = arith.constant dense<0.000000e+00> : vector<32xf32>
    %218 = vector.multi_reduction <add>, %217, %cst_138 [0] : vector<32x32xf32> to vector<32xf32>
    %219 = vector.shape_cast %218 : vector<32xf32> to vector<1x32xf32>
    %c0_139 = arith.constant 0 : index
    %c0_140 = arith.constant 0 : index
    %220 = vector.load %arg11[%c0_139, %c0_140] : memref<1x32xf32, #tpu.memory_space<vmem>>, vector<1x32xf32>
    %221 = arith.addf %219, %220 : vector<1x32xf32>
    %cst_141 = arith.constant 0.000000e+00 : f32
    %222 = vector.broadcast %cst_141 : f32 to vector<1x32xf32>
    %223 = arith.maximumf %221, %222 : vector<1x32xf32>
    %c0_142 = arith.constant 0 : index
    %c0_143 = arith.constant 0 : index
    %224 = vector.load %arg12[%c0_142, %c0_143] : memref<1x32xf32, #tpu.memory_space<vmem>>, vector<1x32xf32>
    %225 = arith.mulf %223, %224 : vector<1x32xf32>
    %cst_144 = arith.constant dense<0.000000e+00> : vector<1xf32>
    %226 = vector.multi_reduction <add>, %225, %cst_144 [1] : vector<1x32xf32> to vector<1xf32>
    %227 = vector.shape_cast %226 : vector<1xf32> to vector<1x1xf32>
    %c0_145 = arith.constant 0 : index
    %c0_146 = arith.constant 0 : index
    %228 = vector.load %arg13[%c0_145, %c0_146] : memref<1x1xf32, #tpu.memory_space<vmem>>, vector<1x1xf32>
    %229 = arith.addf %227, %228 : vector<1x1xf32>
    %c0_147 = arith.constant 0 : index
    %c0_148 = arith.constant 0 : index
    %c0_149 = arith.constant 0 : index
    %230 = vector.load %arg14[%c0_147, %c0_148, %c0_149] : memref<1x1x1xf32, #tpu.memory_space<vmem>>, vector<1x1x1xf32>
    %231 = vector.shape_cast %230 : vector<1x1x1xf32> to vector<1x1xf32>
    %232 = vector.shape_cast %229 : vector<1x1xf32> to vector<1x1x1xf32>
    tpu.vector_store %arg14[%c0_147, %c0_148, %c0_149], %232 {strides = array<i32>} : memref<1x1x1xf32, #tpu.memory_space<vmem>>, vector<1x1x1xf32>,
    return
  }
  func.func @transform_0(%arg0: i32) -> (i32, i32, i32, i32) {
    %c0_i32 = arith.constant 0 : i32
    %c0_i32_0 = arith.constant 0 : i32
    %c0_i32_1 = arith.constant 0 : i32
    %c0_i32_2 = arith.constant 0 : i32
    return %arg0, %c0_i32, %c0_i32_0, %c0_i32_1 : i32, i32, i32, i32
  }
  func.func @transform_1(%arg0: i32) -> (i32, i32, i32) {
    %c0_i32 = arith.constant 0 : i32
    %c0_i32_0 = arith.constant 0 : i32
    %c0_i32_1 = arith.constant 0 : i32
    return %arg0, %c0_i32, %c0_i32_0 : i32, i32, i32
  }
  func.func @transform_2(%arg0: i32) -> (i32, i32, i32) {
    %c0_i32 = arith.constant 0 : i32
    %c0_i32_0 = arith.constant 0 : i32
    %c0_i32_1 = arith.constant 0 : i32
    return %arg0, %c0_i32, %c0_i32_0 : i32, i32, i32
  }
  func.func @transform_3(%arg0: i32) -> (i32, i32, i32) {
    %c0_i32 = arith.constant 0 : i32
    %c0_i32_0 = arith.constant 0 : i32
    %c0_i32_1 = arith.constant 0 : i32
    %c0_i32_2 = arith.constant 0 : i32
    return %c0_i32, %c0_i32_0, %c0_i32_1 : i32, i32, i32
  }
  func.func @transform_4(%arg0: i32) -> (i32, i32, i32) {
    %c0_i32 = arith.constant 0 : i32
    %c0_i32_0 = arith.constant 0 : i32
    %c0_i32_1 = arith.constant 0 : i32
    %c0_i32_2 = arith.constant 0 : i32
    return %c0_i32, %c0_i32_0, %c0_i32_1 : i32, i32, i32
  }
  func.func @transform_5(%arg0: i32) -> (i32, i32, i32) {
    %c0_i32 = arith.constant 0 : i32
    %c0_i32_0 = arith.constant 0 : i32
    %c0_i32_1 = arith.constant 0 : i32
    %c0_i32_2 = arith.constant 0 : i32
    return %c0_i32, %c0_i32_0, %c0_i32_1 : i32, i32, i32
  }
  func.func @transform_6(%arg0: i32) -> (i32, i32, i32) {
    %c0_i32 = arith.constant 0 : i32
    %c0_i32_0 = arith.constant 0 : i32
    %c0_i32_1 = arith.constant 0 : i32
    %c0_i32_2 = arith.constant 0 : i32
    return %c0_i32, %c0_i32_0, %c0_i32_1 : i32, i32, i32
  }
  func.func @transform_7(%arg0: i32) -> (i32, i32, i32) {
    %c0_i32 = arith.constant 0 : i32
    %c0_i32_0 = arith.constant 0 : i32
    %c0_i32_1 = arith.constant 0 : i32
    %c0_i32_2 = arith.constant 0 : i32
    return %c0_i32, %c0_i32_0, %c0_i32_1 : i32, i32, i32
  }
  func.func @transform_8(%arg0: i32) -> (i32, i32, i32) {
    %c0_i32 = arith.constant 0 : i32
    %c0_i32_0 = arith.constant 0 : i32
    %c0_i32_1 = arith.constant 0 : i32
    %c0_i32_2 = arith.constant 0 : i32
    return %c0_i32, %c0_i32_0, %c0_i32_1 : i32, i32, i32
  }
  func.func @transform_9(%arg0: i32) -> (i32, i32) {
    %c0_i32 = arith.constant 0 : i32
    %c0_i32_0 = arith.constant 0 : i32
    %c0_i32_1 = arith.constant 0 : i32
    return %c0_i32, %c0_i32_0 : i32, i32
  }
  func.func @transform_10(%arg0: i32) -> (i32, i32) {
    %c0_i32 = arith.constant 0 : i32
    %c0_i32_0 = arith.constant 0 : i32
    %c0_i32_1 = arith.constant 0 : i32
    return %c0_i32, %c0_i32_0 : i32, i32
  }
  func.func @transform_11(%arg0: i32) -> (i32, i32) {
    %c0_i32 = arith.constant 0 : i32
    %c0_i32_0 = arith.constant 0 : i32
    %c0_i32_1 = arith.constant 0 : i32
    return %c0_i32, %c0_i32_0 : i32, i32
  }
  func.func @transform_12(%arg0: i32) -> (i32, i32) {
    %c0_i32 = arith.constant 0 : i32
    %c0_i32_0 = arith.constant 0 : i32
    %c0_i32_1 = arith.constant 0 : i32
    return %c0_i32, %c0_i32_0 : i32, i32
  }
  func.func @transform_13(%arg0: i32) -> (i32, i32, i32) {
    %c0_i32 = arith.constant 0 : i32
    %c0_i32_0 = arith.constant 0 : i32
    %c0_i32_1 = arith.constant 0 : i32
    return %arg0, %c0_i32, %c0_i32_0 : i32, i32, i32
  }
}

</mosaic_0001>

<bundles_post_ra>
// kernel: gnnml3_forward.2
= control target key start
LH: loop header
LB: loop body
LE: loop exit
PB: predicated region body
PF: predicated region fallthrough
CT: control target
= control target key end

     0   :  { %s3078_s18 = smov 0   ;;  %s4930_s0 = inlined_call_operand.vmem [shape: f32[2,11,1024], index: 0, kind: input, shape index: {}]   ;;  %s4931_s1 = inlined_call_operand.vmem [shape: f32[110,11], index: 1, kind: input, shape index: {}]   ;;  %s4932_s2 = inlined_call_operand.vmem [shape: f32[110,11], index: 2, kind: input, shape index: {}]   ;;  %s4933_s3 = inlined_call_operand.vmem [shape: f32[55,110], index: 3, kind: input, shape index: {}]   ;;  %s4934_s4 = inlined_call_operand.vmem [shape: f32[55,110], index: 4, kind: input, shape index: {}]   ;;  %s4935_s5 = inlined_call_operand.vmem [shape: f32[2,55,1024], index: 5, kind: output, shape index: {}]  }
   0x1 LB: > { %s2428_s19 = sadd.s32 4294967295, %s3046_s18   ;;  %p2432_p0 = scmp.ge.s32.totalorder %s3046_s18, 1  ;;  %s3046_s18 = sphi %s3078_s18, %s15_s18  }
   0x2   : > { %p187_p1 = scmp.lt.s32.totalorder %s3046_s18, 3 }
   0x4   : > { %p188_p2 = pnand %p2432_p0, %p187_p1 }
   0x6   : > { %191 = sbr.rel (%p188_p2) target bundleno = 942 (0x3ae), region = 40 }
   0xb   : > { %p215_p3 = scmp.lt.s32.totalorder %s2428_s19, 1  ;;  %vm298_vm0 = vcmask 1042432   ;;  %v3119_v8 = vld [vmem:[%s4931_s1] sm:$0xff]  ;;  %vm255_vm1 = vcmask 89088   ;;  %v3144_v11 = vld [vmem:[%s4931_s1 + $0x8] sm:$0xff]  ;;  %v3167_v14 = vld [vmem:[%s4931_s1 + $0x10] sm:$0xff] }
   0xc   : > { %v3180_v15 = vld [vmem:[%s4931_s1 + $0x18] sm:$0xff]  ;;  %v3193_v16 = vld [vmem:[%s4931_s1 + $0x20] sm:$0xff]  ;;  %v3206_v17 = vld [vmem:[%s4931_s1 + $0x28] sm:$0xff]  ;;  %vm1583_vm2 = vcmask 1045504   ;;  %vm1561_vm3 = vcmask 900096  }
   0xd   : > { %s5185_s19 = smov (!%p215_p3, %s2428_s19), 1  ;;  %v3219_v18 = vld [vmem:[%s4931_s1 + $0x30] sm:$0xff]  ;;  %v3236_v21 = vld [vmem:[%s4931_s1 + $0x38] sm:$0xff]  ;;  %v3249_v22 = vld [vmem:[%s4931_s1 + $0x40] sm:$0xff] }
   0xe   : > { %s2806_s20 = sshll.u32 %s5185_s19, 7  ;;  %v3268_v25 = vld [vmem:[%s4931_s1 + $0x48] sm:$0xff]  ;;  %v3283_v26 = vld [vmem:[%s4931_s1 + $0x50] sm:$0xff]  ;;  %v3296_v27 = vld [vmem:[%s4931_s1 + $0x58] sm:$0xff]  ;;  %s2807_s14 = smul.u32 448, %s5185_s19 }
   0xf   : > { %s3092_s23 = scalar_lea.vmem %s4930_s0, %s2806_s20  ;;  %v3309_v28 = vld [vmem:[%s4931_s1 + $0x60] sm:$0xff]  ;;  %v3322_v29 = vld [vmem:[%s4931_s1 + $0x68] sm:$0x3f] }
  0x10   : > { %v3095_v0 = vld [vmem:[%s3092_s23 + $0x40] sm:$0x7]  ;;  %v3098_v1 = vld [vmem:[%s3092_s23 + $0x48] sm:$0x7]  ;;  %v235_v2 = vld [vmem:[%s3092_s23 + $0x50] sm:$0x7]  ;;  %s4811_s17 = scalar_lea.vmem %s4935_s5, %s2807_s14 }
  0x11   : > { %2436 = vmatpush.msk.msra.mxu0 %vm298_vm0, %v3095_v0  ;;  %2451 = vmatpush.msk.msra.mxu1 %vm298_vm0, %v3098_v1  ;;  %v236_v3 = vld [vmem:[%s3092_s23 + $0x58] sm:$0x7]  ;;  %v3107_v4 = vld [vmem:[%s3092_s23] sm:$0xff]  ;;  %v3110_v5 = vld [vmem:[%s3092_s23 + $0x8] sm:$0xff] }
  0x12   : > { %2466 = vmatpush.msk.msra.mxu2 %vm298_vm0, %v235_v2  ;;  %2481 = vmatpush.msk.msra.mxu3 %vm298_vm0, %v236_v3  ;;  %v227_v6 = vld [vmem:[%s3092_s23 + $0x10] sm:$0xff]  ;;  %v228_v7 = vld [vmem:[%s3092_s23 + $0x18] sm:$0xff]  ;;  %v3155_v12 = vld [vmem:[%s3092_s23 + $0x60] sm:$0x7] }
  0x13   : > { %338 = vmatpush.msra.mxu0 %v3107_v4  ;;  %397 = vmatpush.msra.mxu1 %v3110_v5  ;;  %v3124_v9 = vld [vmem:[%s3092_s23 + $0x70] sm:$0x7]  ;;  %v3127_v10 = vld [vmem:[%s3092_s23 + $0x78] sm:$0x7]  ;;  %v3158_v13 = vld [vmem:[%s3092_s23 + $0x68] sm:$0x7] }
  0x14   : > { %456 = vmatpush.msra.mxu2 %v227_v6  ;;  %515 = vmatpush.msra.mxu3 %v228_v7  ;;  %v231_v19 = vld [vmem:[%s3092_s23 + $0x30] sm:$0xff]  ;;  %v232_v20 = vld [vmem:[%s3092_s23 + $0x38] sm:$0xff]  ;;  %v229_v23 = vld [vmem:[%s3092_s23 + $0x20] sm:$0xff] }
  0x15   : > { %2437 = vmatmul.msk.f32.vlgmr.msra.gmra.mxu0 %vm255_vm1, %v3119_v8  ;;  %2452 = vmatmul.msk.f32.vlgmr.msra.gmra.mxu1 %vm255_vm1, %v3119_v8  ;;  %v230_v24 = vld [vmem:[%s3092_s23 + $0x28] sm:$0xff] }
  0x16   : > { %2467 = vmatmul.msk.f32.vlgmr.msra.gmra.mxu2 %vm255_vm1, %v3119_v8  ;;  %2482 = vmatmul.msk.f32.vlgmr.msra.gmra.mxu3 %vm255_vm1, %v3119_v8 }
  0x17   : > { %2526 = vmatpush.msk.msrb.mxu2 %vm298_vm0, %v3124_v9  ;;  %2541 = vmatpush.msk.msrb.mxu3 %vm298_vm0, %v3127_v10 }
  0x18   : > { %2496 = vmatpush.msk.msrb.mxu0 %vm298_vm0, %v3155_v12  ;;  %2511 = vmatpush.msk.msrb.mxu1 %vm298_vm0, %v3158_v13 }
  0x19   : > { %692 = vmatpush.msrb.mxu2 %v231_v19  ;;  %751 = vmatpush.msrb.mxu3 %v232_v20 }
  0x1a   : > { %574 = vmatpush.msrb.mxu0 %v229_v23  ;;  %633 = vmatpush.msrb.mxu1 %v230_v24 }
  0x1b   : > { %2586 = vmatpush.msk.msra.mxu2 %vm298_vm0, %v235_v2  ;;  %2601 = vmatpush.msk.msra.mxu3 %vm298_vm0, %v236_v3 }
  0x1c   : > { %2556 = vmatpush.msk.msra.mxu0 %vm298_vm0, %v3095_v0  ;;  %2571 = vmatpush.msk.msra.mxu1 %vm298_vm0, %v3098_v1 }
  0x1d   : > { %2438 = vmatmul.msk.f32.gmra.mxu0 %vm255_vm1, %v3144_v11  ;;  %2453 = vmatmul.msk.f32.gmra.mxu1 %vm255_vm1, %v3144_v11 }
  0x1e   : > { %2468 = vmatmul.msk.f32.gmra.mxu2 %vm255_vm1, %v3144_v11  ;;  %2483 = vmatmul.msk.f32.gmra.mxu3 %vm255_vm1, %v3144_v11 }
  0x1f   : > { %1096 = vmatpush.msra.mxu2 %v227_v6  ;;  %1155 = vmatpush.msra.mxu3 %v228_v7 }
  0x20   : > { %978 = vmatpush.msra.mxu0 %v3107_v4  ;;  %1037 = vmatpush.msra.mxu1 %v3110_v5 }
  0x25   : > { %2439 = vmatmul.msk.f32.gmra.mxu0 %vm255_vm1, %v3167_v14  ;;  %2454 = vmatmul.msk.f32.gmra.mxu1 %vm255_vm1, %v3167_v14 }
  0x26   : > { %2469 = vmatmul.msk.f32.gmra.mxu2 %vm255_vm1, %v3167_v14  ;;  %2484 = vmatmul.msk.f32.gmra.mxu3 %vm255_vm1, %v3167_v14 }
  0x2d   : > { %2440 = vmatmul.msk.f32.gmra.mxu0 %vm255_vm1, %v3180_v15  ;;  %2455 = vmatmul.msk.f32.gmra.mxu1 %vm255_vm1, %v3180_v15 }
  0x2e   : > { %2470 = vmatmul.msk.f32.gmra.mxu2 %vm255_vm1, %v3180_v15  ;;  %2485 = vmatmul.msk.f32.gmra.mxu3 %vm255_vm1, %v3180_v15 }
  0x35   : > { %2441 = vmatmul.msk.f32.gmra.mxu0 %vm255_vm1, %v3193_v16  ;;  %2456 = vmatmul.msk.f32.gmra.mxu1 %vm255_vm1, %v3193_v16 }
  0x36   : > { %2471 = vmatmul.msk.f32.gmra.mxu2 %vm255_vm1, %v3193_v16  ;;  %2486 = vmatmul.msk.f32.gmra.mxu3 %vm255_vm1, %v3193_v16 }
  0x3d   : > { %2442 = vmatmul.msk.f32.gmra.mxu0 %vm255_vm1, %v3206_v17  ;;  %2457 = vmatmul.msk.f32.gmra.mxu1 %vm255_vm1, %v3206_v17 }
  0x3e   : > { %2472 = vmatmul.msk.f32.gmra.mxu2 %vm255_vm1, %v3206_v17  ;;  %2487 = vmatmul.msk.f32.gmra.mxu3 %vm255_vm1, %v3206_v17 }
  0x45   : > { %2443 = vmatmul.msk.f32.gmra.mxu0 %vm255_vm1, %v3219_v18  ;;  %2458 = vmatmul.msk.f32.gmra.mxu1 %vm255_vm1, %v3219_v18 }
  0x46   : > { %2473 = vmatmul.msk.f32.gmra.mxu2 %vm255_vm1, %v3219_v18  ;;  %2488 = vmatmul.msk.f32.gmra.mxu3 %vm255_vm1, %v3219_v18 }
  0x4d   : > { %2444 = vmatmul.msk.f32.gmra.mxu0 %vm255_vm1, %v3236_v21  ;;  %2459 = vmatmul.msk.f32.gmra.mxu1 %vm255_vm1, %v3236_v21 }
  0x4e   : > { %2474 = vmatmul.msk.f32.gmra.mxu2 %vm255_vm1, %v3236_v21  ;;  %2489 = vmatmul.msk.f32.gmra.mxu3 %vm255_vm1, %v3236_v21 }
  0x55   : > { %2445 = vmatmul.msk.f32.gmra.mxu0 %vm255_vm1, %v3249_v22  ;;  %2460 = vmatmul.msk.f32.gmra.mxu1 %vm255_vm1, %v3249_v22 }
  0x56   : > { %2475 = vmatmul.msk.f32.gmra.mxu2 %vm255_vm1, %v3249_v22  ;;  %2490 = vmatmul.msk.f32.gmra.mxu3 %vm255_vm1, %v3249_v22 }
  0x5d   : > { %2446 = vmatmul.msk.f32.gmra.mxu0 %vm255_vm1, %v3268_v25  ;;  %2461 = vmatmul.msk.f32.gmra.mxu1 %vm255_vm1, %v3268_v25 }
  0x5e   : > { %2476 = vmatmul.msk.f32.gmra.mxu2 %vm255_vm1, %v3268_v25  ;;  %2491 = vmatmul.msk.f32.gmra.mxu3 %vm255_vm1, %v3268_v25 }
  0x65   : > { %2447 = vmatmul.msk.f32.gmra.mxu0 %vm255_vm1, %v3283_v26  ;;  %2462 = vmatmul.msk.f32.gmra.mxu1 %vm255_vm1, %v3283_v26 }
  0x66   : > { %2477 = vmatmul.msk.f32.gmra.mxu2 %vm255_vm1, %v3283_v26  ;;  %2492 = vmatmul.msk.f32.gmra.mxu3 %vm255_vm1, %v3283_v26 }
  0x6d   : > { %2448 = vmatmul.msk.f32.gmra.mxu0 %vm255_vm1, %v3296_v27  ;;  %2463 = vmatmul.msk.f32.gmra.mxu1 %vm255_vm1, %v3296_v27 }
  0x6e   : > { %2478 = vmatmul.msk.f32.gmra.mxu2 %vm255_vm1, %v3296_v27  ;;  %2493 = vmatmul.msk.f32.gmra.mxu3 %vm255_vm1, %v3296_v27 }
  0x75   : > { %2449 = vmatmul.msk.f32.gmra.mxu0 %vm255_vm1, %v3309_v28  ;;  %2464 = vmatmul.msk.f32.gmra.mxu1 %vm255_vm1, %v3309_v28 }
  0x76   : > { %2479 = vmatmul.msk.f32.gmra.mxu2 %vm255_vm1, %v3309_v28  ;;  %2494 = vmatmul.msk.f32.gmra.mxu3 %vm255_vm1, %v3309_v28 }
  0x7d   : > { %2450 = vmatmul.msk.f32.gmra.mxu0 %vm255_vm1, %v3322_v29  ;;  %2465 = vmatmul.msk.f32.gmra.mxu1 %vm255_vm1, %v3322_v29 }
  0x7e   : > { %2480 = vmatmul.msk.f32.gmra.mxu2 %vm255_vm1, %v3322_v29  ;;  %2495 = vmatmul.msk.f32.gmra.mxu3 %vm255_vm1, %v3322_v29 }
  0x85   : > { %2497 = vmatmul.msk.f32.vlgmr.msrb.gmra.mxu0 %vm255_vm1, %v3119_v8  ;;  %2512 = vmatmul.msk.f32.vlgmr.msrb.gmra.mxu1 %vm255_vm1, %v3119_v8 }
  0x86   : > { %2527 = vmatmul.msk.f32.vlgmr.msrb.gmra.mxu2 %vm255_vm1, %v3119_v8  ;;  %2542 = vmatmul.msk.f32.vlgmr.msrb.gmra.mxu3 %vm255_vm1, %v3119_v8 }
  0x87   : > { %2646 = vmatpush.msk.msrb.mxu2 %vm298_vm0, %v3124_v9  ;;  %2661 = vmatpush.msk.msrb.mxu3 %vm298_vm0, %v3127_v10 }
  0x88   : > { %2616 = vmatpush.msk.msrb.mxu0 %vm298_vm0, %v3155_v12  ;;  %2631 = vmatpush.msk.msrb.mxu1 %vm298_vm0, %v3158_v13 }
  0x89   : > { %1332 = vmatpush.msrb.mxu2 %v231_v19  ;;  %1391 = vmatpush.msrb.mxu3 %v232_v20 }
  0x8a   : > { %1214 = vmatpush.msrb.mxu0 %v229_v23  ;;  %1273 = vmatpush.msrb.mxu1 %v230_v24 }
  0x8d   : > { %2498 = vmatmul.msk.f32.gmra.mxu0 %vm255_vm1, %v3144_v11  ;;  %2513 = vmatmul.msk.f32.gmra.mxu1 %vm255_vm1, %v3144_v11 }
  0x8e   : > { %2528 = vmatmul.msk.f32.gmra.mxu2 %vm255_vm1, %v3144_v11  ;;  %2543 = vmatmul.msk.f32.gmra.mxu3 %vm255_vm1, %v3144_v11 }
  0x92   : > { %v3356_v30 = vpop.f32.mrf.mxu0  ;;  %v3358_v31 = vpop.f32.mrf.mxu1 }
  0x93   : > { %4948 = vst [vmem:[#allocation2_spill] sm:$0xff] %v3356_v30  ;;  %v3828_v30 = vld [vmem:[%s4932_s2 + $0x68] sm:$0x3f] }
  0x94   : > { %4949 = vst [vmem:[#allocation3_spill] sm:$0xff] %v3358_v31  ;;  %v3807_v31 = vld [vmem:[%s4932_s2 + $0x60] sm:$0xff] }
  0x95   : > { %2499 = vmatmul.msk.f32.gmra.mxu0 %vm255_vm1, %v3167_v14  ;;  %2514 = vmatmul.msk.f32.gmra.mxu1 %vm255_vm1, %v3167_v14 }
  0x96   : > { %2529 = vmatmul.msk.f32.gmra.mxu2 %vm255_vm1, %v3167_v14  ;;  %2544 = vmatmul.msk.f32.gmra.mxu3 %vm255_vm1, %v3167_v14 }
  0x99   : > { %v3368_v32 = vpop.f32.mrf.mxu2  ;;  %v3370_v33 = vpop.f32.mrf.mxu3 }
  0x9a   : > { %4950 = vst [vmem:[#allocation4_spill] sm:$0xff] %v3368_v32  ;;  %v3372_v34 = vpop.f32.mrf.mxu0  ;;  %v3374_v35 = vpop.f32.mrf.mxu1  ;;  %v3660_v32 = vld [vmem:[%s4932_s2 + $0x28] sm:$0xff] }
  0x9b   : > { %4951 = vst [vmem:[#allocation5_spill] sm:$0xff] %v3370_v33  ;;  %v3639_v33 = vld [vmem:[%s4932_s2 + $0x20] sm:$0xff] }
  0x9c   : > { %4952 = vst [vmem:[#allocation6_spill] sm:$0xff] %v3372_v34 }
  0x9d   : > { %4953 = vst [vmem:[#allocation7_spill] sm:$0xff] %v3374_v35  ;;  %2500 = vmatmul.msk.f32.gmra.mxu0 %vm255_vm1, %v3180_v15  ;;  %2515 = vmatmul.msk.f32.gmra.mxu1 %vm255_vm1, %v3180_v15 }
  0x9e   : > { %2530 = vmatmul.msk.f32.gmra.mxu2 %vm255_vm1, %v3180_v15  ;;  %2545 = vmatmul.msk.f32.gmra.mxu3 %vm255_vm1, %v3180_v15 }
  0xa1   : > { %v3384_v36 = vpop.f32.mrf.mxu2  ;;  %v3386_v37 = vpop.f32.mrf.mxu3 }
  0xa2   : > { %4954 = vst [vmem:[#allocation8_spill] sm:$0xff] %v3384_v36  ;;  %v3388_v38 = vpop.f32.mrf.mxu0  ;;  %v3390_v39 = vpop.f32.mrf.mxu1  ;;  %v3702_v36 = vld [vmem:[%s4932_s2 + $0x38] sm:$0xff] }
  0xa3   : > { %4955 = vst [vmem:[#allocation9_spill] sm:$0xff] %v3386_v37  ;;  %v3681_v37 = vld [vmem:[%s4932_s2 + $0x30] sm:$0xff] }
  0xa4   : > { %4956 = vst [vmem:[#allocation10_spill] sm:$0xff] %v3388_v38 }
  0xa5   : > { %4957 = vst [vmem:[#allocation11_spill] sm:$0xff] %v3390_v39  ;;  %2501 = vmatmul.msk.f32.gmra.mxu0 %vm255_vm1, %v3193_v16  ;;  %2516 = vmatmul.msk.f32.gmra.mxu1 %vm255_vm1, %v3193_v16 }
  0xa6   : > { %2531 = vmatmul.msk.f32.gmra.mxu2 %vm255_vm1, %v3193_v16  ;;  %2546 = vmatmul.msk.f32.gmra.mxu3 %vm255_vm1, %v3193_v16  ;;  %v3555_v16 = vld [vmem:[%s4932_s2] sm:$0xff] }
  0xa9   : > { %v3400_v40 = vpop.f32.mrf.mxu2  ;;  %v3402_v41 = vpop.f32.mrf.mxu3 }
  0xaa   : > { %4958 = vst [vmem:[#allocation12_spill] sm:$0xff] %v3400_v40  ;;  %v3404_v42 = vpop.f32.mrf.mxu0  ;;  %v3406_v43 = vpop.f32.mrf.mxu1  ;;  %v3744_v40 = vld [vmem:[%s4932_s2 + $0x48] sm:$0xff] }
  0xab   : > { %4959 = vst [vmem:[#allocation13_spill] sm:$0xff] %v3402_v41  ;;  %v3723_v41 = vld [vmem:[%s4932_s2 + $0x40] sm:$0xff] }
  0xac   : > { %4960 = vst [vmem:[#allocation14_spill] sm:$0xff] %v3404_v42 }
  0xad   : > { %4961 = vst [vmem:[#allocation15_spill] sm:$0xff] %v3406_v43  ;;  %2502 = vmatmul.msk.f32.gmra.mxu0 %vm255_vm1, %v3206_v17  ;;  %2517 = vmatmul.msk.f32.gmra.mxu1 %vm255_vm1, %v3206_v17 }
  0xae   : > { %2532 = vmatmul.msk.f32.gmra.mxu2 %vm255_vm1, %v3206_v17  ;;  %2547 = vmatmul.msk.f32.gmra.mxu3 %vm255_vm1, %v3206_v17 }
  0xb1   : > { %v3416_v44 = vpop.f32.mrf.mxu2  ;;  %v3418_v45 = vpop.f32.mrf.mxu3 }
  0xb2   : > { %4962 = vst [vmem:[#allocation16_spill] sm:$0xff] %v3416_v44  ;;  %v3420_v46 = vpop.f32.mrf.mxu0  ;;  %v3422_v47 = vpop.f32.mrf.mxu1  ;;  %v3786_v44 = vld [vmem:[%s4932_s2 + $0x58] sm:$0xff] }
  0xb3   : > { %4963 = vst [vmem:[#allocation17_spill] sm:$0xff] %v3418_v45  ;;  %v3765_v45 = vld [vmem:[%s4932_s2 + $0x50] sm:$0xff] }
  0xb4   : > { %4964 = vst [vmem:[#allocation18_spill] sm:$0xff] %v3420_v46 }
  0xb5   : > { %4965 = vst [vmem:[#allocation19_spill] sm:$0xff] %v3422_v47  ;;  %2503 = vmatmul.msk.f32.gmra.mxu0 %vm255_vm1, %v3219_v18  ;;  %2518 = vmatmul.msk.f32.gmra.mxu1 %vm255_vm1, %v3219_v18 }
  0xb6   : > { %2533 = vmatmul.msk.f32.gmra.mxu2 %vm255_vm1, %v3219_v18  ;;  %2548 = vmatmul.msk.f32.gmra.mxu3 %vm255_vm1, %v3219_v18 }
  0xb9   : > { %v3432_v48 = vpop.f32.mrf.mxu2  ;;  %v3434_v49 = vpop.f32.mrf.mxu3 }
  0xba   : > { %4966 = vst [vmem:[#allocation20_spill] sm:$0xff] %v3432_v48  ;;  %v3436_v50 = vpop.f32.mrf.mxu0  ;;  %v3438_v51 = vpop.f32.mrf.mxu1 }
  0xbb   : > { %4967 = vst [vmem:[#allocation21_spill] sm:$0xff] %v3434_v49 }
  0xbc   : > { %4968 = vst [vmem:[#allocation22_spill] sm:$0xff] %v3436_v50 }
  0xbd   : > { %4969 = vst [vmem:[#allocation23_spill] sm:$0xff] %v3438_v51  ;;  %2504 = vmatmul.msk.f32.gmra.mxu0 %vm255_vm1, %v3236_v21  ;;  %2519 = vmatmul.msk.f32.gmra.mxu1 %vm255_vm1, %v3236_v21 }
  0xbe   : > { %2534 = vmatmul.msk.f32.gmra.mxu2 %vm255_vm1, %v3236_v21  ;;  %2549 = vmatmul.msk.f32.gmra.mxu3 %vm255_vm1, %v3236_v21  ;;  %v3576_v21 = vld [vmem:[%s4932_s2 + $0x8] sm:$0xff] }
  0xc1   : > { %v3448_v52 = vpop.f32.mrf.mxu2  ;;  %v3450_v53 = vpop.f32.mrf.mxu3 }
  0xc2   : > { %4970 = vst [vmem:[#allocation24_spill] sm:$0xff] %v3448_v52  ;;  %v3452_v54 = vpop.f32.mrf.mxu0  ;;  %v3454_v55 = vpop.f32.mrf.mxu1 }
  0xc3   : > { %4971 = vst [vmem:[#allocation25_spill] sm:$0xff] %v3450_v53 }
  0xc4   : > { %4972 = vst [vmem:[#allocation26_spill] sm:$0xff] %v3452_v54 }
  0xc5   : > { %4973 = vst [vmem:[#allocation27_spill] sm:$0xff] %v3454_v55  ;;  %2505 = vmatmul.msk.f32.gmra.mxu0 %vm255_vm1, %v3249_v22  ;;  %2520 = vmatmul.msk.f32.gmra.mxu1 %vm255_vm1, %v3249_v22 }
  0xc6   : > { %2535 = vmatmul.msk.f32.gmra.mxu2 %vm255_vm1, %v3249_v22  ;;  %2550 = vmatmul.msk.f32.gmra.mxu3 %vm255_vm1, %v3249_v22 }
  0xc9   : > { %v3464_v56 = vpop.f32.mrf.mxu2  ;;  %v3466_v57 = vpop.f32.mrf.mxu3 }
  0xca   : > { %4974 = vst [vmem:[#allocation28_spill] sm:$0xff] %v3464_v56  ;;  %v3468_v58 = vpop.f32.mrf.mxu0  ;;  %v3470_v59 = vpop.f32.mrf.mxu1 }
  0xcb   : > { %4975 = vst [vmem:[#allocation29_spill] sm:$0xff] %v3466_v57 }
  0xcc   : > { %4976 = vst [vmem:[#allocation30_spill] sm:$0xff] %v3468_v58 }
  0xcd   : > { %4977 = vst [vmem:[#allocation31_spill] sm:$0xff] %v3470_v59  ;;  %2506 = vmatmul.msk.f32.gmra.mxu0 %vm255_vm1, %v3268_v25  ;;  %2521 = vmatmul.msk.f32.gmra.mxu1 %vm255_vm1, %v3268_v25 }
  0xce   : > { %2536 = vmatmul.msk.f32.gmra.mxu2 %vm255_vm1, %v3268_v25  ;;  %2551 = vmatmul.msk.f32.gmra.mxu3 %vm255_vm1, %v3268_v25 }
  0xd1   : > { %v3480_v60 = vpop.f32.mrf.mxu2  ;;  %v3482_v61 = vpop.f32.mrf.mxu3 }
  0xd2   : > { %4978 = vst [vmem:[#allocation32_spill] sm:$0xff] %v3480_v60  ;;  %v3484_v62 = vpop.f32.mrf.mxu0  ;;  %v3486_v63 = vpop.f32.mrf.mxu1 }
  0xd3   : > { %4979 = vst [vmem:[#allocation33_spill] sm:$0xff] %v3482_v61 }
  0xd4   : > { %4980 = vst [vmem:[#allocation34_spill] sm:$0xff] %v3484_v62 }
  0xd5   : > { %4981 = vst [vmem:[#allocation35_spill] sm:$0xff] %v3486_v63  ;;  %2507 = vmatmul.msk.f32.gmra.mxu0 %vm255_vm1, %v3283_v26  ;;  %2522 = vmatmul.msk.f32.gmra.mxu1 %vm255_vm1, %v3283_v26 }
  0xd6   : > { %2537 = vmatmul.msk.f32.gmra.mxu2 %vm255_vm1, %v3283_v26  ;;  %2552 = vmatmul.msk.f32.gmra.mxu3 %vm255_vm1, %v3283_v26  ;;  %v3597_v26 = vld [vmem:[%s4932_s2 + $0x10] sm:$0xff] }
  0xd9   : > { %v3496_v0 = vpop.f32.mrf.mxu2  ;;  %v3498_v1 = vpop.f32.mrf.mxu3 }
  0xda   : > { %4982 = vst [vmem:[#allocation36_spill] sm:$0xff] %v3496_v0  ;;  %v3500_v2 = vpop.f32.mrf.mxu0  ;;  %v3502_v3 = vpop.f32.mrf.mxu1 }
  0xdb   : > { %4983 = vst [vmem:[#allocation37_spill] sm:$0xff] %v3498_v1 }
  0xdc   : > { %4984 = vst [vmem:[#allocation38_spill] sm:$0xff] %v3500_v2 }
  0xdd   : > { %4985 = vst [vmem:[#allocation39_spill] sm:$0xff] %v3502_v3  ;;  %2508 = vmatmul.msk.f32.gmra.mxu0 %vm255_vm1, %v3296_v27  ;;  %2523 = vmatmul.msk.f32.gmra.mxu1 %vm255_vm1, %v3296_v27 }
  0xde   : > { %2538 = vmatmul.msk.f32.gmra.mxu2 %vm255_vm1, %v3296_v27  ;;  %2553 = vmatmul.msk.f32.gmra.mxu3 %vm255_vm1, %v3296_v27 }
  0xe1   : > { %v3512_v4 = vpop.f32.mrf.mxu2  ;;  %v3514_v5 = vpop.f32.mrf.mxu3 }
  0xe2   : > { %4986 = vst [vmem:[#allocation40_spill] sm:$0xff] %v3512_v4  ;;  %v3516_v6 = vpop.f32.mrf.mxu0  ;;  %v3518_v7 = vpop.f32.mrf.mxu1 }
  0xe3   : > { %4987 = vst [vmem:[#allocation41_spill] sm:$0xff] %v3514_v5 }
  0xe4   : > { %4988 = vst [vmem:[#allocation42_spill] sm:$0xff] %v3516_v6 }
  0xe5   : > { %4989 = vst [vmem:[#allocation43_spill] sm:$0xff] %v3518_v7  ;;  %2509 = vmatmul.msk.f32.gmra.mxu0 %vm255_vm1, %v3309_v28  ;;  %2524 = vmatmul.msk.f32.gmra.mxu1 %vm255_vm1, %v3309_v28 }
  0xe6   : > { %2539 = vmatmul.msk.f32.gmra.mxu2 %vm255_vm1, %v3309_v28  ;;  %2554 = vmatmul.msk.f32.gmra.mxu3 %vm255_vm1, %v3309_v28 }
  0xe9   : > { %v3528_v8 = vpop.f32.mrf.mxu2  ;;  %v3530_v9 = vpop.f32.mrf.mxu3 }
  0xea   : > { %4990 = vst [vmem:[#allocation44_spill] sm:$0xff] %v3528_v8  ;;  %v3532_v10 = vpop.f32.mrf.mxu0  ;;  %v3534_v11 = vpop.f32.mrf.mxu1 }
  0xeb   : > { %4991 = vst [vmem:[#allocation45_spill] sm:$0xff] %v3530_v9 }
  0xec   : > { %4992 = vst [vmem:[#allocation46_spill] sm:$0xff] %v3532_v10 }
  0xed   : > { %4993 = vst [vmem:[#allocation47_spill] sm:$0xff] %v3534_v11  ;;  %2510 = vmatmul.msk.f32.gmra.mxu0 %vm255_vm1, %v3322_v29  ;;  %2525 = vmatmul.msk.f32.gmra.mxu1 %vm255_vm1, %v3322_v29 }
  0xee   : > { %2540 = vmatmul.msk.f32.gmra.mxu2 %vm255_vm1, %v3322_v29  ;;  %2555 = vmatmul.msk.f32.gmra.mxu3 %vm255_vm1, %v3322_v29 }
  0xf1   : > { %v3544_v12 = vpop.f32.mrf.mxu2  ;;  %v3546_v13 = vpop.f32.mrf.mxu3 }
  0xf2   : > { %4994 = vst [vmem:[#allocation48_spill] sm:$0xff] %v3544_v12  ;;  %v3548_v14 = vpop.f32.mrf.mxu0  ;;  %v3550_v15 = vpop.f32.mrf.mxu1 }
  0xf3   : > { %4995 = vst [vmem:[#allocation49_spill] sm:$0xff] %v3546_v13 }
  0xf5   : > { %2557 = vmatmul.msk.f32.vlgmr.msra.gmra.mxu0 %vm255_vm1, %v3555_v16  ;;  %2572 = vmatmul.msk.f32.vlgmr.msra.gmra.mxu1 %vm255_vm1, %v3555_v16 }
  0xf6   : > { %2587 = vmatmul.msk.f32.vlgmr.msra.gmra.mxu2 %vm255_vm1, %v3555_v16  ;;  %2602 = vmatmul.msk.f32.vlgmr.msra.gmra.mxu3 %vm255_vm1, %v3555_v16 }
  0xf9   : > { %v3565_v17 = vpop.f32.mrf.mxu2  ;;  %v3567_v18 = vpop.f32.mrf.mxu3 }
  0xfa   : > { %4996 = vst [vmem:[#allocation50_spill] sm:$0xff] %v3565_v17  ;;  %v3569_v19 = vpop.f32.mrf.mxu0  ;;  %v3571_v20 = vpop.f32.mrf.mxu1 }
  0xfb   : > { %4997 = vst [vmem:[#allocation51_spill] sm:$0xff] %v3567_v18 }
  0xfd   : > { %2558 = vmatmul.msk.f32.gmra.mxu0 %vm255_vm1, %v3576_v21  ;;  %2573 = vmatmul.msk.f32.gmra.mxu1 %vm255_vm1, %v3576_v21 }
  0xfe   : > { %2588 = vmatmul.msk.f32.gmra.mxu2 %vm255_vm1, %v3576_v21  ;;  %2603 = vmatmul.msk.f32.gmra.mxu3 %vm255_vm1, %v3576_v21 }
 0x101   : > { %v3586_v22 = vpop.f32.mrf.mxu2  ;;  %v3588_v23 = vpop.f32.mrf.mxu3 }
 0x102   : > { %4998 = vst [vmem:[#allocation52_spill] sm:$0xff] %v3586_v22  ;;  %v3590_v24 = vpop.f32.mrf.mxu0  ;;  %v3592_v25 = vpop.f32.mrf.mxu1 }
 0x103   : > { %4999 = vst [vmem:[#allocation53_spill] sm:$0xff] %v3588_v23 }
 0x104   : > { %5000 = vst [vmem:[#allocation54_spill] sm:$0xff] %v3590_v24  ;;  %v3618_v24 = vld [vmem:[%s4932_s2 + $0x18] sm:$0xff] }
 0x105   : > { %5001 = vst [vmem:[#allocation55_spill] sm:$0xff] %v3592_v25  ;;  %2559 = vmatmul.msk.f32.gmra.mxu0 %vm255_vm1, %v3597_v26  ;;  %2574 = vmatmul.msk.f32.gmra.mxu1 %vm255_vm1, %v3597_v26 }
 0x106   : > { %2589 = vmatmul.msk.f32.gmra.mxu2 %vm255_vm1, %v3597_v26  ;;  %2604 = vmatmul.msk.f32.gmra.mxu3 %vm255_vm1, %v3597_v26 }
 0x109   : > { %v3607_v27 = vpop.f32.mrf.mxu2  ;;  %v3609_v28 = vpop.f32.mrf.mxu3 }
 0x10a   : > { %5002 = vst [vmem:[#allocation56_spill] sm:$0xff] %v3607_v27  ;;  %v3611_v29 = vpop.f32.mrf.mxu0  ;;  %v3613_v25 = vpop.f32.mrf.mxu1 }
 0x10b   : > { %5003 = vst [vmem:[#allocation57_spill] sm:$0xff] %v3609_v28 }
 0x10c   : > { %5004 = vst [vmem:[#allocation58_spill] sm:$0xff] %v3611_v29 }
 0x10d   : > { %5005 = vst [vmem:[#allocation59_spill] sm:$0xff] %v3613_v25  ;;  %2560 = vmatmul.msk.f32.gmra.mxu0 %vm255_vm1, %v3618_v24  ;;  %2575 = vmatmul.msk.f32.gmra.mxu1 %vm255_vm1, %v3618_v24 }
 0x10e   : > { %2590 = vmatmul.msk.f32.gmra.mxu2 %vm255_vm1, %v3618_v24  ;;  %2605 = vmatmul.msk.f32.gmra.mxu3 %vm255_vm1, %v3618_v24 }
 0x111   : > { %v3628_v28 = vpop.f32.mrf.mxu2  ;;  %v3630_v27 = vpop.f32.mrf.mxu3 }
 0x112   : > { %5006 = vst [vmem:[#allocation60_spill] sm:$0xff] %v3628_v28  ;;  %v3632_v25 = vpop.f32.mrf.mxu0  ;;  %v3634_v29 = vpop.f32.mrf.mxu1 }
 0x113   : > { %5007 = vst [vmem:[#allocation61_spill] sm:$0xff] %v3630_v27 }
 0x114   : > { %5008 = vst [vmem:[#allocation62_spill] sm:$0xff] %v3632_v25 }
 0x115   : > { %5009 = vst [vmem:[#allocation63_spill] sm:$0xff] %v3634_v29  ;;  %2561 = vmatmul.msk.f32.gmra.mxu0 %vm255_vm1, %v3639_v33  ;;  %2576 = vmatmul.msk.f32.gmra.mxu1 %vm255_vm1, %v3639_v33 }
 0x116   : > { %2591 = vmatmul.msk.f32.gmra.mxu2 %vm255_vm1, %v3639_v33  ;;  %2606 = vmatmul.msk.f32.gmra.mxu3 %vm255_vm1, %v3639_v33 }
 0x119   : > { %v3649_v27 = vpop.f32.mrf.mxu2  ;;  %v3651_v28 = vpop.f32.mrf.mxu3 }
 0x11a   : > { %5010 = vst [vmem:[#allocation64_spill] sm:$0xff] %v3649_v27  ;;  %v3653_v29 = vpop.f32.mrf.mxu0  ;;  %v3655_v25 = vpop.f32.mrf.mxu1 }
 0x11b   : > { %5011 = vst [vmem:[#allocation65_spill] sm:$0xff] %v3651_v28 }
 0x11c   : > { %5012 = vst [vmem:[#allocation66_spill] sm:$0xff] %v3653_v29 }
 0x11d   : > { %5013 = vst [vmem:[#allocation67_spill] sm:$0xff] %v3655_v25  ;;  %2562 = vmatmul.msk.f32.gmra.mxu0 %vm255_vm1, %v3660_v32  ;;  %2577 = vmatmul.msk.f32.gmra.mxu1 %vm255_vm1, %v3660_v32 }
 0x11e   : > { %2592 = vmatmul.msk.f32.gmra.mxu2 %vm255_vm1, %v3660_v32  ;;  %2607 = vmatmul.msk.f32.gmra.mxu3 %vm255_vm1, %v3660_v32 }
 0x121   : > { %v3670_v28 = vpop.f32.mrf.mxu2  ;;  %v3672_v27 = vpop.f32.mrf.mxu3 }
 0x122   : > { %5014 = vst [vmem:[#allocation68_spill] sm:$0xff] %v3670_v28  ;;  %v3674_v25 = vpop.f32.mrf.mxu0  ;;  %v3676_v29 = vpop.f32.mrf.mxu1 }
 0x123   : > { %5015 = vst [vmem:[#allocation69_spill] sm:$0xff] %v3672_v27 }
 0x124   : > { %5016 = vst [vmem:[#allocation70_spill] sm:$0xff] %v3674_v25 }
 0x125   : > { %5017 = vst [vmem:[#allocation71_spill] sm:$0xff] %v3676_v29  ;;  %2563 = vmatmul.msk.f32.gmra.mxu0 %vm255_vm1, %v3681_v37  ;;  %2578 = vmatmul.msk.f32.gmra.mxu1 %vm255_vm1, %v3681_v37 }
 0x126   : > { %2593 = vmatmul.msk.f32.gmra.mxu2 %vm255_vm1, %v3681_v37  ;;  %2608 = vmatmul.msk.f32.gmra.mxu3 %vm255_vm1, %v3681_v37 }
 0x129   : > { %v3691_v27 = vpop.f32.mrf.mxu2  ;;  %v3693_v28 = vpop.f32.mrf.mxu3 }
 0x12a   : > { %5018 = vst [vmem:[#allocation72_spill] sm:$0xff] %v3691_v27  ;;  %v3695_v29 = vpop.f32.mrf.mxu0  ;;  %v3697_v25 = vpop.f32.mrf.mxu1 }
 0x12b   : > { %5019 = vst [vmem:[#allocation73_spill] sm:$0xff] %v3693_v28 }
 0x12c   : > { %5020 = vst [vmem:[#allocation74_spill] sm:$0xff] %v3695_v29 }
 0x12d   : > { %5021 = vst [vmem:[#allocation75_spill] sm:$0xff] %v3697_v25  ;;  %2564 = vmatmul.msk.f32.gmra.mxu0 %vm255_vm1, %v3702_v36  ;;  %2579 = vmatmul.msk.f32.gmra.mxu1 %vm255_vm1, %v3702_v36 }
 0x12e   : > { %2594 = vmatmul.msk.f32.gmra.mxu2 %vm255_vm1, %v3702_v36  ;;  %2609 = vmatmul.msk.f32.gmra.mxu3 %vm255_vm1, %v3702_v36 }
 0x131   : > { %v3712_v28 = vpop.f32.mrf.mxu2  ;;  %v3714_v27 = vpop.f32.mrf.mxu3 }
 0x132   : > { %5022 = vst [vmem:[#allocation76_spill] sm:$0xff] %v3712_v28  ;;  %v3716_v25 = vpop.f32.mrf.mxu0  ;;  %v3718_v29 = vpop.f32.mrf.mxu1 }
 0x133   : > { %5023 = vst [vmem:[#allocation77_spill] sm:$0xff] %v3714_v27 }
 0x134   : > { %5024 = vst [vmem:[#allocation78_spill] sm:$0xff] %v3716_v25 }
 0x135   : > { %5025 = vst [vmem:[#allocation79_spill] sm:$0xff] %v3718_v29  ;;  %2565 = vmatmul.msk.f32.gmra.mxu0 %vm255_vm1, %v3723_v41  ;;  %2580 = vmatmul.msk.f32.gmra.mxu1 %vm255_vm1, %v3723_v41 }
 0x136   : > { %2595 = vmatmul.msk.f32.gmra.mxu2 %vm255_vm1, %v3723_v41  ;;  %2610 = vmatmul.msk.f32.gmra.mxu3 %vm255_vm1, %v3723_v41 }
 0x139   : > { %v3733_v27 = vpop.f32.mrf.mxu2  ;;  %v3735_v28 = vpop.f32.mrf.mxu3 }
 0x13a   : > { %5026 = vst [vmem:[#allocation80_spill] sm:$0xff] %v3733_v27  ;;  %v3737_v29 = vpop.f32.mrf.mxu0  ;;  %v3739_v25 = vpop.f32.mrf.mxu1 }
 0x13b   : > { %5027 = vst [vmem:[#allocation81_spill] sm:$0xff] %v3735_v28 }
 0x13c   : > { %5028 = vst [vmem:[#allocation82_spill] sm:$0xff] %v3737_v29 }
 0x13d   : > { %5029 = vst [vmem:[#allocation83_spill] sm:$0xff] %v3739_v25  ;;  %2566 = vmatmul.msk.f32.gmra.mxu0 %vm255_vm1, %v3744_v40  ;;  %2581 = vmatmul.msk.f32.gmra.mxu1 %vm255_vm1, %v3744_v40 }
 0x13e   : > { %2596 = vmatmul.msk.f32.gmra.mxu2 %vm255_vm1, %v3744_v40  ;;  %2611 = vmatmul.msk.f32.gmra.mxu3 %vm255_vm1, %v3744_v40 }
 0x141   : > { %v3754_v28 = vpop.f32.mrf.mxu2  ;;  %v3756_v27 = vpop.f32.mrf.mxu3 }
 0x142   : > { %5030 = vst [vmem:[#allocation84_spill] sm:$0xff] %v3754_v28  ;;  %v3758_v25 = vpop.f32.mrf.mxu0  ;;  %v3760_v29 = vpop.f32.mrf.mxu1 }
 0x143   : > { %5031 = vst [vmem:[#allocation85_spill] sm:$0xff] %v3756_v27 }
 0x144   : > { %5032 = vst [vmem:[#allocation86_spill] sm:$0xff] %v3758_v25 }
 0x145   : > { %5033 = vst [vmem:[#allocation87_spill] sm:$0xff] %v3760_v29  ;;  %2567 = vmatmul.msk.f32.gmra.mxu0 %vm255_vm1, %v3765_v45  ;;  %2582 = vmatmul.msk.f32.gmra.mxu1 %vm255_vm1, %v3765_v45 }
 0x146   : > { %2597 = vmatmul.msk.f32.gmra.mxu2 %vm255_vm1, %v3765_v45  ;;  %2612 = vmatmul.msk.f32.gmra.mxu3 %vm255_vm1, %v3765_v45 }
 0x149   : > { %v3775_v27 = vpop.f32.mrf.mxu2  ;;  %v3777_v28 = vpop.f32.mrf.mxu3 }
 0x14a   : > { %5034 = vst [vmem:[#allocation88_spill] sm:$0xff] %v3775_v27  ;;  %v3779_v29 = vpop.f32.mrf.mxu0  ;;  %v3781_v25 = vpop.f32.mrf.mxu1 }
 0x14b   : > { %5035 = vst [vmem:[#allocation89_spill] sm:$0xff] %v3777_v28 }
 0x14c   : > { %5036 = vst [vmem:[#allocation90_spill] sm:$0xff] %v3779_v29 }
 0x14d   : > { %5037 = vst [vmem:[#allocation91_spill] sm:$0xff] %v3781_v25  ;;  %2568 = vmatmul.msk.f32.gmra.mxu0 %vm255_vm1, %v3786_v44  ;;  %2583 = vmatmul.msk.f32.gmra.mxu1 %vm255_vm1, %v3786_v44 }
 0x14e   : > { %2598 = vmatmul.msk.f32.gmra.mxu2 %vm255_vm1, %v3786_v44  ;;  %2613 = vmatmul.msk.f32.gmra.mxu3 %vm255_vm1, %v3786_v44 }
 0x151   : > { %v3796_v28 = vpop.f32.mrf.mxu2  ;;  %v3798_v27 = vpop.f32.mrf.mxu3 }
 0x152   : > { %5038 = vst [vmem:[#allocation92_spill] sm:$0xff] %v3796_v28  ;;  %v3800_v25 = vpop.f32.mrf.mxu0  ;;  %v3802_v29 = vpop.f32.mrf.mxu1 }
 0x153   : > { %5039 = vst [vmem:[#allocation93_spill] sm:$0xff] %v3798_v27 }
 0x154   : > { %5040 = vst [vmem:[#allocation94_spill] sm:$0xff] %v3800_v25 }
 0x155   : > { %5041 = vst [vmem:[#allocation95_spill] sm:$0xff] %v3802_v29  ;;  %2569 = vmatmul.msk.f32.gmra.mxu0 %vm255_vm1, %v3807_v31  ;;  %2584 = vmatmul.msk.f32.gmra.mxu1 %vm255_vm1, %v3807_v31 }
 0x156   : > { %2599 = vmatmul.msk.f32.gmra.mxu2 %vm255_vm1, %v3807_v31  ;;  %2614 = vmatmul.msk.f32.gmra.mxu3 %vm255_vm1, %v3807_v31 }
 0x159   : > { %v3817_v27 = vpop.f32.mrf.mxu2  ;;  %v3819_v28 = vpop.f32.mrf.mxu3 }
 0x15a   : > { %5042 = vst [vmem:[#allocation96_spill] sm:$0xff] %v3817_v27  ;;  %v3821_v29 = vpop.f32.mrf.mxu0  ;;  %v3823_v25 = vpop.f32.mrf.mxu1 }
 0x15b   : > { %5043 = vst [vmem:[#allocation97_spill] sm:$0xff] %v3819_v28 }
 0x15c   : > { %5044 = vst [vmem:[#allocation98_spill] sm:$0xff] %v3821_v29 }
 0x15d   : > { %5045 = vst [vmem:[#allocation99_spill] sm:$0xff] %v3823_v25  ;;  %2570 = vmatmul.msk.f32.gmra.mxu0 %vm255_vm1, %v3828_v30  ;;  %2585 = vmatmul.msk.f32.gmra.mxu1 %vm255_vm1, %v3828_v30 }
 0x15e   : > { %2600 = vmatmul.msk.f32.gmra.mxu2 %vm255_vm1, %v3828_v30  ;;  %2615 = vmatmul.msk.f32.gmra.mxu3 %vm255_vm1, %v3828_v30 }
 0x161   : > { %v3838_v28 = vpop.f32.mrf.mxu2  ;;  %v3840_v27 = vpop.f32.mrf.mxu3 }
 0x162   : > { %5046 = vst [vmem:[#allocation100_spill] sm:$0xff] %v3838_v28  ;;  %v3842_v25 = vpop.f32.mrf.mxu0  ;;  %v3844_v29 = vpop.f32.mrf.mxu1 }
 0x163   : > { %5047 = vst [vmem:[#allocation101_spill] sm:$0xff] %v3840_v27 }
 0x164   : > { %5048 = vst [vmem:[#allocation102_spill] sm:$0xff] %v3842_v25 }
 0x165   : > { %5049 = vst [vmem:[#allocation103_spill] sm:$0xff] %v3844_v29  ;;  %2617 = vmatmul.msk.f32.vlgmr.msrb.gmra.mxu0 %vm255_vm1, %v3555_v16  ;;  %2632 = vmatmul.msk.f32.vlgmr.msrb.gmra.mxu1 %vm255_vm1, %v3555_v16 }
 0x166   : > { %2647 = vmatmul.msk.f32.vlgmr.msrb.gmra.mxu2 %vm255_vm1, %v3555_v16  ;;  %2662 = vmatmul.msk.f32.vlgmr.msrb.gmra.mxu3 %vm255_vm1, %v3555_v16 }
 0x169   : > { %v3854_v49 = vpop.f32.mrf.mxu2  ;;  %v3856_v28 = vpop.f32.mrf.mxu3 }
 0x16a   : > { %5050 = vst [vmem:[#allocation104_spill] sm:$0xff] %v3854_v49  ;;  %v3858_v27 = vpop.f32.mrf.mxu0  ;;  %v3860_v25 = vpop.f32.mrf.mxu1 }
 0x16b   : > { %5051 = vst [vmem:[#allocation105_spill] sm:$0xff] %v3856_v28 }
 0x16c   : > { %5052 = vst [vmem:[#allocation106_spill] sm:$0xff] %v3858_v27 }
 0x16d   : > { %5053 = vst [vmem:[#allocation107_spill] sm:$0xff] %v3860_v25  ;;  %2618 = vmatmul.msk.f32.gmra.mxu0 %vm255_vm1, %v3576_v21  ;;  %2633 = vmatmul.msk.f32.gmra.mxu1 %vm255_vm1, %v3576_v21 }
 0x16e   : > { %2648 = vmatmul.msk.f32.gmra.mxu2 %vm255_vm1, %v3576_v21  ;;  %2663 = vmatmul.msk.f32.gmra.mxu3 %vm255_vm1, %v3576_v21 }
 0x171   : > { %v3870_v16 = vpop.f32.mrf.mxu2  ;;  %v3872_v49 = vpop.f32.mrf.mxu3 }
 0x172   : > { %5054 = vst [vmem:[#allocation108_spill] sm:$0xff] %v3870_v16  ;;  %v3874_v28 = vpop.f32.mrf.mxu0  ;;  %v3876_v29 = vpop.f32.mrf.mxu1 }
 0x173   : > { %5055 = vst [vmem:[#allocation109_spill] sm:$0xff] %v3872_v49  ;;  %2816 = vtanh.f32 %v3874_v28 }
 0x174   : > { %2818 = vtanh.f32 %v3876_v29 }
 0x175   : > { %2619 = vmatmul.msk.f32.gmra.mxu0 %vm255_vm1, %v3597_v26  ;;  %2634 = vmatmul.msk.f32.gmra.mxu1 %vm255_vm1, %v3597_v26 }
 0x176   : > { %2649 = vmatmul.msk.f32.gmra.mxu2 %vm255_vm1, %v3597_v26  ;;  %2664 = vmatmul.msk.f32.gmra.mxu3 %vm255_vm1, %v3597_v26 }
 0x179   : > { %v3886_v21 = vpop.f32.mrf.mxu2  ;;  %v3888_v16 = vpop.f32.mrf.mxu3 }
 0x17a   : > { %v3890_v49 = vpop.f32.mrf.mxu0  ;;  %v3892_v25 = vpop.f32.mrf.mxu1 }
 0x17b   : > { %2820 = vtanh.f32 %v3890_v49  ;;  %v4048_v12 = vpop.eup %2816 }
 0x17c   : > { %2822 = vtanh.f32 %v3892_v25 }
 0x17d   : > { %2620 = vmatmul.msk.f32.gmra.mxu0 %vm255_vm1, %v3618_v24  ;;  %2635 = vmatmul.msk.f32.gmra.mxu1 %vm255_vm1, %v3618_v24 }
 0x17e   : > { %2650 = vmatmul.msk.f32.gmra.mxu2 %vm255_vm1, %v3618_v24  ;;  %2665 = vmatmul.msk.f32.gmra.mxu3 %vm255_vm1, %v3618_v24 }
 0x181   : > { %v3902_v26 = vpop.f32.mrf.mxu2  ;;  %v3904_v27 = vpop.f32.mrf.mxu3 }
 0x182   : > { %v3906_v48 = vpop.f32.mrf.mxu0  ;;  %v3908_v35 = vpop.f32.mrf.mxu1 }
 0x183   : > { %2824 = vtanh.f32 %v3906_v48 }
 0x184   : > { %2826 = vtanh.f32 %v3908_v35 }
 0x185   : > { %2621 = vmatmul.msk.f32.gmra.mxu0 %vm255_vm1, %v3639_v33  ;;  %2636 = vmatmul.msk.f32.gmra.mxu1 %vm255_vm1, %v3639_v33 }
 0x186   : > { %2651 = vmatmul.msk.f32.gmra.mxu2 %vm255_vm1, %v3639_v33  ;;  %2666 = vmatmul.msk.f32.gmra.mxu3 %vm255_vm1, %v3639_v33 }
 0x189   : > { %v3918_v24 = vpop.f32.mrf.mxu2  ;;  %v3920_v34 = vpop.f32.mrf.mxu3 }
 0x18a   : > { %v3922_v53 = vpop.f32.mrf.mxu0  ;;  %v3924_v52 = vpop.f32.mrf.mxu1 }
 0x18b   : > { %2828 = vtanh.f32 %v3922_v53 }
 0x18c   : > { %2830 = vtanh.f32 %v3924_v52 }
 0x18d   : > { %2622 = vmatmul.msk.f32.gmra.mxu0 %vm255_vm1, %v3660_v32  ;;  %2637 = vmatmul.msk.f32.gmra.mxu1 %vm255_vm1, %v3660_v32 }
 0x18e   : > { %2652 = vmatmul.msk.f32.gmra.mxu2 %vm255_vm1, %v3660_v32  ;;  %2667 = vmatmul.msk.f32.gmra.mxu3 %vm255_vm1, %v3660_v32 }
 0x191   : > { %v3934_v33 = vpop.f32.mrf.mxu2  ;;  %v3936_v39 = vpop.f32.mrf.mxu3 }
 0x192   : > { %v3938_v38 = vpop.f32.mrf.mxu0  ;;  %v3940_v57 = vpop.f32.mrf.mxu1 }
 0x193   : > { %2832 = vtanh.f32 %v3938_v38 }
 0x194   : > { %2834 = vtanh.f32 %v3940_v57 }
 0x195   : > { %2623 = vmatmul.msk.f32.gmra.mxu0 %vm255_vm1, %v3681_v37  ;;  %2638 = vmatmul.msk.f32.gmra.mxu1 %vm255_vm1, %v3681_v37 }
 0x196   : > { %2653 = vmatmul.msk.f32.gmra.mxu2 %vm255_vm1, %v3681_v37  ;;  %2668 = vmatmul.msk.f32.gmra.mxu3 %vm255_vm1, %v3681_v37 }
 0x199   : > { %v3950_v32 = vpop.f32.mrf.mxu2  ;;  %v3952_v56 = vpop.f32.mrf.mxu3 }
 0x19a   : > { %v3954_v43 = vpop.f32.mrf.mxu0  ;;  %v3956_v42 = vpop.f32.mrf.mxu1 }
 0x19b   : > { %2836 = vtanh.f32 %v3954_v43 }
 0x19c   : > { %2838 = vtanh.f32 %v3956_v42 }
 0x19d   : > { %2624 = vmatmul.msk.f32.gmra.mxu0 %vm255_vm1, %v3702_v36  ;;  %2639 = vmatmul.msk.f32.gmra.mxu1 %vm255_vm1, %v3702_v36 }
 0x19e   : > { %2654 = vmatmul.msk.f32.gmra.mxu2 %vm255_vm1, %v3702_v36  ;;  %2669 = vmatmul.msk.f32.gmra.mxu3 %vm255_vm1, %v3702_v36 }
 0x1a1   : > { %v3966_v37 = vpop.f32.mrf.mxu2  ;;  %v3968_v61 = vpop.f32.mrf.mxu3 }
 0x1a2   : > { %v3970_v60 = vpop.f32.mrf.mxu0  ;;  %v3972_v47 = vpop.f32.mrf.mxu1 }
 0x1a3   : > { %2840 = vtanh.f32 %v3970_v60 }
 0x1a4   : > { %2842 = vtanh.f32 %v3972_v47 }
 0x1a5   : > { %2625 = vmatmul.msk.f32.gmra.mxu0 %vm255_vm1, %v3723_v41  ;;  %2640 = vmatmul.msk.f32.gmra.mxu1 %vm255_vm1, %v3723_v41 }
 0x1a6   : > { %2655 = vmatmul.msk.f32.gmra.mxu2 %vm255_vm1, %v3723_v41  ;;  %2670 = vmatmul.msk.f32.gmra.mxu3 %vm255_vm1, %v3723_v41 }
 0x1a9   : > { %v3982_v36 = vpop.f32.mrf.mxu2  ;;  %v3984_v46 = vpop.f32.mrf.mxu3 }
 0x1aa   : > { %v3986_v1 = vpop.f32.mrf.mxu0  ;;  %v3988_v0 = vpop.f32.mrf.mxu1 }
 0x1ab   : > { %2844 = vtanh.f32 %v3986_v1 }
 0x1ac   : > { %2846 = vtanh.f32 %v3988_v0 }
 0x1ad   : > { %2626 = vmatmul.msk.f32.gmra.mxu0 %vm255_vm1, %v3744_v40  ;;  %2641 = vmatmul.msk.f32.gmra.mxu1 %vm255_vm1, %v3744_v40 }
 0x1ae   : > { %2656 = vmatmul.msk.f32.gmra.mxu2 %vm255_vm1, %v3744_v40  ;;  %2671 = vmatmul.msk.f32.gmra.mxu3 %vm255_vm1, %v3744_v40 }
 0x1b1   : > { %v3998_v41 = vpop.f32.mrf.mxu2  ;;  %v4000_v51 = vpop.f32.mrf.mxu3 }
 0x1b2   : > { %v1004_v50 = vpop.f32.mrf.mxu0  ;;  %v1063_v5 = vpop.f32.mrf.mxu1 }
 0x1b3   : > { %2848 = vtanh.f32 %v1004_v50 }
 0x1b5   : > { %2627 = vmatmul.msk.f32.gmra.mxu0 %vm255_vm1, %v3765_v45  ;;  %2642 = vmatmul.msk.f32.gmra.mxu1 %vm255_vm1, %v3765_v45 }
 0x1b6   : > { %2657 = vmatmul.msk.f32.gmra.mxu2 %vm255_vm1, %v3765_v45  ;;  %2672 = vmatmul.msk.f32.gmra.mxu3 %vm255_vm1, %v3765_v45 }
 0x1b9   : > { %v4010_v4 = vpop.f32.mrf.mxu2  ;;  %v4012_v40 = vpop.f32.mrf.mxu3 }
 0x1ba   : > { %v1007_v55 = vpop.f32.mrf.mxu0  ;;  %v1066_v54 = vpop.f32.mrf.mxu1 }
 0x1bd   : > { %2628 = vmatmul.msk.f32.gmra.mxu0 %vm255_vm1, %v3786_v44  ;;  %2643 = vmatmul.msk.f32.gmra.mxu1 %vm255_vm1, %v3786_v44 }
 0x1be   : > { %2658 = vmatmul.msk.f32.gmra.mxu2 %vm255_vm1, %v3786_v44  ;;  %2673 = vmatmul.msk.f32.gmra.mxu3 %vm255_vm1, %v3786_v44 }
 0x1c1   : > { %v4022_v9 = vpop.f32.mrf.mxu2  ;;  %v4024_v45 = vpop.f32.mrf.mxu3 }
 0x1c2   : > { %v4026_v8 = vpop.f32.mrf.mxu0  ;;  %v4028_v59 = vpop.f32.mrf.mxu1 }
 0x1c5   : > { %2629 = vmatmul.msk.f32.gmra.mxu0 %vm255_vm1, %v3807_v31  ;;  %2644 = vmatmul.msk.f32.gmra.mxu1 %vm255_vm1, %v3807_v31 }
 0x1c6   : > { %2659 = vmatmul.msk.f32.gmra.mxu2 %vm255_vm1, %v3807_v31  ;;  %2674 = vmatmul.msk.f32.gmra.mxu3 %vm255_vm1, %v3807_v31  ;;  %v4051_v31 = vpop.eup %2818  ;;  %2850 = vtanh.f32 %v1063_v5 }
 0x1c7   : > { %v4058_v49 = vpop.eup %2820  ;;  %2852 = vtanh.f32 %v1007_v55 }
 0x1c8   : > { %v4065_v35 = vpop.eup %2822  ;;  %2854 = vtanh.f32 %v1066_v54 }
 0x1c9   : > { %v4042_v44 = vpop.f32.mrf.mxu2  ;;  %v4044_v58 = vpop.f32.mrf.mxu3 }
 0x1ca   : > { %v1013_v13 = vpop.f32.mrf.mxu0  ;;  %v1072_v28 = vpop.f32.mrf.mxu1 }
 0x1cb   : > { %v4068_v48 = vpop.eup %2824 }
 0x1cc   : > { %v4071_v52 = vpop.eup %2826 }
 0x1cd   : > { %2630 = vmatmul.msk.f32.gmra.mxu0 %vm255_vm1, %v3828_v30  ;;  %2645 = vmatmul.msk.f32.gmra.mxu1 %vm255_vm1, %v3828_v30  ;;  %v4074_v25 = vpop.eup %2828 }
 0x1ce   : > { %2660 = vmatmul.msk.f32.gmra.mxu2 %vm255_vm1, %v3828_v30  ;;  %2675 = vmatmul.msk.f32.gmra.mxu3 %vm255_vm1, %v3828_v30  ;;  %v4077_v63 = vpop.eup %2830 }
 0x1cf   : > { %v4080_v57 = vpop.eup %2832 }
 0x1d0   : > { %v4083_v43 = vpop.eup %2834 }
 0x1d1   : > { %v1131_v53 = vpop.f32.mrf.mxu2  ;;  %v1190_v38 = vpop.f32.mrf.mxu3 }
 0x1d2   : > { %v1016_v29 = vpop.f32.mrf.mxu0  ;;  %v1075_v30 = vpop.f32.mrf.mxu1 }
 0x1d3   : > { %v4086_v42 = vpop.eup %2836  ;;  %2856 = vtanh.f32 %v1016_v29 }
 0x1d4   : > { %v4088_v62 = vpop.eup %2838  ;;  %2858 = vtanh.f32 %v1075_v30 }
 0x1d5   : > { %v4090_v60 = vpop.eup %2840 }
 0x1d6   : > { %v4092_v18 = vpop.eup %2842 }
 0x1d7   : > { %v4094_v3 = vpop.eup %2844 }
 0x1d8   : > { %v4096_v0 = vpop.eup %2846 }
 0x1d9   : > { %v1134_v47 = vpop.f32.mrf.mxu2  ;;  %v1193_v17 = vpop.f32.mrf.mxu3 }
 0x1da   : > { %v1019_v1 = vpop.f32.mrf.mxu0  ;;  %v1078_v2 = vpop.f32.mrf.mxu1 }
 0x1db   : > { %v2849_v50 = vpop.eup %2848  ;;  %2860 = vtanh.f32 %v1019_v1 }
 0x1dc   : > { %v2851_v23 = vpop.eup %2850  ;;  %2862 = vtanh.f32 %v1078_v2 }
 0x1dd   : > { %v2853_v5 = vpop.eup %2852  ;;  %2864 = vtanh.f32 %v4026_v8 }
 0x1de   : > { %v2855_v55 = vpop.eup %2854  ;;  %2866 = vtanh.f32 %v4028_v59 }
 0x1df   : > { %v2857_v54 = vpop.eup %2856  ;;  %2868 = vtanh.f32 %v1013_v13 }
 0x1e0   : > { %v2859_v22 = vpop.eup %2858  ;;  %2870 = vtanh.f32 %v1072_v28 }
 0x1e1   : > { %v1137_v29 = vpop.f32.mrf.mxu2  ;;  %v1196_v7 = vpop.f32.mrf.mxu3 }
 0x1e2   : > { %v2861_v6 = vpop.eup %2860  ;;  %2872 = vtanh.f32 %v1137_v29  ;;  %v4100_v30 = vpop.f32.mrf.mxu0 }
 0x1e3   : > { %v4102_v1 = vpop.f32.mrf.mxu1  ;;  %v2863_v2 = vpop.eup %2862  ;;  %2874 = vtanh.f32 %v1196_v7  ;;  %2676 = vmatpush.msk.msra.mxu0 %vm1583_vm2, %v2861_v6 }
 0x1e4   : > { %v2865_v8 = vpop.eup %2864  ;;  %2876 = vtanh.f32 %v1134_v47  ;;  %2684 = vmatpush.msk.msra.mxu1 %vm1583_vm2, %v2863_v2 }
 0x1e5   : > { %v2867_v59 = vpop.eup %2866  ;;  %2878 = vtanh.f32 %v1193_v17  ;;  %1611 = vmatpush.msra.mxu0 %v2857_v54 }
 0x1e6   : > { %v2869_v13 = vpop.eup %2868  ;;  %2880 = vtanh.f32 %v1131_v53  ;;  %1649 = vmatpush.msra.mxu1 %v2859_v22 }
 0x1e7   : > { %v2871_v28 = vpop.eup %2870  ;;  %2882 = vtanh.f32 %v1190_v38  ;;  %1612 = vmatpush.msra.mxu0 %v2869_v13 }
 0x1e8   : > { %v2873_v29 = vpop.eup %2872  ;;  %2884 = vtanh.f32 %v4042_v44  ;;  %1650 = vmatpush.msra.mxu1 %v2871_v28 }
 0x1e9   : > { %v2875_v7 = vpop.eup %2874  ;;  %2886 = vtanh.f32 %v4044_v58  ;;  %v4108_v6 = vpop.f32.mrf.mxu2  ;;  %1613 = vmatpush.msra.mxu0 %v2865_v8  ;;  %2692 = vmatpush.msk.msra.mxu2 %vm1583_vm2, %v2873_v29  ;;  %v4197_v8 = vld [vmem:[%s4934_s4] sm:$0xff] }
 0x1ea   : > { %v4110_v47 = vpop.f32.mrf.mxu3  ;;  %v2877_v17 = vpop.eup %2876  ;;  %2888 = vtanh.f32 %v4022_v9  ;;  %1651 = vmatpush.msra.mxu1 %v2867_v59  ;;  %2700 = vmatpush.msk.msra.mxu3 %vm1583_vm2, %v2875_v7  ;;  %v4218_v7 = vld [vmem:[%s4934_s4 + $0x8] sm:$0xff] }
 0x1eb   : > { %v4115_v22 = vpop.f32.mrf.mxu0  ;;  %v4117_v44 = vpop.f32.mrf.mxu1  ;;  %2890 = vtanh.f32 %v4024_v45  ;;  %1614 = vmatpush.msra.mxu0 %v2853_v5  ;;  %1687 = vmatpush.msra.mxu2 %v2877_v17  ;;  %5056 = vst [vmem:[#allocation110_spill] sm:$0xff] %v4218_v7 }
 0x1ec   : > { %v2879_v53 = vpop.eup %2878  ;;  %2892 = vtanh.f32 %v4010_v4  ;;  %1652 = vmatpush.msra.mxu1 %v2855_v55 }
 0x1ed   : > { %v2881_v58 = vpop.eup %2880  ;;  %1725 = vmatpush.msra.mxu3 %v2879_v53  ;;  %2894 = vtanh.f32 %v4012_v40  ;;  %1615 = vmatpush.msra.mxu0 %v2849_v50 }
 0x1ee   : > { %v2883_v38 = vpop.eup %2882  ;;  %1688 = vmatpush.msra.mxu2 %v2881_v58  ;;  %2896 = vtanh.f32 %v3998_v41  ;;  %1653 = vmatpush.msra.mxu1 %v2851_v23 }
 0x1ef   : > { %v2885_v9 = vpop.eup %2884  ;;  %1726 = vmatpush.msra.mxu3 %v2883_v38  ;;  %2898 = vtanh.f32 %v4000_v51  ;;  %1616 = vmatpush.msra.mxu0 %v4094_v3 }
 0x1f0   : > { %v2887_v54 = vpop.eup %2886  ;;  %1689 = vmatpush.msra.mxu2 %v2885_v9  ;;  %2900 = vtanh.f32 %v3982_v36  ;;  %1654 = vmatpush.msra.mxu1 %v4096_v0  ;;  %v4239_v9 = vld [vmem:[%s4934_s4 + $0x10] sm:$0xff] }
 0x1f1   : > { %v2889_v45 = vpop.eup %2888  ;;  %1727 = vmatpush.msra.mxu3 %v2887_v54  ;;  %2902 = vtanh.f32 %v3984_v46  ;;  %v4128_v40 = vpop.f32.mrf.mxu2  ;;  %1617 = vmatpush.msra.mxu0 %v4090_v60  ;;  %5057 = vst [vmem:[#allocation111_spill] sm:$0xff] %v4239_v9 }
 0x1f2   : > { %v2891_v4 = vpop.eup %2890  ;;  %v4130_v41 = vpop.f32.mrf.mxu3  ;;  %1690 = vmatpush.msra.mxu2 %v2889_v45  ;;  %2904 = vtanh.f32 %v3966_v37  ;;  %1655 = vmatpush.msra.mxu1 %v4092_v18 }
 0x1f3   : > { %v2893_v51 = vpop.eup %2892  ;;  %1728 = vmatpush.msra.mxu3 %v2891_v4  ;;  %v4135_v3 = vpop.f32.mrf.mxu0  ;;  %2906 = vtanh.f32 %v3968_v61  ;;  %1618 = vmatpush.msra.mxu0 %v4086_v42 }
 0x1f4   : > { %v4137_v23 = vpop.f32.mrf.mxu1  ;;  %v2895_v36 = vpop.eup %2894  ;;  %1691 = vmatpush.msra.mxu2 %v2893_v51  ;;  %2908 = vtanh.f32 %v3950_v32  ;;  %1656 = vmatpush.msra.mxu1 %v4088_v62 }
 0x1f5   : > { %v2897_v46 = vpop.eup %2896  ;;  %1729 = vmatpush.msra.mxu3 %v2895_v36  ;;  %2910 = vtanh.f32 %v3952_v56  ;;  %1619 = vmatpush.msra.mxu0 %v4080_v57  ;;  %v4258_v36 = vld [vmem:[%s4934_s4 + $0x18] sm:$0xff] }
 0x1f6   : > { %v2899_v37 = vpop.eup %2898  ;;  %1692 = vmatpush.msra.mxu2 %v2897_v46  ;;  %2912 = vtanh.f32 %v3934_v33  ;;  %1657 = vmatpush.msra.mxu1 %v4083_v43  ;;  %5058 = vst [vmem:[#allocation112_spill] sm:$0xff] %v4258_v36 }
 0x1f7   : > { %v2901_v18 = vpop.eup %2900  ;;  %1730 = vmatpush.msra.mxu3 %v2899_v37  ;;  %2914 = vtanh.f32 %v3936_v39  ;;  %1620 = vmatpush.msra.mxu0 %v4074_v25 }
 0x1f8   : > { %v2903_v61 = vpop.eup %2902  ;;  %1693 = vmatpush.msra.mxu2 %v2901_v18  ;;  %2916 = vtanh.f32 %v3918_v24  ;;  %1658 = vmatpush.msra.mxu1 %v4077_v63 }
 0x1f9   : > { %v2905_v62 = vpop.eup %2904  ;;  %1731 = vmatpush.msra.mxu3 %v2903_v61  ;;  %2918 = vtanh.f32 %v3920_v34  ;;  %v4152_v32 = vpop.f32.mrf.mxu2  ;;  %1621 = vmatpush.msra.mxu0 %v4068_v48 }
 0x1fa   : > { %v2907_v56 = vpop.eup %2906  ;;  %v4154_v33 = vpop.f32.mrf.mxu3  ;;  %1694 = vmatpush.msra.mxu2 %v2905_v62  ;;  %2920 = vtanh.f32 %v3902_v26  ;;  %1659 = vmatpush.msra.mxu1 %v4071_v52  ;;  %v4280_v62 = vld [vmem:[%s4934_s4 + $0x20] sm:$0xff] }
 0x1fb   : > { %v2909_v39 = vpop.eup %2908  ;;  %1732 = vmatpush.msra.mxu3 %v2907_v56  ;;  %v4159_v24 = vpop.f32.mrf.mxu0  ;;  %2922 = vtanh.f32 %v3904_v27  ;;  %1622 = vmatpush.msra.mxu0 %v4058_v49  ;;  %5059 = vst [vmem:[#allocation113_spill] sm:$0xff] %v4280_v62 }
 0x1fc   : > { %v4161_v63 = vpop.f32.mrf.mxu1  ;;  %v2911_v25 = vpop.eup %2910  ;;  %1695 = vmatpush.msra.mxu2 %v2909_v39  ;;  %2924 = vtanh.f32 %v3886_v21  ;;  %1660 = vmatpush.msra.mxu1 %v4065_v35 }
 0x1fd   : > { %v2913_v34 = vpop.eup %2912  ;;  %1733 = vmatpush.msra.mxu3 %v2911_v25  ;;  %2926 = vtanh.f32 %v3888_v16  ;;  %1623 = vmatpush.msra.mxu0 %v4048_v12 }
 0x1fe   : > { %v2915_v26 = vpop.eup %2914  ;;  %1696 = vmatpush.msra.mxu2 %v2913_v34  ;;  %1661 = vmatpush.msra.mxu1 %v4051_v31  ;;  %2928 = vtanh.f32 %v4100_v30 }
 0x1ff   : > { %v2917_v48 = vpop.eup %2916  ;;  %1734 = vmatpush.msra.mxu3 %v2915_v26  ;;  %2677 = vmatmul.msk.f32.vlgmr.msra.gmra.mxu0 %vm1561_vm3, %v4197_v8  ;;  %2930 = vtanh.f32 %v4102_v1 }
 0x200   : > { %v2919_v27 = vpop.eup %2918  ;;  %1697 = vmatpush.msra.mxu2 %v2917_v48  ;;  %2685 = vmatmul.msk.f32.vlgmr.msra.gmra.mxu1 %vm1561_vm3, %v4197_v8  ;;  %2932 = vtanh.f32 %v4115_v22 }
 0x201   : > { %v2921_v49 = vpop.eup %2920  ;;  %1735 = vmatpush.msra.mxu3 %v2919_v27  ;;  %v4170_v57 = vpop.f32.mrf.mxu2  ;;  %2934 = vtanh.f32 %v4117_v44  ;;  %v4311_v44 = vld [vmem:[%s4934_s4 + $0x28] sm:$0xff] }
 0x202   : > { %v2923_v52 = vpop.eup %2922  ;;  %v4172_v21 = vpop.f32.mrf.mxu3  ;;  %1698 = vmatpush.msra.mxu2 %v2921_v49  ;;  %2936 = vtanh.f32 %v4135_v3  ;;  %5060 = vst [vmem:[#allocation114_spill] sm:$0xff] %v4311_v44 }
 0x203   : > { %v2925_v35 = vpop.eup %2924  ;;  %1736 = vmatpush.msra.mxu3 %v2923_v52  ;;  %v4174_v16 = vpop.f32.mrf.mxu0  ;;  %2938 = vtanh.f32 %v4137_v23 }
 0x204   : > { %v4176_v12 = vpop.f32.mrf.mxu1  ;;  %v2927_v43 = vpop.eup %2926  ;;  %1699 = vmatpush.msra.mxu2 %v2925_v35  ;;  %2940 = vtanh.f32 %v4159_v24 }
 0x205   : > { %1737 = vmatpush.msra.mxu3 %v2927_v43  ;;  %2693 = vmatmul.msk.f32.vlgmr.msra.gmra.mxu2 %vm1561_vm3, %v4197_v8  ;;  %v4299_v25 = vpop.eup %2928  ;;  %2942 = vtanh.f32 %v4161_v63  ;;  %v4348_v43 = vld [vmem:[%s4934_s4 + $0x30] sm:$0x7f] }
 0x206   : > { %2701 = vmatmul.msk.f32.vlgmr.msra.gmra.mxu3 %vm1561_vm3, %v4197_v8  ;;  %v4302_v22 = vpop.eup %2930  ;;  %2944 = vtanh.f32 %v4174_v16  ;;  %5061 = vst [vmem:[#allocation115_spill] sm:$0xff] %v4348_v43 }
 0x207   : > { %2678 = vmatmul.msk.f32.gmra.mxu0 %vm1561_vm3, %v4218_v7  ;;  %v4305_v34 = vpop.eup %2932  ;;  %2946 = vtanh.f32 %v4176_v12 }
 0x208   : > { %2686 = vmatmul.msk.f32.gmra.mxu1 %vm1561_vm3, %v4218_v7  ;;  %v4313_v3 = vpop.eup %2934 }
 0x209   : > { %v4178_v31 = vpop.f32.mrf.mxu2  ;;  %v4320_v23 = vpop.eup %2936 }
 0x20a   : > { %v4180_v42 = vpop.f32.mrf.mxu3  ;;  %v4327_v24 = vpop.eup %2938 }
 0x20b   : > { %v4182_v60 = vpop.f32.mrf.mxu0  ;;  %v4330_v48 = vpop.eup %2940 }
 0x20c   : > { %v4184_v0 = vpop.f32.mrf.mxu1  ;;  %2948 = vtanh.f32 %v4182_v60  ;;  %v4333_v52 = vpop.eup %2942 }
 0x20d   : > { %2694 = vmatmul.msk.f32.gmra.mxu2 %vm1561_vm3, %v4218_v7  ;;  %2950 = vtanh.f32 %v4184_v0  ;;  %v4336_v35 = vpop.eup %2944 }
 0x20e   : > { %2702 = vmatmul.msk.f32.gmra.mxu3 %vm1561_vm3, %v4218_v7  ;;  %v4339_v16 = vpop.eup %2946 }
 0x20f   : > { %2679 = vmatmul.msk.f32.gmra.mxu0 %vm1561_vm3, %v4239_v9 }
 0x210   : > { %2687 = vmatmul.msk.f32.gmra.mxu1 %vm1561_vm3, %v4239_v9 }
 0x211   : > { %v4186_v50 = vpop.f32.mrf.mxu2 }
 0x212   : > { %v4188_v5 = vpop.f32.mrf.mxu3  ;;  %v4342_v12 = vpop.eup %2948 }
 0x213   : > { %v4190_v55 = vpop.f32.mrf.mxu0  ;;  %v4350_v60 = vpop.eup %2950 }
 0x214   : > { %v4192_v2 = vpop.f32.mrf.mxu1  ;;  %2952 = vtanh.f32 %v4190_v55 }
 0x215   : > { %2695 = vmatmul.msk.f32.gmra.mxu2 %vm1561_vm3, %v4239_v9  ;;  %2954 = vtanh.f32 %v4192_v2 }
 0x216   : > { %2703 = vmatmul.msk.f32.gmra.mxu3 %vm1561_vm3, %v4239_v9 }
 0x217   : > { %2680 = vmatmul.msk.f32.gmra.mxu0 %vm1561_vm3, %v4258_v36 }
 0x218   : > { %2688 = vmatmul.msk.f32.gmra.mxu1 %vm1561_vm3, %v4258_v36 }
 0x219   : > { %v4207_v59 = vpop.f32.mrf.mxu2 }
 0x21a   : > { %v4209_v13 = vpop.f32.mrf.mxu3  ;;  %v4357_v0 = vpop.eup %2952 }
 0x21b   : > { %v4211_v28 = vpop.f32.mrf.mxu0  ;;  %v4363_v55 = vpop.eup %2954 }
 0x21c   : > { %v4213_v29 = vpop.f32.mrf.mxu1  ;;  %2956 = vtanh.f32 %v4211_v28 }
 0x21d   : > { %2696 = vmatmul.msk.f32.gmra.mxu2 %vm1561_vm3, %v4258_v36  ;;  %2958 = vtanh.f32 %v4213_v29 }
 0x21e   : > { %2704 = vmatmul.msk.f32.gmra.mxu3 %vm1561_vm3, %v4258_v36 }
 0x21f   : > { %2681 = vmatmul.msk.f32.gmra.mxu0 %vm1561_vm3, %v4280_v62 }
 0x220   : > { %2689 = vmatmul.msk.f32.gmra.mxu1 %vm1561_vm3, %v4280_v62 }
 0x221   : > { %v4228_v17 = vpop.f32.mrf.mxu2 }
 0x222   : > { %v4230_v53 = vpop.f32.mrf.mxu3  ;;  %v4366_v29 = vpop.eup %2956 }
 0x223   : > { %v4232_v58 = vpop.f32.mrf.mxu0 }
 0x224   : > { %v4234_v38 = vpop.f32.mrf.mxu1  ;;  %2960 = vtanh.f32 %v4232_v58 }
 0x225   : > { %2697 = vmatmul.msk.f32.gmra.mxu2 %vm1561_vm3, %v4280_v62  ;;  %2962 = vtanh.f32 %v4234_v38 }
 0x226   : > { %2705 = vmatmul.msk.f32.gmra.mxu3 %vm1561_vm3, %v4280_v62 }
 0x227   : > { %2682 = vmatmul.msk.f32.gmra.mxu0 %vm1561_vm3, %v4311_v44 }
 0x228   : > { %2690 = vmatmul.msk.f32.gmra.mxu1 %vm1561_vm3, %v4311_v44 }
 0x229   : > { %v4249_v54 = vpop.f32.mrf.mxu2 }
 0x22a   : > { %v4251_v45 = vpop.f32.mrf.mxu3 }
 0x22b   : > { %v1243_v4 = vpop.f32.mrf.mxu0 }
 0x22c   : > { %v4253_v51 = vpop.f32.mrf.mxu1  ;;  %2964 = vtanh.f32 %v1243_v4 }
 0x22d   : > { %2698 = vmatmul.msk.f32.gmra.mxu2 %vm1561_vm3, %v4311_v44  ;;  %2966 = vtanh.f32 %v4253_v51 }
 0x22e   : > { %2706 = vmatmul.msk.f32.gmra.mxu3 %vm1561_vm3, %v4311_v44  ;;  %v4368_v44 = vpop.eup %2958 }
 0x22f   : > { %2683 = vmatmul.msk.f32.gmra.mxu0 %vm1561_vm3, %v4348_v43  ;;  %v2961_v4 = vpop.eup %2960 }
 0x230   : > { %2691 = vmatmul.msk.f32.gmra.mxu1 %vm1561_vm3, %v4348_v43  ;;  %v2963_v62 = vpop.eup %2962 }
 0x231   : > { %v4268_v46 = vpop.f32.mrf.mxu2 }
 0x232   : > { %v4270_v37 = vpop.f32.mrf.mxu3  ;;  %v2965_v36 = vpop.eup %2964 }
 0x233   : > { %v4272_v18 = vpop.f32.mrf.mxu0 }
 0x234   : > { %v4274_v61 = vpop.f32.mrf.mxu1 }
 0x235   : > { %2699 = vmatmul.msk.f32.gmra.mxu2 %vm1561_vm3, %v4348_v43 }
 0x236   : > { %2707 = vmatmul.msk.f32.gmra.mxu3 %vm1561_vm3, %v4348_v43  ;;  %v2967_v43 = vpop.eup %2966 }
 0x239   : > { %v4293_v30 = vpop.f32.mrf.mxu2 }
 0x23a   : > { %v4295_v56 = vpop.f32.mrf.mxu3 }
 0x23b   : > { %v1249_v1 = vpop.f32.mrf.mxu0 }
 0x23c   : > { %v1308_v39 = vpop.f32.mrf.mxu1 }
 0x241   : > { %v1367_v63 = vpop.f32.mrf.mxu2 }
 0x242   : > { %v1426_v26 = vpop.f32.mrf.mxu3 }
 0x243   : > { %v1252_v27 = vpop.f32.mrf.mxu0 }
 0x244   : > { %v1311_v49 = vpop.f32.mrf.mxu1  ;;  %2968 = vtanh.f32 %v1252_v27 }
 0x245   : > { %2970 = vtanh.f32 %v1311_v49 }
 0x249   : > { %v1370_v2 = vpop.f32.mrf.mxu2 }
 0x24a   : > { %v1429_v28 = vpop.f32.mrf.mxu3  ;;  %v2969_v51 = vpop.eup %2968 }
 0x24b   : > { %v1255_v58 = vpop.f32.mrf.mxu0  ;;  %v2971_v9 = vpop.eup %2970 }
 0x24c   : > { %v1314_v38 = vpop.f32.mrf.mxu1  ;;  %2972 = vtanh.f32 %v1255_v58  ;;  %v5074_v58 = vld [vmem:[#allocation35_spill] sm:$0xff] }
 0x24d   : > { %2974 = vtanh.f32 %v1314_v38  ;;  %v860_v38 = vmax.f32 %v5074_v58, 0.0  ;;  %v5107_v58 = vld [vmem:[#allocation2_spill] sm:$0xff] }
 0x24e   : > { %2976 = vtanh.f32 %v4272_v18 }
 0x24f   : > { %2978 = vtanh.f32 %v4274_v61 }
 0x250   : > { %2980 = vtanh.f32 %v1249_v1 }
 0x251   : > { %2982 = vtanh.f32 %v1308_v39  ;;  %v1373_v27 = vpop.f32.mrf.mxu2 }
 0x252   : > { %v1432_v7 = vpop.f32.mrf.mxu3  ;;  %v2973_v11 = vpop.eup %2972  ;;  %2984 = vtanh.f32 %v1373_v27  ;;  %v5076_v27 = vld [vmem:[#allocation49_spill] sm:$0xff] }
 0x253   : > { %v2975_v10 = vpop.eup %2974  ;;  %2986 = vtanh.f32 %v1432_v7  ;;  %2708 = vmatpush.msk.msrb.mxu0 %vm1583_vm2, %v2973_v11 }
 0x254   : > { %v2977_v49 = vpop.eup %2976  ;;  %2988 = vtanh.f32 %v1370_v2  ;;  %2716 = vmatpush.msk.msrb.mxu1 %vm1583_vm2, %v2975_v10 }
 0x255   : > { %v2979_v18 = vpop.eup %2978  ;;  %2990 = vtanh.f32 %v1429_v28  ;;  %1763 = vmatpush.msrb.mxu0 %v2969_v51  ;;  %v5072_v28 = vld [vmem:[#allocation110_spill] sm:$0xff] }
 0x256   : > { %v2981_v61 = vpop.eup %2980  ;;  %2992 = vtanh.f32 %v1367_v63  ;;  %1801 = vmatpush.msrb.mxu1 %v2971_v9  ;;  %v5066_v63 = vld [vmem:[#allocation52_spill] sm:$0xff] }
 0x257   : > { %v2983_v1 = vpop.eup %2982  ;;  %2994 = vtanh.f32 %v1426_v26  ;;  %1764 = vmatpush.msrb.mxu0 %v2981_v61  ;;  %v901_v26 = vmax.f32 %v5066_v63, 0.0  ;;  %v5099_v63 = vld [vmem:[#allocation11_spill] sm:$0xff] }
 0x258   : > { %v2985_v39 = vpop.eup %2984  ;;  %2996 = vtanh.f32 %v4293_v30  ;;  %1802 = vmatpush.msrb.mxu1 %v2983_v1  ;;  %v5078_v1 = vld [vmem:[#allocation31_spill] sm:$0xff] }
 0x259   : > { %v2987_v7 = vpop.eup %2986  ;;  %2998 = vtanh.f32 %v4295_v56  ;;  %1765 = vmatpush.msrb.mxu0 %v2977_v49  ;;  %2724 = vmatpush.msk.msrb.mxu2 %vm1583_vm2, %v2985_v39  ;;  %v886_v49 = vmax.f32 %v5076_v27, 0.0  ;;  %v852_v39 = vmax.f32 %v5078_v1, 0.0  ;;  %v5109_v27 = vld [vmem:[#allocation16_spill] sm:$0xff]  ;;  %v5111_v1 = vld [vmem:[#allocation106_spill] sm:$0xff] }
 0x25a   : > { %v2989_v10 = vpop.eup %2988  ;;  %3000 = vtanh.f32 %v4268_v46  ;;  %1803 = vmatpush.msrb.mxu1 %v2979_v18  ;;  %2732 = vmatpush.msk.msrb.mxu3 %vm1583_vm2, %v2987_v7  ;;  %v5077_v18 = vld [vmem:[#allocation30_spill] sm:$0xff]  ;;  %v5079_v7 = vld [vmem:[#allocation44_spill] sm:$0xff] }
 0x25b   : > { %v2991_v11 = vpop.eup %2990  ;;  %3002 = vtanh.f32 %v4270_v37  ;;  %1766 = vmatpush.msrb.mxu0 %v2965_v36  ;;  %1839 = vmatpush.msrb.mxu2 %v2989_v10  ;;  %v900_v37 = vmax.f32 %v3571_v20, 0.0  ;;  %v851_v61 = vmax.f32 %v5077_v18, 0.0  ;;  %v877_v10 = vmax.f32 %v5079_v7, 0.0  ;;  %v5110_v18 = vld [vmem:[#allocation17_spill] sm:$0xff]  ;;  %v5112_v7 = vld [vmem:[#allocation107_spill] sm:$0xff] }
 0x25c   : > { %v2993_v9 = vpop.eup %2992  ;;  %3004 = vtanh.f32 %v4249_v54  ;;  %1804 = vmatpush.msrb.mxu1 %v2967_v43  ;;  %1877 = vmatpush.msrb.mxu3 %v2991_v11  ;;  %v5080_v11 = vld [vmem:[#allocation45_spill] sm:$0xff] }
 0x25d   : > { %v2995_v30 = vpop.eup %2994  ;;  %3006 = vtanh.f32 %v4251_v45  ;;  %1767 = vmatpush.msrb.mxu0 %v2961_v4  ;;  %1840 = vmatpush.msrb.mxu2 %v2993_v9  ;;  %v5075_v4 = vld [vmem:[#allocation48_spill] sm:$0xff]  ;;  %v878_v9 = vmax.f32 %v5080_v11, 0.0 }
 0x25e   : > { %v2997_v56 = vpop.eup %2996  ;;  %3008 = vtanh.f32 %v4228_v17  ;;  %1805 = vmatpush.msrb.mxu1 %v2963_v62  ;;  %1878 = vmatpush.msrb.mxu3 %v2995_v30  ;;  %v892_v62 = vmax.f32 %v3550_v15, 0.0  ;;  %v5064_v15 = vld [vmem:[#allocation42_spill] sm:$0xff]  ;;  %v885_v51 = vmax.f32 %v5075_v4, 0.0  ;;  %v5108_v4 = vld [vmem:[#allocation3_spill] sm:$0xff]  ;;  %v5113_v11 = vld [vmem:[#allocation12_spill] sm:$0xff] }
 0x25f   : > { %v2999_v46 = vpop.eup %2998  ;;  %3010 = vtanh.f32 %v4230_v53  ;;  %1768 = vmatpush.msrb.mxu0 %v4366_v29  ;;  %1841 = vmatpush.msrb.mxu2 %v2997_v56  ;;  %v5081_v30 = vld [vmem:[#allocation26_spill] sm:$0xff] }
 0x260   : > { %v3001_v36 = vpop.eup %3000  ;;  %3012 = vtanh.f32 %v4207_v59  ;;  %1806 = vmatpush.msrb.mxu1 %v4368_v44  ;;  %1879 = vmatpush.msrb.mxu3 %v2999_v46  ;;  %v843_v56 = vmax.f32 %v5081_v30, 0.0  ;;  %v5082_v46 = vld [vmem:[#allocation27_spill] sm:$0xff]  ;;  %v5114_v30 = vld [vmem:[#allocation13_spill] sm:$0xff] }
 0x261   : > { %v3003_v54 = vpop.eup %3002  ;;  %3014 = vtanh.f32 %v4209_v13  ;;  %1769 = vmatpush.msrb.mxu0 %v4357_v0  ;;  %1842 = vmatpush.msrb.mxu2 %v3001_v36  ;;  %v844_v36 = vmax.f32 %v5082_v46, 0.0  ;;  %v5115_v46 = vld [vmem:[#allocation102_spill] sm:$0xff] }
 0x262   : > { %v3005_v17 = vpop.eup %3004  ;;  %3016 = vtanh.f32 %v4186_v50  ;;  %1807 = vmatpush.msrb.mxu1 %v4363_v55  ;;  %1880 = vmatpush.msrb.mxu3 %v3003_v54  ;;  %v5071_v55 = vld [vmem:[#allocation51_spill] sm:$0xff]  ;;  %v5083_v54 = vld [vmem:[#allocation40_spill] sm:$0xff] }
 0x263   : > { %v3007_v53 = vpop.eup %3006  ;;  %3018 = vtanh.f32 %v4188_v5  ;;  %1770 = vmatpush.msrb.mxu0 %v4342_v12  ;;  %1843 = vmatpush.msrb.mxu2 %v3005_v17  ;;  %v5069_v12 = vld [vmem:[#allocation39_spill] sm:$0xff]  ;;  %v894_v2 = vmax.f32 %v5071_v55, 0.0  ;;  %v869_v17 = vmax.f32 %v5083_v54, 0.0  ;;  %v5104_v55 = vld [vmem:[#allocation20_spill] sm:$0xff] }
 0x264   : > { %v3009_v59 = vpop.eup %3008  ;;  %3020 = vtanh.f32 %v4178_v31  ;;  %1808 = vmatpush.msrb.mxu1 %v4350_v60  ;;  %1881 = vmatpush.msrb.mxu3 %v3007_v53  ;;  %v868_v43 = vmax.f32 %v5069_v12, 0.0  ;;  %v5070_v60 = vld [vmem:[#allocation50_spill] sm:$0xff]  ;;  %v5084_v53 = vld [vmem:[#allocation41_spill] sm:$0xff]  ;;  %v5116_v54 = vld [vmem:[#allocation103_spill] sm:$0xff] }
 0x265   : > { %v3011_v13 = vpop.eup %3010  ;;  %3022 = vtanh.f32 %v4180_v42  ;;  %1771 = vmatpush.msrb.mxu0 %v4336_v35  ;;  %1844 = vmatpush.msrb.mxu2 %v3009_v59  ;;  %v5068_v35 = vld [vmem:[#allocation38_spill] sm:$0xff]  ;;  %v893_v0 = vmax.f32 %v5070_v60, 0.0  ;;  %v870_v59 = vmax.f32 %v5084_v53, 0.0  ;;  %v5103_v60 = vld [vmem:[#allocation7_spill] sm:$0xff]  ;;  %v5117_v53 = vld [vmem:[#allocation8_spill] sm:$0xff] }
 0x266   : > { %v3013_v50 = vpop.eup %3012  ;;  %3024 = vtanh.f32 %v4170_v57  ;;  %1809 = vmatpush.msrb.mxu1 %v4339_v16  ;;  %1882 = vmatpush.msrb.mxu3 %v3011_v13  ;;  %v867_v16 = vmax.f32 %v5068_v35, 0.0  ;;  %v5085_v13 = vld [vmem:[#allocation22_spill] sm:$0xff]  ;;  %v5101_v35 = vld [vmem:[#allocation25_spill] sm:$0xff] }
 0x267   : > { %v3015_v5 = vpop.eup %3014  ;;  %3026 = vtanh.f32 %v4172_v21  ;;  %1772 = vmatpush.msrb.mxu0 %v4330_v48  ;;  %1845 = vmatpush.msrb.mxu2 %v3013_v50  ;;  %v5067_v48 = vld [vmem:[#allocation53_spill] sm:$0xff]  ;;  %v835_v50 = vmax.f32 %v5085_v13, 0.0  ;;  %v5102_v12 = vld [vmem:[#allocation6_spill] sm:$0xff] }
 0x268   : > { %v3017_v31 = vpop.eup %3016  ;;  %1810 = vmatpush.msrb.mxu1 %v4333_v52  ;;  %1883 = vmatpush.msrb.mxu3 %v3015_v5  ;;  %3028 = vtanh.f32 %v4152_v32  ;;  %v902_v52 = vmax.f32 %v5067_v48, 0.0  ;;  %v5086_v5 = vld [vmem:[#allocation23_spill] sm:$0xff]  ;;  %v5100_v48 = vld [vmem:[#allocation24_spill] sm:$0xff]  ;;  %v5118_v13 = vld [vmem:[#allocation9_spill] sm:$0xff] }
 0x269   : > { %v3019_v42 = vpop.eup %3018  ;;  %1773 = vmatpush.msrb.mxu0 %v4320_v23  ;;  %1846 = vmatpush.msrb.mxu2 %v3017_v31  ;;  %3030 = vtanh.f32 %v4154_v33  ;;  %v899_v33 = vmax.f32 %v3569_v19, 0.0  ;;  %v5065_v23 = vld [vmem:[#allocation43_spill] sm:$0xff]  ;;  %v836_v31 = vmax.f32 %v5086_v5, 0.0  ;;  %v5119_v5 = vld [vmem:[#allocation98_spill] sm:$0xff] }
 0x26a   : > { %v3021_v57 = vpop.eup %3020  ;;  %1811 = vmatpush.msrb.mxu1 %v4327_v24  ;;  %1884 = vmatpush.msrb.mxu3 %v3019_v42  ;;  %3032 = vtanh.f32 %v4128_v40  ;;  %v876_v24 = vmax.f32 %v5065_v23, 0.0  ;;  %v5087_v42 = vld [vmem:[#allocation36_spill] sm:$0xff]  ;;  %v5098_v23 = vld [vmem:[#allocation10_spill] sm:$0xff] }
 0x26b   : > { %v3023_v21 = vpop.eup %3022  ;;  %1774 = vmatpush.msrb.mxu0 %v4305_v34  ;;  %1847 = vmatpush.msrb.mxu2 %v3021_v57  ;;  %3034 = vtanh.f32 %v4130_v41  ;;  %v891_v41 = vmax.f32 %v3548_v14, 0.0  ;;  %v861_v57 = vmax.f32 %v5087_v42, 0.0  ;;  %v5120_v42 = vld [vmem:[#allocation99_spill] sm:$0xff] }
 0x26c   : > { %v3025_v45 = vpop.eup %3024  ;;  %1812 = vmatpush.msrb.mxu1 %v4313_v3  ;;  %1885 = vmatpush.msrb.mxu3 %v3023_v21  ;;  %3036 = vtanh.f32 %v4108_v6  ;;  %v875_v3 = vmax.f32 %v5064_v15, 0.0  ;;  %v5088_v21 = vld [vmem:[#allocation37_spill] sm:$0xff] }
 0x26d   : > { %v3027_v32 = vpop.eup %3026  ;;  %1775 = vmatpush.msrb.mxu0 %v4299_v25  ;;  %1848 = vmatpush.msrb.mxu2 %v3025_v45  ;;  %3038 = vtanh.f32 %v4110_v47  ;;  %v5062_v47 = vld [vmem:[#allocation46_spill] sm:$0xff]  ;;  %v862_v45 = vmax.f32 %v5088_v21, 0.0  ;;  %v5097_v15 = vld [vmem:[#allocation29_spill] sm:$0xff]  ;;  %v5121_v21 = vld [vmem:[#allocation4_spill] sm:$0xff] }
 0x26e   : > { %1813 = vmatpush.msrb.mxu1 %v4302_v22  ;;  %1886 = vmatpush.msrb.mxu3 %v3027_v32  ;;  %v3029_v40 = vpop.eup %3028  ;;  %v883_v25 = vmax.f32 %v5062_v47, 0.0  ;;  %v5063_v22 = vld [vmem:[#allocation47_spill] sm:$0xff]  ;;  %v5094_v47 = vld [vmem:[#allocation14_spill] sm:$0xff] }
 0x26f   : > { %2709 = vmatmul.msk.f32.vlgmr.msrb.gmra.mxu0 %vm1561_vm3, %v4197_v8  ;;  %2717 = vmatmul.msk.f32.vlgmr.msrb.gmra.mxu1 %vm1561_vm3, %v4197_v8  ;;  %v3031_v6 = vpop.eup %3030  ;;  %v884_v34 = vmax.f32 %v5063_v22, 0.0  ;;  %v5089_v32 = vld [vmem:[#allocation111_spill] sm:$0xff] }
 0x270   : > { %2740 = vmatpush.msk.msra.mxu0 %vm1583_vm2, %v899_v33  ;;  %2748 = vmatpush.msk.msra.mxu1 %vm1583_vm2, %v900_v37  ;;  %v3033_v19 = vpop.eup %3032  ;;  %v5090_v33 = vld [vmem:[#allocation18_spill] sm:$0xff]  ;;  %v5095_v22 = vld [vmem:[#allocation15_spill] sm:$0xff] }
 0x271   : > { %1849 = vmatpush.msrb.mxu2 %v3029_v40  ;;  %1887 = vmatpush.msrb.mxu3 %v3031_v6  ;;  %v3035_v20 = vpop.eup %3034  ;;  %v827_v37 = vmax.f32 %v5090_v33, 0.0  ;;  %v5091_v40 = vld [vmem:[#allocation19_spill] sm:$0xff] }
 0x272   : > { %1960 = vmatpush.msra.mxu0 %v891_v41  ;;  %1998 = vmatpush.msra.mxu1 %v892_v62  ;;  %v3037_v44 = vpop.eup %3036  ;;  %v828_v6 = vmax.f32 %v5091_v40, 0.0  ;;  %v5092_v41 = vld [vmem:[#allocation32_spill] sm:$0xff] }
 0x273   : > { %1850 = vmatpush.msrb.mxu2 %v3033_v19  ;;  %1888 = vmatpush.msrb.mxu3 %v3035_v20  ;;  %v3039_v14 = vpop.eup %3038  ;;  %v853_v62 = vmax.f32 %v5092_v41, 0.0  ;;  %v5093_v19 = vld [vmem:[#allocation33_spill] sm:$0xff] }
 0x274   : > { %1961 = vmatpush.msra.mxu0 %v883_v25  ;;  %1999 = vmatpush.msra.mxu1 %v884_v34  ;;  %v854_v20 = vmax.f32 %v5093_v19, 0.0  ;;  %v819_v25 = vmax.f32 %v5094_v47, 0.0  ;;  %v820_v34 = vmax.f32 %v5095_v22, 0.0  ;;  %v5126_v19 = vld [vmem:[#allocation108_spill] sm:$0xff]  ;;  %v5127_v47 = vld [vmem:[#allocation109_spill] sm:$0xff]  ;;  %v5128_v22 = vld [vmem:[#allocation90_spill] sm:$0xff] }
 0x275   : > { %1851 = vmatpush.msrb.mxu2 %v3037_v44  ;;  %1889 = vmatpush.msrb.mxu3 %v3039_v14  ;;  %v5096_v44 = vld [vmem:[#allocation28_spill] sm:$0xff] }
 0x276   : > { %2725 = vmatmul.msk.f32.vlgmr.msrb.gmra.mxu2 %vm1561_vm3, %v4197_v8  ;;  %2733 = vmatmul.msk.f32.vlgmr.msrb.gmra.mxu3 %vm1561_vm3, %v4197_v8  ;;  %v5073_v8 = vld [vmem:[#allocation34_spill] sm:$0xff]  ;;  %v845_v14 = vmax.f32 %v5096_v44, 0.0  ;;  %v5129_v44 = vld [vmem:[#allocation91_spill] sm:$0xff] }
 0x277   : > { %1962 = vmatpush.msra.mxu0 %v875_v3  ;;  %2000 = vmatpush.msra.mxu1 %v876_v24  ;;  %v859_v29 = vmax.f32 %v5073_v8, 0.0  ;;  %v846_v3 = vmax.f32 %v5097_v15, 0.0  ;;  %v811_v24 = vmax.f32 %v5098_v23, 0.0  ;;  %v5130_v15 = vld [vmem:[#allocation104_spill] sm:$0xff]  ;;  %v5131_v23 = vld [vmem:[#allocation105_spill] sm:$0xff] }
 0x278   : > { %2756 = vmatpush.msk.msra.mxu2 %vm1583_vm2, %v901_v26  ;;  %2764 = vmatpush.msk.msra.mxu3 %vm1583_vm2, %v902_v52  ;;  %v812_v26 = vmax.f32 %v5099_v63, 0.0  ;;  %v837_v52 = vmax.f32 %v5100_v48, 0.0  ;;  %v5132_v63 = vld [vmem:[#allocation86_spill] sm:$0xff]  ;;  %v5133_v48 = vld [vmem:[#allocation87_spill] sm:$0xff] }
 0x279   : > { %2710 = vmatmul.msk.f32.gmra.mxu0 %vm1561_vm3, %v5072_v28  ;;  %2718 = vmatmul.msk.f32.gmra.mxu1 %vm1561_vm3, %v5072_v28 }
 0x27a   : > { %1963 = vmatpush.msra.mxu0 %v867_v16  ;;  %2001 = vmatpush.msra.mxu1 %v868_v43  ;;  %v838_v16 = vmax.f32 %v5101_v35, 0.0  ;;  %v803_v43 = vmax.f32 %v5102_v12, 0.0  ;;  %v5134_v35 = vld [vmem:[#allocation100_spill] sm:$0xff]  ;;  %v5135_v12 = vld [vmem:[#allocation101_spill] sm:$0xff] }
 0x27b   : > { %2036 = vmatpush.msra.mxu2 %v893_v0  ;;  %2074 = vmatpush.msra.mxu3 %v894_v2  ;;  %v804_v0 = vmax.f32 %v5103_v60, 0.0  ;;  %v829_v2 = vmax.f32 %v5104_v55, 0.0  ;;  %v5136_v60 = vld [vmem:[#allocation82_spill] sm:$0xff]  ;;  %v5137_v55 = vld [vmem:[#allocation83_spill] sm:$0xff] }
 0x27c   : > { %1964 = vmatpush.msra.mxu0 %v859_v29  ;;  %2002 = vmatpush.msra.mxu1 %v860_v38  ;;  %v5106_v29 = vld [vmem:[#allocation112_spill] sm:$0xff]  ;;  %v795_v38 = vmax.f32 %v5107_v58, 0.0 }
 0x27d   : > { %2037 = vmatpush.msra.mxu2 %v885_v51  ;;  %2075 = vmatpush.msra.mxu3 %v886_v49  ;;  %v796_v51 = vmax.f32 %v5108_v4, 0.0  ;;  %v821_v49 = vmax.f32 %v5109_v27, 0.0 }
 0x27e   : > { %1965 = vmatpush.msra.mxu0 %v851_v61  ;;  %2003 = vmatpush.msra.mxu1 %v852_v39  ;;  %v822_v61 = vmax.f32 %v5110_v18, 0.0  ;;  %v903_v39 = vmax.f32 %v5111_v1, 0.0 }
 0x27f   : > { %2038 = vmatpush.msra.mxu2 %v877_v10  ;;  %2076 = vmatpush.msra.mxu3 %v878_v9  ;;  %v904_v10 = vmax.f32 %v5112_v7, 0.0  ;;  %v813_v9 = vmax.f32 %v5113_v11, 0.0  ;;  %v5145_v7 = vld [vmem:[#allocation74_spill] sm:$0xff]  ;;  %v5146_v11 = vld [vmem:[#allocation75_spill] sm:$0xff] }
 0x280   : > { %2726 = vmatmul.msk.f32.gmra.mxu2 %vm1561_vm3, %v5072_v28  ;;  %2734 = vmatmul.msk.f32.gmra.mxu3 %vm1561_vm3, %v5072_v28  ;;  %v5105_v28 = vld [vmem:[#allocation21_spill] sm:$0xff] }
 0x281   : > { %1966 = vmatpush.msra.mxu0 %v843_v56  ;;  %2004 = vmatpush.msra.mxu1 %v844_v36  ;;  %v830_v8 = vmax.f32 %v5105_v28, 0.0  ;;  %v814_v56 = vmax.f32 %v5114_v30, 0.0  ;;  %v895_v36 = vmax.f32 %v5115_v46, 0.0  ;;  %v5138_v28 = vld [vmem:[#allocation96_spill] sm:$0xff]  ;;  %v5148_v46 = vld [vmem:[#allocation89_spill] sm:$0xff] }
 0x282   : > { %2039 = vmatpush.msra.mxu2 %v869_v17  ;;  %2077 = vmatpush.msra.mxu3 %v870_v59  ;;  %v896_v17 = vmax.f32 %v5116_v54, 0.0  ;;  %v805_v59 = vmax.f32 %v5117_v53, 0.0  ;;  %v5147_v30 = vld [vmem:[#allocation88_spill] sm:$0xff]  ;;  %v5149_v54 = vld [vmem:[#allocation70_spill] sm:$0xff]  ;;  %v5150_v53 = vld [vmem:[#allocation71_spill] sm:$0xff] }
 0x283   : > { %2711 = vmatmul.msk.f32.gmra.mxu0 %vm1561_vm3, %v5089_v32  ;;  %2719 = vmatmul.msk.f32.gmra.mxu1 %vm1561_vm3, %v5089_v32 }
 0x284   : > { %1967 = vmatpush.msra.mxu0 %v835_v50  ;;  %2005 = vmatpush.msra.mxu1 %v836_v31  ;;  %v806_v50 = vmax.f32 %v5118_v13, 0.0  ;;  %v887_v31 = vmax.f32 %v5119_v5, 0.0  ;;  %v5151_v13 = vld [vmem:[#allocation84_spill] sm:$0xff]  ;;  %v5152_v5 = vld [vmem:[#allocation85_spill] sm:$0xff] }
 0x285   : > { %2040 = vmatpush.msra.mxu2 %v861_v57  ;;  %2078 = vmatpush.msra.mxu3 %v862_v45  ;;  %v888_v57 = vmax.f32 %v5120_v42, 0.0  ;;  %v797_v45 = vmax.f32 %v5121_v21, 0.0  ;;  %v4556_v42 = vpop.f32.mrf.mxu0  ;;  %v5153_v21 = vld [vmem:[#allocation66_spill] sm:$0xff] }
 0x286   : > { %1968 = vmatpush.msra.mxu0 %v827_v37  ;;  %2006 = vmatpush.msra.mxu1 %v828_v6  ;;  %v5123_v37 = vld [vmem:[#allocation94_spill] sm:$0xff]  ;;  %v5124_v6 = vld [vmem:[#allocation95_spill] sm:$0xff] }
 0x287   : > { %2041 = vmatpush.msra.mxu2 %v853_v62  ;;  %2079 = vmatpush.msra.mxu3 %v854_v20  ;;  %v879_v40 = vmax.f32 %v5123_v37, 0.0  ;;  %v880_v41 = vmax.f32 %v5124_v6, 0.0  ;;  %v5125_v62 = vld [vmem:[#allocation113_spill] sm:$0xff]  ;;  %v905_v20 = vmax.f32 %v5126_v19, 0.0  ;;  %v5155_v37 = vld [vmem:[#allocation80_spill] sm:$0xff] }
 0x288   : > { %1969 = vmatpush.msra.mxu0 %v819_v25  ;;  %2007 = vmatpush.msra.mxu1 %v820_v34  ;;  %v906_v25 = vmax.f32 %v5127_v47, 0.0  ;;  %v871_v34 = vmax.f32 %v5128_v22, 0.0  ;;  %v5156_v6 = vld [vmem:[#allocation81_spill] sm:$0xff] }
 0x289   : > { %2042 = vmatpush.msra.mxu2 %v845_v14  ;;  %2080 = vmatpush.msra.mxu3 %v846_v3  ;;  %v872_v14 = vmax.f32 %v5129_v44, 0.0  ;;  %v897_v3 = vmax.f32 %v5130_v15, 0.0  ;;  %v5162_v15 = vld [vmem:[#allocation58_spill] sm:$0xff] }
 0x28a   : > { %2727 = vmatmul.msk.f32.gmra.mxu2 %vm1561_vm3, %v5089_v32  ;;  %2735 = vmatmul.msk.f32.gmra.mxu3 %vm1561_vm3, %v5089_v32  ;;  %v5122_v32 = vld [vmem:[#allocation5_spill] sm:$0xff] }
 0x28b   : > { %1970 = vmatpush.msra.mxu0 %v811_v24  ;;  %2008 = vmatpush.msra.mxu1 %v812_v26  ;;  %v798_v33 = vmax.f32 %v5122_v32, 0.0  ;;  %v898_v24 = vmax.f32 %v5131_v23, 0.0  ;;  %v863_v26 = vmax.f32 %v5132_v63, 0.0  ;;  %v5154_v32 = vld [vmem:[#allocation67_spill] sm:$0xff]  ;;  %v5164_v63 = vld [vmem:[#allocation72_spill] sm:$0xff] }
 0x28c   : > { %2043 = vmatpush.msra.mxu2 %v837_v52  ;;  %2081 = vmatpush.msra.mxu3 %v838_v16  ;;  %v864_v52 = vmax.f32 %v5133_v48, 0.0  ;;  %v889_v16 = vmax.f32 %v5134_v35, 0.0  ;;  %v5163_v23 = vld [vmem:[#allocation59_spill] sm:$0xff]  ;;  %v5165_v48 = vld [vmem:[#allocation73_spill] sm:$0xff]  ;;  %v5166_v35 = vld [vmem:[#allocation54_spill] sm:$0xff] }
 0x28d   : > { %2712 = vmatmul.msk.f32.gmra.mxu0 %vm1561_vm3, %v5106_v29  ;;  %2720 = vmatmul.msk.f32.gmra.mxu1 %vm1561_vm3, %v5106_v29 }
 0x28e   : > { %1971 = vmatpush.msra.mxu0 %v803_v43  ;;  %2009 = vmatpush.msra.mxu1 %v804_v0  ;;  %v890_v43 = vmax.f32 %v5135_v12, 0.0  ;;  %v855_v0 = vmax.f32 %v5136_v60, 0.0  ;;  %v5167_v12 = vld [vmem:[#allocation55_spill] sm:$0xff]  ;;  %v5168_v60 = vld [vmem:[#allocation68_spill] sm:$0xff] }
 0x28f   : > { %2044 = vmatpush.msra.mxu2 %v829_v2  ;;  %2082 = vmatpush.msra.mxu3 %v830_v8  ;;  %v856_v2 = vmax.f32 %v5137_v55, 0.0  ;;  %v881_v8 = vmax.f32 %v5138_v28, 0.0  ;;  %v5169_v55 = vld [vmem:[#allocation69_spill] sm:$0xff]  ;;  %v4584_v28 = vpop.f32.mrf.mxu0 }
 0x290   : > { %1972 = vmatpush.msra.mxu0 %v795_v38  ;;  %2010 = vmatpush.msra.mxu1 %v796_v51  ;;  %v5140_v38 = vld [vmem:[#allocation78_spill] sm:$0xff]  ;;  %v5141_v51 = vld [vmem:[#allocation79_spill] sm:$0xff] }
 0x291   : > { %2045 = vmatpush.msra.mxu2 %v821_v49  ;;  %2083 = vmatpush.msra.mxu3 %v822_v61  ;;  %v847_v4 = vmax.f32 %v5140_v38, 0.0  ;;  %v848_v27 = vmax.f32 %v5141_v51, 0.0  ;;  %v5142_v49 = vld [vmem:[#allocation92_spill] sm:$0xff]  ;;  %v5143_v61 = vld [vmem:[#allocation93_spill] sm:$0xff]  ;;  %v4593_v51 = vld [vmem:[%s4933_s3] sm:$0xff] }
 0x292   : > { %2772 = vmatpush.msk.msrb.mxu0 %vm1583_vm2, %v903_v39  ;;  %2780 = vmatpush.msk.msrb.mxu1 %vm1583_vm2, %v904_v10  ;;  %v873_v18 = vmax.f32 %v5142_v49, 0.0  ;;  %v874_v1 = vmax.f32 %v5143_v61, 0.0  ;;  %v5144_v39 = vld [vmem:[#allocation114_spill] sm:$0xff]  ;;  %v839_v10 = vmax.f32 %v5145_v7, 0.0  ;;  %v5171_v38 = vld [vmem:[#allocation65_spill] sm:$0xff]  ;;  %v5174_v7 = vld [vmem:[#allocation56_spill] sm:$0xff] }
 0x293   : > { %2046 = vmatpush.msra.mxu2 %v813_v9  ;;  %2084 = vmatpush.msra.mxu3 %v814_v56  ;;  %v840_v9 = vmax.f32 %v5146_v11, 0.0  ;;  %v865_v56 = vmax.f32 %v5147_v30, 0.0  ;;  %v5175_v11 = vld [vmem:[#allocation57_spill] sm:$0xff]  ;;  %v4614_v30 = vld [vmem:[%s4933_s3 + $0x8] sm:$0xff] }
 0x294   : > { %2112 = vmatpush.msrb.mxu0 %v895_v36  ;;  %2150 = vmatpush.msrb.mxu1 %v896_v17  ;;  %v866_v36 = vmax.f32 %v5148_v46, 0.0  ;;  %v831_v17 = vmax.f32 %v5149_v54, 0.0 }
 0x295   : > { %2728 = vmatmul.msk.f32.gmra.mxu2 %vm1561_vm3, %v5106_v29  ;;  %2736 = vmatmul.msk.f32.gmra.mxu3 %vm1561_vm3, %v5106_v29  ;;  %v5139_v29 = vld [vmem:[#allocation97_spill] sm:$0xff] }
 0x296   : > { %2047 = vmatpush.msra.mxu2 %v805_v59  ;;  %2085 = vmatpush.msra.mxu3 %v806_v50  ;;  %v882_v58 = vmax.f32 %v5139_v29, 0.0  ;;  %v832_v59 = vmax.f32 %v5150_v53, 0.0  ;;  %v857_v50 = vmax.f32 %v5151_v13, 0.0  ;;  %v5170_v29 = vld [vmem:[#allocation64_spill] sm:$0xff] }
 0x297   : > { %2113 = vmatpush.msrb.mxu0 %v887_v31  ;;  %2151 = vmatpush.msrb.mxu1 %v888_v57  ;;  %v858_v31 = vmax.f32 %v5152_v5, 0.0  ;;  %v4558_v57 = vpop.f32.mrf.mxu1  ;;  %v1550_v5 = vld [vmem:[%s4933_s3 + $0x18] sm:$0xff] }
 0x298   : > { %2713 = vmatmul.msk.f32.gmra.mxu0 %vm1561_vm3, %v5125_v62  ;;  %2721 = vmatmul.msk.f32.gmra.mxu1 %vm1561_vm3, %v5125_v62 }
 0x299   : > { %2048 = vmatpush.msra.mxu2 %v797_v45  ;;  %2086 = vmatpush.msra.mxu3 %v798_v33  ;;  %v823_v45 = vmax.f32 %v5153_v21, 0.0  ;;  %v824_v33 = vmax.f32 %v5154_v32, 0.0 }
 0x29a   : > { %2114 = vmatpush.msrb.mxu0 %v879_v40  ;;  %2152 = vmatpush.msrb.mxu1 %v880_v41  ;;  %v849_v40 = vmax.f32 %v5155_v37, 0.0  ;;  %v850_v41 = vmax.f32 %v5156_v6, 0.0  ;;  %v1552_v6 = vld [vmem:[%s4933_s3 + $0x28] sm:$0xff] }
 0x29b   : > { %2788 = vmatpush.msk.msrb.mxu2 %vm1583_vm2, %v905_v20  ;;  %2796 = vmatpush.msk.msrb.mxu3 %vm1583_vm2, %v906_v25  ;;  %v5158_v20 = vld [vmem:[#allocation63_spill] sm:$0xff]  ;;  %v5159_v25 = vld [vmem:[#allocation76_spill] sm:$0xff] }
 0x29c   : > { %2115 = vmatpush.msrb.mxu0 %v871_v34  ;;  %2153 = vmatpush.msrb.mxu1 %v872_v14  ;;  %v816_v47 = vmax.f32 %v5158_v20, 0.0  ;;  %v841_v22 = vmax.f32 %v5159_v25, 0.0  ;;  %v5160_v34 = vld [vmem:[#allocation77_spill] sm:$0xff]  ;;  %v5161_v14 = vld [vmem:[#allocation115_spill] sm:$0xff] }
 0x29d   : > { %2188 = vmatpush.msrb.mxu2 %v897_v3  ;;  %2226 = vmatpush.msrb.mxu3 %v898_v24  ;;  %v842_v44 = vmax.f32 %v5160_v34, 0.0  ;;  %v807_v3 = vmax.f32 %v5162_v15, 0.0  ;;  %v808_v24 = vmax.f32 %v5163_v23, 0.0 }
 0x29e   : > { %2116 = vmatpush.msrb.mxu0 %v863_v26  ;;  %2154 = vmatpush.msrb.mxu1 %v864_v52  ;;  %v833_v26 = vmax.f32 %v5164_v63, 0.0  ;;  %v834_v52 = vmax.f32 %v5165_v48, 0.0 }
 0x29f   : > { %2189 = vmatpush.msrb.mxu2 %v889_v16  ;;  %2227 = vmatpush.msrb.mxu3 %v890_v43  ;;  %v799_v16 = vmax.f32 %v5166_v35, 0.0  ;;  %v800_v43 = vmax.f32 %v5167_v12, 0.0 }
 0x2a0   : > { %2729 = vmatmul.msk.f32.gmra.mxu2 %vm1561_vm3, %v5125_v62  ;;  %2737 = vmatmul.msk.f32.gmra.mxu3 %vm1561_vm3, %v5125_v62  ;;  %v5157_v62 = vld [vmem:[#allocation62_spill] sm:$0xff] }
 0x2a1   : > { %2117 = vmatpush.msrb.mxu0 %v855_v0  ;;  %2155 = vmatpush.msrb.mxu1 %v856_v2  ;;  %v815_v19 = vmax.f32 %v5157_v62, 0.0  ;;  %v825_v0 = vmax.f32 %v5168_v60, 0.0  ;;  %v826_v2 = vmax.f32 %v5169_v55, 0.0 }
 0x2a2   : > { %2190 = vmatpush.msrb.mxu2 %v881_v8  ;;  %2228 = vmatpush.msrb.mxu3 %v882_v58  ;;  %v4586_v8 = vpop.f32.mrf.mxu1  ;;  %v817_v58 = vmax.f32 %v5170_v29, 0.0 }
 0x2a3   : > { %2714 = vmatmul.msk.f32.gmra.mxu0 %vm1561_vm3, %v5144_v39  ;;  %2722 = vmatmul.msk.f32.gmra.mxu1 %vm1561_vm3, %v5144_v39 }
 0x2a4   : > { %2118 = vmatpush.msrb.mxu0 %v847_v4  ;;  %2156 = vmatpush.msrb.mxu1 %v848_v27  ;;  %v818_v4 = vmax.f32 %v5171_v38, 0.0  ;;  %v5172_v27 = vld [vmem:[#allocation60_spill] sm:$0xff] }
 0x2a5   : > { %2191 = vmatpush.msrb.mxu2 %v873_v18  ;;  %2229 = vmatpush.msrb.mxu3 %v874_v1  ;;  %v809_v49 = vmax.f32 %v5172_v27, 0.0  ;;  %v5173_v18 = vld [vmem:[#allocation61_spill] sm:$0xff]  ;;  %v4601_v1 = vpop.f32.mrf.mxu2 }
 0x2a6   : > { %2119 = vmatpush.msrb.mxu0 %v839_v10  ;;  %2157 = vmatpush.msrb.mxu1 %v840_v9  ;;  %v810_v61 = vmax.f32 %v5173_v18, 0.0  ;;  %v801_v10 = vmax.f32 %v5174_v7, 0.0  ;;  %v802_v9 = vmax.f32 %v5175_v11, 0.0 }
 0x2a7   : > { %2192 = vmatpush.msrb.mxu2 %v865_v56  ;;  %2230 = vmatpush.msrb.mxu3 %v866_v36  ;;  %v4620_v56 = vpop.f32.mrf.mxu0 }
 0x2a8   : > { %2120 = vmatpush.msrb.mxu0 %v831_v17  ;;  %2158 = vmatpush.msrb.mxu1 %v832_v59  ;;  %v4635_v17 = vld [vmem:[%s4933_s3 + $0x10] sm:$0xff] }
 0x2a9   : > { %2193 = vmatpush.msrb.mxu2 %v857_v50  ;;  %2231 = vmatpush.msrb.mxu3 %v858_v31 }
 0x2aa   : > { %2730 = vmatmul.msk.f32.gmra.mxu2 %vm1561_vm3, %v5144_v39  ;;  %2738 = vmatmul.msk.f32.gmra.mxu3 %vm1561_vm3, %v5144_v39  ;;  %v4603_v39 = vpop.f32.mrf.mxu3  ;;  %v4622_v46 = vpop.f32.mrf.mxu1 }
 0x2ab   : > { %2121 = vmatpush.msrb.mxu0 %v823_v45  ;;  %2159 = vmatpush.msrb.mxu1 %v824_v33  ;;  %v1551_v45 = vld [vmem:[%s4933_s3 + $0x20] sm:$0xff] }
 0x2ac   : > { %2194 = vmatpush.msrb.mxu2 %v849_v40  ;;  %2232 = vmatpush.msrb.mxu3 %v850_v41 }
 0x2ad   : > { %2715 = vmatmul.msk.f32.gmra.mxu0 %vm1561_vm3, %v5161_v14  ;;  %2723 = vmatmul.msk.f32.gmra.mxu1 %vm1561_vm3, %v5161_v14  ;;  %v4628_v36 = vpop.f32.mrf.mxu2 }
 0x2ae   : > { %2122 = vmatpush.msrb.mxu0 %v815_v19  ;;  %2160 = vmatpush.msrb.mxu1 %v816_v47  ;;  %v1553_v19 = vld [vmem:[%s4933_s3 + $0x30] sm:$0x7f] }
 0x2af   : > { %2195 = vmatpush.msrb.mxu2 %v841_v22  ;;  %2233 = vmatpush.msrb.mxu3 %v842_v44  ;;  %v4645_v53 = vpop.f32.mrf.mxu0 }
 0x2b0   : > { %2123 = vmatpush.msrb.mxu0 %v807_v3  ;;  %2161 = vmatpush.msrb.mxu1 %v808_v24 }
 0x2b1   : > { %2196 = vmatpush.msrb.mxu2 %v833_v26  ;;  %2234 = vmatpush.msrb.mxu3 %v834_v52 }
 0x2b2   : > { %2124 = vmatpush.msrb.mxu0 %v799_v16  ;;  %2162 = vmatpush.msrb.mxu1 %v800_v43  ;;  %v4630_v54 = vpop.f32.mrf.mxu3  ;;  %v4647_v59 = vpop.f32.mrf.mxu1 }
 0x2b3   : > { %2197 = vmatpush.msrb.mxu2 %v825_v0  ;;  %2235 = vmatpush.msrb.mxu3 %v826_v2 }
 0x2b4   : > { %2731 = vmatmul.msk.f32.gmra.mxu2 %vm1561_vm3, %v5161_v14  ;;  %2739 = vmatmul.msk.f32.gmra.mxu3 %vm1561_vm3, %v5161_v14 }
 0x2b5   : > { %2198 = vmatpush.msrb.mxu2 %v817_v58  ;;  %2236 = vmatpush.msrb.mxu3 %v818_v4  ;;  %v4649_v13 = vpop.f32.mrf.mxu2 }
 0x2b6   : > { %2741 = vmatmul.msk.f32.vlgmr.msra.gmra.mxu0 %vm1561_vm3, %v4593_v51  ;;  %2749 = vmatmul.msk.f32.vlgmr.msra.gmra.mxu1 %vm1561_vm3, %v4593_v51 }
 0x2b7   : > { %2199 = vmatpush.msrb.mxu2 %v809_v49  ;;  %2237 = vmatpush.msrb.mxu3 %v810_v61  ;;  %v4662_v31 = vpop.f32.mrf.mxu0 }
 0x2b9   : > { %2200 = vmatpush.msrb.mxu2 %v801_v10  ;;  %2238 = vmatpush.msrb.mxu3 %v802_v9 }
 0x2ba   : > { %v4651_v50 = vpop.f32.mrf.mxu3  ;;  %v4664_v21 = vpop.f32.mrf.mxu1 }
 0x2bc   : > { %2757 = vmatmul.msk.f32.vlgmr.msra.gmra.mxu2 %vm1561_vm3, %v4593_v51  ;;  %2765 = vmatmul.msk.f32.vlgmr.msra.gmra.mxu3 %vm1561_vm3, %v4593_v51 }
 0x2bd   : > { %v4669_v32 = vpop.f32.mrf.mxu2 }
 0x2be   : > { %2742 = vmatmul.msk.f32.gmra.mxu0 %vm1561_vm3, %v4614_v30  ;;  %2750 = vmatmul.msk.f32.gmra.mxu1 %vm1561_vm3, %v4614_v30 }
 0x2bf   : > { %v4677_v37 = vpop.f32.mrf.mxu0 }
 0x2c2   : > { %v4671_v33 = vpop.f32.mrf.mxu3  ;;  %v4679_v40 = vpop.f32.mrf.mxu1 }
 0x2c4   : > { %2758 = vmatmul.msk.f32.gmra.mxu2 %vm1561_vm3, %v4614_v30  ;;  %2766 = vmatmul.msk.f32.gmra.mxu3 %vm1561_vm3, %v4614_v30 }
 0x2c5   : > { %v4686_v41 = vpop.f32.mrf.mxu2 }
 0x2c6   : > { %2743 = vmatmul.msk.f32.gmra.mxu0 %vm1561_vm3, %v4635_v17  ;;  %2751 = vmatmul.msk.f32.gmra.mxu1 %vm1561_vm3, %v4635_v17 }
 0x2c7   : > { %v4697_v20 = vpop.f32.mrf.mxu0 }
 0x2ca   : > { %v4688_v62 = vpop.f32.mrf.mxu3  ;;  %v4699_v47 = vpop.f32.mrf.mxu1 }
 0x2cc   : > { %2759 = vmatmul.msk.f32.gmra.mxu2 %vm1561_vm3, %v4635_v17  ;;  %2767 = vmatmul.msk.f32.gmra.mxu3 %vm1561_vm3, %v4635_v17 }
 0x2cd   : > { %v4703_v25 = vpop.f32.mrf.mxu2 }
 0x2ce   : > { %2744 = vmatmul.msk.f32.gmra.mxu0 %vm1561_vm3, %v1550_v5  ;;  %2752 = vmatmul.msk.f32.gmra.mxu1 %vm1561_vm3, %v1550_v5 }
 0x2d2   : > { %v4705_v22 = vpop.f32.mrf.mxu3 }
 0x2d4   : > { %2760 = vmatmul.msk.f32.gmra.mxu2 %vm1561_vm3, %v1550_v5  ;;  %2768 = vmatmul.msk.f32.gmra.mxu3 %vm1561_vm3, %v1550_v5 }
 0x2d5   : > { %v4717_v14 = vpop.f32.mrf.mxu2 }
 0x2d6   : > { %2745 = vmatmul.msk.f32.gmra.mxu0 %vm1561_vm3, %v1551_v45  ;;  %2753 = vmatmul.msk.f32.gmra.mxu1 %vm1561_vm3, %v1551_v45 }
 0x2da   : > { %v4719_v15 = vpop.f32.mrf.mxu3 }
 0x2dc   : > { %2761 = vmatmul.msk.f32.gmra.mxu2 %vm1561_vm3, %v1551_v45  ;;  %2769 = vmatmul.msk.f32.gmra.mxu3 %vm1561_vm3, %v1551_v45 }
 0x2de   : > { %2746 = vmatmul.msk.f32.gmra.mxu0 %vm1561_vm3, %v1552_v6  ;;  %2754 = vmatmul.msk.f32.gmra.mxu1 %vm1561_vm3, %v1552_v6 }
 0x2e4   : > { %2762 = vmatmul.msk.f32.gmra.mxu2 %vm1561_vm3, %v1552_v6  ;;  %2770 = vmatmul.msk.f32.gmra.mxu3 %vm1561_vm3, %v1552_v6 }
 0x2e6   : > { %2747 = vmatmul.msk.f32.gmra.mxu0 %vm1561_vm3, %v1553_v19  ;;  %2755 = vmatmul.msk.f32.gmra.mxu1 %vm1561_vm3, %v1553_v19 }
 0x2ec   : > { %2763 = vmatmul.msk.f32.gmra.mxu2 %vm1561_vm3, %v1553_v19  ;;  %2771 = vmatmul.msk.f32.gmra.mxu3 %vm1561_vm3, %v1553_v19  ;;  %v4713_v34 = vpop.f32.mrf.mxu0  ;;  %v4715_v44 = vpop.f32.mrf.mxu1 }
 0x2ee   : > { %2773 = vmatmul.msk.f32.vlgmr.msrb.gmra.mxu0 %vm1561_vm3, %v4593_v51  ;;  %2781 = vmatmul.msk.f32.vlgmr.msrb.gmra.mxu1 %vm1561_vm3, %v4593_v51 }
 0x2f4   : > { %2789 = vmatmul.msk.f32.vlgmr.msrb.gmra.mxu2 %vm1561_vm3, %v4593_v51  ;;  %2797 = vmatmul.msk.f32.vlgmr.msrb.gmra.mxu3 %vm1561_vm3, %v4593_v51 }
 0x2f6   : > { %2774 = vmatmul.msk.f32.gmra.mxu0 %vm1561_vm3, %v4614_v30  ;;  %2782 = vmatmul.msk.f32.gmra.mxu1 %vm1561_vm3, %v4614_v30  ;;  %v4729_v3 = vpop.f32.mrf.mxu0  ;;  %v4731_v23 = vpop.f32.mrf.mxu1 }
 0x2f9   : > { %v4733_v24 = vpop.f32.mrf.mxu2  ;;  %v4735_v63 = vpop.f32.mrf.mxu3 }
 0x2fc   : > { %2790 = vmatmul.msk.f32.gmra.mxu2 %vm1561_vm3, %v4614_v30  ;;  %2798 = vmatmul.msk.f32.gmra.mxu3 %vm1561_vm3, %v4614_v30 }
 0x2fe   : > { %2775 = vmatmul.msk.f32.gmra.mxu0 %vm1561_vm3, %v4635_v17  ;;  %2783 = vmatmul.msk.f32.gmra.mxu1 %vm1561_vm3, %v4635_v17 }
 0x300   : > { %v4745_v26 = vpop.f32.mrf.mxu0  ;;  %v4747_v48 = vpop.f32.mrf.mxu1 }
 0x303   : > { %v4753_v52 = vpop.f32.mrf.mxu2  ;;  %v4755_v35 = vpop.f32.mrf.mxu3 }
 0x304   : > { %2791 = vmatmul.msk.f32.gmra.mxu2 %vm1561_vm3, %v4635_v17  ;;  %2799 = vmatmul.msk.f32.gmra.mxu3 %vm1561_vm3, %v4635_v17 }
 0x306   : > { %2776 = vmatmul.msk.f32.gmra.mxu0 %vm1561_vm3, %v1550_v5  ;;  %2784 = vmatmul.msk.f32.gmra.mxu1 %vm1561_vm3, %v1550_v5 }
 0x30a   : > { %v4761_v16 = vpop.f32.mrf.mxu0  ;;  %v4763_v12 = vpop.f32.mrf.mxu1 }
 0x30c   : > { %2792 = vmatmul.msk.f32.gmra.mxu2 %vm1561_vm3, %v1550_v5  ;;  %2800 = vmatmul.msk.f32.gmra.mxu3 %vm1561_vm3, %v1550_v5 }
 0x30d   : > { %v4767_v43 = vpop.f32.mrf.mxu2  ;;  %v4769_v60 = vpop.f32.mrf.mxu3 }
 0x30e   : > { %2777 = vmatmul.msk.f32.gmra.mxu0 %vm1561_vm3, %v1551_v45  ;;  %2785 = vmatmul.msk.f32.gmra.mxu1 %vm1561_vm3, %v1551_v45 }
 0x314   : > { %2793 = vmatmul.msk.f32.gmra.mxu2 %vm1561_vm3, %v1551_v45  ;;  %2801 = vmatmul.msk.f32.gmra.mxu3 %vm1561_vm3, %v1551_v45 }
 0x315   : > { %v4775_v0 = vpop.f32.mrf.mxu0  ;;  %v4777_v55 = vpop.f32.mrf.mxu1 }
 0x316   : > { %2778 = vmatmul.msk.f32.gmra.mxu0 %vm1561_vm3, %v1552_v6  ;;  %2786 = vmatmul.msk.f32.gmra.mxu1 %vm1561_vm3, %v1552_v6 }
 0x318   : > { %v4779_v2 = vpop.f32.mrf.mxu2  ;;  %v4781_v29 = vpop.f32.mrf.mxu3 }
 0x31c   : > { %2794 = vmatmul.msk.f32.gmra.mxu2 %vm1561_vm3, %v1552_v6  ;;  %2802 = vmatmul.msk.f32.gmra.mxu3 %vm1561_vm3, %v1552_v6 }
 0x31e   : > { %2779 = vmatmul.msk.f32.gmra.mxu0 %vm1561_vm3, %v1553_v19  ;;  %2787 = vmatmul.msk.f32.gmra.mxu1 %vm1561_vm3, %v1553_v19 }
 0x320   : > { %v4787_v58 = vpop.f32.mrf.mxu0  ;;  %v4789_v38 = vpop.f32.mrf.mxu1 }
 0x323   : > { %v4791_v4 = vpop.f32.mrf.mxu2  ;;  %v4793_v51 = vpop.f32.mrf.mxu3 }
 0x324   : > { %2795 = vmatmul.msk.f32.gmra.mxu2 %vm1561_vm3, %v1553_v19  ;;  %2803 = vmatmul.msk.f32.gmra.mxu3 %vm1561_vm3, %v1553_v19 }
 0x32a   : > { %v4797_v27 = vpop.f32.mrf.mxu0  ;;  %v4799_v49 = vpop.f32.mrf.mxu1 }
 0x32d   : > { %v4801_v18 = vpop.f32.mrf.mxu2  ;;  %v4803_v61 = vpop.f32.mrf.mxu3 }
 0x32e   : > { %5176 = vst [vmem:[#allocation46_spill] sm:$0xff] %v4801_v18 }
 0x32f   : > { %5177 = vst [vmem:[#allocation47_spill] sm:$0xff] %v4803_v61 }
 0x333   : > { %v1974_v7 = vpop.f32.mrf.mxu0  ;;  %v2012_v10 = vpop.f32.mrf.mxu1 }
 0x334   : > { %v1975_v11 = vadd.f32 %v1974_v7, %v4556_v42  ;;  %v2013_v9 = vadd.f32 %v2012_v10, %v4558_v57 }
 0x336   : > { %v2261_v30 = vmax.f32 %v1975_v11, 0.0  ;;  %v2262_v17 = vmax.f32 %v2013_v9, 0.0 }
 0x337   : > { %v4813_v5 = vpop.f32.mrf.mxu2  ;;  %v4815_v45 = vpop.f32.mrf.mxu3 }
 0x338   : > { %5178 = vst [vmem:[#allocation42_spill] sm:$0xff] %v4813_v5 }
 0x339   : > { %5179 = vst [vmem:[#allocation43_spill] sm:$0xff] %v4815_v45 }
 0x33a   : > { %2317 = vst [vmem:[%s4811_s17] sm:$0xff] %v2261_v30 }
 0x33b   : > { %2318 = vst [vmem:[%s4811_s17 + $0x8] sm:$0xff] %v2262_v17  ;;  %v1977_v42 = vpop.f32.mrf.mxu0  ;;  %v2015_v57 = vpop.f32.mrf.mxu1 }
 0x33c   : > { %v1978_v6 = vadd.f32 %v1977_v42, %v4584_v28  ;;  %v2016_v19 = vadd.f32 %v2015_v57, %v4586_v8 }
 0x33e   : > { %v2269_v7 = vmax.f32 %v1978_v6, 0.0  ;;  %v2270_v10 = vmax.f32 %v2016_v19, 0.0 }
 0x33f   : > { %v2050_v61 = vpop.f32.mrf.mxu2  ;;  %v2088_v11 = vpop.f32.mrf.mxu3 }
 0x340   : > { %2325 = vst [vmem:[%s4811_s17 + $0x40] sm:$0xff] %v2269_v7  ;;  %v2051_v9 = vadd.f32 %v2050_v61, %v4601_v1  ;;  %v2089_v45 = vadd.f32 %v2088_v11, %v4603_v39 }
 0x341   : > { %2326 = vst [vmem:[%s4811_s17 + $0x48] sm:$0xff] %v2270_v10 }
 0x342   : > { %v2263_v30 = vmax.f32 %v2051_v9, 0.0  ;;  %v2264_v17 = vmax.f32 %v2089_v45, 0.0 }
 0x343   : > { %v1980_v5 = vpop.f32.mrf.mxu0  ;;  %v2018_v18 = vpop.f32.mrf.mxu1 }
 0x344   : > { %2319 = vst [vmem:[%s4811_s17 + $0x10] sm:$0xff] %v2263_v30  ;;  %v1981_v28 = vadd.f32 %v1980_v5, %v4620_v56  ;;  %v2019_v8 = vadd.f32 %v2018_v18, %v4622_v46 }
 0x345   : > { %2320 = vst [vmem:[%s4811_s17 + $0x18] sm:$0xff] %v2264_v17 }
 0x346   : > { %v2277_v42 = vmax.f32 %v1981_v28, 0.0  ;;  %v2278_v57 = vmax.f32 %v2019_v8, 0.0 }
 0x347   : > { %v2053_v6 = vpop.f32.mrf.mxu2  ;;  %v2091_v1 = vpop.f32.mrf.mxu3 }
 0x348   : > { %2333 = vst [vmem:[%s4811_s17 + $0x80] sm:$0xff] %v2277_v42  ;;  %v2054_v39 = vadd.f32 %v2053_v6, %v4628_v36  ;;  %v2092_v61 = vadd.f32 %v2091_v1, %v4630_v54 }
 0x349   : > { %2334 = vst [vmem:[%s4811_s17 + $0x88] sm:$0xff] %v2278_v57 }
 0x34a   : > { %v2271_v45 = vmax.f32 %v2054_v39, 0.0  ;;  %v2272_v19 = vmax.f32 %v2092_v61, 0.0 }
 0x34b   : > { %v1983_v7 = vpop.f32.mrf.mxu0  ;;  %v2021_v56 = vpop.f32.mrf.mxu1 }
 0x34c   : > { %2327 = vst [vmem:[%s4811_s17 + $0x50] sm:$0xff] %v2271_v45  ;;  %v1984_v46 = vadd.f32 %v1983_v7, %v4645_v53  ;;  %v2022_v18 = vadd.f32 %v2021_v56, %v4647_v59 }
 0x34d   : > { %2328 = vst [vmem:[%s4811_s17 + $0x58] sm:$0xff] %v2272_v19 }
 0x34e   : > { %v2285_v5 = vmax.f32 %v1984_v46, 0.0  ;;  %v2286_v10 = vmax.f32 %v2022_v18, 0.0 }
 0x34f   : > { %v2056_v11 = vpop.f32.mrf.mxu2  ;;  %v2094_v36 = vpop.f32.mrf.mxu3 }
 0x350   : > { %2341 = vst [vmem:[%s4811_s17 + $0xc0] sm:$0xff] %v2285_v5  ;;  %v2057_v54 = vadd.f32 %v2056_v11, %v4649_v13  ;;  %v2095_v9 = vadd.f32 %v2094_v36, %v4651_v50 }
 0x351   : > { %2342 = vst [vmem:[%s4811_s17 + $0xc8] sm:$0xff] %v2286_v10 }
 0x352   : > { %v2279_v30 = vmax.f32 %v2057_v54, 0.0  ;;  %v2280_v17 = vmax.f32 %v2095_v9, 0.0 }
 0x353   : > { %v1986_v28 = vpop.f32.mrf.mxu0  ;;  %v2024_v53 = vpop.f32.mrf.mxu1 }
 0x354   : > { %2335 = vst [vmem:[%s4811_s17 + $0x90] sm:$0xff] %v2279_v30  ;;  %v1987_v59 = vadd.f32 %v1986_v28, %v4662_v31  ;;  %v2025_v8 = vadd.f32 %v2024_v53, %v4664_v21 }
 0x355   : > { %2336 = vst [vmem:[%s4811_s17 + $0x98] sm:$0xff] %v2280_v17 }
 0x356   : > { %v2293_v42 = vmax.f32 %v1987_v59, 0.0  ;;  %v2294_v57 = vmax.f32 %v2025_v8, 0.0 }
 0x357   : > { %v2059_v6 = vpop.f32.mrf.mxu2  ;;  %v2097_v13 = vpop.f32.mrf.mxu3 }
 0x358   : > { %2349 = vst [vmem:[%s4811_s17 + $0x100] sm:$0xff] %v2293_v42  ;;  %v2060_v50 = vadd.f32 %v2059_v6, %v4669_v32  ;;  %v2098_v1 = vadd.f32 %v2097_v13, %v4671_v33 }
 0x359   : > { %2350 = vst [vmem:[%s4811_s17 + $0x108] sm:$0xff] %v2294_v57 }
 0x35a   : > { %v2287_v39 = vmax.f32 %v2060_v50, 0.0  ;;  %v2288_v61 = vmax.f32 %v2098_v1, 0.0 }
 0x35b   : > { %v1989_v45 = vpop.f32.mrf.mxu0  ;;  %v2027_v31 = vpop.f32.mrf.mxu1 }
 0x35c   : > { %2343 = vst [vmem:[%s4811_s17 + $0xd0] sm:$0xff] %v2287_v39  ;;  %v1990_v21 = vadd.f32 %v1989_v45, %v4677_v37  ;;  %v2028_v19 = vadd.f32 %v2027_v31, %v4679_v40 }
 0x35d   : > { %2344 = vst [vmem:[%s4811_s17 + $0xd8] sm:$0xff] %v2288_v61 }
 0x35e   : > { %v2301_v7 = vmax.f32 %v1990_v21, 0.0  ;;  %v2302_v56 = vmax.f32 %v2028_v19, 0.0 }
 0x35f   : > { %v2062_v46 = vpop.f32.mrf.mxu2  ;;  %v2100_v32 = vpop.f32.mrf.mxu3 }
 0x360   : > { %2357 = vst [vmem:[%s4811_s17 + $0x140] sm:$0xff] %v2301_v7  ;;  %v2063_v33 = vadd.f32 %v2062_v46, %v4686_v41  ;;  %v2101_v18 = vadd.f32 %v2100_v32, %v4688_v62 }
 0x361   : > { %2358 = vst [vmem:[%s4811_s17 + $0x148] sm:$0xff] %v2302_v56 }
 0x362   : > { %v2295_v5 = vmax.f32 %v2063_v33, 0.0  ;;  %v2296_v10 = vmax.f32 %v2101_v18, 0.0 }
 0x363   : > { %v1992_v11 = vpop.f32.mrf.mxu0  ;;  %v2030_v37 = vpop.f32.mrf.mxu1 }
 0x364   : > { %2351 = vst [vmem:[%s4811_s17 + $0x110] sm:$0xff] %v2295_v5  ;;  %v1993_v40 = vadd.f32 %v1992_v11, %v4697_v20  ;;  %v2031_v36 = vadd.f32 %v2030_v37, %v4699_v47 }
 0x365   : > { %2352 = vst [vmem:[%s4811_s17 + $0x118] sm:$0xff] %v2296_v10 }
 0x366   : > { %v2309_v54 = vmax.f32 %v1993_v40, 0.0  ;;  %v2310_v9 = vmax.f32 %v2031_v36, 0.0 }
 0x367   : > { %v2065_v30 = vpop.f32.mrf.mxu2  ;;  %v2103_v41 = vpop.f32.mrf.mxu3 }
 0x368   : > { %2365 = vst [vmem:[%s4811_s17 + $0x180] sm:$0x7f] %v2309_v54  ;;  %v2066_v62 = vadd.f32 %v2065_v30, %v4703_v25  ;;  %v2104_v17 = vadd.f32 %v2103_v41, %v4705_v22 }
 0x369   : > { %2366 = vst [vmem:[%s4811_s17 + $0x188] sm:$0x7f] %v2310_v9 }
 0x36a   : > { %v2303_v28 = vmax.f32 %v2066_v62, 0.0  ;;  %v2304_v53 = vmax.f32 %v2104_v17, 0.0 }
 0x36b   : > { %v2126_v59 = vpop.f32.mrf.mxu0  ;;  %v2164_v20 = vpop.f32.mrf.mxu1 }
 0x36c   : > { %2359 = vst [vmem:[%s4811_s17 + $0x150] sm:$0xff] %v2303_v28  ;;  %v2127_v47 = vadd.f32 %v2126_v59, %v4713_v34  ;;  %v2165_v8 = vadd.f32 %v2164_v20, %v4715_v44 }
 0x36d   : > { %2360 = vst [vmem:[%s4811_s17 + $0x158] sm:$0xff] %v2304_v53 }
 0x36e   : > { %v2265_v42 = vmax.f32 %v2127_v47, 0.0  ;;  %v2266_v57 = vmax.f32 %v2165_v8, 0.0 }
 0x36f   : > { %v2068_v6 = vpop.f32.mrf.mxu2  ;;  %v2106_v25 = vpop.f32.mrf.mxu3 }
 0x370   : > { %2321 = vst [vmem:[%s4811_s17 + $0x20] sm:$0xff] %v2265_v42  ;;  %v2069_v22 = vadd.f32 %v2068_v6, %v4717_v14  ;;  %v2107_v13 = vadd.f32 %v2106_v25, %v4719_v15 }
 0x371   : > { %2322 = vst [vmem:[%s4811_s17 + $0x28] sm:$0xff] %v2266_v57 }
 0x372   : > { %v2311_v50 = vmax.f32 %v2069_v22, 0.0  ;;  %v2312_v1 = vmax.f32 %v2107_v13, 0.0 }
 0x373   : > { %v2129_v39 = vpop.f32.mrf.mxu0  ;;  %v2167_v34 = vpop.f32.mrf.mxu1 }
 0x374   : > { %2367 = vst [vmem:[%s4811_s17 + $0x190] sm:$0x7f] %v2311_v50  ;;  %v2130_v44 = vadd.f32 %v2129_v39, %v4729_v3  ;;  %v2168_v61 = vadd.f32 %v2167_v34, %v4731_v23 }
 0x375   : > { %2368 = vst [vmem:[%s4811_s17 + $0x198] sm:$0x7f] %v2312_v1 }
 0x376   : > { %v2273_v45 = vmax.f32 %v2130_v44, 0.0  ;;  %v2274_v31 = vmax.f32 %v2168_v61, 0.0 }
 0x377   : > { %v2202_v21 = vpop.f32.mrf.mxu2  ;;  %v2240_v14 = vpop.f32.mrf.mxu3 }
 0x378   : > { %2329 = vst [vmem:[%s4811_s17 + $0x60] sm:$0xff] %v2273_v45  ;;  %v2203_v15 = vadd.f32 %v2202_v21, %v4733_v24  ;;  %v2241_v19 = vadd.f32 %v2240_v14, %v4735_v63 }
 0x379   : > { %2330 = vst [vmem:[%s4811_s17 + $0x68] sm:$0xff] %v2274_v31 }
 0x37a   : > { %v2267_v7 = vmax.f32 %v2203_v15, 0.0  ;;  %v2268_v56 = vmax.f32 %v2241_v19, 0.0  ;;  %v5181_v15 = vld [vmem:[#allocation47_spill] sm:$0xff] }
 0x37b   : > { %v2132_v46 = vpop.f32.mrf.mxu0  ;;  %v2170_v3 = vpop.f32.mrf.mxu1 }
 0x37c   : > { %2323 = vst [vmem:[%s4811_s17 + $0x30] sm:$0xff] %v2267_v7  ;;  %v2133_v23 = vadd.f32 %v2132_v46, %v4745_v26  ;;  %v2171_v32 = vadd.f32 %v2170_v3, %v4747_v48 }
 0x37d   : > { %2324 = vst [vmem:[%s4811_s17 + $0x38] sm:$0xff] %v2268_v56 }
 0x37e   : > { %v2281_v33 = vmax.f32 %v2133_v23, 0.0  ;;  %v2282_v18 = vmax.f32 %v2171_v32, 0.0  ;;  %v5183_v23 = vld [vmem:[#allocation43_spill] sm:$0xff] }
 0x37f   : > { %v2205_v5 = vpop.f32.mrf.mxu2  ;;  %v2243_v24 = vpop.f32.mrf.mxu3 }
 0x380   : > { %2337 = vst [vmem:[%s4811_s17 + $0xa0] sm:$0xff] %v2281_v33  ;;  %v2206_v63 = vadd.f32 %v2205_v5, %v4753_v52  ;;  %v2244_v10 = vadd.f32 %v2243_v24, %v4755_v35 }
 0x381   : > { %2338 = vst [vmem:[%s4811_s17 + $0xa8] sm:$0xff] %v2282_v18 }
 0x382   : > { %v2275_v11 = vmax.f32 %v2206_v63, 0.0  ;;  %v2276_v37 = vmax.f32 %v2244_v10, 0.0 }
 0x383   : > { %v2135_v40 = vpop.f32.mrf.mxu0  ;;  %v2173_v26 = vpop.f32.mrf.mxu1 }
 0x384   : > { %2331 = vst [vmem:[%s4811_s17 + $0x70] sm:$0xff] %v2275_v11  ;;  %v2136_v48 = vadd.f32 %v2135_v40, %v4761_v16  ;;  %v2174_v36 = vadd.f32 %v2173_v26, %v4763_v12 }
 0x385   : > { %2332 = vst [vmem:[%s4811_s17 + $0x78] sm:$0xff] %v2276_v37 }
 0x386   : > { %v2289_v54 = vmax.f32 %v2136_v48, 0.0  ;;  %v2290_v9 = vmax.f32 %v2174_v36, 0.0 }
 0x387   : > { %v2208_v30 = vpop.f32.mrf.mxu2  ;;  %v2246_v52 = vpop.f32.mrf.mxu3 }
 0x388   : > { %2345 = vst [vmem:[%s4811_s17 + $0xe0] sm:$0xff] %v2289_v54  ;;  %v2209_v35 = vadd.f32 %v2208_v30, %v4767_v43  ;;  %v2247_v41 = vadd.f32 %v2246_v52, %v4769_v60 }
 0x389   : > { %2346 = vst [vmem:[%s4811_s17 + $0xe8] sm:$0xff] %v2290_v9 }
 0x38a   : > { %v2283_v62 = vmax.f32 %v2209_v35, 0.0  ;;  %v2284_v17 = vmax.f32 %v2247_v41, 0.0 }
 0x38b   : > { %v2138_v28 = vpop.f32.mrf.mxu0  ;;  %v2176_v16 = vpop.f32.mrf.mxu1 }
 0x38c   : > { %2339 = vst [vmem:[%s4811_s17 + $0xb0] sm:$0xff] %v2283_v62  ;;  %v2139_v12 = vadd.f32 %v2138_v28, %v4775_v0  ;;  %v2177_v53 = vadd.f32 %v2176_v16, %v4777_v55 }
 0x38d   : > { %2340 = vst [vmem:[%s4811_s17 + $0xb8] sm:$0xff] %v2284_v17 }
 0x38e   : > { %v2297_v59 = vmax.f32 %v2139_v12, 0.0  ;;  %v2298_v20 = vmax.f32 %v2177_v53, 0.0 }
 0x38f   : > { %v2211_v47 = vpop.f32.mrf.mxu2  ;;  %v2249_v43 = vpop.f32.mrf.mxu3 }
 0x390   : > { %2353 = vst [vmem:[%s4811_s17 + $0x120] sm:$0xff] %v2297_v59  ;;  %v2212_v60 = vadd.f32 %v2211_v47, %v4779_v2  ;;  %v2250_v8 = vadd.f32 %v2249_v43, %v4781_v29 }
 0x391   : > { %2354 = vst [vmem:[%s4811_s17 + $0x128] sm:$0xff] %v2298_v20 }
 0x392   : > { %v2291_v42 = vmax.f32 %v2212_v60, 0.0  ;;  %v2292_v57 = vmax.f32 %v2250_v8, 0.0 }
 0x393   : > { %v2141_v6 = vpop.f32.mrf.mxu0  ;;  %v2179_v0 = vpop.f32.mrf.mxu1 }
 0x394   : > { %2347 = vst [vmem:[%s4811_s17 + $0xf0] sm:$0xff] %v2291_v42  ;;  %v2142_v55 = vadd.f32 %v2141_v6, %v4787_v58  ;;  %v2180_v25 = vadd.f32 %v2179_v0, %v4789_v38 }
 0x395   : > { %2348 = vst [vmem:[%s4811_s17 + $0xf8] sm:$0xff] %v2292_v57 }
 0x396   : > { %v2305_v22 = vmax.f32 %v2142_v55, 0.0  ;;  %v2306_v13 = vmax.f32 %v2180_v25, 0.0 }
 0x397   : > { %v2214_v50 = vpop.f32.mrf.mxu2  ;;  %v2252_v2 = vpop.f32.mrf.mxu3 }
 0x398   : > { %2361 = vst [vmem:[%s4811_s17 + $0x160] sm:$0xff] %v2305_v22  ;;  %v2215_v29 = vadd.f32 %v2214_v50, %v4791_v4  ;;  %v2253_v1 = vadd.f32 %v2252_v2, %v4793_v51  ;;  %v5180_v51 = vld [vmem:[#allocation46_spill] sm:$0xff] }
 0x399   : > { %2362 = vst [vmem:[%s4811_s17 + $0x168] sm:$0xff] %v2306_v13 }
 0x39a   : > { %v2299_v39 = vmax.f32 %v2215_v29, 0.0  ;;  %v2300_v34 = vmax.f32 %v2253_v1, 0.0 }
 0x39b   : > { %v2144_v44 = vpop.f32.mrf.mxu0  ;;  %v2182_v58 = vpop.f32.mrf.mxu1 }
 0x39c   : > { %2355 = vst [vmem:[%s4811_s17 + $0x130] sm:$0xff] %v2299_v39  ;;  %v2145_v38 = vadd.f32 %v2144_v44, %v4797_v27  ;;  %v2183_v61 = vadd.f32 %v2182_v58, %v4799_v49  ;;  %v5182_v49 = vld [vmem:[#allocation42_spill] sm:$0xff] }
 0x39d   : > { %2356 = vst [vmem:[%s4811_s17 + $0x138] sm:$0xff] %v2300_v34 }
 0x39e   : > { %v2313_v45 = vmax.f32 %v2145_v38, 0.0  ;;  %v2314_v31 = vmax.f32 %v2183_v61, 0.0 }
 0x39f   : > { %v2217_v21 = vpop.f32.mrf.mxu2  ;;  %v2255_v4 = vpop.f32.mrf.mxu3 }
 0x3a0   : > { %2369 = vst [vmem:[%s4811_s17 + $0x1a0] sm:$0x7f] %v2313_v45  ;;  %v2218_v14 = vadd.f32 %v2217_v21, %v5180_v51  ;;  %v2256_v19 = vadd.f32 %v2255_v4, %v5181_v15 }
 0x3a1   : > { %2370 = vst [vmem:[%s4811_s17 + $0x1a8] sm:$0x7f] %v2314_v31 }
 0x3a2   : > { %v2307_v7 = vmax.f32 %v2218_v14, 0.0  ;;  %v2308_v56 = vmax.f32 %v2256_v19, 0.0 }
 0x3a4   : > { %2363 = vst [vmem:[%s4811_s17 + $0x170] sm:$0xff] %v2307_v7 }
 0x3a5   : > { %2364 = vst [vmem:[%s4811_s17 + $0x178] sm:$0xff] %v2308_v56 }
 0x3a7   : > { %v2220_v27 = vpop.f32.mrf.mxu2  ;;  %v2258_v46 = vpop.f32.mrf.mxu3 }
 0x3a8   : > { %v2221_v3 = vadd.f32 %v2220_v27, %v5182_v49  ;;  %v2259_v32 = vadd.f32 %v2258_v46, %v5183_v23 }
 0x3aa   : > { %v2315_v33 = vmax.f32 %v2221_v3, 0.0  ;;  %v2316_v18 = vmax.f32 %v2259_v32, 0.0 }
 0x3ac   : > { %2371 = vst [vmem:[%s4811_s17 + $0x1b0] sm:$0x7f] %v2315_v33 }
 0x3ad   : > { %2372 = vst [vmem:[%s4811_s17 + $0x1b8] sm:$0x7f] %v2316_v18 }
 0x3ae PF: > { %s15_s18 = sadd.s32 1, %s3046_s18  }
 0x3af   : > { %p12_p4 = scmp.ge.s32.totalorder %s15_s18, 4  }
 0x3b1   :  { %14 = sbr.rel (!%p12_p4) target bundleno = 1 (0x1), region = 70 }

// kernel: gnnml3_forward.3
= control target key start
LH: loop header
LB: loop body
LE: loop exit
PB: predicated region body
PF: predicated region fallthrough
CT: control target
= control target key end

     0   :  { %s5530_s27 = smov 0   ;;  %s7639_s0 = inlined_call_operand.vmem [shape: f32[2,5,352,32], index: 0, kind: input, shape index: {}]   ;;  %s7640_s1 = inlined_call_operand.vmem [shape: f32[2,32,32], index: 1, kind: input, shape index: {}]   ;;  %s7641_s2 = inlined_call_operand.vmem [shape: f32[2,32,1], index: 2, kind: input, shape index: {}]   ;;  %s7642_s3 = inlined_call_operand.vmem [shape: f32[5,352,16], index: 3, kind: input, shape index: {}]   ;;  %s7643_s4 = inlined_call_operand.vmem [shape: f32[5,1,16], index: 4, kind: input, shape index: {}]   ;;  %s7644_s5 = inlined_call_operand.vmem [shape: f32[5,32,16], index: 5, kind: input, shape index: {}]   ;;  %s7645_s6 = inlined_call_operand.vmem [shape: f32[5,1,16], index: 6, kind: input, shape index: {}]   ;;  %s7646_s7 = inlined_call_operand.vmem [shape: f32[5,32,16], index: 7, kind: input, shape index: {}]   ;;  %s7647_s8 = inlined_call_operand.vmem [shape: f32[5,1,16], index: 8, kind: input, shape index: {}]   ;;  %s7648_s9 = inlined_call_operand.vmem [shape: f32[32,32], index: 9, kind: input, shape index: {}]   ;;  %s7649_s10 = inlined_call_operand.vmem [shape: f32[1,32], index: 10, kind: input, shape index: {}]   ;;  %s7650_s11 = inlined_call_operand.vmem [shape: f32[1,32], index: 11, kind: input, shape index: {}]   ;;  %s7651_s12 = inlined_call_operand.<no memory space> [shape: f32[1,1], index: 12, kind: input, shape index: {}]   ;;  %s7652_s13 = inlined_call_operand.vmem [shape: f32[2,1,1], index: 13, kind: output, shape index: {}]  }
   0x1   :  { %v18_v0 = vstv %s7651_s12 }
   0x2   :  { %19 = vst [vmem:[#allocation2] sm:$0x1] %v18_v0 }
   0x3 LB: > { %s4455_s28 = sadd.s32 4294967295, %s5450_s27   ;;  %p4459_p0 = scmp.ge.s32.totalorder %s5450_s27, 1  ;;  %s5450_s27 = sphi %s5530_s27, %s25_s27  }
   0x4   : > { %p409_p1 = scmp.lt.s32.totalorder %s5450_s27, 3 }
   0x6   : > { %p410_p2 = pnand %p4459_p0, %p409_p1 }
   0x7   : > { %p461_p3 = scmp.lt.s32.totalorder (!%p410_p2), %s4455_s28, 1  ;;  %s5452_s19 = smov (!%p410_p2), 32  }
   0x8   : > { %413 = sbr.rel (%p410_p2) target bundleno = 4576 (0x11e0), region = 72  ;;  %s5453_s20 = smov (!%p410_p2), 64  }
   0x9   : > { %s5454_s21 = smov (!%p410_p2), 96   ;;  %s5455_s16 = smov (!%p410_p2), 16  }
   0xd   : > { %s7654_s28 = smov (!%p461_p3, %s4455_s28), 1  ;;  %vm527_vm0 = vcmask 261120   ;;  %vm941_vm1 = vcmask 523264   ;;  %vm946_vm2 = vcmask 785408   ;;  %vm1236_vm3 = vcmask 130048  }
   0xe   : > { %s5157_s12 = smul.u32 1760, %s7654_s28  ;;  %s5147_s29 = sshll.u32 %s7654_s28, 5  ;;  %vm4376_vm4 = vcmask 253952   ;;  %vm4382_vm5 = vcmask 0  }
   0xf   : > { %s470_s15 = scalar_lea.vmem %s7640_s1, %s5147_s29 }
  0x10   : > { %v5547_v1 = vld [vmem:[%s470_s15 + $0x18] sm:$0xff]  ;;  %v5549_v2 = vld [vmem:[%s470_s15 + $0x10] sm:$0xff]  ;;  %s5556_s18 = scalar_lea.vmem %s7639_s0, %s5157_s12  ;;  %v5558_v3 = vld [vmem:[%s470_s15 + $0x8] sm:$0xff]  ;;  %s7578_s12 = scalar_lea.vmem %s7641_s2, %s5147_s29 }
  0x11   : > { %672 = vmatpush.msra.mxu0 %v5547_v1  ;;  %5150 = vmatpush.msra.mxu2 %v5547_v1  ;;  %v5563_v4 = vld [vmem:[%s470_s15] sm:$0xff]  ;;  %v514_v6 = vld [vmem:[%s5556_s18 + $0xf8] sm:$0xff]  ;;  %v484_v7 = vld [vmem:[%s5556_s18 + $0x8] sm:$0xff] }
  0x12   : > { %5149 = vmatpush.msra.mxu1 %v5547_v1  ;;  %v483_v5 = vld [vmem:[%s5556_s18] sm:$0xff]  ;;  %v485_v9 = vld [vmem:[%s5556_s18 + $0x10] sm:$0xff]  ;;  %v516_v10 = vld [vmem:[%s5556_s18 + $0x108] sm:$0xff] }
  0x13   : > { %673 = vmatpush.msra.mxu0 %v5549_v2  ;;  %5152 = vmatpush.msra.mxu2 %v5549_v2  ;;  %v515_v8 = vld [vmem:[%s5556_s18 + $0x100] sm:$0xff]  ;;  %v486_v11 = vld [vmem:[%s5556_s18 + $0x18] sm:$0xff]  ;;  %v517_v12 = vld [vmem:[%s5556_s18 + $0x110] sm:$0xff] }
  0x14   : > { %5151 = vmatpush.msra.mxu1 %v5549_v2  ;;  %v487_v13 = vld [vmem:[%s5556_s18 + $0x20] sm:$0xff]  ;;  %v518_v14 = vld [vmem:[%s5556_s18 + $0x118] sm:$0xff]  ;;  %v488_v15 = vld [vmem:[%s5556_s18 + $0x28] sm:$0xff] }
  0x15   : > { %674 = vmatpush.msra.mxu0 %v5558_v3  ;;  %5154 = vmatpush.msra.mxu2 %v5558_v3  ;;  %v519_v16 = vld [vmem:[%s5556_s18 + $0x120] sm:$0xff]  ;;  %v489_v17 = vld [vmem:[%s5556_s18 + $0x30] sm:$0xff]  ;;  %v520_v18 = vld [vmem:[%s5556_s18 + $0x128] sm:$0xff] }
  0x16   : > { %5153 = vmatpush.msra.mxu1 %v5558_v3  ;;  %v490_v19 = vld [vmem:[%s5556_s18 + $0x38] sm:$0xff]  ;;  %v521_v20 = vld [vmem:[%s5556_s18 + $0x130] sm:$0xff]  ;;  %v491_v21 = vld [vmem:[%s5556_s18 + $0x40] sm:$0xff] }
  0x17   : > { %675 = vmatpush.msra.mxu0 %v5563_v4  ;;  %5156 = vmatpush.msra.mxu2 %v5563_v4  ;;  %v522_v22 = vld [vmem:[%s5556_s18 + $0x138] sm:$0xff]  ;;  %v492_v23 = vld [vmem:[%s5556_s18 + $0x48] sm:$0xff]  ;;  %v523_v24 = vld [vmem:[%s5556_s18 + $0x140] sm:$0xff] }
  0x18   : > { %4465 = vmatmul.msk.f32.vlgmr.msra.gmra.mxu0 %vm527_vm0, %v483_v5  ;;  %4496 = vmatmul.msk.f32.vlgmr.msra.gmra.mxu2 %vm527_vm0, %v514_v6  ;;  %v493_v25 = vld [vmem:[%s5556_s18 + $0x50] sm:$0xff]  ;;  %v524_v26 = vld [vmem:[%s5556_s18 + $0x148] sm:$0xff]  ;;  %v494_v27 = vld [vmem:[%s5556_s18 + $0x58] sm:$0xff] }
  0x19   : > { %5155 = vmatpush.msra.mxu1 %v5563_v4  ;;  %v525_v28 = vld [vmem:[%s5556_s18 + $0x150] sm:$0xff]  ;;  %v495_v29 = vld [vmem:[%s5556_s18 + $0x60] sm:$0xff]  ;;  %v526_v30 = vld [vmem:[%s5556_s18 + $0x158] sm:$0xff] }
  0x1a   : > { %v496_v31 = vld [vmem:[%s5556_s18 + $0x68] sm:$0xff]  ;;  %v497_v32 = vld [vmem:[%s5556_s18 + $0x70] sm:$0xff]  ;;  %v498_v33 = vld [vmem:[%s5556_s18 + $0x78] sm:$0xff] }
  0x1b   : > { %v499_v35 = vld [vmem:[%s5556_s18 + $0x80] sm:$0xff]  ;;  %v510_v36 = vld [vmem:[%s5556_s18 + $0xd8] sm:$0xff]  ;;  %v500_v39 = vld [vmem:[%s5556_s18 + $0x88] sm:$0xff] }
  0x1c   : > { %4492 = vmatmul.msk.f32.vlgmr.msra.gmra.mxu1 %vm527_vm0, %v510_v36  ;;  %v511_v40 = vld [vmem:[%s5556_s18 + $0xe0] sm:$0xff]  ;;  %v501_v43 = vld [vmem:[%s5556_s18 + $0x90] sm:$0xff]  ;;  %v502_v46 = vld [vmem:[%s5556_s18 + $0x98] sm:$0xff] }
  0x1d   : > { %v503_v49 = vld [vmem:[%s5556_s18 + $0xa0] sm:$0xff]  ;;  %v504_v52 = vld [vmem:[%s5556_s18 + $0xa8] sm:$0xff]  ;;  %v505_v57 = vld [vmem:[%s5556_s18 + $0xb0] sm:$0xff] }
  0x1e   : > { %v512_v54 = vld [vmem:[%s5556_s18 + $0xe8] sm:$0xff]  ;;  %v513_v58 = vld [vmem:[%s5556_s18 + $0xf0] sm:$0xff]  ;;  %v506_v61 = vld [vmem:[%s5556_s18 + $0xb8] sm:$0xff] }
  0x1f   : > { %v507_v0 = vld [vmem:[%s5556_s18 + $0xc0] sm:$0xff] }
  0x20   : > { %4466 = vmatmul.msk.f32.gmra.mxu0 %vm527_vm0, %v484_v7  ;;  %4497 = vmatmul.msk.f32.gmra.mxu2 %vm527_vm0, %v515_v8  ;;  %v508_v7 = vld [vmem:[%s5556_s18 + $0xc8] sm:$0xff] }
  0x24   : > { %4493 = vmatmul.msk.f32.gmra.mxu1 %vm527_vm0, %v511_v40 }
  0x28   : > { %4467 = vmatmul.msk.f32.gmra.mxu0 %vm527_vm0, %v485_v9  ;;  %4498 = vmatmul.msk.f32.gmra.mxu2 %vm527_vm0, %v516_v10  ;;  %v509_v9 = vld [vmem:[%s5556_s18 + $0xd0] sm:$0xff] }
  0x2c   : > { %4494 = vmatmul.msk.f32.gmra.mxu1 %vm527_vm0, %v512_v54 }
  0x30   : > { %4468 = vmatmul.msk.f32.gmra.mxu0 %vm527_vm0, %v486_v11  ;;  %4499 = vmatmul.msk.f32.gmra.mxu2 %vm527_vm0, %v517_v12 }
  0x34   : > { %4495 = vmatmul.msk.f32.gmra.mxu1 %vm527_vm0, %v513_v58  ;;  %v1012_v58 = vld [vmem:[%s7642_s3 + $0x148] sm:$0xff] }
  0x38   : > { %4469 = vmatmul.msk.f32.gmra.mxu0 %vm527_vm0, %v487_v13  ;;  %4500 = vmatmul.msk.f32.gmra.mxu2 %vm527_vm0, %v518_v14 }
  0x40   : > { %4470 = vmatmul.msk.f32.gmra.mxu0 %vm527_vm0, %v488_v15  ;;  %4501 = vmatmul.msk.f32.gmra.mxu2 %vm527_vm0, %v519_v16 }
  0x48   : > { %4471 = vmatmul.msk.f32.gmra.mxu0 %vm527_vm0, %v489_v17  ;;  %4502 = vmatmul.msk.f32.gmra.mxu2 %vm527_vm0, %v520_v18 }
  0x50   : > { %4472 = vmatmul.msk.f32.gmra.mxu0 %vm527_vm0, %v490_v19  ;;  %4503 = vmatmul.msk.f32.gmra.mxu2 %vm527_vm0, %v521_v20 }
  0x58   : > { %4473 = vmatmul.msk.f32.gmra.mxu0 %vm527_vm0, %v491_v21  ;;  %4504 = vmatmul.msk.f32.gmra.mxu2 %vm527_vm0, %v522_v22 }
  0x60   : > { %4474 = vmatmul.msk.f32.gmra.mxu0 %vm527_vm0, %v492_v23  ;;  %4505 = vmatmul.msk.f32.gmra.mxu2 %vm527_vm0, %v523_v24  ;;  %v986_v24 = vld [vmem:[%s7642_s3 + $0x78] sm:$0xff] }
  0x61   : > { %1031 = vmatpush.msrb.mxu1 %v986_v24 }
  0x68   : > { %4475 = vmatmul.msk.f32.gmra.mxu0 %vm527_vm0, %v493_v25  ;;  %4506 = vmatmul.msk.f32.gmra.mxu2 %vm527_vm0, %v524_v26  ;;  %v985_v26 = vld [vmem:[%s7642_s3 + $0x70] sm:$0xff] }
  0x69   : > { %1032 = vmatpush.msrb.mxu1 %v985_v26 }
  0x70   : > { %4476 = vmatmul.msk.f32.gmra.mxu0 %vm527_vm0, %v494_v27  ;;  %4507 = vmatmul.msk.f32.gmra.mxu2 %vm527_vm0, %v525_v28  ;;  %v984_v27 = vld [vmem:[%s7642_s3 + $0x68] sm:$0xff]  ;;  %v983_v28 = vld [vmem:[%s7642_s3 + $0x60] sm:$0xff] }
  0x71   : > { %1033 = vmatpush.msrb.mxu1 %v984_v27 }
  0x73   : > { %1034 = vmatpush.msrb.mxu1 %v983_v28 }
  0x78   : > { %4477 = vmatmul.msk.f32.gmra.mxu0 %vm527_vm0, %v495_v29  ;;  %4508 = vmatmul.msk.f32.gmra.mxu2 %vm527_vm0, %v526_v30  ;;  %v982_v29 = vld [vmem:[%s7642_s3 + $0x58] sm:$0xff] }
  0x79   : > { %1035 = vmatpush.msrb.mxu1 %v982_v29 }
  0x80   : > { %4478 = vmatmul.msk.f32.gmra.mxu0 %vm527_vm0, %v496_v31  ;;  %v981_v31 = vld [vmem:[%s7642_s3 + $0x50] sm:$0xff] }
  0x81   : > { %1036 = vmatpush.msrb.mxu1 %v981_v31 }
  0x88   : > { %4479 = vmatmul.msk.f32.gmra.mxu0 %vm527_vm0, %v497_v32  ;;  %v980_v32 = vld [vmem:[%s7642_s3 + $0x48] sm:$0xff] }
  0x89   : > { %1037 = vmatpush.msrb.mxu1 %v980_v32 }
  0x90   : > { %4480 = vmatmul.msk.f32.gmra.mxu0 %vm527_vm0, %v498_v33  ;;  %v979_v33 = vld [vmem:[%s7642_s3 + $0x40] sm:$0xff] }
  0x91   : > { %1038 = vmatpush.msrb.mxu1 %v979_v33 }
  0x95   : > { %v5630_v34 = vpop.f32.mrf.mxu0 }
  0x98   : > { %4481 = vmatmul.msk.f32.gmra.mxu0 %vm527_vm0, %v499_v35  ;;  %v978_v35 = vld [vmem:[%s7642_s3 + $0x38] sm:$0xff] }
  0x99   : > { %v5694_v20 = vpop.f32.mrf.mxu1  ;;  %1039 = vmatpush.msrb.mxu1 %v978_v35 }
  0x9b   : > { %v5636_v37 = vpop.f32.mrf.mxu2 }
  0x9d   : > { %v5638_v38 = vpop.f32.mrf.mxu0 }
  0xa0   : > { %4482 = vmatmul.msk.f32.gmra.mxu0 %vm527_vm0, %v500_v39  ;;  %v977_v39 = vld [vmem:[%s7642_s3 + $0x30] sm:$0xff] }
  0xa1   : > { %v761_v22 = vpop.f32.mrf.mxu1  ;;  %1040 = vmatpush.msrb.mxu1 %v977_v39  ;;  %v1121_v39 = vld [vmem:[%s7644_s5 + $0x18] sm:$0xff] }
  0xa2   : > { %1150 = vmatpush.msra.mxu3 %v1121_v39 }
  0xa3   : > { %v5644_v41 = vpop.f32.mrf.mxu2 }
  0xa5   : > { %v5646_v42 = vpop.f32.mrf.mxu0 }
  0xa8   : > { %4483 = vmatmul.msk.f32.gmra.mxu0 %vm527_vm0, %v501_v43  ;;  %v976_v43 = vld [vmem:[%s7642_s3 + $0x28] sm:$0xff] }
  0xa9   : > { %1041 = vmatpush.msrb.mxu1 %v976_v43 }
  0xab   : > { %v5650_v44 = vpop.f32.mrf.mxu2 }
  0xad   : > { %v5652_v45 = vpop.f32.mrf.mxu0 }
  0xb0   : > { %4484 = vmatmul.msk.f32.gmra.mxu0 %vm527_vm0, %v502_v46  ;;  %v975_v46 = vld [vmem:[%s7642_s3 + $0x20] sm:$0xff] }
  0xb1   : > { %1042 = vmatpush.msrb.mxu1 %v975_v46  ;;  %v998_v46 = vld [vmem:[%s7642_s3 + $0xd8] sm:$0xff] }
  0xb3   : > { %v5656_v47 = vpop.f32.mrf.mxu2 }
  0xb5   : > { %v689_v48 = vpop.f32.mrf.mxu0 }
  0xb8   : > { %4485 = vmatmul.msk.f32.gmra.mxu0 %vm527_vm0, %v503_v49 }
  0xbb   : > { %v5660_v50 = vpop.f32.mrf.mxu2 }
  0xbd   : > { %v692_v51 = vpop.f32.mrf.mxu0 }
  0xbe   : > { %v5171_v53 = vpack.i.bf16 %v692_v51, %v689_v48  ;;  %v974_v48 = vld [vmem:[%s7642_s3 + $0x18] sm:$0xff]  ;;  %v973_v51 = vld [vmem:[%s7642_s3 + $0x10] sm:$0xff] }
  0xbf   : > { %1043 = vmatpush.msrb.mxu1 %v974_v48  ;;  %v1119_v48 = vld [vmem:[%s7644_s5 + $0x8] sm:$0xff] }
  0xc0   : > { %4486 = vmatmul.msk.f32.gmra.mxu0 %vm527_vm0, %v504_v52  ;;  %5172 = vrot.lane.b32.xlu0 %v5171_v53, %s5452_s19  ;;  %v972_v52 = vld [vmem:[%s7642_s3 + $0x8] sm:$0xff]  ;;  %v971_v53 = vld [vmem:[%s7642_s3] sm:$0xff] }
  0xc1   : > { %1044 = vmatpush.msrb.mxu1 %v973_v51 }
  0xc3   : > { %v785_v55 = vpop.f32.mrf.mxu2  ;;  %1045 = vmatpush.msrb.mxu1 %v972_v52 }
  0xc5   : > { %v695_v56 = vpop.f32.mrf.mxu0  ;;  %1046 = vmatpush.msrb.mxu1 %v971_v53 }
  0xc8   : > { %4487 = vmatmul.msk.f32.gmra.mxu0 %vm527_vm0, %v505_v57 }
  0xcb   : > { %v788_v59 = vpop.f32.mrf.mxu2 }
  0xcd   : > { %v698_v60 = vpop.f32.mrf.mxu0 }
  0xd0   : > { %4488 = vmatmul.msk.f32.gmra.mxu0 %vm527_vm0, %v506_v61  ;;  %v1010_v61 = vld [vmem:[%s7642_s3 + $0x138] sm:$0xff] }
  0xd3   : > { %v791_v62 = vpop.f32.mrf.mxu2 }
  0xd5   : > { %v701_v63 = vpop.f32.mrf.mxu0 }
  0xd6   : > { %829 = vrot.lane.b32.xlu0 %v701_v63, %s5453_s20 }
  0xd8   : > { %4489 = vmatmul.msk.f32.gmra.mxu0 %vm527_vm0, %v507_v0 }
  0xdb   : > { %v794_v5 = vpop.f32.mrf.mxu2 }
  0xdd   : > { %v704_v6 = vpop.f32.mrf.mxu0 }
  0xe0   : > { %4490 = vmatmul.msk.f32.gmra.mxu0 %vm527_vm0, %v508_v7 }
  0xe3   : > { %v797_v10 = vpop.f32.mrf.mxu2 }
  0xe5   : > { %v707_v8 = vpop.f32.mrf.mxu0 }
  0xe6   : > { %833 = vrot.lane.b32.xlu0 %v707_v8, %s5453_s20 }
  0xe8   : > { %4491 = vmatmul.msk.f32.gmra.mxu0 %vm527_vm0, %v509_v9  ;;  %v1006_v9 = vld [vmem:[%s7642_s3 + $0x118] sm:$0xff] }
  0xeb   : > { %v800_v12 = vpop.f32.mrf.mxu2 }
  0xed   : > { %v710_v11 = vpop.f32.mrf.mxu0 }
  0xee   : > { %835 = vrot.lane.b32.xlu0 %v710_v11, %s5453_s20 }
  0xf3   : > { %v803_v14 = vpop.f32.mrf.mxu2 }
  0xf5   : > { %v713_v13 = vpop.f32.mrf.mxu0 }
  0xf6   : > { %925 = vrot.lane.b32.xlu0 %v797_v10, %s5453_s20  ;;  %845 = vrot.lane.b32.xlu1 %v713_v13, %s5454_s21  ;;  %v1005_v10 = vld [vmem:[%s7642_s3 + $0x110] sm:$0xff] }
  0xfb   : > { %v806_v16 = vpop.f32.mrf.mxu2 }
  0xfd   : > { %v716_v15 = vpop.f32.mrf.mxu0 }
  0xfe   : > { %913 = vrot.lane.b32.xlu0 %v791_v62, %s5452_s19  ;;  %831 = vrot.lane.b32.xlu1 %v704_v6, %s5453_s20  ;;  %v1009_v62 = vld [vmem:[%s7642_s3 + $0x130] sm:$0xff]  ;;  %v1007_v6 = vld [vmem:[%s7642_s3 + $0x120] sm:$0xff] }
  0xff   : > { %847 = vrot.lane.b32.xlu2 %v716_v15, %s5454_s21 }
 0x105   : > { %v719_v17 = vpop.f32.mrf.mxu0 }
 0x106   : > { %849 = vrot.lane.b32.xlu1 %v719_v17, %s5454_s21  ;;  %931 = vrot.lane.b32.xlu0 %v806_v16, %s5453_s20 }
 0x107   : > { %817 = vrot.lane.b32.xlu2 %v695_v56, %s5452_s19  ;;  %v1013_v56 = vld [vmem:[%s7642_s3 + $0x150] sm:$0xff] }
 0x10d   : > { %v722_v18 = vpop.f32.mrf.mxu0 }
 0x10e   : > { %851 = vrot.lane.b32.xlu1 %v722_v18, %s5454_s21  ;;  %893 = vrot.lane.b32.xlu0 %v761_v22, %s5454_s21  ;;  %v1003_v22 = vld [vmem:[%s7642_s3 + $0x100] sm:$0xff] }
 0x10f   : > { %819 = vrot.lane.b32.xlu2 %v698_v60, %s5452_s19  ;;  %v1011_v60 = vld [vmem:[%s7642_s3 + $0x140] sm:$0xff] }
 0x115   : > { %v5692_v19 = vpop.f32.mrf.mxu0 }
 0x116   : > { %911 = vrot.lane.b32.xlu1 %v788_v59, %s5452_s19  ;;  %v764_v59 = vpop.f32.mrf.mxu1 }
 0x117   : > { %909 = vrot.lane.b32.xlu2 %v785_v55, %s5452_s19  ;;  %v1014_v55 = vld [vmem:[%s7642_s3 + $0x158] sm:$0xff] }
 0x118   : > { %1093 = vmatpush.msra.mxu1 %v1014_v55  ;;  %v1118_v55 = vld [vmem:[%s7644_s5] sm:$0xff] }
 0x11a   : > { %1094 = vmatpush.msra.mxu1 %v1013_v56  ;;  %v996_v56 = vld [vmem:[%s7642_s3 + $0xc8] sm:$0xff] }
 0x11c   : > { %1095 = vmatpush.msra.mxu1 %v1012_v58 }
 0x11d   : > { %v5698_v21 = vpop.f32.mrf.mxu0 }
 0x11e   : > { %929 = vrot.lane.b32.xlu1 %v803_v14, %s5453_s20  ;;  %1096 = vmatpush.msra.mxu1 %v1011_v60  ;;  %v767_v8 = vpop.f32.mrf.mxu1  ;;  %v1004_v14 = vld [vmem:[%s7642_s3 + $0x108] sm:$0xff] }
 0x11f   : > { %927 = vrot.lane.b32.xlu2 %v800_v12, %s5453_s20  ;;  %v1172_v60 = vld [vmem:[%s7646_s7 + $0x8] sm:$0xff] }
 0x120   : > { %1097 = vmatpush.msra.mxu1 %v1010_v61  ;;  %v994_v61 = vld [vmem:[%s7642_s3 + $0xb8] sm:$0xff] }
 0x122   : > { %1098 = vmatpush.msra.mxu1 %v1009_v62  ;;  %v1171_v62 = vld [vmem:[%s7646_s7] sm:$0xff] }
 0x125   : > { %v5703_v23 = vpop.f32.mrf.mxu0 }
 0x127   : > { %915 = vrot.lane.b32.xlu2 %v794_v5, %s5452_s19  ;;  %v1008_v5 = vld [vmem:[%s7642_s3 + $0x128] sm:$0xff] }
 0x128   : > { %1099 = vmatpush.msra.mxu1 %v1008_v5 }
 0x12a   : > { %1100 = vmatpush.msra.mxu1 %v1007_v6 }
 0x12c   : > { %1101 = vmatpush.msra.mxu1 %v1006_v9 }
 0x12d   : > { %v5709_v25 = vpop.f32.mrf.mxu0 }
 0x12e   : > { %1102 = vmatpush.msra.mxu1 %v1005_v10  ;;  %v990_v10 = vld [vmem:[%s7642_s3 + $0x98] sm:$0xff] }
 0x130   : > { %1103 = vmatpush.msra.mxu1 %v1004_v14  ;;  %v988_v14 = vld [vmem:[%s7642_s3 + $0x88] sm:$0xff] }
 0x132   : > { %v5173_v63 = vpop.permute.xlu0 %5172  ;;  %1104 = vmatpush.msra.mxu1 %v1003_v22 }
 0x133   : > { %v5174_v7 = vunpack.i.l.bf16 %v5173_v63  ;;  %v5175_v24 = vunpack.i.h.bf16 %v5173_v63 }
 0x135   : > { %v737_v30 = vpop.f32.mrf.mxu0  ;;  %v937_v15 = vsel %vm527_vm0, %v5630_v34, %v5174_v7  ;;  %v938_v26 = vsel %vm527_vm0, %v5638_v38, %v5175_v24  ;;  %v992_v7 = vld [vmem:[%s7642_s3 + $0xa8] sm:$0xff] }
 0x13d   : > { %v740_v36 = vpop.f32.mrf.mxu0 }
 0x13e   : > { %v5176_v40 = vpack.i.bf16 %v740_v36, %v737_v30  ;;  %v1002_v30 = vld [vmem:[%s7642_s3 + $0xf8] sm:$0xff]  ;;  %v1000_v36 = vld [vmem:[%s7642_s3 + $0xe8] sm:$0xff] }
 0x13f   : > { %1060 = vmatpush.msrb.mxu2 %v1002_v30 }
 0x140   : > { %5177 = vrot.lane.b32.xlu1 %v5176_v40, %s5452_s19  ;;  %v1120_v40 = vld [vmem:[%s7644_s5 + $0x10] sm:$0xff] }
 0x141   : > { %1151 = vmatpush.msra.mxu3 %v1120_v40 }
 0x143   : > { %1152 = vmatpush.msra.mxu3 %v1119_v48 }
 0x145   : > { %v743_v49 = vpop.f32.mrf.mxu0  ;;  %1153 = vmatpush.msra.mxu3 %v1118_v55 }
 0x146   : > { %865 = vrot.lane.b32.xlu0 %v743_v49, %s5452_s19  ;;  %v1174_v49 = vld [vmem:[%s7646_s7 + $0x18] sm:$0xff]  ;;  %4513 = vmatmul.msk.f32.vlgmr.msra.gmra.mxu3 %vm527_vm0, %v5563_v4 }
 0x148   : > { %v830_v11 = vpop.permute.xlu0 %829 }
 0x149   : > { %v942_v16 = vsel %vm941_vm1, %v937_v15, %v830_v11 }
 0x14d   : > { %v746_v54 = vpop.f32.mrf.mxu0 }
 0x14e   : > { %867 = vrot.lane.b32.xlu0 %v746_v54, %s5452_s19  ;;  %4514 = vmatmul.msk.f32.gmra.mxu3 %vm527_vm0, %v5558_v3 }
 0x155   : > { %v749_v57 = vpop.f32.mrf.mxu0 }
 0x156   : > { %877 = vrot.lane.b32.xlu2 %v749_v57, %s5453_s20  ;;  %v1173_v57 = vld [vmem:[%s7646_s7 + $0x10] sm:$0xff]  ;;  %4515 = vmatmul.msk.f32.gmra.mxu3 %vm527_vm0, %v5549_v2 }
 0x159   : > { %v848_v13 = vpop.permute.xlu2 %847 }
 0x15d   : > { %v752_v0 = vpop.f32.mrf.mxu0 }
 0x15e   : > { %895 = vrot.lane.b32.xlu2 %v764_v59, %s5454_s21  ;;  %879 = vrot.lane.b32.xlu1 %v752_v0, %s5453_s20  ;;  %v995_v59 = vld [vmem:[%s7642_s3 + $0xc0] sm:$0xff]  ;;  %v993_v0 = vld [vmem:[%s7642_s3 + $0xb0] sm:$0xff] }
 0x15f   : > { %4516 = vmatmul.msk.f32.gmra.mxu3 %vm527_vm0, %v5547_v1 }
 0x161   : > { %v818_v34 = vpop.permute.xlu2 %817 }
 0x162   : > { %v939_v31 = vsel %vm527_vm0, %v5646_v42, %v818_v34  ;;  %v999_v42 = vld [vmem:[%s7642_s3 + $0xe0] sm:$0xff] }
 0x165   : > { %v755_v12 = vpop.f32.mrf.mxu0 }
 0x166   : > { %897 = vrot.lane.b32.xlu2 %v767_v8, %s5454_s21  ;;  %881 = vrot.lane.b32.xlu1 %v755_v12, %s5453_s20 }
 0x168   : > { %v846_v17 = vpop.permute.xlu1 %845 }
 0x169   : > { %v947_v18 = vsel %vm946_vm2, %v942_v16, %v846_v17  ;;  %v820_v35 = vpop.permute.xlu2 %819 }
 0x16a   : > { %1047 = vmatmul.f32.vlgmr.msrb.gmra.mxu1 %v947_v18  ;;  %v940_v43 = vsel %vm527_vm0, %v5652_v45, %v820_v35  ;;  %v997_v45 = vld [vmem:[%s7642_s3 + $0xd0] sm:$0xff] }
 0x16b   : > { %1191 = vmatpush.msrb.mxu1 %v1174_v49 }
 0x16d   : > { %1192 = vmatpush.msrb.mxu1 %v1173_v57  ;;  %v5350_v57 = vld [vmem:[%s7645_s6] ss:$0 sm:$0xff] }
 0x16e   : > { %899 = vrot.lane.b32.xlu2 %v5636_v37, %s5454_s21  ;;  %883 = vrot.lane.b32.xlu1 %v5694_v20, %s5453_s20  ;;  %v1001_v37 = vld [vmem:[%s7642_s3 + $0xf0] sm:$0xff]  ;;  %v834_v20 = vpop.permute.xlu0 %833 }
 0x16f   : > { %1061 = vmatpush.msrb.mxu2 %v1001_v37  ;;  %v944_v32 = vsel %vm941_vm1, %v939_v31, %v834_v20  ;;  %1193 = vmatpush.msrb.mxu1 %v1172_v60 }
 0x170   : > { %v832_v27 = vpop.permute.xlu1 %831 }
 0x171   : > { %v943_v28 = vsel %vm941_vm1, %v938_v26, %v832_v27  ;;  %1062 = vmatpush.msrb.mxu2 %v1000_v36  ;;  %v910_v58 = vpop.permute.xlu2 %909  ;;  %1194 = vmatpush.msrb.mxu1 %v1171_v62 }
 0x172   : > { %v948_v29 = vsel %vm946_vm2, %v943_v28, %v848_v13  ;;  %v963_v63 = vsel %vm527_vm0, %v5644_v41, %v910_v58  ;;  %v991_v41 = vld [vmem:[%s7642_s3 + $0xa0] sm:$0xff]  ;;  %v989_v13 = vld [vmem:[%s7642_s3 + $0x90] sm:$0xff] }
 0x173   : > { %1050 = vmatmul.f32.gmra.mxu1 %v948_v29  ;;  %1063 = vmatpush.msrb.mxu2 %v999_v42 }
 0x175   : > { %1064 = vmatpush.msrb.mxu2 %v998_v46 }
 0x176   : > { %v836_v51 = vpop.permute.xlu0 %835 }
 0x177   : > { %v945_v53 = vsel %vm941_vm1, %v940_v43, %v836_v51  ;;  %1065 = vmatpush.msrb.mxu2 %v997_v45 }
 0x178   : > { %v850_v38 = vpop.permute.xlu1 %849 }
 0x179   : > { %v949_v33 = vsel %vm946_vm2, %v944_v32, %v850_v38  ;;  %1066 = vmatpush.msrb.mxu2 %v996_v56  ;;  %v928_v11 = vpop.permute.xlu2 %927 }
 0x17b   : > { %1053 = vmatmul.f32.gmra.mxu1 %v949_v33  ;;  %1067 = vmatpush.msrb.mxu2 %v995_v59  ;;  %v5351_v59 = vld [vmem:[%s7647_s8] ss:$0 sm:$0xff] }
 0x17d   : > { %1068 = vmatpush.msrb.mxu2 %v994_v61 }
 0x17e   : > { %v926_v5 = vpop.permute.xlu0 %925 }
 0x17f   : > { %v967_v6 = vsel %vm941_vm1, %v963_v63, %v926_v5  ;;  %1069 = vmatpush.msrb.mxu2 %v993_v0 }
 0x180   : > { %v852_v52 = vpop.permute.xlu1 %851 }
 0x181   : > { %v950_v54 = vsel %vm946_vm2, %v945_v53, %v852_v52  ;;  %1070 = vmatpush.msrb.mxu2 %v992_v7  ;;  %v916_v22 = vpop.permute.xlu2 %915 }
 0x182   : > { %v966_v24 = vsel %vm527_vm0, %v5660_v50, %v916_v22 }
 0x183   : > { %1056 = vmatmul.f32.gmra.mxu1 %v950_v54  ;;  %1071 = vmatpush.msrb.mxu2 %v991_v41 }
 0x185   : > { %1072 = vmatpush.msrb.mxu2 %v990_v10 }
 0x186   : > { %v914_v15 = vpop.permute.xlu0 %913 }
 0x187   : > { %1073 = vmatpush.msrb.mxu2 %v989_v13  ;;  %v965_v17 = vsel %vm527_vm0, %v5656_v47, %v914_v15 }
 0x188   : > { %v912_v8 = vpop.permute.xlu1 %911 }
 0x189   : > { %v964_v9 = vsel %vm527_vm0, %v5650_v44, %v912_v8  ;;  %v987_v44 = vld [vmem:[%s7642_s3 + $0x80] sm:$0xff]  ;;  %1074 = vmatpush.msrb.mxu2 %v988_v14 }
 0x18a   : > { %v968_v12 = vsel %vm941_vm1, %v964_v9, %v928_v11 }
 0x18b   : > { %4509 = vmatmul.msk.f32.vlgmr.msra.gmra.mxu1 %vm946_vm2, %v967_v6  ;;  %1075 = vmatpush.msrb.mxu2 %v987_v44 }
 0x18e   : > { %v932_v34 = vpop.permute.xlu0 %931 }
 0x18f   : > { %v970_v26 = vsel %vm941_vm1, %v966_v24, %v932_v34 }
 0x190   : > { %v930_v16 = vpop.permute.xlu1 %929 }
 0x191   : > { %v969_v18 = vsel %vm941_vm1, %v965_v17, %v930_v16 }
 0x193   : > { %4510 = vmatmul.msk.f32.gmra.mxu1 %vm946_vm2, %v968_v12 }
 0x196   : > { %v894_v30 = vpop.permute.xlu0 %893 }
 0x19b   : > { %4511 = vmatmul.msk.f32.gmra.mxu1 %vm946_vm2, %v969_v18 }
 0x1a3   : > { %4512 = vmatmul.msk.f32.gmra.mxu1 %vm946_vm2, %v970_v26 }
 0x1ab   : > { %4517 = vmatmul.msk.f32.vlgmr.msrb.gmra.mxu1 %vm527_vm0, %v5563_v4 }
 0x1b0   : > { %v878_v28 = vpop.permute.xlu2 %877 }
 0x1b2   : > { %v5178_v47 = vpop.permute.xlu1 %5177 }
 0x1b3   : > { %v5179_v27 = vunpack.i.l.bf16 %v5178_v47  ;;  %4518 = vmatmul.msk.f32.gmra.mxu1 %vm527_vm0, %v5558_v3  ;;  %v5180_v4 = vunpack.i.h.bf16 %v5178_v47 }
 0x1b5   : > { %v951_v29 = vsel %vm527_vm0, %v5692_v19, %v5179_v27  ;;  %v952_v3 = vsel %vm527_vm0, %v5698_v21, %v5180_v4 }
 0x1b6   : > { %v955_v50 = vsel %vm941_vm1, %v951_v29, %v878_v28  ;;  %v5349_v28 = vld [vmem:[%s7643_s4] ss:$0 sm:$0xff] }
 0x1b7   : > { %v959_v37 = vsel %vm946_vm2, %v955_v50, %v894_v30 }
 0x1b8   : > { %1076 = vmatmul.f32.vlgmr.msrb.gmra.mxu2 %v959_v37  ;;  %v896_v20 = vpop.permute.xlu2 %895  ;;  %v866_v32 = vpop.permute.xlu0 %865 }
 0x1b9   : > { %v953_v35 = vsel %vm527_vm0, %v5703_v23, %v866_v32 }
 0x1bb   : > { %4519 = vmatmul.msk.f32.gmra.mxu1 %vm527_vm0, %v5549_v2 }
 0x1c0   : > { %v898_v33 = vpop.permute.xlu2 %897  ;;  %v868_v39 = vpop.permute.xlu0 %867 }
 0x1c1   : > { %v954_v21 = vsel %vm527_vm0, %v5709_v25, %v868_v39 }
 0x1c3   : > { %4520 = vmatmul.msk.f32.gmra.mxu1 %vm527_vm0, %v5547_v1 }
 0x1c8   : > { %v900_v40 = vpop.permute.xlu2 %899 }
 0x1c9   : > { %v1155_v54 = vpop.f32.mrf.mxu3 }
 0x1ca   : > { %v1156_v44 = vadd.f32 %v5350_v57, %v1155_v54  ;;  %v4525_v54 = vld [vmem:[%s5556_s18 + $0x180] sm:$0xff] }
 0x1d0   : > { %v880_v31 = vpop.permute.xlu1 %879 }
 0x1d1   : > { %v956_v19 = vsel %vm941_vm1, %v952_v3, %v880_v31  ;;  %v1158_v56 = vpop.f32.mrf.mxu3 }
 0x1d2   : > { %v960_v38 = vsel %vm946_vm2, %v956_v19, %v896_v20  ;;  %v1159_v58 = vadd.f32 %v5350_v57, %v1158_v56  ;;  %v4527_v56 = vld [vmem:[%s5556_s18 + $0x190] sm:$0xff] }
 0x1d3   : > { %1079 = vmatmul.f32.gmra.mxu2 %v960_v38 }
 0x1d4   : > { %5364 = vtanh.f32 %v1159_v58  ;;  %v4530_v58 = vld [vmem:[%s5556_s18 + $0x1a8] sm:$0xff] }
 0x1d8   : > { %v882_v2 = vpop.permute.xlu1 %881 }
 0x1d9   : > { %v957_v36 = vsel %vm941_vm1, %v953_v35, %v882_v2  ;;  %v1161_v61 = vpop.f32.mrf.mxu3 }
 0x1da   : > { %v961_v1 = vsel %vm946_vm2, %v957_v36, %v898_v33  ;;  %v1162_v63 = vadd.f32 %v5350_v57, %v1161_v61  ;;  %v5365_v0 = vpop.eup %5364  ;;  %v4533_v61 = vld [vmem:[%s5556_s18 + $0x1c0] sm:$0xff] }
 0x1db   : > { %1082 = vmatmul.f32.gmra.mxu2 %v961_v1 }
 0x1e0   : > { %v884_v42 = vpop.permute.xlu1 %883 }
 0x1e1   : > { %v958_v43 = vsel %vm941_vm1, %v954_v21, %v884_v42 }
 0x1e2   : > { %v962_v46 = vsel %vm946_vm2, %v958_v43, %v900_v40  ;;  %v1164_v8 = vpop.f32.mrf.mxu3 }
 0x1e3   : > { %1085 = vmatmul.f32.gmra.mxu2 %v962_v46  ;;  %v1165_v9 = vadd.f32 %v5350_v57, %v1164_v8  ;;  %v4529_v57 = vld [vmem:[%s5556_s18 + $0x1a0] sm:$0xff]  ;;  %v4539_v8 = vld [vmem:[%s5556_s18 + $0x1f0] sm:$0xff] }
 0x1e7   : > { %v5940_v48 = vpop.f32.mrf.mxu1 }
 0x1e8   : > { %v1049_v19 = vadd.f32 %v5349_v28, %v5940_v48 }
 0x1f0   : > { %v1051_v23 = vpop.f32.mrf.mxu1 }
 0x1f1   : > { %v1052_v4 = vadd.f32 %v5349_v28, %v1051_v23 }
 0x1f8   : > { %v1054_v49 = vpop.f32.mrf.mxu1 }
 0x1f9   : > { %v1055_v50 = vadd.f32 %v5349_v28, %v1054_v49  ;;  %v4521_v49 = vld [vmem:[%s5556_s18 + $0x160] sm:$0xff] }
 0x200   : > { %v1057_v51 = vpop.f32.mrf.mxu1 }
 0x201   : > { %v1058_v30 = vadd.f32 %v5349_v28, %v1057_v51 }
 0x208   : > { %v5942_v45 = vpop.f32.mrf.mxu1 }
 0x210   : > { %v1109_v52 = vpop.f32.mrf.mxu1 }
 0x218   : > { %v1112_v53 = vpop.f32.mrf.mxu1 }
 0x220   : > { %v1115_v55 = vpop.f32.mrf.mxu1 }
 0x228   : > { %v1196_v25 = vpop.f32.mrf.mxu1 }
 0x229   : > { %v1197_v15 = vadd.f32 %v5351_v59, %v1196_v25  ;;  %v4528_v25 = vld [vmem:[%s5556_s18 + $0x198] sm:$0xff] }
 0x230   : > { %v1199_v60 = vpop.f32.mrf.mxu1 }
 0x231   : > { %v1200_v62 = vadd.f32 %v5351_v59, %v1199_v60  ;;  %v4532_v60 = vld [vmem:[%s5556_s18 + $0x1b8] sm:$0xff] }
 0x233   : > { %5366 = vtanh.f32 %v1200_v62  ;;  %v4534_v62 = vld [vmem:[%s5556_s18 + $0x1c8] sm:$0xff] }
 0x234   : > { %5368 = vtanh.f32 %v1162_v63  ;;  %v4535_v63 = vld [vmem:[%s5556_s18 + $0x1d0] sm:$0xff] }
 0x238   : > { %v1202_v5 = vpop.f32.mrf.mxu1 }
 0x239   : > { %v5367_v6 = vpop.eup %5366  ;;  %v1203_v7 = vadd.f32 %v5351_v59, %v1202_v5  ;;  %v4537_v5 = vld [vmem:[%s5556_s18 + $0x1e0] sm:$0xff] }
 0x23a   : > { %v1217_v41 = vmul.f32 %v5367_v6, %v5365_v0  ;;  %v5369_v10 = vpop.eup %5368  ;;  %v4536_v0 = vld [vmem:[%s5556_s18 + $0x1d8] sm:$0xff] }
 0x23b   : > { %5370 = vtanh.f32 %v1203_v7  ;;  %v1077_v26 = vpop.f32.mrf.mxu2  ;;  %v4538_v7 = vld [vmem:[%s5556_s18 + $0x1e8] sm:$0xff] }
 0x23c   : > { %1226 = vrot.lane.b32.xlu2 %v1217_v41, %s5455_s16  ;;  %5372 = vtanh.f32 %v1165_v9  ;;  %v1078_v32 = vadd.f32 %v1077_v26, %v1049_v19 }
 0x23e   : > { %v1107_v42 = vadd.f32 %v5942_v45, %v1078_v32  ;;  %v4522_v45 = vld [vmem:[%s5556_s18 + $0x168] sm:$0xff]  ;;  %v4551_v32 = vld [vmem:[%s5556_s18 + $0x250] sm:$0xff] }
 0x240   : > { %v1205_v11 = vpop.f32.mrf.mxu1  ;;  %v1212_v48 = vmax.f32 %v1107_v42, 0.0  ;;  %v4554_v42 = vld [vmem:[%s5556_s18 + $0x268] sm:$0xff] }
 0x241   : > { %v5371_v12 = vpop.eup %5370  ;;  %v1206_v13 = vadd.f32 %v5351_v59, %v1205_v11  ;;  %v4531_v59 = vld [vmem:[%s5556_s18 + $0x1b0] sm:$0xff] }
 0x242   : > { %v1218_v14 = vmul.f32 %v5371_v12, %v5369_v10  ;;  %v5373_v16 = vpop.eup %5372  ;;  %v4540_v10 = vld [vmem:[%s5556_s18 + $0x1f8] sm:$0xff]  ;;  %v4541_v12 = vld [vmem:[%s5556_s18 + $0x200] sm:$0xff] }
 0x243   : > { %5374 = vtanh.f32 %v1206_v13 }
 0x244   : > { %1228 = vrot.lane.b32.xlu1 %v1218_v14, %s5455_s16  ;;  %5376 = vtanh.f32 %v1156_v44  ;;  %v4542_v14 = vld [vmem:[%s5556_s18 + $0x208] sm:$0xff] }
 0x245   : > { %5378 = vtanh.f32 %v1197_v15 }
 0x249   : > { %v5375_v17 = vpop.eup %5374 }
 0x24a   : > { %v1219_v18 = vmul.f32 %v5375_v17, %v5373_v16  ;;  %v5377_v22 = vpop.eup %5376  ;;  %v4543_v16 = vld [vmem:[%s5556_s18 + $0x210] sm:$0xff] }
 0x24b   : > { %v5379_v24 = vpop.eup %5378 }
 0x24c   : > { %1230 = vrot.lane.b32.xlu0 %v1219_v18, %s5455_s16  ;;  %v1216_v34 = vmul.f32 %v5379_v24, %v5377_v22  ;;  %v4544_v18 = vld [vmem:[%s5556_s18 + $0x218] sm:$0xff] }
 0x254   : > { %1224 = vrot.lane.b32.xlu0 %v1216_v34, %s5455_s16  ;;  %v4545_v34 = vld [vmem:[%s5556_s18 + $0x220] sm:$0xff] }
 0x256   : > { %v1080_v47 = vpop.f32.mrf.mxu2 }
 0x257   : > { %v1081_v3 = vadd.f32 %v1080_v47, %v1052_v4  ;;  %v4546_v47 = vld [vmem:[%s5556_s18 + $0x228] sm:$0xff] }
 0x259   : > { %v1110_v33 = vadd.f32 %v1109_v52, %v1081_v3  ;;  %v4523_v52 = vld [vmem:[%s5556_s18 + $0x170] sm:$0xff] }
 0x25b   : > { %v1213_v40 = vmax.f32 %v1110_v33, 0.0 }
 0x25e   : > { %v1083_v27 = vpop.f32.mrf.mxu2 }
 0x25f   : > { %v1084_v20 = vadd.f32 %v1083_v27, %v1055_v50  ;;  %v4548_v50 = vld [vmem:[%s5556_s18 + $0x238] sm:$0xff] }
 0x261   : > { %v1113_v38 = vadd.f32 %v1112_v53, %v1084_v20  ;;  %v4524_v53 = vld [vmem:[%s5556_s18 + $0x178] sm:$0xff]  ;;  %v4549_v20 = vld [vmem:[%s5556_s18 + $0x240] sm:$0xff] }
 0x263   : > { %v1214_v1 = vmax.f32 %v1113_v38, 0.0 }
 0x266   : > { %v1086_v29 = vpop.f32.mrf.mxu2 }
 0x267   : > { %v1087_v37 = vadd.f32 %v1086_v29, %v1058_v30  ;;  %v4547_v29 = vld [vmem:[%s5556_s18 + $0x230] sm:$0xff] }
 0x269   : > { %v1116_v31 = vadd.f32 %v1115_v55, %v1087_v37  ;;  %v4526_v55 = vld [vmem:[%s5556_s18 + $0x188] sm:$0xff] }
 0x26b   : > { %v1215_v35 = vmax.f32 %v1116_v31, 0.0  ;;  %v4550_v31 = vld [vmem:[%s5556_s18 + $0x248] sm:$0xff] }
 0x296   : > { %v1227_v21 = vpop.permute.xlu2 %1226 }
 0x297   : > { %v5968_v46 = vsel %vm1236_vm3, %v1213_v40, %v1227_v21 }
 0x2b6   : > { %v1229_v2 = vpop.permute.xlu1 %1228 }
 0x2b7   : > { %v5964_v43 = vsel %vm1236_vm3, %v1214_v1, %v1229_v2  ;;  %v4553_v1 = vld [vmem:[%s5556_s18 + $0x260] sm:$0xff] }
 0x2be   : > { %v1231_v36 = vpop.permute.xlu0 %1230 }
 0x2bf   : > { %v5959_v39 = vsel %vm1236_vm3, %v1215_v35, %v1231_v36  ;;  %v4552_v35 = vld [vmem:[%s5556_s18 + $0x258] sm:$0xff] }
 0x2c0   : > { %1430 = vmatpush.msra.mxu2 %v5959_v39 }
 0x2c2   : > { %1431 = vmatpush.msra.mxu2 %v5964_v43 }
 0x2c4   : > { %1432 = vmatpush.msra.mxu2 %v5968_v46 }
 0x2c6   : > { %v1225_v23 = vpop.permute.xlu0 %1224 }
 0x2c7   : > { %v5973_v51 = vsel %vm1236_vm3, %v1212_v48, %v1225_v23  ;;  %v4555_v48 = vld [vmem:[%s5556_s18 + $0x270] sm:$0xff] }
 0x2c8   : > { %1433 = vmatpush.msra.mxu2 %v5973_v51 }
 0x2c9   : > { %4565 = vmatmul.msk.f32.vlgmr.msra.gmra.mxu2 %vm527_vm0, %v4521_v49  ;;  %v4556_v49 = vld [vmem:[%s5556_s18 + $0x278] sm:$0xff] }
 0x2d1   : > { %4566 = vmatmul.msk.f32.gmra.mxu2 %vm527_vm0, %v4522_v45 }
 0x2d9   : > { %4567 = vmatmul.msk.f32.gmra.mxu2 %vm527_vm0, %v4523_v52  ;;  %v4557_v52 = vld [vmem:[%s5556_s18 + $0x280] sm:$0xff] }
 0x2e1   : > { %4568 = vmatmul.msk.f32.gmra.mxu2 %vm527_vm0, %v4524_v53 }
 0x2e9   : > { %4569 = vmatmul.msk.f32.gmra.mxu2 %vm527_vm0, %v4525_v54  ;;  %v4624_v54 = vld [vmem:[%s7642_s3 + $0x1d8] sm:$0xff] }
 0x2ea   : > { %1789 = vmatpush.msrb.mxu3 %v4624_v54 }
 0x2f1   : > { %4570 = vmatmul.msk.f32.gmra.mxu2 %vm527_vm0, %v4526_v55  ;;  %v4623_v55 = vld [vmem:[%s7642_s3 + $0x1d0] sm:$0xff] }
 0x2f2   : > { %1790 = vmatpush.msrb.mxu3 %v4623_v55 }
 0x2f9   : > { %4571 = vmatmul.msk.f32.gmra.mxu2 %vm527_vm0, %v4527_v56  ;;  %v4558_v56 = vld [vmem:[%s5556_s18 + $0x288] sm:$0xff] }
 0x301   : > { %4572 = vmatmul.msk.f32.gmra.mxu2 %vm527_vm0, %v4528_v25  ;;  %v4622_v25 = vld [vmem:[%s7642_s3 + $0x1c8] sm:$0xff] }
 0x302   : > { %1791 = vmatpush.msrb.mxu3 %v4622_v25 }
 0x309   : > { %4573 = vmatmul.msk.f32.gmra.mxu2 %vm527_vm0, %v4529_v57 }
 0x311   : > { %4574 = vmatmul.msk.f32.gmra.mxu2 %vm527_vm0, %v4530_v58  ;;  %v4621_v58 = vld [vmem:[%s7642_s3 + $0x1c0] sm:$0xff] }
 0x312   : > { %1792 = vmatpush.msrb.mxu3 %v4621_v58 }
 0x319   : > { %4575 = vmatmul.msk.f32.gmra.mxu2 %vm527_vm0, %v4531_v59 }
 0x321   : > { %4576 = vmatmul.msk.f32.gmra.mxu2 %vm527_vm0, %v4532_v60  ;;  %v4620_v60 = vld [vmem:[%s7642_s3 + $0x1b8] sm:$0xff] }
 0x322   : > { %1793 = vmatpush.msrb.mxu3 %v4620_v60 }
 0x329   : > { %4577 = vmatmul.msk.f32.gmra.mxu2 %vm527_vm0, %v4533_v61  ;;  %v4559_v61 = vld [vmem:[%s5556_s18 + $0x290] sm:$0xff] }
 0x331   : > { %4578 = vmatmul.msk.f32.gmra.mxu2 %vm527_vm0, %v4534_v62  ;;  %v4619_v62 = vld [vmem:[%s7642_s3 + $0x1b0] sm:$0xff] }
 0x332   : > { %1794 = vmatpush.msrb.mxu3 %v4619_v62 }
 0x339   : > { %4579 = vmatmul.msk.f32.gmra.mxu2 %vm527_vm0, %v4535_v63  ;;  %v4618_v63 = vld [vmem:[%s7642_s3 + $0x1a8] sm:$0xff] }
 0x33a   : > { %1795 = vmatpush.msrb.mxu3 %v4618_v63 }
 0x341   : > { %4580 = vmatmul.msk.f32.gmra.mxu2 %vm527_vm0, %v4536_v0 }
 0x349   : > { %4581 = vmatmul.msk.f32.gmra.mxu2 %vm527_vm0, %v4537_v5  ;;  %v4617_v5 = vld [vmem:[%s7642_s3 + $0x1a0] sm:$0xff] }
 0x34a   : > { %1796 = vmatpush.msrb.mxu3 %v4617_v5 }
 0x34c   : > { %v6009_v6 = vpop.f32.mrf.mxu2 }
 0x351   : > { %4582 = vmatmul.msk.f32.gmra.mxu2 %vm527_vm0, %v4538_v7  ;;  %v4616_v7 = vld [vmem:[%s7642_s3 + $0x198] sm:$0xff] }
 0x352   : > { %1797 = vmatpush.msrb.mxu3 %v4616_v7 }
 0x354   : > { %v6013_v41 = vpop.f32.mrf.mxu2 }
 0x359   : > { %4583 = vmatmul.msk.f32.gmra.mxu2 %vm527_vm0, %v4539_v8  ;;  %v4560_v8 = vld [vmem:[%s5556_s18 + $0x298] sm:$0xff] }
 0x35c   : > { %v6017_v9 = vpop.f32.mrf.mxu2 }
 0x361   : > { %4584 = vmatmul.msk.f32.gmra.mxu2 %vm527_vm0, %v4540_v10  ;;  %v4615_v10 = vld [vmem:[%s7642_s3 + $0x190] sm:$0xff] }
 0x362   : > { %1798 = vmatpush.msrb.mxu3 %v4615_v10  ;;  %v4640_v10 = vld [vmem:[%s7642_s3 + $0x258] sm:$0xff] }
 0x363   : > { %1818 = vmatpush.msra.mxu1 %v4640_v10 }
 0x364   : > { %v6021_v11 = vpop.f32.mrf.mxu2 }
 0x369   : > { %4585 = vmatmul.msk.f32.gmra.mxu2 %vm527_vm0, %v4541_v12  ;;  %v4614_v12 = vld [vmem:[%s7642_s3 + $0x188] sm:$0xff] }
 0x36a   : > { %1799 = vmatpush.msrb.mxu3 %v4614_v12  ;;  %v4639_v12 = vld [vmem:[%s7642_s3 + $0x250] sm:$0xff] }
 0x36b   : > { %1819 = vmatpush.msra.mxu1 %v4639_v12  ;;  %v4670_v12 = vld [vmem:[%s7646_s7 + $0x38] sm:$0xff] }
 0x36c   : > { %v1447_v13 = vpop.f32.mrf.mxu2 }
 0x371   : > { %4586 = vmatmul.msk.f32.gmra.mxu2 %vm527_vm0, %v4542_v14  ;;  %v4613_v14 = vld [vmem:[%s7642_s3 + $0x180] sm:$0xff] }
 0x372   : > { %1800 = vmatpush.msrb.mxu3 %v4613_v14 }
 0x374   : > { %v1450_v44 = vpop.f32.mrf.mxu2 }
 0x375   : > { %v5181_v15 = vpack.i.bf16 %v1450_v44, %v1447_v13  ;;  %v4612_v44 = vld [vmem:[%s7642_s3 + $0x178] sm:$0xff] }
 0x376   : > { %1801 = vmatpush.msrb.mxu3 %v4612_v44  ;;  %v4637_v44 = vld [vmem:[%s7642_s3 + $0x240] sm:$0xff] }
 0x377   : > { %5182 = vrot.lane.b32.xlu1 %v5181_v15, %s5452_s19  ;;  %v4561_v15 = vld [vmem:[%s5556_s18 + $0x2a0] sm:$0xff] }
 0x379   : > { %4587 = vmatmul.msk.f32.gmra.mxu2 %vm527_vm0, %v4543_v16  ;;  %v4611_v16 = vld [vmem:[%s7642_s3 + $0x170] sm:$0xff] }
 0x37a   : > { %1802 = vmatpush.msrb.mxu3 %v4611_v16  ;;  %v4635_v16 = vld [vmem:[%s7642_s3 + $0x230] sm:$0xff] }
 0x37c   : > { %v1453_v17 = vpop.f32.mrf.mxu2 }
 0x381   : > { %4588 = vmatmul.msk.f32.gmra.mxu2 %vm527_vm0, %v4544_v18 }
 0x384   : > { %v1456_v22 = vpop.f32.mrf.mxu2 }
 0x385   : > { %v5196_v24 = vpack.i.bf16 %v1456_v22, %v1453_v17  ;;  %v4610_v17 = vld [vmem:[%s7642_s3 + $0x168] sm:$0xff]  ;;  %v4609_v22 = vld [vmem:[%s7642_s3 + $0x160] sm:$0xff] }
 0x386   : > { %1803 = vmatpush.msrb.mxu3 %v4610_v17  ;;  %v4634_v17 = vld [vmem:[%s7642_s3 + $0x228] sm:$0xff] }
 0x387   : > { %5197 = vrot.lane.b32.xlu1 %v5196_v24, %s5452_s19  ;;  %v4562_v24 = vld [vmem:[%s5556_s18 + $0x2a8] sm:$0xff] }
 0x388   : > { %1804 = vmatpush.msrb.mxu3 %v4609_v22  ;;  %v4633_v22 = vld [vmem:[%s7642_s3 + $0x220] sm:$0xff] }
 0x389   : > { %4589 = vmatmul.msk.f32.gmra.mxu2 %vm527_vm0, %v4545_v34 }
 0x38c   : > { %v1459_v26 = vpop.f32.mrf.mxu2 }
 0x391   : > { %4590 = vmatmul.msk.f32.gmra.mxu2 %vm527_vm0, %v4546_v47  ;;  %v4563_v47 = vld [vmem:[%s5556_s18 + $0x2b0] sm:$0xff] }
 0x394   : > { %v1462_v27 = vpop.f32.mrf.mxu2 }
 0x395   : > { %v5186_v28 = vpack.i.bf16 %v1462_v27, %v1459_v26 }
 0x397   : > { %5187 = vrot.lane.b32.xlu2 %v5186_v28, %s5453_s20  ;;  %v4564_v28 = vld [vmem:[%s5556_s18 + $0x2b8] sm:$0xff] }
 0x399   : > { %4591 = vmatmul.msk.f32.gmra.mxu2 %vm527_vm0, %v4547_v29 }
 0x39c   : > { %v1465_v30 = vpop.f32.mrf.mxu2 }
 0x3a1   : > { %4592 = vmatmul.msk.f32.gmra.mxu2 %vm527_vm0, %v4548_v50 }
 0x3a4   : > { %v1468_v37 = vpop.f32.mrf.mxu2 }
 0x3a5   : > { %v5201_v4 = vpack.i.bf16 %v1468_v37, %v1465_v30 }
 0x3a7   : > { %5202 = vrot.lane.b32.xlu2 %v5201_v4, %s5453_s20 }
 0x3a9   : > { %4593 = vmatmul.msk.f32.gmra.mxu2 %vm527_vm0, %v4549_v20 }
 0x3ac   : > { %v1471_v3 = vpop.f32.mrf.mxu2 }
 0x3b1   : > { %4594 = vmatmul.msk.f32.gmra.mxu2 %vm527_vm0, %v4550_v31 }
 0x3b4   : > { %v1474_v19 = vpop.f32.mrf.mxu2 }
 0x3b5   : > { %v5191_v38 = vpack.i.bf16 %v1474_v19, %v1471_v3 }
 0x3b7   : > { %5192 = vrot.lane.b32.xlu0 %v5191_v38, %s5454_s21 }
 0x3b9   : > { %4595 = vmatmul.msk.f32.gmra.mxu2 %vm527_vm0, %v4551_v32 }
 0x3bc   : > { %v1477_v33 = vpop.f32.mrf.mxu2 }
 0x3c1   : > { %4596 = vmatmul.msk.f32.gmra.mxu2 %vm527_vm0, %v4552_v35 }
 0x3c4   : > { %v1480_v2 = vpop.f32.mrf.mxu2 }
 0x3c5   : > { %v5206_v36 = vpack.i.bf16 %v1480_v2, %v1477_v33 }
 0x3c7   : > { %5207 = vrot.lane.b32.xlu0 %v5206_v36, %s5454_s21 }
 0x3c9   : > { %4597 = vmatmul.msk.f32.gmra.mxu2 %vm527_vm0, %v4553_v1 }
 0x3cc   : > { %v6055_v21 = vpop.f32.mrf.mxu2 }
 0x3d1   : > { %4598 = vmatmul.msk.f32.gmra.mxu2 %vm527_vm0, %v4554_v42 }
 0x3d4   : > { %v6059_v40 = vpop.f32.mrf.mxu2 }
 0x3d9   : > { %4599 = vmatmul.msk.f32.gmra.mxu2 %vm527_vm0, %v4555_v48 }
 0x3dc   : > { %v6063_v23 = vpop.f32.mrf.mxu2 }
 0x3e1   : > { %4600 = vmatmul.msk.f32.gmra.mxu2 %vm527_vm0, %v4556_v49 }
 0x3e4   : > { %v6067_v45 = vpop.f32.mrf.mxu2 }
 0x3e9   : > { %4601 = vmatmul.msk.f32.gmra.mxu2 %vm527_vm0, %v4557_v52  ;;  %v5183_v29 = vpop.permute.xlu1 %5182 }
 0x3ea   : > { %v5184_v37 = vunpack.i.l.bf16 %v5183_v29  ;;  %v5185_v33 = vunpack.i.h.bf16 %v5183_v29  ;;  %v4628_v29 = vld [vmem:[%s7642_s3 + $0x1f8] sm:$0xff] }
 0x3ec   : > { %v1495_v53 = vpop.f32.mrf.mxu2  ;;  %v1695_v31 = vsel %vm527_vm0, %v6009_v6, %v5184_v37  ;;  %v1696_v36 = vsel %vm527_vm0, %v6013_v41, %v5185_v33  ;;  %v4626_v37 = vld [vmem:[%s7642_s3 + $0x1e8] sm:$0xff] }
 0x3f1   : > { %4602 = vmatmul.msk.f32.gmra.mxu2 %vm527_vm0, %v4558_v56  ;;  %v5188_v30 = vpop.permute.xlu2 %5187 }
 0x3f2   : > { %v5189_v4 = vunpack.i.l.bf16 %v5188_v30  ;;  %v5190_v35 = vunpack.i.h.bf16 %v5188_v30  ;;  %v4627_v30 = vld [vmem:[%s7642_s3 + $0x1f0] sm:$0xff] }
 0x3f4   : > { %v1498_v57 = vpop.f32.mrf.mxu2  ;;  %v1699_v19 = vsel %vm941_vm1, %v1695_v31, %v5189_v4  ;;  %v1700_v42 = vsel %vm941_vm1, %v1696_v36, %v5190_v35 }
 0x3f5   : > { %v5211_v59 = vpack.i.bf16 %v1498_v57, %v1495_v53 }
 0x3f7   : > { %5212 = vrot.lane.b32.xlu0 %v5211_v59, %s5452_s19 }
 0x3f9   : > { %4603 = vmatmul.msk.f32.gmra.mxu2 %vm527_vm0, %v4559_v61  ;;  %v5198_v1 = vpop.permute.xlu1 %5197 }
 0x3fa   : > { %v5199_v53 = vunpack.i.l.bf16 %v5198_v1  ;;  %v5200_v59 = vunpack.i.h.bf16 %v5198_v1 }
 0x3fc   : > { %v6097_v0 = vpop.f32.mrf.mxu2  ;;  %v1697_v25 = vsel %vm527_vm0, %v6017_v9, %v5199_v53  ;;  %v1698_v62 = vsel %vm527_vm0, %v6021_v11, %v5200_v59  ;;  %v4638_v11 = vld [vmem:[%s7642_s3 + $0x248] sm:$0xff]  ;;  %v4644_v59 = vld [vmem:[%s7642_s3 + $0x278] sm:$0xff] }
 0x3fd   : > { %1820 = vmatpush.msra.mxu1 %v4638_v11  ;;  %v4669_v11 = vld [vmem:[%s7646_s7 + $0x30] sm:$0xff] }
 0x3ff   : > { %1821 = vmatpush.msra.mxu1 %v4637_v44  ;;  %v4668_v44 = vld [vmem:[%s7646_s7 + $0x28] sm:$0xff] }
 0x401   : > { %4604 = vmatmul.msk.f32.gmra.mxu2 %vm527_vm0, %v4560_v8  ;;  %v5203_v48 = vpop.permute.xlu2 %5202 }
 0x402   : > { %v5204_v54 = vunpack.i.l.bf16 %v5203_v48  ;;  %v5205_v60 = vunpack.i.h.bf16 %v5203_v48 }
 0x404   : > { %v6113_v13 = vpop.f32.mrf.mxu2  ;;  %v1701_v41 = vsel %vm941_vm1, %v1697_v25, %v5204_v54  ;;  %v1702_v63 = vsel %vm941_vm1, %v1698_v62, %v5205_v60  ;;  %v4643_v60 = vld [vmem:[%s7642_s3 + $0x270] sm:$0xff]  ;;  %v4641_v62 = vld [vmem:[%s7642_s3 + $0x260] sm:$0xff] }
 0x409   : > { %4605 = vmatmul.msk.f32.gmra.mxu2 %vm527_vm0, %v4561_v15  ;;  %v4636_v15 = vld [vmem:[%s7642_s3 + $0x238] sm:$0xff] }
 0x40a   : > { %1822 = vmatpush.msra.mxu1 %v4636_v15  ;;  %v4661_v15 = vld [vmem:[%s7644_s5 + $0x38] sm:$0xff] }
 0x40c   : > { %v1507_v18 = vpop.f32.mrf.mxu2  ;;  %1823 = vmatpush.msra.mxu1 %v4635_v16 }
 0x40e   : > { %1824 = vmatpush.msra.mxu1 %v4634_v17  ;;  %v4660_v17 = vld [vmem:[%s7644_s5 + $0x30] sm:$0xff] }
 0x410   : > { %1825 = vmatpush.msra.mxu1 %v4633_v22  ;;  %v4659_v22 = vld [vmem:[%s7644_s5 + $0x28] sm:$0xff] }
 0x411   : > { %4606 = vmatmul.msk.f32.gmra.mxu2 %vm527_vm0, %v4562_v24  ;;  %v4632_v24 = vld [vmem:[%s7642_s3 + $0x218] sm:$0xff] }
 0x412   : > { %1826 = vmatpush.msra.mxu1 %v4632_v24 }
 0x414   : > { %v1510_v34 = vpop.f32.mrf.mxu2 }
 0x415   : > { %v5216_v26 = vpack.i.bf16 %v1510_v34, %v1507_v18  ;;  %v4631_v34 = vld [vmem:[%s7642_s3 + $0x210] sm:$0xff] }
 0x416   : > { %1827 = vmatpush.msra.mxu1 %v4631_v34  ;;  %v4658_v34 = vld [vmem:[%s7644_s5 + $0x20] sm:$0xff] }
 0x417   : > { %5217 = vrot.lane.b32.xlu1 %v5216_v26, %s5453_s20  ;;  %v4630_v26 = vld [vmem:[%s7642_s3 + $0x208] sm:$0xff] }
 0x418   : > { %1828 = vmatpush.msra.mxu1 %v4630_v26 }
 0x419   : > { %4607 = vmatmul.msk.f32.gmra.mxu2 %vm527_vm0, %v4563_v47 }
 0x41c   : > { %v6137_v27 = vpop.f32.mrf.mxu2 }
 0x421   : > { %4608 = vmatmul.msk.f32.gmra.mxu2 %vm527_vm0, %v4564_v28  ;;  %v4629_v28 = vld [vmem:[%s7642_s3 + $0x200] sm:$0xff] }
 0x422   : > { %1829 = vmatpush.msra.mxu1 %v4629_v28 }
 0x424   : > { %v6141_v50 = vpop.f32.mrf.mxu2  ;;  %1830 = vmatpush.msra.mxu1 %v4628_v29 }
 0x426   : > { %1831 = vmatpush.msra.mxu1 %v4627_v30 }
 0x428   : > { %1832 = vmatpush.msra.mxu1 %v4626_v37 }
 0x429   : > { %v5193_v20 = vpop.permute.xlu0 %5192 }
 0x42a   : > { %v5194_v3 = vunpack.i.l.bf16 %v5193_v20  ;;  %v5195_v2 = vunpack.i.h.bf16 %v5193_v20  ;;  %v4625_v20 = vld [vmem:[%s7642_s3 + $0x1e0] sm:$0xff] }
 0x42b   : > { %1833 = vmatpush.msra.mxu1 %v4625_v20 }
 0x42c   : > { %v1519_v38 = vpop.f32.mrf.mxu2  ;;  %v1703_v32 = vsel %vm946_vm2, %v1699_v19, %v5194_v3  ;;  %v1704_v52 = vsel %vm946_vm2, %v1700_v42, %v5195_v2 }
 0x42d   : > { %1805 = vmatmul.f32.vlgmr.msrb.gmra.mxu3 %v1703_v32  ;;  %1910 = vmatpush.msrb.mxu1 %v4661_v15 }
 0x42f   : > { %1911 = vmatpush.msrb.mxu1 %v4660_v17 }
 0x431   : > { %1912 = vmatpush.msrb.mxu1 %v4659_v22 }
 0x433   : > { %1913 = vmatpush.msrb.mxu1 %v4658_v34 }
 0x434   : > { %v1522_v49 = vpop.f32.mrf.mxu2 }
 0x435   : > { %v5221_v6 = vpack.i.bf16 %v1522_v49, %v1519_v38  ;;  %1808 = vmatmul.f32.gmra.mxu3 %v1704_v52 }
 0x437   : > { %5222 = vrot.lane.b32.xlu2 %v5221_v6, %s5454_s21 }
 0x439   : > { %v5208_v55 = vpop.permute.xlu0 %5207 }
 0x43a   : > { %v5209_v56 = vunpack.i.l.bf16 %v5208_v55  ;;  %v5210_v61 = vunpack.i.h.bf16 %v5208_v55 }
 0x43c   : > { %v6155_v57 = vpop.f32.mrf.mxu2  ;;  %v1705_v58 = vsel %vm946_vm2, %v1701_v41, %v5209_v56  ;;  %v1706_v7 = vsel %vm946_vm2, %v1702_v63, %v5210_v61  ;;  %v4649_v41 = vld [vmem:[%s7642_s3 + $0x2a0] sm:$0xff]  ;;  %v4642_v61 = vld [vmem:[%s7642_s3 + $0x268] sm:$0xff] }
 0x43d   : > { %1811 = vmatmul.f32.gmra.mxu3 %v1705_v58  ;;  %v4647_v58 = vld [vmem:[%s7642_s3 + $0x290] sm:$0xff] }
 0x444   : > { %v6161_v5 = vpop.f32.mrf.mxu2 }
 0x445   : > { %1814 = vmatmul.f32.gmra.mxu3 %v1706_v7 }
 0x44c   : > { %v6164_v9 = vpop.f32.mrf.mxu2 }
 0x454   : > { %v6166_v8 = vpop.f32.mrf.mxu2 }
 0x45c   : > { %v6177_v14 = vpop.f32.mrf.mxu2 }
 0x464   : > { %v6191_v18 = vpop.f32.mrf.mxu2 }
 0x469   : > { %v5213_v19 = vpop.permute.xlu0 %5212 }
 0x46a   : > { %v5214_v33 = vunpack.i.l.bf16 %v5213_v19  ;;  %v5215_v52 = vunpack.i.h.bf16 %v5213_v19 }
 0x46c   : > { %v1543_v47 = vpop.f32.mrf.mxu2  ;;  %v1707_v36 = vsel %vm527_vm0, %v6055_v21, %v5214_v33  ;;  %v1708_v54 = vsel %vm527_vm0, %v6059_v40, %v5215_v52  ;;  %v4652_v40 = vld [vmem:[%s7642_s3 + $0x2b8] sm:$0xff] }
 0x46d   : > { %1667 = vrot.lane.b32.xlu1 %v1543_v47, %s5452_s19  ;;  %1851 = vmatpush.msra.mxu3 %v4652_v40 }
 0x474   : > { %v1546_v4 = vpop.f32.mrf.mxu2 }
 0x475   : > { %1669 = vrot.lane.b32.xlu0 %v1546_v4, %s5452_s19 }
 0x47c   : > { %v1549_v3 = vpop.f32.mrf.mxu2 }
 0x484   : > { %v1552_v31 = vpop.f32.mrf.mxu2 }
 0x489   : > { %v5218_v38 = vpop.permute.xlu1 %5217 }
 0x48a   : > { %v5219_v35 = vunpack.i.l.bf16 %v5218_v38  ;;  %v5220_v6 = vunpack.i.h.bf16 %v5218_v38 }
 0x48c   : > { %v1555_v32 = vpop.f32.mrf.mxu2  ;;  %v1711_v42 = vsel %vm941_vm1, %v1707_v36, %v5219_v35  ;;  %v1712_v55 = vsel %vm941_vm1, %v1708_v54, %v5220_v6 }
 0x48d   : > { %1683 = vrot.lane.b32.xlu2 %v1555_v32, %s5453_s20 }
 0x491   : > { %v5223_v2 = vpop.permute.xlu2 %5222 }
 0x492   : > { %v5224_v1 = vunpack.i.l.bf16 %v5223_v2  ;;  %v5225_v53 = vunpack.i.h.bf16 %v5223_v2 }
 0x494   : > { %v1558_v48 = vpop.f32.mrf.mxu2  ;;  %v1715_v49 = vsel %vm946_vm2, %v1711_v42, %v5224_v1  ;;  %v1716_v56 = vsel %vm946_vm2, %v1712_v55, %v5225_v53 }
 0x495   : > { %1834 = vmatmul.f32.vlgmr.msra.gmra.mxu1 %v1715_v49  ;;  %1671 = vrot.lane.b32.xlu2 %v1549_v3, %s5452_s19 }
 0x496   : > { %1685 = vrot.lane.b32.xlu1 %v1558_v48, %s5453_s20 }
 0x49c   : > { %v1561_v21 = vpop.f32.mrf.mxu2 }
 0x49d   : > { %1837 = vmatmul.f32.gmra.mxu1 %v1716_v56  ;;  %1639 = vrot.lane.b32.xlu2 %v6137_v27, %s5453_s20  ;;  %v4651_v27 = vld [vmem:[%s7642_s3 + $0x2b0] sm:$0xff] }
 0x49e   : > { %1623 = vrot.lane.b32.xlu1 %v6097_v0, %s5452_s19  ;;  %1687 = vrot.lane.b32.xlu0 %v1561_v21, %s5453_s20  ;;  %v4650_v0 = vld [vmem:[%s7642_s3 + $0x2a8] sm:$0xff] }
 0x49f   : > { %1852 = vmatpush.msra.mxu3 %v4651_v27  ;;  %v5354_v27 = vld [vmem:[%s7645_s6 + $0x1] ss:$0 sm:$0xff] }
 0x4a1   : > { %1853 = vmatpush.msra.mxu3 %v4650_v0 }
 0x4a3   : > { %1854 = vmatpush.msra.mxu3 %v4649_v41 }
 0x4a4   : > { %v1564_v25 = vpop.f32.mrf.mxu2 }
 0x4a5   : > { %1689 = vrot.lane.b32.xlu2 %v1564_v25, %s5453_s20 }
 0x4a6   : > { %1673 = vrot.lane.b32.xlu1 %v1552_v31, %s5452_s19  ;;  %1655 = vrot.lane.b32.xlu0 %v6155_v57, %s5454_s21  ;;  %v4648_v57 = vld [vmem:[%s7642_s3 + $0x298] sm:$0xff] }
 0x4a7   : > { %1855 = vmatpush.msra.mxu3 %v4648_v57 }
 0x4a9   : > { %1856 = vmatpush.msra.mxu3 %v4647_v58 }
 0x4ad   : > { %1657 = vrot.lane.b32.xlu2 %v6161_v5, %s5454_s21 }
 0x4ae   : > { %1641 = vrot.lane.b32.xlu1 %v6141_v50, %s5453_s20  ;;  %1625 = vrot.lane.b32.xlu0 %v6113_v13, %s5452_s19  ;;  %v4646_v50 = vld [vmem:[%s7642_s3 + $0x288] sm:$0xff]  ;;  %v4645_v13 = vld [vmem:[%s7642_s3 + $0x280] sm:$0xff] }
 0x4af   : > { %1857 = vmatpush.msra.mxu3 %v4646_v50 }
 0x4b1   : > { %1858 = vmatpush.msra.mxu3 %v4645_v13 }
 0x4b3   : > { %1859 = vmatpush.msra.mxu3 %v4644_v59 }
 0x4b5   : > { %1860 = vmatpush.msra.mxu3 %v4643_v60 }
 0x4b7   : > { %1861 = vmatpush.msra.mxu3 %v4642_v61 }
 0x4b9   : > { %1862 = vmatpush.msra.mxu3 %v4641_v62 }
 0x4bb   : > { %1953 = vmatpush.msrb.mxu3 %v4670_v12 }
 0x4bd   : > { %1954 = vmatpush.msrb.mxu3 %v4669_v11 }
 0x4bf   : > { %1955 = vmatpush.msrb.mxu3 %v4668_v44 }
 0x4df   : > { %v1668_v63 = vpop.permute.xlu1 %1667 }
 0x4e0   : > { %v1719_v5 = vsel %vm527_vm0, %v6164_v9, %v1668_v63  ;;  %v4667_v9 = vld [vmem:[%s7646_s7 + $0x20] sm:$0xff] }
 0x4e1   : > { %1956 = vmatpush.msrb.mxu3 %v4667_v9 }
 0x4e7   : > { %v1684_v7 = vpop.permute.xlu2 %1683  ;;  %v1670_v24 = vpop.permute.xlu0 %1669 }
 0x4e8   : > { %v1723_v10 = vsel %vm941_vm1, %v1719_v5, %v1684_v7  ;;  %v1720_v26 = vsel %vm527_vm0, %v6166_v8, %v1670_v24 }
 0x4e9   : > { %4654 = vmatmul.msk.f32.vlgmr.msra.gmra.mxu3 %vm946_vm2, %v1723_v10 }
 0x4ef   : > { %v1672_v16 = vpop.permute.xlu2 %1671 }
 0x4f0   : > { %v1721_v30 = vsel %vm527_vm0, %v6177_v14, %v1672_v16 }
 0x4f7   : > { %v1640_v29 = vpop.permute.xlu2 %1639 }
 0x4ff   : > { %v1690_v8 = vpop.permute.xlu2 %1689 }
 0x507   : > { %v1658_v36 = vpop.permute.xlu2 %1657 }
 0x508   : > { %v1686_v47 = vpop.permute.xlu1 %1685 }
 0x509   : > { %v1724_v28 = vsel %vm941_vm1, %v1720_v26, %v1686_v47  ;;  %v5352_v26 = vld [vmem:[%s7643_s4 + $0x1] ss:$0 sm:$0xff] }
 0x50a   : > { %4655 = vmatmul.msk.f32.gmra.mxu3 %vm946_vm2, %v1724_v28 }
 0x510   : > { %v1624_v37 = vpop.permute.xlu1 %1623  ;;  %v1688_v4 = vpop.permute.xlu0 %1687 }
 0x511   : > { %v1725_v20 = vsel %vm941_vm1, %v1721_v30, %v1688_v4  ;;  %v1709_v3 = vsel %vm527_vm0, %v6063_v23, %v1624_v37 }
 0x512   : > { %4656 = vmatmul.msk.f32.gmra.mxu3 %vm946_vm2, %v1725_v20  ;;  %v1713_v38 = vsel %vm941_vm1, %v1709_v3, %v1640_v29  ;;  %v6352_v52 = vpop.f32.mrf.mxu1 }
 0x518   : > { %v1674_v31 = vpop.permute.xlu1 %1673  ;;  %v1656_v19 = vpop.permute.xlu0 %1655 }
 0x519   : > { %v1722_v32 = vsel %vm527_vm0, %v6191_v18, %v1674_v31  ;;  %v1717_v33 = vsel %vm946_vm2, %v1713_v38, %v1656_v19 }
 0x51a   : > { %1840 = vmatmul.f32.gmra.mxu1 %v1717_v33  ;;  %v1726_v14 = vsel %vm941_vm1, %v1722_v32, %v1690_v8 }
 0x51b   : > { %4657 = vmatmul.msk.f32.gmra.mxu3 %vm946_vm2, %v1726_v14 }
 0x520   : > { %v1642_v35 = vpop.permute.xlu1 %1641  ;;  %v1626_v2 = vpop.permute.xlu0 %1625 }
 0x521   : > { %v1710_v23 = vsel %vm527_vm0, %v6067_v45, %v1626_v2  ;;  %v6348_v45 = vpop.f32.mrf.mxu3 }
 0x522   : > { %v1714_v1 = vsel %vm941_vm1, %v1710_v23, %v1642_v35  ;;  %v1807_v8 = vadd.f32 %v5352_v26, %v6348_v45 }
 0x523   : > { %4672 = vmatmul.msk.f32.vlgmr.msrb.gmra.mxu3 %vm527_vm0, %v5973_v51  ;;  %v1718_v18 = vsel %vm946_vm2, %v1714_v1, %v1658_v36 }
 0x524   : > { %1843 = vmatmul.f32.gmra.mxu1 %v1718_v18  ;;  %v1836_v33 = vadd.f32 %v6352_v52, %v1807_v8  ;;  %v4678_v52 = vld [vmem:[%s5556_s18 + $0x2d0] sm:$0xff] }
 0x529   : > { %v1809_v42 = vpop.f32.mrf.mxu3 }
 0x52a   : > { %v1810_v37 = vadd.f32 %v5352_v26, %v1809_v42 }
 0x52b   : > { %4673 = vmatmul.msk.f32.gmra.mxu3 %vm527_vm0, %v5968_v46 }
 0x52c   : > { %4663 = vmatmul.msk.f32.vlgmr.msrb.gmra.mxu1 %vm527_vm0, %v5973_v51 }
 0x531   : > { %v1812_v48 = vpop.f32.mrf.mxu3 }
 0x532   : > { %v1813_v28 = vadd.f32 %v5352_v26, %v1812_v48  ;;  %v4676_v48 = vld [vmem:[%s5556_s18 + $0x2c0] sm:$0xff] }
 0x533   : > { %4674 = vmatmul.msk.f32.gmra.mxu3 %vm527_vm0, %v5964_v43 }
 0x534   : > { %4664 = vmatmul.msk.f32.gmra.mxu1 %vm527_vm0, %v5968_v46  ;;  %v1838_v46 = vpop.f32.mrf.mxu1 }
 0x535   : > { %v1839_v20 = vadd.f32 %v1838_v46, %v1810_v37  ;;  %v4680_v46 = vld [vmem:[%s5556_s18 + $0x2e0] sm:$0xff] }
 0x539   : > { %v1815_v51 = vpop.f32.mrf.mxu3 }
 0x53a   : > { %v1816_v47 = vadd.f32 %v5352_v26, %v1815_v51 }
 0x53b   : > { %4675 = vmatmul.msk.f32.gmra.mxu3 %vm527_vm0, %v5959_v39 }
 0x53c   : > { %4665 = vmatmul.msk.f32.gmra.mxu1 %vm527_vm0, %v5964_v43 }
 0x544   : > { %4666 = vmatmul.msk.f32.gmra.mxu1 %vm527_vm0, %v5959_v39  ;;  %v5353_v39 = vld [vmem:[%s7647_s8 + $0x1] ss:$0 sm:$0xff] }
 0x56c   : > { %v6350_v49 = vpop.f32.mrf.mxu3 }
 0x56d   : > { %v1865_v23 = vadd.f32 %v6350_v49, %v1836_v33  ;;  %v4677_v49 = vld [vmem:[%s5556_s18 + $0x2c8] sm:$0xff] }
 0x56f   : > { %v1974_v45 = vmax.f32 %v1865_v23, 0.0  ;;  %v4709_v23 = vld [vmem:[%s5556_s18 + $0x3c8] sm:$0xff] }
 0x58d   : > { %v1867_v6 = vpop.f32.mrf.mxu3 }
 0x58e   : > { %v1868_v31 = vadd.f32 %v1867_v6, %v1839_v20  ;;  %v4679_v6 = vld [vmem:[%s5556_s18 + $0x2d8] sm:$0xff] }
 0x590   : > { %v1975_v36 = vmax.f32 %v1868_v31, 0.0 }
 0x595   : > { %v1870_v53 = vpop.f32.mrf.mxu3 }
 0x597   : > { %v1841_v54 = vpop.f32.mrf.mxu1 }
 0x598   : > { %v1842_v30 = vadd.f32 %v1841_v54, %v1813_v28  ;;  %v4682_v54 = vld [vmem:[%s5556_s18 + $0x2f0] sm:$0xff] }
 0x59a   : > { %v1871_v3 = vadd.f32 %v1870_v53, %v1842_v30  ;;  %v4681_v53 = vld [vmem:[%s5556_s18 + $0x2e8] sm:$0xff] }
 0x59c   : > { %v1976_v14 = vmax.f32 %v1871_v3, 0.0  ;;  %v4705_v3 = vld [vmem:[%s5556_s18 + $0x3a8] sm:$0xff] }
 0x59e   : > { %v1873_v55 = vpop.f32.mrf.mxu3 }
 0x5a1   : > { %v1844_v21 = vpop.f32.mrf.mxu1 }
 0x5a2   : > { %v1845_v29 = vadd.f32 %v1844_v21, %v1816_v47  ;;  %v4684_v21 = vld [vmem:[%s5556_s18 + $0x300] sm:$0xff]  ;;  %v4702_v47 = vld [vmem:[%s5556_s18 + $0x390] sm:$0xff] }
 0x5a4   : > { %v1874_v4 = vadd.f32 %v1873_v55, %v1845_v29  ;;  %v4683_v55 = vld [vmem:[%s5556_s18 + $0x2f8] sm:$0xff] }
 0x5a5   : > { %v4703_v29 = vld [vmem:[%s5556_s18 + $0x398] sm:$0xff] }
 0x5a6   : > { %v1958_v56 = vpop.f32.mrf.mxu3  ;;  %v1977_v19 = vmax.f32 %v1874_v4, 0.0  ;;  %v4704_v4 = vld [vmem:[%s5556_s18 + $0x3a0] sm:$0xff] }
 0x5a7   : > { %v1959_v9 = vadd.f32 %v5353_v39, %v1958_v56  ;;  %v4685_v56 = vld [vmem:[%s5556_s18 + $0x308] sm:$0xff] }
 0x5a9   : > { %v1915_v43 = vpop.f32.mrf.mxu1 }
 0x5aa   : > { %v1916_v44 = vadd.f32 %v5354_v27, %v1915_v43  ;;  %v4686_v43 = vld [vmem:[%s5556_s18 + $0x310] sm:$0xff] }
 0x5ae   : > { %v1961_v25 = vpop.f32.mrf.mxu3 }
 0x5af   : > { %v1962_v40 = vadd.f32 %v5353_v39, %v1961_v25  ;;  %v4688_v25 = vld [vmem:[%s5556_s18 + $0x320] sm:$0xff] }
 0x5b1   : > { %v1918_v0 = vpop.f32.mrf.mxu1  ;;  %5380 = vtanh.f32 %v1962_v40  ;;  %v4689_v40 = vld [vmem:[%s5556_s18 + $0x328] sm:$0xff] }
 0x5b2   : > { %v1919_v41 = vadd.f32 %v5354_v27, %v1918_v0  ;;  %v4691_v0 = vld [vmem:[%s5556_s18 + $0x338] sm:$0xff] }
 0x5b4   : > { %5382 = vtanh.f32 %v1919_v41 }
 0x5b6   : > { %v1964_v57 = vpop.f32.mrf.mxu3 }
 0x5b7   : > { %v1965_v58 = vadd.f32 %v5353_v39, %v1964_v57  ;;  %v5381_v50 = vpop.eup %5380  ;;  %v4692_v57 = vld [vmem:[%s5556_s18 + $0x340] sm:$0xff] }
 0x5b9   : > { %v1921_v13 = vpop.f32.mrf.mxu1  ;;  %5384 = vtanh.f32 %v1965_v58 }
 0x5ba   : > { %v5383_v59 = vpop.eup %5382  ;;  %v1922_v60 = vadd.f32 %v5354_v27, %v1921_v13 }
 0x5bb   : > { %v1979_v61 = vmul.f32 %v5383_v59, %v5381_v50  ;;  %v4693_v50 = vld [vmem:[%s5556_s18 + $0x348] sm:$0xff]  ;;  %v4694_v59 = vld [vmem:[%s5556_s18 + $0x350] sm:$0xff] }
 0x5bc   : > { %5386 = vtanh.f32 %v1922_v60 }
 0x5bd   : > { %1988 = vrot.lane.b32.xlu2 %v1979_v61, %s5455_s16  ;;  %v4695_v61 = vld [vmem:[%s5556_s18 + $0x358] sm:$0xff] }
 0x5be   : > { %v1967_v62 = vpop.f32.mrf.mxu3 }
 0x5bf   : > { %v1968_v63 = vadd.f32 %v5353_v39, %v1967_v62  ;;  %v5385_v5 = vpop.eup %5384  ;;  %v4687_v39 = vld [vmem:[%s5556_s18 + $0x318] sm:$0xff] }
 0x5c1   : > { %v1924_v7 = vpop.f32.mrf.mxu1  ;;  %5388 = vtanh.f32 %v1968_v63  ;;  %v4696_v63 = vld [vmem:[%s5556_s18 + $0x360] sm:$0xff] }
 0x5c2   : > { %v5387_v10 = vpop.eup %5386  ;;  %v1925_v12 = vadd.f32 %v5354_v27, %v1924_v7  ;;  %v4690_v27 = vld [vmem:[%s5556_s18 + $0x330] sm:$0xff]  ;;  %v4697_v7 = vld [vmem:[%s5556_s18 + $0x368] sm:$0xff] }
 0x5c3   : > { %v1980_v11 = vmul.f32 %v5387_v10, %v5385_v5 }
 0x5c4   : > { %5390 = vtanh.f32 %v1925_v12 }
 0x5c5   : > { %1990 = vrot.lane.b32.xlu1 %v1980_v11, %s5455_s16  ;;  %5392 = vtanh.f32 %v1916_v44  ;;  %v4698_v11 = vld [vmem:[%s5556_s18 + $0x370] sm:$0xff] }
 0x5c6   : > { %5394 = vtanh.f32 %v1959_v9  ;;  %v4699_v9 = vld [vmem:[%s5556_s18 + $0x378] sm:$0xff] }
 0x5c7   : > { %v5389_v15 = vpop.eup %5388 }
 0x5ca   : > { %v5391_v16 = vpop.eup %5390 }
 0x5cb   : > { %v1981_v17 = vmul.f32 %v5391_v16, %v5389_v15  ;;  %v5393_v22 = vpop.eup %5392 }
 0x5cc   : > { %v5395_v24 = vpop.eup %5394 }
 0x5cd   : > { %1992 = vrot.lane.b32.xlu0 %v1981_v17, %s5455_s16  ;;  %v1978_v34 = vmul.f32 %v5395_v24, %v5393_v22  ;;  %v4700_v17 = vld [vmem:[%s5556_s18 + $0x380] sm:$0xff]  ;;  %v4701_v24 = vld [vmem:[%s5556_s18 + $0x388] sm:$0xff] }
 0x5d5   : > { %1986 = vrot.lane.b32.xlu0 %v1978_v34, %s5455_s16 }
 0x617   : > { %v1989_v2 = vpop.permute.xlu2 %1988 }
 0x618   : > { %v6379_v18 = vsel %vm1236_vm3, %v1975_v36, %v1989_v2 }
 0x637   : > { %v1991_v38 = vpop.permute.xlu1 %1990 }
 0x638   : > { %v6375_v1 = vsel %vm1236_vm3, %v1976_v14, %v1991_v38  ;;  %v4708_v14 = vld [vmem:[%s5556_s18 + $0x3c0] sm:$0xff] }
 0x63f   : > { %v1993_v32 = vpop.permute.xlu0 %1992 }
 0x640   : > { %v6370_v35 = vsel %vm1236_vm3, %v1977_v19, %v1993_v32  ;;  %v4706_v19 = vld [vmem:[%s5556_s18 + $0x3b0] sm:$0xff]  ;;  %v4707_v32 = vld [vmem:[%s5556_s18 + $0x3b8] sm:$0xff] }
 0x641   : > { %2191 = vmatpush.msra.mxu1 %v6370_v35 }
 0x643   : > { %2192 = vmatpush.msra.mxu1 %v6375_v1 }
 0x645   : > { %2193 = vmatpush.msra.mxu1 %v6379_v18 }
 0x647   : > { %v1987_v42 = vpop.permute.xlu0 %1986 }
 0x648   : > { %v6384_v51 = vsel %vm1236_vm3, %v1974_v45, %v1987_v42  ;;  %v4710_v45 = vld [vmem:[%s5556_s18 + $0x3d0] sm:$0xff] }
 0x649   : > { %2194 = vmatpush.msra.mxu1 %v6384_v51 }
 0x64a   : > { %4720 = vmatmul.msk.f32.vlgmr.msra.gmra.mxu1 %vm527_vm0, %v4676_v48  ;;  %v4711_v48 = vld [vmem:[%s5556_s18 + $0x3d8] sm:$0xff] }
 0x652   : > { %4721 = vmatmul.msk.f32.gmra.mxu1 %vm527_vm0, %v4677_v49 }
 0x65a   : > { %4722 = vmatmul.msk.f32.gmra.mxu1 %vm527_vm0, %v4678_v52  ;;  %v4712_v52 = vld [vmem:[%s5556_s18 + $0x3e0] sm:$0xff] }
 0x662   : > { %4723 = vmatmul.msk.f32.gmra.mxu1 %vm527_vm0, %v4679_v6  ;;  %v4779_v6 = vld [vmem:[%s7642_s3 + $0x338] sm:$0xff] }
 0x663   : > { %2550 = vmatpush.msra.mxu3 %v4779_v6 }
 0x66a   : > { %4724 = vmatmul.msk.f32.gmra.mxu1 %vm527_vm0, %v4680_v46  ;;  %v4778_v46 = vld [vmem:[%s7642_s3 + $0x330] sm:$0xff] }
 0x66b   : > { %2551 = vmatpush.msra.mxu3 %v4778_v46 }
 0x672   : > { %4725 = vmatmul.msk.f32.gmra.mxu1 %vm527_vm0, %v4681_v53  ;;  %v4777_v53 = vld [vmem:[%s7642_s3 + $0x328] sm:$0xff] }
 0x673   : > { %2552 = vmatpush.msra.mxu3 %v4777_v53 }
 0x67a   : > { %4726 = vmatmul.msk.f32.gmra.mxu1 %vm527_vm0, %v4682_v54  ;;  %v4776_v54 = vld [vmem:[%s7642_s3 + $0x320] sm:$0xff] }
 0x67b   : > { %2553 = vmatpush.msra.mxu3 %v4776_v54 }
 0x682   : > { %4727 = vmatmul.msk.f32.gmra.mxu1 %vm527_vm0, %v4683_v55 }
 0x68a   : > { %4728 = vmatmul.msk.f32.gmra.mxu1 %vm527_vm0, %v4684_v21  ;;  %v4713_v21 = vld [vmem:[%s5556_s18 + $0x3e8] sm:$0xff] }
 0x692   : > { %4729 = vmatmul.msk.f32.gmra.mxu1 %vm527_vm0, %v4685_v56 }
 0x69a   : > { %4730 = vmatmul.msk.f32.gmra.mxu1 %vm527_vm0, %v4686_v43  ;;  %v4775_v43 = vld [vmem:[%s7642_s3 + $0x318] sm:$0xff] }
 0x69b   : > { %2554 = vmatpush.msra.mxu3 %v4775_v43 }
 0x6a2   : > { %4731 = vmatmul.msk.f32.gmra.mxu1 %vm527_vm0, %v4687_v39  ;;  %v4774_v39 = vld [vmem:[%s7642_s3 + $0x310] sm:$0xff] }
 0x6a3   : > { %2555 = vmatpush.msra.mxu3 %v4774_v39 }
 0x6aa   : > { %4732 = vmatmul.msk.f32.gmra.mxu1 %vm527_vm0, %v4688_v25  ;;  %v4773_v25 = vld [vmem:[%s7642_s3 + $0x308] sm:$0xff] }
 0x6ab   : > { %2556 = vmatpush.msra.mxu3 %v4773_v25 }
 0x6b2   : > { %4733 = vmatmul.msk.f32.gmra.mxu1 %vm527_vm0, %v4689_v40  ;;  %v4772_v40 = vld [vmem:[%s7642_s3 + $0x300] sm:$0xff] }
 0x6b3   : > { %2557 = vmatpush.msra.mxu3 %v4772_v40 }
 0x6ba   : > { %4734 = vmatmul.msk.f32.gmra.mxu1 %vm527_vm0, %v4690_v27 }
 0x6c2   : > { %4735 = vmatmul.msk.f32.gmra.mxu1 %vm527_vm0, %v4691_v0  ;;  %v4714_v0 = vld [vmem:[%s5556_s18 + $0x3f0] sm:$0xff] }
 0x6c7   : > { %v6418_v41 = vpop.f32.mrf.mxu1 }
 0x6ca   : > { %4736 = vmatmul.msk.f32.gmra.mxu1 %vm527_vm0, %v4692_v57  ;;  %v4771_v57 = vld [vmem:[%s7642_s3 + $0x2f8] sm:$0xff] }
 0x6cb   : > { %2558 = vmatpush.msra.mxu3 %v4771_v57  ;;  %v4794_v57 = vld [vmem:[%s7642_s3 + $0x3b0] sm:$0xff] }
 0x6cf   : > { %v6422_v58 = vpop.f32.mrf.mxu1 }
 0x6d2   : > { %4737 = vmatmul.msk.f32.gmra.mxu1 %vm527_vm0, %v4693_v50  ;;  %v4770_v50 = vld [vmem:[%s7642_s3 + $0x2f0] sm:$0xff] }
 0x6d3   : > { %2559 = vmatpush.msra.mxu3 %v4770_v50  ;;  %v4793_v50 = vld [vmem:[%s7642_s3 + $0x3a8] sm:$0xff] }
 0x6d7   : > { %v6426_v13 = vpop.f32.mrf.mxu1 }
 0x6da   : > { %4738 = vmatmul.msk.f32.gmra.mxu1 %vm527_vm0, %v4694_v59  ;;  %v4769_v59 = vld [vmem:[%s7642_s3 + $0x2e8] sm:$0xff] }
 0x6db   : > { %2560 = vmatpush.msra.mxu3 %v4769_v59  ;;  %v4792_v59 = vld [vmem:[%s7642_s3 + $0x3a0] sm:$0xff] }
 0x6df   : > { %v6430_v60 = vpop.f32.mrf.mxu1 }
 0x6e2   : > { %4739 = vmatmul.msk.f32.gmra.mxu1 %vm527_vm0, %v4695_v61  ;;  %v4768_v61 = vld [vmem:[%s7642_s3 + $0x2e0] sm:$0xff] }
 0x6e3   : > { %2561 = vmatpush.msra.mxu3 %v4768_v61  ;;  %v4791_v61 = vld [vmem:[%s7642_s3 + $0x398] sm:$0xff] }
 0x6e7   : > { %v2208_v62 = vpop.f32.mrf.mxu1 }
 0x6ea   : > { %4740 = vmatmul.msk.f32.gmra.mxu1 %vm527_vm0, %v4696_v63  ;;  %v4715_v63 = vld [vmem:[%s5556_s18 + $0x3f8] sm:$0xff] }
 0x6ef   : > { %v2211_v5 = vpop.f32.mrf.mxu1 }
 0x6f0   : > { %v5226_v10 = vpack.i.bf16 %v2211_v5, %v2208_v62  ;;  %v4767_v5 = vld [vmem:[%s7642_s3 + $0x2d8] sm:$0xff] }
 0x6f1   : > { %2562 = vmatpush.msra.mxu3 %v4767_v5  ;;  %v4789_v5 = vld [vmem:[%s7642_s3 + $0x388] sm:$0xff] }
 0x6f2   : > { %4741 = vmatmul.msk.f32.gmra.mxu1 %vm527_vm0, %v4697_v7  ;;  %5227 = vrot.lane.b32.xlu1 %v5226_v10, %s5452_s19  ;;  %v4766_v7 = vld [vmem:[%s7642_s3 + $0x2d0] sm:$0xff]  ;;  %v4765_v10 = vld [vmem:[%s7642_s3 + $0x2c8] sm:$0xff] }
 0x6f3   : > { %2563 = vmatpush.msra.mxu3 %v4766_v7  ;;  %v4788_v7 = vld [vmem:[%s7642_s3 + $0x380] sm:$0xff] }
 0x6f5   : > { %2564 = vmatpush.msra.mxu3 %v4765_v10  ;;  %v4787_v10 = vld [vmem:[%s7642_s3 + $0x378] sm:$0xff] }
 0x6f7   : > { %v2214_v12 = vpop.f32.mrf.mxu1 }
 0x6fa   : > { %4742 = vmatmul.msk.f32.gmra.mxu1 %vm527_vm0, %v4698_v11 }
 0x6ff   : > { %v2217_v44 = vpop.f32.mrf.mxu1 }
 0x700   : > { %v5241_v15 = vpack.i.bf16 %v2217_v44, %v2214_v12  ;;  %v4764_v12 = vld [vmem:[%s7642_s3 + $0x2c0] sm:$0xff] }
 0x701   : > { %v4716_v44 = vld [vmem:[%s5556_s18 + $0x400] sm:$0xff]  ;;  %2565 = vmatpush.msra.mxu3 %v4764_v12 }
 0x702   : > { %4743 = vmatmul.msk.f32.gmra.mxu1 %vm527_vm0, %v4699_v9  ;;  %5242 = vrot.lane.b32.xlu1 %v5241_v15, %s5452_s19  ;;  %v4717_v15 = vld [vmem:[%s5556_s18 + $0x408] sm:$0xff] }
 0x707   : > { %v2220_v16 = vpop.f32.mrf.mxu1 }
 0x70a   : > { %4744 = vmatmul.msk.f32.gmra.mxu1 %vm527_vm0, %v4700_v17  ;;  %v4718_v17 = vld [vmem:[%s5556_s18 + $0x410] sm:$0xff] }
 0x70f   : > { %v2223_v22 = vpop.f32.mrf.mxu1 }
 0x710   : > { %v5231_v34 = vpack.i.bf16 %v2223_v22, %v2220_v16 }
 0x712   : > { %4745 = vmatmul.msk.f32.gmra.mxu1 %vm527_vm0, %v4701_v24  ;;  %5232 = vrot.lane.b32.xlu2 %v5231_v34, %s5453_s20 }
 0x717   : > { %v2226_v26 = vpop.f32.mrf.mxu1 }
 0x71a   : > { %4746 = vmatmul.msk.f32.gmra.mxu1 %vm527_vm0, %v4702_v47 }
 0x71f   : > { %v2229_v28 = vpop.f32.mrf.mxu1 }
 0x720   : > { %v5246_v30 = vpack.i.bf16 %v2229_v28, %v2226_v26  ;;  %v4719_v26 = vld [vmem:[%s5556_s18 + $0x418] sm:$0xff] }
 0x722   : > { %4747 = vmatmul.msk.f32.gmra.mxu1 %vm527_vm0, %v4703_v29  ;;  %5247 = vrot.lane.b32.xlu2 %v5246_v30, %s5453_s20 }
 0x727   : > { %v2232_v37 = vpop.f32.mrf.mxu1 }
 0x72a   : > { %4748 = vmatmul.msk.f32.gmra.mxu1 %vm527_vm0, %v4704_v4 }
 0x72f   : > { %v2235_v20 = vpop.f32.mrf.mxu1 }
 0x730   : > { %v5236_v8 = vpack.i.bf16 %v2235_v20, %v2232_v37 }
 0x732   : > { %4749 = vmatmul.msk.f32.gmra.mxu1 %vm527_vm0, %v4705_v3  ;;  %5237 = vrot.lane.b32.xlu0 %v5236_v8, %s5454_s21 }
 0x737   : > { %v2238_v31 = vpop.f32.mrf.mxu1 }
 0x73a   : > { %4750 = vmatmul.msk.f32.gmra.mxu1 %vm527_vm0, %v4706_v19  ;;  %2368 = vrot.lane.b32.xlu0 %v2238_v31, %s5454_s21 }
 0x73f   : > { %v2241_v38 = vpop.f32.mrf.mxu1 }
 0x740   : > { %2370 = vrot.lane.b32.xlu1 %v2241_v38, %s5454_s21 }
 0x742   : > { %4751 = vmatmul.msk.f32.gmra.mxu1 %vm527_vm0, %v4707_v32 }
 0x747   : > { %v6465_v33 = vpop.f32.mrf.mxu1 }
 0x74a   : > { %4752 = vmatmul.msk.f32.gmra.mxu1 %vm527_vm0, %v4708_v14 }
 0x74f   : > { %v6469_v2 = vpop.f32.mrf.mxu1 }
 0x752   : > { %4753 = vmatmul.msk.f32.gmra.mxu1 %vm527_vm0, %v4709_v23 }
 0x757   : > { %v6473_v36 = vpop.f32.mrf.mxu1 }
 0x75a   : > { %4754 = vmatmul.msk.f32.gmra.mxu1 %vm527_vm0, %v4710_v45 }
 0x75f   : > { %v6477_v42 = vpop.f32.mrf.mxu1 }
 0x762   : > { %4755 = vmatmul.msk.f32.gmra.mxu1 %vm527_vm0, %v4711_v48 }
 0x764   : > { %v5228_v22 = vpop.permute.xlu1 %5227 }
 0x765   : > { %v5229_v47 = vunpack.i.l.bf16 %v5228_v22  ;;  %v5230_v8 = vunpack.i.h.bf16 %v5228_v22  ;;  %v4781_v22 = vld [vmem:[%s7642_s3 + $0x348] sm:$0xff] }
 0x767   : > { %v2256_v49 = vpop.f32.mrf.mxu1  ;;  %v2456_v30 = vsel %vm527_vm0, %v6418_v41, %v5229_v47  ;;  %v2457_v38 = vsel %vm527_vm0, %v6422_v58, %v5230_v8 }
 0x76a   : > { %4756 = vmatmul.msk.f32.gmra.mxu1 %vm527_vm0, %v4712_v52 }
 0x76c   : > { %v5233_v24 = vpop.permute.xlu2 %5232 }
 0x76d   : > { %v5234_v28 = vunpack.i.l.bf16 %v5233_v24  ;;  %v5235_v31 = vunpack.i.h.bf16 %v5233_v24  ;;  %v4780_v24 = vld [vmem:[%s7642_s3 + $0x340] sm:$0xff] }
 0x76f   : > { %v2259_v55 = vpop.f32.mrf.mxu1  ;;  %v2460_v4 = vsel %vm941_vm1, %v2456_v30, %v5234_v28  ;;  %v2461_v14 = vsel %vm941_vm1, %v2457_v38, %v5235_v31 }
 0x770   : > { %v5251_v56 = vpack.i.bf16 %v2259_v55, %v2256_v49 }
 0x772   : > { %4757 = vmatmul.msk.f32.gmra.mxu1 %vm527_vm0, %v4713_v21  ;;  %5252 = vrot.lane.b32.xlu2 %v5251_v56, %s5452_s19 }
 0x774   : > { %v5243_v32 = vpop.permute.xlu1 %5242 }
 0x775   : > { %v5244_v48 = vunpack.i.l.bf16 %v5243_v32  ;;  %v5245_v54 = vunpack.i.h.bf16 %v5243_v32 }
 0x777   : > { %v2262_v27 = vpop.f32.mrf.mxu1  ;;  %v2458_v6 = vsel %vm527_vm0, %v6426_v13, %v5244_v48  ;;  %v2459_v56 = vsel %vm527_vm0, %v6430_v60, %v5245_v54  ;;  %v4806_v48 = vld [vmem:[%s7642_s3 + $0x410] sm:$0xff] }
 0x77a   : > { %4758 = vmatmul.msk.f32.gmra.mxu1 %vm527_vm0, %v4714_v0  ;;  %v4795_v0 = vld [vmem:[%s7642_s3 + $0x3b8] sm:$0xff] }
 0x77b   : > { %2579 = vmatpush.msrb.mxu3 %v4795_v0 }
 0x77c   : > { %v5248_v23 = vpop.permute.xlu2 %5247 }
 0x77d   : > { %v5249_v49 = vunpack.i.l.bf16 %v5248_v23  ;;  %v5250_v55 = vunpack.i.h.bf16 %v5248_v23  ;;  %2580 = vmatpush.msrb.mxu3 %v4794_v57  ;;  %v4800_v57 = vld [vmem:[%s7642_s3 + $0x3e0] sm:$0xff] }
 0x77f   : > { %v2265_v62 = vpop.f32.mrf.mxu1  ;;  %v2462_v58 = vsel %vm941_vm1, %v2458_v6, %v5249_v49  ;;  %v2463_v43 = vsel %vm941_vm1, %v2459_v56, %v5250_v55  ;;  %2581 = vmatpush.msrb.mxu3 %v4793_v50  ;;  %v4804_v6 = vld [vmem:[%s7642_s3 + $0x400] sm:$0xff]  ;;  %v4799_v50 = vld [vmem:[%s7642_s3 + $0x3d8] sm:$0xff] }
 0x781   : > { %2582 = vmatpush.msrb.mxu3 %v4792_v59  ;;  %v4797_v59 = vld [vmem:[%s7642_s3 + $0x3c8] sm:$0xff] }
 0x782   : > { %4759 = vmatmul.msk.f32.gmra.mxu1 %vm527_vm0, %v4715_v63  ;;  %v4790_v63 = vld [vmem:[%s7642_s3 + $0x390] sm:$0xff] }
 0x783   : > { %2583 = vmatpush.msrb.mxu3 %v4791_v61  ;;  %v4796_v61 = vld [vmem:[%s7642_s3 + $0x3c0] sm:$0xff] }
 0x785   : > { %2584 = vmatpush.msrb.mxu3 %v4790_v63 }
 0x787   : > { %v2268_v11 = vpop.f32.mrf.mxu1  ;;  %2585 = vmatpush.msrb.mxu3 %v4789_v5 }
 0x788   : > { %2396 = vrot.lane.b32.xlu0 %v2268_v11, %s5453_s20  ;;  %v4786_v11 = vld [vmem:[%s7642_s3 + $0x370] sm:$0xff] }
 0x789   : > { %2586 = vmatpush.msrb.mxu3 %v4788_v7 }
 0x78a   : > { %4760 = vmatmul.msk.f32.gmra.mxu1 %vm527_vm0, %v4716_v44  ;;  %v4785_v44 = vld [vmem:[%s7642_s3 + $0x368] sm:$0xff] }
 0x78b   : > { %2587 = vmatpush.msrb.mxu3 %v4787_v10  ;;  %v4816_v10 = vld [vmem:[%s7644_s5 + $0x58] sm:$0xff] }
 0x78d   : > { %2588 = vmatpush.msrb.mxu3 %v4786_v11  ;;  %v4814_v11 = vld [vmem:[%s7644_s5 + $0x48] sm:$0xff] }
 0x78f   : > { %v2271_v9 = vpop.f32.mrf.mxu1  ;;  %2589 = vmatpush.msrb.mxu3 %v4785_v44 }
 0x790   : > { %2398 = vrot.lane.b32.xlu2 %v2271_v9, %s5453_s20  ;;  %v4784_v9 = vld [vmem:[%s7642_s3 + $0x360] sm:$0xff] }
 0x791   : > { %2590 = vmatpush.msrb.mxu3 %v4784_v9 }
 0x792   : > { %4761 = vmatmul.msk.f32.gmra.mxu1 %vm527_vm0, %v4717_v15  ;;  %v4783_v15 = vld [vmem:[%s7642_s3 + $0x358] sm:$0xff] }
 0x793   : > { %2591 = vmatpush.msrb.mxu3 %v4783_v15 }
 0x797   : > { %v2274_v16 = vpop.f32.mrf.mxu1 }
 0x798   : > { %2400 = vrot.lane.b32.xlu2 %v2274_v16, %s5453_s20 }
 0x79a   : > { %4762 = vmatmul.msk.f32.gmra.mxu1 %vm527_vm0, %v4718_v17  ;;  %v4782_v17 = vld [vmem:[%s7642_s3 + $0x350] sm:$0xff] }
 0x79b   : > { %2592 = vmatpush.msrb.mxu3 %v4782_v17 }
 0x79d   : > { %2593 = vmatpush.msrb.mxu3 %v4781_v22 }
 0x79f   : > { %v2277_v34 = vpop.f32.mrf.mxu1  ;;  %2594 = vmatpush.msrb.mxu3 %v4780_v24 }
 0x7a0   : > { %2402 = vrot.lane.b32.xlu2 %v2277_v34, %s5453_s20 }
 0x7a2   : > { %4763 = vmatmul.msk.f32.gmra.mxu1 %vm527_vm0, %v4719_v26 }
 0x7a4   : > { %v5238_v29 = vpop.permute.xlu0 %5237 }
 0x7a5   : > { %v5239_v37 = vunpack.i.l.bf16 %v5238_v29  ;;  %v5240_v19 = vunpack.i.h.bf16 %v5238_v29 }
 0x7a7   : > { %v2280_v20 = vpop.f32.mrf.mxu1  ;;  %v2464_v3 = vsel %vm946_vm2, %v2460_v4, %v5239_v37  ;;  %v2465_v45 = vsel %vm946_vm2, %v2461_v14, %v5240_v19 }
 0x7a8   : > { %2566 = vmatmul.f32.vlgmr.msra.gmra.mxu3 %v2464_v3  ;;  %2412 = vrot.lane.b32.xlu1 %v2280_v20, %s5454_s21 }
 0x7ac   : > { %v2369_v52 = vpop.permute.xlu0 %2368 }
 0x7ad   : > { %v2466_v53 = vsel %vm946_vm2, %v2462_v58, %v2369_v52 }
 0x7af   : > { %v2283_v41 = vpop.f32.mrf.mxu1 }
 0x7b0   : > { %2569 = vmatmul.f32.gmra.mxu3 %v2465_v45  ;;  %2384 = vrot.lane.b32.xlu1 %v2262_v27, %s5452_s19  ;;  %v4807_v45 = vld [vmem:[%s7642_s3 + $0x418] sm:$0xff] }
 0x7b1   : > { %2414 = vrot.lane.b32.xlu0 %v2283_v41, %s5454_s21  ;;  %2612 = vmatpush.msra.mxu3 %v4807_v45 }
 0x7b2   : > { %v2371_v21 = vpop.permute.xlu1 %2370 }
 0x7b3   : > { %v2467_v13 = vsel %vm946_vm2, %v2463_v43, %v2371_v21  ;;  %2613 = vmatpush.msra.mxu3 %v4806_v48  ;;  %v4801_v21 = vld [vmem:[%s7642_s3 + $0x3e8] sm:$0xff] }
 0x7b7   : > { %v2286_v46 = vpop.f32.mrf.mxu1 }
 0x7b8   : > { %2572 = vmatmul.f32.gmra.mxu3 %v2466_v53  ;;  %2386 = vrot.lane.b32.xlu1 %v2265_v62, %s5452_s19  ;;  %v4803_v53 = vld [vmem:[%s7642_s3 + $0x3f8] sm:$0xff] }
 0x7b9   : > { %2416 = vrot.lane.b32.xlu0 %v2286_v46, %s5454_s21 }
 0x7bf   : > { %v2289_v39 = vpop.f32.mrf.mxu1 }
 0x7c0   : > { %2575 = vmatmul.f32.gmra.mxu3 %v2467_v13 }
 0x7c1   : > { %2418 = vrot.lane.b32.xlu0 %v2289_v39, %s5454_s21 }
 0x7c7   : > { %v6572_v25 = vpop.f32.mrf.mxu1 }
 0x7cc   : > { %v5253_v28 = vpop.permute.xlu2 %5252 }
 0x7cd   : > { %v5254_v29 = vunpack.i.l.bf16 %v5253_v28  ;;  %v5255_v31 = vunpack.i.h.bf16 %v5253_v28 }
 0x7cf   : > { %v6574_v40 = vpop.f32.mrf.mxu1  ;;  %v2468_v4 = vsel %vm527_vm0, %v6465_v33, %v5254_v29  ;;  %v2469_v32 = vsel %vm527_vm0, %v6469_v2, %v5255_v31  ;;  %v4805_v2 = vld [vmem:[%s7642_s3 + $0x408] sm:$0xff] }
 0x7d0   : > { %2614 = vmatpush.msra.mxu3 %v4805_v2  ;;  %v5357_v2 = vld [vmem:[%s7647_s8 + $0x2] ss:$0 sm:$0xff] }
 0x7d2   : > { %2615 = vmatpush.msra.mxu3 %v4804_v6 }
 0x7d4   : > { %2616 = vmatpush.msra.mxu3 %v4803_v53 }
 0x7d7   : > { %v6576_v27 = vpop.f32.mrf.mxu1 }
 0x7df   : > { %v6581_v60 = vpop.f32.mrf.mxu1 }
 0x7e7   : > { %v2304_v62 = vpop.f32.mrf.mxu1 }
 0x7e8   : > { %2428 = vrot.lane.b32.xlu1 %v2304_v62, %s5452_s19 }
 0x7ea   : > { %v2399_v19 = vpop.permute.xlu2 %2398 }
 0x7eb   : > { %v2473_v14 = vsel %vm941_vm1, %v2469_v32, %v2399_v19 }
 0x7ef   : > { %v2307_v12 = vpop.f32.mrf.mxu1 }
 0x7f0   : > { %2430 = vrot.lane.b32.xlu0 %v2307_v12, %s5452_s19  ;;  %v4815_v12 = vld [vmem:[%s7644_s5 + $0x50] sm:$0xff] }
 0x7f2   : > { %v2401_v49 = vpop.permute.xlu2 %2400 }
 0x7f7   : > { %v2310_v16 = vpop.f32.mrf.mxu1 }
 0x7fa   : > { %v2397_v30 = vpop.permute.xlu0 %2396  ;;  %v2403_v43 = vpop.permute.xlu2 %2402 }
 0x7fb   : > { %v2472_v20 = vsel %vm941_vm1, %v2468_v4, %v2397_v30  ;;  %v4823_v30 = vld [vmem:[%s7646_s7 + $0x48] sm:$0xff] }
 0x7ff   : > { %v2313_v34 = vpop.f32.mrf.mxu1 }
 0x807   : > { %v2316_v26 = vpop.f32.mrf.mxu1 }
 0x808   : > { %2444 = vrot.lane.b32.xlu2 %v2316_v26, %s5453_s20 }
 0x80f   : > { %v2319_v47 = vpop.f32.mrf.mxu1 }
 0x810   : > { %2432 = vrot.lane.b32.xlu2 %v2310_v16, %s5452_s19  ;;  %2446 = vrot.lane.b32.xlu1 %v2319_v47, %s5453_s20 }
 0x817   : > { %v2322_v37 = vpop.f32.mrf.mxu1 }
 0x818   : > { %2434 = vrot.lane.b32.xlu1 %v2313_v34, %s5452_s19  ;;  %2448 = vrot.lane.b32.xlu0 %v2322_v37, %s5453_s20 }
 0x81a   : > { %v2413_v3 = vpop.permute.xlu1 %2412 }
 0x81b   : > { %v2476_v8 = vsel %vm946_vm2, %v2472_v20, %v2413_v3 }
 0x81c   : > { %2595 = vmatmul.f32.vlgmr.msrb.gmra.mxu3 %v2476_v8 }
 0x81f   : > { %v2325_v38 = vpop.f32.mrf.mxu1 }
 0x820   : > { %2450 = vrot.lane.b32.xlu2 %v2325_v38, %s5453_s20 }
 0x822   : > { %v2385_v23 = vpop.permute.xlu1 %2384 }
 0x823   : > { %v2415_v41 = vpop.permute.xlu0 %2414  ;;  %v2470_v52 = vsel %vm527_vm0, %v6473_v36, %v2385_v23  ;;  %v4802_v36 = vld [vmem:[%s7642_s3 + $0x3f0] sm:$0xff] }
 0x824   : > { %v2477_v33 = vsel %vm946_vm2, %v2473_v14, %v2415_v41  ;;  %v2474_v46 = vsel %vm941_vm1, %v2470_v52, %v2401_v49  ;;  %2617 = vmatpush.msra.mxu3 %v4802_v36 }
 0x825   : > { %2598 = vmatmul.f32.gmra.mxu3 %v2477_v33 }
 0x826   : > { %2618 = vmatpush.msra.mxu3 %v4801_v21 }
 0x828   : > { %2619 = vmatpush.msra.mxu3 %v4800_v57 }
 0x82a   : > { %v2387_v55 = vpop.permute.xlu1 %2386  ;;  %2620 = vmatpush.msra.mxu3 %v4799_v50 }
 0x82b   : > { %v2417_v58 = vpop.permute.xlu0 %2416  ;;  %v2471_v56 = vsel %vm527_vm0, %v6477_v42, %v2387_v55  ;;  %v4798_v42 = vld [vmem:[%s7642_s3 + $0x3d0] sm:$0xff]  ;;  %v6734_v37 = vpop.f32.mrf.mxu3 }
 0x82c   : > { %v2478_v54 = vsel %vm946_vm2, %v2474_v46, %v2417_v58  ;;  %v2475_v13 = vsel %vm941_vm1, %v2471_v56, %v2403_v43  ;;  %2621 = vmatpush.msra.mxu3 %v4798_v42 }
 0x82d   : > { %2601 = vmatmul.f32.gmra.mxu3 %v2478_v54 }
 0x82e   : > { %2622 = vmatpush.msra.mxu3 %v4797_v59 }
 0x830   : > { %2623 = vmatpush.msra.mxu3 %v4796_v61 }
 0x832   : > { %2671 = vmatpush.msrb.mxu3 %v4816_v10 }
 0x833   : > { %v2419_v39 = vpop.permute.xlu0 %2418  ;;  %v2570_v4 = vpop.f32.mrf.mxu3 }
 0x834   : > { %v2479_v0 = vsel %vm946_vm2, %v2475_v13, %v2419_v39  ;;  %2672 = vmatpush.msrb.mxu3 %v4815_v12 }
 0x835   : > { %2604 = vmatmul.f32.gmra.mxu3 %v2479_v0 }
 0x836   : > { %2673 = vmatpush.msrb.mxu3 %v4814_v11 }
 0x83b   : > { %v2573_v20 = vpop.f32.mrf.mxu3 }
 0x843   : > { %v2576_v3 = vpop.f32.mrf.mxu3 }
 0x85a   : > { %v2429_v62 = vpop.permute.xlu1 %2428 }
 0x85b   : > { %v2480_v63 = vsel %vm527_vm0, %v6572_v25, %v2429_v62  ;;  %v4813_v25 = vld [vmem:[%s7644_s5 + $0x40] sm:$0xff] }
 0x85c   : > { %2674 = vmatpush.msrb.mxu3 %v4813_v25 }
 0x862   : > { %v2445_v5 = vpop.permute.xlu2 %2444  ;;  %v2431_v44 = vpop.permute.xlu0 %2430 }
 0x863   : > { %v2484_v7 = vsel %vm941_vm1, %v2480_v63, %v2445_v5  ;;  %v2481_v9 = vsel %vm527_vm0, %v6574_v40, %v2431_v44  ;;  %v4825_v40 = vld [vmem:[%s7646_s7 + $0x58] sm:$0xff]  ;;  %v5355_v5 = vld [vmem:[%s7643_s4 + $0x2] ss:$0 sm:$0xff] }
 0x864   : > { %4809 = vmatmul.msk.f32.vlgmr.msra.gmra.mxu3 %vm946_vm2, %v2484_v7  ;;  %v2577_v7 = vadd.f32 %v5355_v5, %v2576_v3  ;;  %v2574_v10 = vadd.f32 %v5355_v5, %v2573_v20  ;;  %v2571_v11 = vadd.f32 %v5355_v5, %v2570_v4  ;;  %v4831_v20 = vld [vmem:[%s5556_s18 + $0x420] sm:$0xff] }
 0x865   : > { %2714 = vmatpush.msra.mxu3 %v4825_v40 }
 0x86a   : > { %v2433_v17 = vpop.permute.xlu2 %2432 }
 0x86b   : > { %v2482_v22 = vsel %vm527_vm0, %v6576_v27, %v2433_v17  ;;  %v4824_v27 = vld [vmem:[%s7646_s7 + $0x50] sm:$0xff] }
 0x86c   : > { %2715 = vmatpush.msra.mxu3 %v4824_v27 }
 0x86e   : > { %2716 = vmatpush.msra.mxu3 %v4823_v30 }
 0x87a   : > { %v2451_v28 = vpop.permute.xlu2 %2450 }
 0x882   : > { %v2447_v15 = vpop.permute.xlu1 %2446 }
 0x883   : > { %v2485_v16 = vsel %vm941_vm1, %v2481_v9, %v2447_v15 }
 0x884   : > { %4810 = vmatmul.msk.f32.gmra.mxu3 %vm946_vm2, %v2485_v16  ;;  %v2568_v16 = vadd.f32 %v5355_v5, %v6734_v37  ;;  %v4857_v5 = vld [vmem:[%s5556_s18 + $0x4f0] sm:$0xff] }
 0x88a   : > { %v2449_v24 = vpop.permute.xlu0 %2448  ;;  %v2435_v26 = vpop.permute.xlu1 %2434 }
 0x88b   : > { %v2486_v34 = vsel %vm941_vm1, %v2482_v22, %v2449_v24  ;;  %v2483_v47 = vsel %vm527_vm0, %v6581_v60, %v2435_v26  ;;  %v4822_v60 = vld [vmem:[%s7646_s7 + $0x40] sm:$0xff] }
 0x88c   : > { %4811 = vmatmul.msk.f32.gmra.mxu3 %vm946_vm2, %v2486_v34  ;;  %v2487_v29 = vsel %vm941_vm1, %v2483_v47, %v2451_v28 }
 0x88d   : > { %2717 = vmatpush.msra.mxu3 %v4822_v60 }
 0x894   : > { %4812 = vmatmul.msk.f32.gmra.mxu3 %vm946_vm2, %v2487_v29 }
 0x89c   : > { %4818 = vmatmul.msk.f32.vlgmr.msrb.gmra.mxu3 %vm527_vm0, %v6384_v51 }
 0x89f   : > { %v6746_v8 = vpop.f32.mrf.mxu3 }
 0x8a0   : > { %v2597_v26 = vadd.f32 %v6746_v8, %v2568_v16  ;;  %v4832_v8 = vld [vmem:[%s5556_s18 + $0x428] sm:$0xff] }
 0x8a4   : > { %4819 = vmatmul.msk.f32.gmra.mxu3 %vm527_vm0, %v6379_v18 }
 0x8a8   : > { %v2599_v31 = vpop.f32.mrf.mxu3 }
 0x8a9   : > { %v2600_v9 = vadd.f32 %v2599_v31, %v2571_v11  ;;  %v4833_v31 = vld [vmem:[%s5556_s18 + $0x430] sm:$0xff] }
 0x8ac   : > { %4820 = vmatmul.msk.f32.gmra.mxu3 %vm527_vm0, %v6375_v1 }
 0x8b0   : > { %v2602_v19 = vpop.f32.mrf.mxu3 }
 0x8b1   : > { %v2603_v25 = vadd.f32 %v2602_v19, %v2574_v10  ;;  %v4834_v19 = vld [vmem:[%s5556_s18 + $0x438] sm:$0xff] }
 0x8b2   : > { %v4962_v10 = vld [vmem:[%s7642_s3 + $0x578] sm:$0xff] }
 0x8b3   : > { %3373 = vmatpush.msrb.mxu2 %v4962_v10  ;;  %v4873_v10 = vld [vmem:[%s5556_s18 + $0x570] sm:$0xff] }
 0x8b4   : > { %4821 = vmatmul.msk.f32.gmra.mxu3 %vm527_vm0, %v6370_v35 }
 0x8b8   : > { %v2605_v38 = vpop.f32.mrf.mxu3 }
 0x8b9   : > { %v2606_v12 = vadd.f32 %v2605_v38, %v2577_v7  ;;  %v4835_v38 = vld [vmem:[%s5556_s18 + $0x440] sm:$0xff] }
 0x8bc   : > { %4827 = vmatmul.msk.f32.vlgmr.msra.gmra.mxu3 %vm527_vm0, %v6384_v51 }
 0x8c4   : > { %4828 = vmatmul.msk.f32.gmra.mxu3 %vm527_vm0, %v6379_v18 }
 0x8cc   : > { %4829 = vmatmul.msk.f32.gmra.mxu3 %vm527_vm0, %v6375_v1  ;;  %v5356_v1 = vld [vmem:[%s7645_s6 + $0x2] ss:$0 sm:$0xff] }
 0x8d4   : > { %4830 = vmatmul.msk.f32.gmra.mxu3 %vm527_vm0, %v6370_v35 }
 0x8e7   : > { %v6748_v32 = vpop.f32.mrf.mxu3 }
 0x8e8   : > { %v2626_v29 = vadd.f32 %v6748_v32, %v2597_v26  ;;  %v4836_v32 = vld [vmem:[%s5556_s18 + $0x448] sm:$0xff]  ;;  %v4862_v26 = vld [vmem:[%s5556_s18 + $0x518] sm:$0xff] }
 0x8ea   : > { %v2735_v37 = vmax.f32 %v2626_v29, 0.0  ;;  %v4863_v29 = vld [vmem:[%s5556_s18 + $0x520] sm:$0xff] }
 0x907   : > { %v2628_v51 = vpop.f32.mrf.mxu3 }
 0x908   : > { %v2629_v17 = vadd.f32 %v2628_v51, %v2600_v9  ;;  %v4837_v51 = vld [vmem:[%s5556_s18 + $0x450] sm:$0xff] }
 0x90a   : > { %v2736_v27 = vmax.f32 %v2629_v17, 0.0 }
 0x90f   : > { %v2631_v14 = vpop.f32.mrf.mxu3 }
 0x910   : > { %v2632_v15 = vadd.f32 %v2631_v14, %v2603_v25  ;;  %v4838_v14 = vld [vmem:[%s5556_s18 + $0x458] sm:$0xff] }
 0x912   : > { %v2737_v47 = vmax.f32 %v2632_v15, 0.0  ;;  %v4860_v15 = vld [vmem:[%s5556_s18 + $0x508] sm:$0xff] }
 0x917   : > { %v2634_v23 = vpop.f32.mrf.mxu3 }
 0x918   : > { %v2635_v44 = vadd.f32 %v2634_v23, %v2606_v12  ;;  %v4839_v23 = vld [vmem:[%s5556_s18 + $0x460] sm:$0xff]  ;;  %v4858_v12 = vld [vmem:[%s5556_s18 + $0x4f8] sm:$0xff] }
 0x91a   : > { %v2738_v22 = vmax.f32 %v2635_v44, 0.0  ;;  %v4859_v44 = vld [vmem:[%s5556_s18 + $0x500] sm:$0xff] }
 0x91f   : > { %v2676_v41 = vpop.f32.mrf.mxu3 }
 0x920   : > { %v2677_v57 = vadd.f32 %v5356_v1, %v2676_v41  ;;  %v4840_v41 = vld [vmem:[%s5556_s18 + $0x468] sm:$0xff] }
 0x927   : > { %v2679_v18 = vpop.f32.mrf.mxu3 }
 0x928   : > { %v2680_v35 = vadd.f32 %v5356_v1, %v2679_v18  ;;  %v4841_v18 = vld [vmem:[%s5556_s18 + $0x470] sm:$0xff] }
 0x92a   : > { %5396 = vtanh.f32 %v2680_v35  ;;  %v4846_v35 = vld [vmem:[%s5556_s18 + $0x498] sm:$0xff] }
 0x92f   : > { %v2682_v33 = vpop.f32.mrf.mxu3 }
 0x930   : > { %v2683_v6 = vadd.f32 %v5356_v1, %v2682_v33  ;;  %v5397_v58 = vpop.eup %5396  ;;  %v4842_v33 = vld [vmem:[%s5556_s18 + $0x478] sm:$0xff] }
 0x937   : > { %v2685_v45 = vpop.f32.mrf.mxu3 }
 0x938   : > { %v2686_v36 = vadd.f32 %v5356_v1, %v2685_v45  ;;  %v4843_v45 = vld [vmem:[%s5556_s18 + $0x480] sm:$0xff]  ;;  %v4845_v1 = vld [vmem:[%s5556_s18 + $0x490] sm:$0xff] }
 0x93f   : > { %v2719_v48 = vpop.f32.mrf.mxu3 }
 0x940   : > { %v2720_v0 = vadd.f32 %v5357_v2, %v2719_v48  ;;  %v4844_v48 = vld [vmem:[%s5556_s18 + $0x488] sm:$0xff] }
 0x947   : > { %v2722_v49 = vpop.f32.mrf.mxu3 }
 0x948   : > { %v2723_v52 = vadd.f32 %v5357_v2, %v2722_v49 }
 0x94a   : > { %5398 = vtanh.f32 %v2723_v52  ;;  %v4848_v52 = vld [vmem:[%s5556_s18 + $0x4a8] sm:$0xff] }
 0x94b   : > { %5400 = vtanh.f32 %v2683_v6 }
 0x94f   : > { %v2725_v46 = vpop.f32.mrf.mxu3 }
 0x950   : > { %v5399_v53 = vpop.eup %5398  ;;  %v2726_v54 = vadd.f32 %v5357_v2, %v2725_v46 }
 0x951   : > { %v2740_v55 = vmul.f32 %v5399_v53, %v5397_v58  ;;  %v5401_v21 = vpop.eup %5400  ;;  %v4849_v58 = vld [vmem:[%s5556_s18 + $0x4b0] sm:$0xff]  ;;  %v4850_v53 = vld [vmem:[%s5556_s18 + $0x4b8] sm:$0xff] }
 0x952   : > { %5402 = vtanh.f32 %v2726_v54 }
 0x953   : > { %2749 = vrot.lane.b32.xlu2 %v2740_v55, %s5455_s16  ;;  %5404 = vtanh.f32 %v2686_v36  ;;  %v4851_v55 = vld [vmem:[%s5556_s18 + $0x4c0] sm:$0xff] }
 0x957   : > { %v2728_v56 = vpop.f32.mrf.mxu3 }
 0x958   : > { %v5403_v43 = vpop.eup %5402  ;;  %v2729_v39 = vadd.f32 %v5357_v2, %v2728_v56  ;;  %v4847_v2 = vld [vmem:[%s5556_s18 + $0x4a0] sm:$0xff] }
 0x959   : > { %v2741_v13 = vmul.f32 %v5403_v43, %v5401_v21  ;;  %v5405_v50 = vpop.eup %5404  ;;  %v4852_v21 = vld [vmem:[%s5556_s18 + $0x4c8] sm:$0xff] }
 0x95a   : > { %5406 = vtanh.f32 %v2729_v39  ;;  %v4853_v39 = vld [vmem:[%s5556_s18 + $0x4d0] sm:$0xff] }
 0x95b   : > { %2751 = vrot.lane.b32.xlu1 %v2741_v13, %s5455_s16  ;;  %5408 = vtanh.f32 %v2720_v0  ;;  %v4854_v0 = vld [vmem:[%s5556_s18 + $0x4d8] sm:$0xff] }
 0x95c   : > { %5410 = vtanh.f32 %v2677_v57 }
 0x960   : > { %v5407_v42 = vpop.eup %5406 }
 0x961   : > { %v2742_v59 = vmul.f32 %v5407_v42, %v5405_v50  ;;  %v5409_v61 = vpop.eup %5408  ;;  %v4855_v42 = vld [vmem:[%s5556_s18 + $0x4e0] sm:$0xff] }
 0x962   : > { %v5411_v62 = vpop.eup %5410 }
 0x963   : > { %2753 = vrot.lane.b32.xlu0 %v2742_v59, %s5455_s16  ;;  %v2739_v63 = vmul.f32 %v5411_v62, %v5409_v61  ;;  %v4856_v61 = vld [vmem:[%s5556_s18 + $0x4e8] sm:$0xff] }
 0x96b   : > { %2747 = vrot.lane.b32.xlu0 %v2739_v63, %s5455_s16 }
 0x9ad   : > { %v2750_v40 = vpop.permute.xlu2 %2749 }
 0x9ae   : > { %v6775_v60 = vsel %vm1236_vm3, %v2736_v27, %v2750_v40 }
 0x9cd   : > { %v2752_v24 = vpop.permute.xlu1 %2751 }
 0x9ce   : > { %v6771_v30 = vsel %vm1236_vm3, %v2737_v47, %v2752_v24  ;;  %v4961_v24 = vld [vmem:[%s7642_s3 + $0x570] sm:$0xff] }
 0x9cf   : > { %3374 = vmatpush.msrb.mxu2 %v4961_v24 }
 0x9d5   : > { %v2754_v34 = vpop.permute.xlu0 %2753 }
 0x9d6   : > { %v6766_v28 = vsel %vm1236_vm3, %v2738_v22, %v2754_v34  ;;  %v4861_v22 = vld [vmem:[%s5556_s18 + $0x510] sm:$0xff] }
 0x9d7   : > { %2952 = vmatpush.msrb.mxu3 %v6766_v28 }
 0x9d9   : > { %2953 = vmatpush.msrb.mxu3 %v6771_v30 }
 0x9db   : > { %2954 = vmatpush.msrb.mxu3 %v6775_v60 }
 0x9dd   : > { %v2748_v4 = vpop.permute.xlu0 %2747 }
 0x9de   : > { %v6780_v3 = vsel %vm1236_vm3, %v2735_v37, %v2748_v4  ;;  %v4864_v37 = vld [vmem:[%s5556_s18 + $0x528] sm:$0xff] }
 0x9df   : > { %2955 = vmatpush.msrb.mxu3 %v6780_v3 }
 0x9e0   : > { %4875 = vmatmul.msk.f32.vlgmr.msrb.gmra.mxu3 %vm527_vm0, %v4831_v20  ;;  %v4960_v20 = vld [vmem:[%s7642_s3 + $0x568] sm:$0xff] }
 0x9e1   : > { %3375 = vmatpush.msrb.mxu2 %v4960_v20 }
 0x9e8   : > { %4876 = vmatmul.msk.f32.gmra.mxu3 %vm527_vm0, %v4832_v8  ;;  %v4865_v8 = vld [vmem:[%s5556_s18 + $0x530] sm:$0xff] }
 0x9f0   : > { %4877 = vmatmul.msk.f32.gmra.mxu3 %vm527_vm0, %v4833_v31 }
 0x9f8   : > { %4878 = vmatmul.msk.f32.gmra.mxu3 %vm527_vm0, %v4834_v19  ;;  %v4866_v19 = vld [vmem:[%s5556_s18 + $0x538] sm:$0xff] }
 0xa00   : > { %4879 = vmatmul.msk.f32.gmra.mxu3 %vm527_vm0, %v4835_v38 }
 0xa08   : > { %4880 = vmatmul.msk.f32.gmra.mxu3 %vm527_vm0, %v4836_v32  ;;  %v4867_v32 = vld [vmem:[%s5556_s18 + $0x540] sm:$0xff] }
 0xa10   : > { %4881 = vmatmul.msk.f32.gmra.mxu3 %vm527_vm0, %v4837_v51 }
 0xa18   : > { %4882 = vmatmul.msk.f32.gmra.mxu3 %vm527_vm0, %v4838_v14  ;;  %v4934_v14 = vld [vmem:[%s7642_s3 + $0x498] sm:$0xff] }
 0xa19   : > { %3311 = vmatpush.msrb.mxu0 %v4934_v14 }
 0xa20   : > { %4883 = vmatmul.msk.f32.gmra.mxu3 %vm527_vm0, %v4839_v23  ;;  %v4933_v23 = vld [vmem:[%s7642_s3 + $0x490] sm:$0xff] }
 0xa21   : > { %3312 = vmatpush.msrb.mxu0 %v4933_v23 }
 0xa28   : > { %4884 = vmatmul.msk.f32.gmra.mxu3 %vm527_vm0, %v4840_v41  ;;  %v4868_v41 = vld [vmem:[%s5556_s18 + $0x548] sm:$0xff] }
 0xa30   : > { %4885 = vmatmul.msk.f32.gmra.mxu3 %vm527_vm0, %v4841_v18  ;;  %v4932_v18 = vld [vmem:[%s7642_s3 + $0x488] sm:$0xff] }
 0xa31   : > { %3313 = vmatpush.msrb.mxu0 %v4932_v18 }
 0xa38   : > { %4886 = vmatmul.msk.f32.gmra.mxu3 %vm527_vm0, %v4842_v33 }
 0xa40   : > { %4887 = vmatmul.msk.f32.gmra.mxu3 %vm527_vm0, %v4843_v45  ;;  %v4931_v45 = vld [vmem:[%s7642_s3 + $0x480] sm:$0xff] }
 0xa41   : > { %3314 = vmatpush.msrb.mxu0 %v4931_v45 }
 0xa48   : > { %4888 = vmatmul.msk.f32.gmra.mxu3 %vm527_vm0, %v4844_v48 }
 0xa50   : > { %4889 = vmatmul.msk.f32.gmra.mxu3 %vm527_vm0, %v4845_v1  ;;  %v4959_v1 = vld [vmem:[%s7642_s3 + $0x560] sm:$0xff] }
 0xa51   : > { %3376 = vmatpush.msrb.mxu2 %v4959_v1 }
 0xa58   : > { %4890 = vmatmul.msk.f32.gmra.mxu3 %vm527_vm0, %v4846_v35  ;;  %v4930_v35 = vld [vmem:[%s7642_s3 + $0x478] sm:$0xff] }
 0xa59   : > { %3315 = vmatpush.msrb.mxu0 %v4930_v35 }
 0xa60   : > { %4891 = vmatmul.msk.f32.gmra.mxu3 %vm527_vm0, %v4847_v2  ;;  %v4869_v2 = vld [vmem:[%s5556_s18 + $0x550] sm:$0xff] }
 0xa63   : > { %v6816_v49 = vpop.f32.mrf.mxu3 }
 0xa68   : > { %4892 = vmatmul.msk.f32.gmra.mxu3 %vm527_vm0, %v4848_v52  ;;  %v4929_v52 = vld [vmem:[%s7642_s3 + $0x470] sm:$0xff] }
 0xa69   : > { %3316 = vmatpush.msrb.mxu0 %v4929_v52 }
 0xa6b   : > { %v6820_v6 = vpop.f32.mrf.mxu3 }
 0xa70   : > { %4893 = vmatmul.msk.f32.gmra.mxu3 %vm527_vm0, %v4849_v58  ;;  %v4928_v58 = vld [vmem:[%s7642_s3 + $0x468] sm:$0xff] }
 0xa71   : > { %3317 = vmatpush.msrb.mxu0 %v4928_v58 }
 0xa73   : > { %v6824_v46 = vpop.f32.mrf.mxu3 }
 0xa78   : > { %4894 = vmatmul.msk.f32.gmra.mxu3 %vm527_vm0, %v4850_v53 }
 0xa7b   : > { %v6828_v54 = vpop.f32.mrf.mxu3 }
 0xa80   : > { %4895 = vmatmul.msk.f32.gmra.mxu3 %vm527_vm0, %v4851_v55  ;;  %v4927_v55 = vld [vmem:[%s7642_s3 + $0x460] sm:$0xff] }
 0xa81   : > { %3318 = vmatpush.msrb.mxu0 %v4927_v55 }
 0xa83   : > { %v2969_v36 = vpop.f32.mrf.mxu3 }
 0xa88   : > { %4896 = vmatmul.msk.f32.gmra.mxu3 %vm527_vm0, %v4852_v21  ;;  %v4870_v21 = vld [vmem:[%s5556_s18 + $0x558] sm:$0xff] }
 0xa8b   : > { %v2972_v56 = vpop.f32.mrf.mxu3 }
 0xa8c   : > { %v5256_v43 = vpack.i.bf16 %v2972_v56, %v2969_v36  ;;  %v4926_v36 = vld [vmem:[%s7642_s3 + $0x458] sm:$0xff]  ;;  %v4925_v56 = vld [vmem:[%s7642_s3 + $0x450] sm:$0xff] }
 0xa8d   : > { %3319 = vmatpush.msrb.mxu0 %v4926_v36 }
 0xa8e   : > { %5257 = vrot.lane.b32.xlu1 %v5256_v43, %s5452_s19  ;;  %v4924_v43 = vld [vmem:[%s7642_s3 + $0x448] sm:$0xff] }
 0xa8f   : > { %3320 = vmatpush.msrb.mxu0 %v4925_v56 }
 0xa90   : > { %4897 = vmatmul.msk.f32.gmra.mxu3 %vm527_vm0, %v4853_v39 }
 0xa91   : > { %3321 = vmatpush.msrb.mxu0 %v4924_v43  ;;  %v4956_v43 = vld [vmem:[%s7642_s3 + $0x548] sm:$0xff] }
 0xa93   : > { %v2975_v13 = vpop.f32.mrf.mxu3 }
 0xa98   : > { %4898 = vmatmul.msk.f32.gmra.mxu3 %vm527_vm0, %v4854_v0  ;;  %v4922_v0 = vld [vmem:[%s7642_s3 + $0x438] sm:$0xff] }
 0xa9b   : > { %v2978_v57 = vpop.f32.mrf.mxu3 }
 0xa9c   : > { %v5271_v50 = vpack.i.bf16 %v2978_v57, %v2975_v13  ;;  %v4923_v13 = vld [vmem:[%s7642_s3 + $0x440] sm:$0xff] }
 0xa9d   : > { %3322 = vmatpush.msrb.mxu0 %v4923_v13  ;;  %v4871_v57 = vld [vmem:[%s5556_s18 + $0x560] sm:$0xff] }
 0xa9e   : > { %5272 = vrot.lane.b32.xlu1 %v5271_v50, %s5452_s19  ;;  %v4921_v50 = vld [vmem:[%s7642_s3 + $0x430] sm:$0xff] }
 0xa9f   : > { %3323 = vmatpush.msrb.mxu0 %v4922_v0  ;;  %v4949_v0 = vld [vmem:[%s7642_s3 + $0x510] sm:$0xff] }
 0xaa0   : > { %4899 = vmatmul.msk.f32.gmra.mxu3 %vm527_vm0, %v4855_v42  ;;  %v4920_v42 = vld [vmem:[%s7642_s3 + $0x428] sm:$0xff] }
 0xaa1   : > { %3324 = vmatpush.msrb.mxu0 %v4921_v50 }
 0xaa3   : > { %v2981_v59 = vpop.f32.mrf.mxu3  ;;  %3325 = vmatpush.msrb.mxu0 %v4920_v42  ;;  %v4947_v42 = vld [vmem:[%s7642_s3 + $0x500] sm:$0xff] }
 0xaa8   : > { %4900 = vmatmul.msk.f32.gmra.mxu3 %vm527_vm0, %v4856_v61  ;;  %v4919_v61 = vld [vmem:[%s7642_s3 + $0x420] sm:$0xff] }
 0xaa9   : > { %3326 = vmatpush.msrb.mxu0 %v4919_v61  ;;  %v4945_v61 = vld [vmem:[%s7642_s3 + $0x4f0] sm:$0xff] }
 0xaab   : > { %v2984_v62 = vpop.f32.mrf.mxu3 }
 0xaac   : > { %v5261_v63 = vpack.i.bf16 %v2984_v62, %v2981_v59  ;;  %v4958_v62 = vld [vmem:[%s7642_s3 + $0x558] sm:$0xff] }
 0xaad   : > { %3377 = vmatpush.msrb.mxu2 %v4958_v62  ;;  %v4944_v62 = vld [vmem:[%s7642_s3 + $0x4e8] sm:$0xff] }
 0xaae   : > { %5262 = vrot.lane.b32.xlu2 %v5261_v63, %s5453_s20  ;;  %v4872_v63 = vld [vmem:[%s5556_s18 + $0x568] sm:$0xff] }
 0xab0   : > { %4901 = vmatmul.msk.f32.gmra.mxu3 %vm527_vm0, %v4857_v5 }
 0xab3   : > { %v2987_v7 = vpop.f32.mrf.mxu3 }
 0xab8   : > { %4902 = vmatmul.msk.f32.gmra.mxu3 %vm527_vm0, %v4858_v12 }
 0xabb   : > { %v2990_v11 = vpop.f32.mrf.mxu3 }
 0xabc   : > { %v5276_v25 = vpack.i.bf16 %v2990_v11, %v2987_v7  ;;  %v4874_v11 = vld [vmem:[%s5556_s18 + $0x578] sm:$0xff] }
 0xabe   : > { %5277 = vrot.lane.b32.xlu2 %v5276_v25, %s5453_s20 }
 0xac0   : > { %4903 = vmatmul.msk.f32.gmra.mxu3 %vm527_vm0, %v4859_v44 }
 0xac3   : > { %v2993_v9 = vpop.f32.mrf.mxu3 }
 0xac8   : > { %4904 = vmatmul.msk.f32.gmra.mxu3 %vm527_vm0, %v4860_v15 }
 0xacb   : > { %v2996_v16 = vpop.f32.mrf.mxu3 }
 0xacc   : > { %v5266_v17 = vpack.i.bf16 %v2996_v16, %v2993_v9 }
 0xace   : > { %5267 = vrot.lane.b32.xlu0 %v5266_v17, %s5454_s21 }
 0xad0   : > { %4905 = vmatmul.msk.f32.gmra.mxu3 %vm527_vm0, %v4861_v22 }
 0xad3   : > { %v2999_v34 = vpop.f32.mrf.mxu3 }
 0xad8   : > { %4906 = vmatmul.msk.f32.gmra.mxu3 %vm527_vm0, %v4862_v26 }
 0xadb   : > { %v3002_v47 = vpop.f32.mrf.mxu3 }
 0xadc   : > { %v5281_v40 = vpack.i.bf16 %v3002_v47, %v2999_v34 }
 0xade   : > { %5282 = vrot.lane.b32.xlu0 %v5281_v40, %s5454_s21  ;;  %v4957_v40 = vld [vmem:[%s7642_s3 + $0x550] sm:$0xff] }
 0xadf   : > { %3378 = vmatpush.msrb.mxu2 %v4957_v40  ;;  %v4954_v40 = vld [vmem:[%s7642_s3 + $0x538] sm:$0xff] }
 0xae0   : > { %4907 = vmatmul.msk.f32.gmra.mxu3 %vm527_vm0, %v4863_v29 }
 0xae1   : > { %3379 = vmatpush.msrb.mxu2 %v4956_v43  ;;  %v4970_v43 = vld [vmem:[%s7644_s5 + $0x70] sm:$0xff] }
 0xae3   : > { %v6868_v27 = vpop.f32.mrf.mxu3 }
 0xae8   : > { %4908 = vmatmul.msk.f32.gmra.mxu3 %vm527_vm0, %v4864_v37 }
 0xaeb   : > { %v6872_v4 = vpop.f32.mrf.mxu3 }
 0xaf0   : > { %4909 = vmatmul.msk.f32.gmra.mxu3 %vm527_vm0, %v4865_v8 }
 0xaf3   : > { %v6879_v31 = vpop.f32.mrf.mxu3 }
 0xaf8   : > { %4910 = vmatmul.msk.f32.gmra.mxu3 %vm527_vm0, %v4866_v19 }
 0xafb   : > { %v6883_v38 = vpop.f32.mrf.mxu3 }
 0xb00   : > { %4911 = vmatmul.msk.f32.gmra.mxu3 %vm527_vm0, %v4867_v32  ;;  %v5258_v25 = vpop.permute.xlu1 %5257 }
 0xb01   : > { %v5259_v15 = vunpack.i.l.bf16 %v5258_v25  ;;  %v5260_v29 = vunpack.i.h.bf16 %v5258_v25 }
 0xb03   : > { %v3017_v51 = vpop.f32.mrf.mxu3  ;;  %v3217_v22 = vsel %vm527_vm0, %v6816_v49, %v5259_v15  ;;  %v3218_v8 = vsel %vm527_vm0, %v6820_v6, %v5260_v29  ;;  %v4939_v15 = vld [vmem:[%s7642_s3 + $0x4c0] sm:$0xff] }
 0xb08   : > { %4912 = vmatmul.msk.f32.gmra.mxu3 %vm527_vm0, %v4868_v41  ;;  %v5263_v44 = vpop.permute.xlu2 %5262 }
 0xb09   : > { %v5264_v16 = vunpack.i.l.bf16 %v5263_v44  ;;  %v5265_v37 = vunpack.i.h.bf16 %v5263_v44  ;;  %v4955_v44 = vld [vmem:[%s7642_s3 + $0x540] sm:$0xff] }
 0xb0a   : > { %3380 = vmatpush.msrb.mxu2 %v4955_v44 }
 0xb0b   : > { %v3020_v33 = vpop.f32.mrf.mxu3  ;;  %v3221_v34 = vsel %vm941_vm1, %v3217_v22, %v5264_v16  ;;  %v3222_v49 = vsel %vm941_vm1, %v3218_v8, %v5265_v37  ;;  %v4938_v16 = vld [vmem:[%s7642_s3 + $0x4b8] sm:$0xff]  ;;  %v4936_v22 = vld [vmem:[%s7642_s3 + $0x4a8] sm:$0xff] }
 0xb0c   : > { %v5286_v48 = vpack.i.bf16 %v3020_v33, %v3017_v51  ;;  %3381 = vmatpush.msrb.mxu2 %v4954_v40 }
 0xb0e   : > { %5287 = vrot.lane.b32.xlu0 %v5286_v48, %s5452_s19 }
 0xb10   : > { %4913 = vmatmul.msk.f32.gmra.mxu3 %vm527_vm0, %v4869_v2  ;;  %v5273_v19 = vpop.permute.xlu1 %5272 }
 0xb11   : > { %v5274_v41 = vunpack.i.l.bf16 %v5273_v19  ;;  %v5275_v2 = vunpack.i.h.bf16 %v5273_v19 }
 0xb13   : > { %v6916_v53 = vpop.f32.mrf.mxu3  ;;  %v3219_v48 = vsel %vm527_vm0, %v6824_v46, %v5274_v41  ;;  %v3220_v55 = vsel %vm527_vm0, %v6828_v54, %v5275_v2  ;;  %v4950_v54 = vld [vmem:[%s7642_s3 + $0x518] sm:$0xff]  ;;  %v4953_v2 = vld [vmem:[%s7642_s3 + $0x530] sm:$0xff] }
 0xb14   : > { %3340 = vmatpush.msra.mxu0 %v4950_v54  ;;  %3382 = vmatpush.msrb.mxu2 %v4953_v2  ;;  %v4969_v54 = vld [vmem:[%s7644_s5 + $0x68] sm:$0xff] }
 0xb16   : > { %3341 = vmatpush.msra.mxu0 %v4949_v0 }
 0xb18   : > { %4914 = vmatmul.msk.f32.gmra.mxu3 %vm527_vm0, %v4870_v21  ;;  %v5278_v32 = vpop.permute.xlu2 %5277 }
 0xb19   : > { %v5279_v18 = vunpack.i.l.bf16 %v5278_v32  ;;  %v5280_v52 = vunpack.i.h.bf16 %v5278_v32 }
 0xb1b   : > { %v6932_v39 = vpop.f32.mrf.mxu3  ;;  %v3223_v6 = vsel %vm941_vm1, %v3219_v48, %v5279_v18  ;;  %v3224_v36 = vsel %vm941_vm1, %v3220_v55, %v5280_v52  ;;  %v4979_v55 = vld [vmem:[%s7646_s7 + $0x70] sm:$0xff] }
 0xb20   : > { %4915 = vmatmul.msk.f32.gmra.mxu3 %vm527_vm0, %v4871_v57  ;;  %v4948_v57 = vld [vmem:[%s7642_s3 + $0x508] sm:$0xff] }
 0xb21   : > { %3342 = vmatpush.msra.mxu0 %v4948_v57  ;;  %v4968_v57 = vld [vmem:[%s7644_s5 + $0x60] sm:$0xff] }
 0xb23   : > { %v3029_v59 = vpop.f32.mrf.mxu3  ;;  %3343 = vmatpush.msra.mxu0 %v4947_v42 }
 0xb28   : > { %4916 = vmatmul.msk.f32.gmra.mxu3 %vm527_vm0, %v4872_v63 }
 0xb2b   : > { %v3032_v5 = vpop.f32.mrf.mxu3 }
 0xb2c   : > { %v5291_v7 = vpack.i.bf16 %v3032_v5, %v3029_v59  ;;  %v4946_v59 = vld [vmem:[%s7642_s3 + $0x4f8] sm:$0xff]  ;;  %v4943_v5 = vld [vmem:[%s7642_s3 + $0x4e0] sm:$0xff] }
 0xb2d   : > { %3344 = vmatpush.msra.mxu0 %v4946_v59 }
 0xb2e   : > { %5292 = vrot.lane.b32.xlu1 %v5291_v7, %s5453_s20  ;;  %v4942_v7 = vld [vmem:[%s7642_s3 + $0x4d8] sm:$0xff] }
 0xb2f   : > { %3345 = vmatpush.msra.mxu0 %v4945_v61 }
 0xb30   : > { %4917 = vmatmul.msk.f32.gmra.mxu3 %vm527_vm0, %v4873_v10  ;;  %v4941_v10 = vld [vmem:[%s7642_s3 + $0x4d0] sm:$0xff] }
 0xb31   : > { %3346 = vmatpush.msra.mxu0 %v4944_v62 }
 0xb33   : > { %v6959_v12 = vpop.f32.mrf.mxu3  ;;  %3347 = vmatpush.msra.mxu0 %v4943_v5 }
 0xb35   : > { %3348 = vmatpush.msra.mxu0 %v4942_v7 }
 0xb37   : > { %3349 = vmatpush.msra.mxu0 %v4941_v10 }
 0xb38   : > { %4918 = vmatmul.msk.f32.gmra.mxu3 %vm527_vm0, %v4874_v11  ;;  %v4940_v11 = vld [vmem:[%s7642_s3 + $0x4c8] sm:$0xff] }
 0xb39   : > { %3350 = vmatpush.msra.mxu0 %v4940_v11 }
 0xb3b   : > { %v6963_v9 = vpop.f32.mrf.mxu3  ;;  %3351 = vmatpush.msra.mxu0 %v4939_v15 }
 0xb3d   : > { %3352 = vmatpush.msra.mxu0 %v4938_v16 }
 0xb40   : > { %v5268_v17 = vpop.permute.xlu0 %5267 }
 0xb41   : > { %v5269_v24 = vunpack.i.l.bf16 %v5268_v17  ;;  %v5270_v20 = vunpack.i.h.bf16 %v5268_v17  ;;  %v4937_v17 = vld [vmem:[%s7642_s3 + $0x4b0] sm:$0xff] }
 0xb42   : > { %3353 = vmatpush.msra.mxu0 %v4937_v17 }
 0xb43   : > { %v3041_v26 = vpop.f32.mrf.mxu3  ;;  %v3225_v47 = vsel %vm946_vm2, %v3221_v34, %v5269_v24  ;;  %v3226_v14 = vsel %vm946_vm2, %v3222_v49, %v5270_v20  ;;  %v4935_v34 = vld [vmem:[%s7642_s3 + $0x4a0] sm:$0xff] }
 0xb44   : > { %3327 = vmatmul.f32.vlgmr.msrb.gmra.mxu0 %v3225_v47 }
 0xb45   : > { %3354 = vmatpush.msra.mxu0 %v4936_v22 }
 0xb47   : > { %3355 = vmatpush.msra.mxu0 %v4935_v34 }
 0xb4b   : > { %v3044_v51 = vpop.f32.mrf.mxu3 }
 0xb4c   : > { %v5296_v23 = vpack.i.bf16 %v3044_v51, %v3041_v26  ;;  %3330 = vmatmul.f32.gmra.mxu0 %v3226_v14 }
 0xb4e   : > { %5297 = vrot.lane.b32.xlu2 %v5296_v23, %s5454_s21 }
 0xb50   : > { %v5283_v33 = vpop.permute.xlu0 %5282 }
 0xb51   : > { %v5284_v45 = vunpack.i.l.bf16 %v5283_v33  ;;  %v5285_v58 = vunpack.i.h.bf16 %v5283_v33 }
 0xb53   : > { %v6980_v1 = vpop.f32.mrf.mxu3  ;;  %v3227_v35 = vsel %vm946_vm2, %v3223_v6, %v5284_v45  ;;  %v3228_v56 = vsel %vm946_vm2, %v3224_v36, %v5285_v58  ;;  %v4978_v36 = vld [vmem:[%s7646_s7 + $0x68] sm:$0xff] }
 0xb54   : > { %3333 = vmatmul.f32.gmra.mxu0 %v3227_v35 }
 0xb5b   : > { %v6986_v21 = vpop.f32.mrf.mxu3 }
 0xb5c   : > { %3336 = vmatmul.f32.gmra.mxu0 %v3228_v56  ;;  %v4971_v56 = vld [vmem:[%s7644_s5 + $0x78] sm:$0xff] }
 0xb5d   : > { %3432 = vmatpush.msrb.mxu0 %v4971_v56 }
 0xb5f   : > { %3433 = vmatpush.msrb.mxu0 %v4970_v43 }
 0xb61   : > { %3434 = vmatpush.msrb.mxu0 %v4969_v54 }
 0xb63   : > { %v6989_v46 = vpop.f32.mrf.mxu3  ;;  %3435 = vmatpush.msrb.mxu0 %v4968_v57 }
 0xb6b   : > { %v6994_v13 = vpop.f32.mrf.mxu3 }
 0xb73   : > { %v7005_v50 = vpop.f32.mrf.mxu3 }
 0xb7b   : > { %v7019_v63 = vpop.f32.mrf.mxu3 }
 0xb80   : > { %v5288_v29 = vpop.permute.xlu0 %5287 }
 0xb81   : > { %v5289_v8 = vunpack.i.l.bf16 %v5288_v29  ;;  %v5290_v18 = vunpack.i.h.bf16 %v5288_v29 }
 0xb83   : > { %v3065_v25 = vpop.f32.mrf.mxu3  ;;  %v3229_v32 = vsel %vm527_vm0, %v6868_v27, %v5289_v8  ;;  %v3230_v48 = vsel %vm527_vm0, %v6872_v4, %v5290_v18  ;;  %v4952_v4 = vld [vmem:[%s7642_s3 + $0x528] sm:$0xff]  ;;  %v5360_v18 = vld [vmem:[%s7645_s6 + $0x3] ss:$0 sm:$0xff] }
 0xb84   : > { %3189 = vrot.lane.b32.xlu1 %v3065_v25, %s5452_s19  ;;  %3383 = vmatpush.msrb.mxu2 %v4952_v4 }
 0xb8b   : > { %v3068_v24 = vpop.f32.mrf.mxu3 }
 0xb8c   : > { %3191 = vrot.lane.b32.xlu0 %v3068_v24, %s5452_s19 }
 0xb93   : > { %v3071_v26 = vpop.f32.mrf.mxu3 }
 0xb9b   : > { %v3074_v47 = vpop.f32.mrf.mxu3 }
 0xba0   : > { %v5293_v37 = vpop.permute.xlu1 %5292 }
 0xba1   : > { %v5294_v19 = vunpack.i.l.bf16 %v5293_v37  ;;  %v5295_v33 = vunpack.i.h.bf16 %v5293_v37 }
 0xba3   : > { %v3077_v20 = vpop.f32.mrf.mxu3  ;;  %v3233_v14 = vsel %vm941_vm1, %v3229_v32, %v5294_v19  ;;  %v3234_v6 = vsel %vm941_vm1, %v3230_v48, %v5295_v33 }
 0xba4   : > { %3205 = vrot.lane.b32.xlu2 %v3077_v20, %s5453_s20 }
 0xba8   : > { %v5298_v49 = vpop.permute.xlu2 %5297 }
 0xba9   : > { %v5299_v51 = vunpack.i.l.bf16 %v5298_v49  ;;  %v5300_v45 = vunpack.i.h.bf16 %v5298_v49 }
 0xbab   : > { %v3080_v23 = vpop.f32.mrf.mxu3  ;;  %v3237_v41 = vsel %vm946_vm2, %v3233_v14, %v5299_v51  ;;  %v3238_v35 = vsel %vm946_vm2, %v3234_v6, %v5300_v45 }
 0xbac   : > { %3356 = vmatmul.f32.vlgmr.msra.gmra.mxu0 %v3237_v41  ;;  %3193 = vrot.lane.b32.xlu2 %v3071_v26, %s5452_s19 }
 0xbad   : > { %3207 = vrot.lane.b32.xlu1 %v3080_v23, %s5453_s20 }
 0xbb3   : > { %v3083_v27 = vpop.f32.mrf.mxu3 }
 0xbb4   : > { %3359 = vmatmul.f32.gmra.mxu0 %v3238_v35  ;;  %3161 = vrot.lane.b32.xlu2 %v6959_v12, %s5453_s20 }
 0xbb5   : > { %3145 = vrot.lane.b32.xlu1 %v6916_v53, %s5452_s19  ;;  %3209 = vrot.lane.b32.xlu0 %v3083_v27, %s5453_s20  ;;  %v4951_v53 = vld [vmem:[%s7642_s3 + $0x520] sm:$0xff] }
 0xbb6   : > { %3384 = vmatpush.msrb.mxu2 %v4951_v53 }
 0xbbb   : > { %v3086_v52 = vpop.f32.mrf.mxu3 }
 0xbbc   : > { %3211 = vrot.lane.b32.xlu2 %v3086_v52, %s5453_s20 }
 0xbbd   : > { %3195 = vrot.lane.b32.xlu1 %v3074_v47, %s5452_s19  ;;  %3177 = vrot.lane.b32.xlu0 %v6980_v1, %s5454_s21 }
 0xbc4   : > { %3179 = vrot.lane.b32.xlu2 %v6986_v21, %s5454_s21  ;;  %v4977_v21 = vld [vmem:[%s7646_s7 + $0x60] sm:$0xff] }
 0xbc5   : > { %3163 = vrot.lane.b32.xlu1 %v6963_v9, %s5453_s20  ;;  %3147 = vrot.lane.b32.xlu0 %v6932_v39, %s5452_s19  ;;  %v4980_v39 = vld [vmem:[%s7646_s7 + $0x78] sm:$0xff] }
 0xbc6   : > { %3475 = vmatpush.msra.mxu2 %v4980_v39 }
 0xbc8   : > { %3476 = vmatpush.msra.mxu2 %v4979_v55 }
 0xbca   : > { %3477 = vmatpush.msra.mxu2 %v4978_v36 }
 0xbcc   : > { %3478 = vmatpush.msra.mxu2 %v4977_v21 }
 0xbf6   : > { %v3190_v12 = vpop.permute.xlu1 %3189 }
 0xbf7   : > { %v3241_v1 = vsel %vm527_vm0, %v6989_v46, %v3190_v12 }
 0xbfe   : > { %v3206_v58 = vpop.permute.xlu2 %3205  ;;  %v3192_v0 = vpop.permute.xlu0 %3191 }
 0xbff   : > { %v3245_v9 = vsel %vm941_vm1, %v3241_v1, %v3206_v58  ;;  %v3242_v42 = vsel %vm527_vm0, %v6994_v13, %v3192_v0 }
 0xc00   : > { %4964 = vmatmul.msk.f32.vlgmr.msrb.gmra.mxu2 %vm946_vm2, %v3245_v9 }
 0xc06   : > { %v3194_v46 = vpop.permute.xlu2 %3193 }
 0xc07   : > { %v3243_v5 = vsel %vm527_vm0, %v7005_v50, %v3194_v46 }
 0xc0e   : > { %v3162_v62 = vpop.permute.xlu2 %3161 }
 0xc16   : > { %v3212_v13 = vpop.permute.xlu2 %3211 }
 0xc1e   : > { %v3180_v26 = vpop.permute.xlu2 %3179 }
 0xc1f   : > { %v3208_v59 = vpop.permute.xlu1 %3207 }
 0xc20   : > { %v3246_v61 = vsel %vm941_vm1, %v3242_v42, %v3208_v59  ;;  %v5358_v42 = vld [vmem:[%s7643_s4 + $0x3] ss:$0 sm:$0xff] }
 0xc21   : > { %4965 = vmatmul.msk.f32.gmra.mxu2 %vm946_vm2, %v3246_v61 }
 0xc27   : > { %v3146_v7 = vpop.permute.xlu1 %3145  ;;  %v3210_v10 = vpop.permute.xlu0 %3209 }
 0xc28   : > { %v3247_v11 = vsel %vm941_vm1, %v3243_v5, %v3210_v10  ;;  %v3231_v25 = vsel %vm527_vm0, %v6879_v31, %v3146_v7 }
 0xc29   : > { %4966 = vmatmul.msk.f32.gmra.mxu2 %vm946_vm2, %v3247_v11  ;;  %v3235_v16 = vsel %vm941_vm1, %v3231_v25, %v3162_v62 }
 0xc2f   : > { %v3196_v44 = vpop.permute.xlu1 %3195  ;;  %v3178_v15 = vpop.permute.xlu0 %3177 }
 0xc30   : > { %v3244_v17 = vsel %vm527_vm0, %v7019_v63, %v3196_v44  ;;  %v3239_v22 = vsel %vm946_vm2, %v3235_v16, %v3178_v15 }
 0xc31   : > { %3362 = vmatmul.f32.gmra.mxu0 %v3239_v22  ;;  %v3248_v50 = vsel %vm941_vm1, %v3244_v17, %v3212_v13 }
 0xc32   : > { %4967 = vmatmul.msk.f32.gmra.mxu2 %vm946_vm2, %v3248_v50 }
 0xc37   : > { %v3164_v24 = vpop.permute.xlu1 %3163  ;;  %v3148_v34 = vpop.permute.xlu0 %3147 }
 0xc38   : > { %v3232_v31 = vsel %vm527_vm0, %v6883_v38, %v3148_v34  ;;  %v7155_v38 = vpop.f32.mrf.mxu0 }
 0xc39   : > { %v3236_v47 = vsel %vm941_vm1, %v3232_v31, %v3164_v24  ;;  %v3329_v13 = vadd.f32 %v5358_v42, %v7155_v38 }
 0xc3a   : > { %4982 = vmatmul.msk.f32.vlgmr.msra.gmra.mxu2 %vm527_vm0, %v6780_v3  ;;  %v3240_v63 = vsel %vm946_vm2, %v3236_v47, %v3180_v26 }
 0xc3b   : > { %3365 = vmatmul.f32.gmra.mxu0 %v3240_v63 }
 0xc40   : > { %v3331_v40 = vpop.f32.mrf.mxu0 }
 0xc41   : > { %v3332_v7 = vadd.f32 %v5358_v42, %v3331_v40 }
 0xc42   : > { %4983 = vmatmul.msk.f32.gmra.mxu2 %vm527_vm0, %v6775_v60 }
 0xc43   : > { %4973 = vmatmul.msk.f32.vlgmr.msrb.gmra.mxu0 %vm527_vm0, %v6780_v3 }
 0xc48   : > { %v3334_v29 = vpop.f32.mrf.mxu0 }
 0xc49   : > { %v3335_v61 = vadd.f32 %v5358_v42, %v3334_v29  ;;  %v4986_v29 = vld [vmem:[%s5556_s18 + $0x580] sm:$0xff] }
 0xc4a   : > { %4984 = vmatmul.msk.f32.gmra.mxu2 %vm527_vm0, %v6771_v30 }
 0xc4b   : > { %4974 = vmatmul.msk.f32.gmra.mxu0 %vm527_vm0, %v6775_v60 }
 0xc50   : > { %v3337_v3 = vpop.f32.mrf.mxu0 }
 0xc51   : > { %v3338_v59 = vadd.f32 %v5358_v42, %v3337_v3 }
 0xc52   : > { %4985 = vmatmul.msk.f32.gmra.mxu2 %vm527_vm0, %v6766_v28 }
 0xc53   : > { %4975 = vmatmul.msk.f32.gmra.mxu0 %vm527_vm0, %v6771_v30 }
 0xc58   : > { %v7159_v20 = vpop.f32.mrf.mxu0 }
 0xc59   : > { %v3358_v22 = vadd.f32 %v7159_v20, %v3329_v13  ;;  %v4988_v20 = vld [vmem:[%s5556_s18 + $0x590] sm:$0xff]  ;;  %v5015_v13 = vld [vmem:[%s5556_s18 + $0x668] sm:$0xff] }
 0xc5b   : > { %4976 = vmatmul.msk.f32.gmra.mxu0 %vm527_vm0, %v6766_v28  ;;  %v5359_v28 = vld [vmem:[%s7647_s8 + $0x3] ss:$0 sm:$0xff] }
 0xc60   : > { %v3360_v60 = vpop.f32.mrf.mxu0 }
 0xc61   : > { %v3361_v11 = vadd.f32 %v3360_v60, %v3332_v7  ;;  %v4990_v60 = vld [vmem:[%s5556_s18 + $0x5a0] sm:$0xff] }
 0xc83   : > { %v7157_v37 = vpop.f32.mrf.mxu2 }
 0xc84   : > { %v3387_v31 = vadd.f32 %v7157_v37, %v3358_v22  ;;  %v4987_v37 = vld [vmem:[%s5556_s18 + $0x588] sm:$0xff] }
 0xc86   : > { %v3496_v38 = vmax.f32 %v3387_v31, 0.0 }
 0xca4   : > { %v3389_v8 = vpop.f32.mrf.mxu2 }
 0xca5   : > { %v3390_v44 = vadd.f32 %v3389_v8, %v3361_v11  ;;  %v4989_v8 = vld [vmem:[%s5556_s18 + $0x598] sm:$0xff]  ;;  %v5014_v11 = vld [vmem:[%s5556_s18 + $0x660] sm:$0xff] }
 0xca7   : > { %v3497_v26 = vmax.f32 %v3390_v44, 0.0 }
 0xcac   : > { %v3392_v19 = vpop.f32.mrf.mxu2 }
 0xcae   : > { %v3363_v49 = vpop.f32.mrf.mxu0 }
 0xcaf   : > { %v3364_v5 = vadd.f32 %v3363_v49, %v3335_v61  ;;  %v4992_v49 = vld [vmem:[%s5556_s18 + $0x5b0] sm:$0xff]  ;;  %v5105_v61 = vld [vmem:[%s7642_s3 + $0x678] sm:$0xff] }
 0xcb0   : > { %4101 = vmatpush.msrb.mxu1 %v5105_v61 }
 0xcb1   : > { %v3393_v25 = vadd.f32 %v3392_v19, %v3364_v5  ;;  %v4991_v19 = vld [vmem:[%s5556_s18 + $0x5a8] sm:$0xff]  ;;  %v5013_v5 = vld [vmem:[%s5556_s18 + $0x658] sm:$0xff] }
 0xcb3   : > { %v3498_v50 = vmax.f32 %v3393_v25, 0.0 }
 0xcb5   : > { %v3395_v32 = vpop.f32.mrf.mxu2 }
 0xcb8   : > { %v3366_v51 = vpop.f32.mrf.mxu0 }
 0xcb9   : > { %v3367_v62 = vadd.f32 %v3366_v51, %v3338_v59  ;;  %v4994_v51 = vld [vmem:[%s5556_s18 + $0x5c0] sm:$0xff]  ;;  %v5012_v59 = vld [vmem:[%s5556_s18 + $0x650] sm:$0xff] }
 0xcbb   : > { %v3396_v10 = vadd.f32 %v3395_v32, %v3367_v62  ;;  %v4993_v32 = vld [vmem:[%s5556_s18 + $0x5b8] sm:$0xff] }
 0xcbd   : > { %v3480_v14 = vpop.f32.mrf.mxu2  ;;  %v3499_v15 = vmax.f32 %v3396_v10, 0.0 }
 0xcbe   : > { %v3481_v21 = vadd.f32 %v5359_v28, %v3480_v14  ;;  %v4995_v14 = vld [vmem:[%s5556_s18 + $0x5c8] sm:$0xff] }
 0xcc0   : > { %v3437_v30 = vpop.f32.mrf.mxu0 }
 0xcc1   : > { %v3438_v36 = vadd.f32 %v5360_v18, %v3437_v30  ;;  %v4996_v30 = vld [vmem:[%s5556_s18 + $0x5d0] sm:$0xff] }
 0xcc5   : > { %v3483_v23 = vpop.f32.mrf.mxu2 }
 0xcc6   : > { %v3484_v41 = vadd.f32 %v5359_v28, %v3483_v23  ;;  %v4998_v23 = vld [vmem:[%s5556_s18 + $0x5e0] sm:$0xff] }
 0xcc8   : > { %v3440_v33 = vpop.f32.mrf.mxu0  ;;  %5412 = vtanh.f32 %v3484_v41  ;;  %v4999_v41 = vld [vmem:[%s5556_s18 + $0x5e8] sm:$0xff] }
 0xcc9   : > { %v3441_v45 = vadd.f32 %v5360_v18, %v3440_v33  ;;  %v5001_v33 = vld [vmem:[%s5556_s18 + $0x5f8] sm:$0xff] }
 0xccb   : > { %5414 = vtanh.f32 %v3441_v45 }
 0xccd   : > { %v3486_v48 = vpop.f32.mrf.mxu2 }
 0xcce   : > { %v3487_v6 = vadd.f32 %v5359_v28, %v3486_v48  ;;  %v5413_v27 = vpop.eup %5412  ;;  %v5002_v48 = vld [vmem:[%s5556_s18 + $0x600] sm:$0xff] }
 0xcd0   : > { %v3443_v35 = vpop.f32.mrf.mxu0  ;;  %5416 = vtanh.f32 %v3487_v6 }
 0xcd1   : > { %v5415_v2 = vpop.eup %5414  ;;  %v3444_v52 = vadd.f32 %v5360_v18, %v3443_v35 }
 0xcd2   : > { %v3501_v4 = vmul.f32 %v5415_v2, %v5413_v27  ;;  %v5003_v27 = vld [vmem:[%s5556_s18 + $0x608] sm:$0xff]  ;;  %v5004_v2 = vld [vmem:[%s5556_s18 + $0x610] sm:$0xff] }
 0xcd3   : > { %5418 = vtanh.f32 %v3444_v52 }
 0xcd4   : > { %3510 = vrot.lane.b32.xlu2 %v3501_v4, %s5455_s16  ;;  %v5005_v4 = vld [vmem:[%s5556_s18 + $0x618] sm:$0xff] }
 0xcd5   : > { %v3489_v53 = vpop.f32.mrf.mxu2 }
 0xcd6   : > { %v3490_v12 = vadd.f32 %v5359_v28, %v3489_v53  ;;  %v5417_v1 = vpop.eup %5416  ;;  %v4997_v28 = vld [vmem:[%s5556_s18 + $0x5d8] sm:$0xff] }
 0xcd8   : > { %v3446_v58 = vpop.f32.mrf.mxu0  ;;  %5420 = vtanh.f32 %v3490_v12  ;;  %v5006_v12 = vld [vmem:[%s5556_s18 + $0x620] sm:$0xff] }
 0xcd9   : > { %v5419_v9 = vpop.eup %5418  ;;  %v3447_v39 = vadd.f32 %v5360_v18, %v3446_v58  ;;  %v5000_v18 = vld [vmem:[%s5556_s18 + $0x5f0] sm:$0xff]  ;;  %v5007_v58 = vld [vmem:[%s5556_s18 + $0x628] sm:$0xff] }
 0xcda   : > { %v3502_v55 = vmul.f32 %v5419_v9, %v5417_v1 }
 0xcdb   : > { %5422 = vtanh.f32 %v3447_v39 }
 0xcdc   : > { %3512 = vrot.lane.b32.xlu1 %v3502_v55, %s5455_s16  ;;  %5424 = vtanh.f32 %v3438_v36  ;;  %v5008_v55 = vld [vmem:[%s5556_s18 + $0x630] sm:$0xff] }
 0xcdd   : > { %5426 = vtanh.f32 %v3481_v21  ;;  %v5009_v21 = vld [vmem:[%s5556_s18 + $0x638] sm:$0xff] }
 0xcde   : > { %v5421_v56 = vpop.eup %5420 }
 0xce1   : > { %v5423_v46 = vpop.eup %5422 }
 0xce2   : > { %v3503_v43 = vmul.f32 %v5423_v46, %v5421_v56  ;;  %v5425_v54 = vpop.eup %5424 }
 0xce3   : > { %v5427_v0 = vpop.eup %5426 }
 0xce4   : > { %3514 = vrot.lane.b32.xlu0 %v3503_v43, %s5455_s16  ;;  %v3500_v57 = vmul.f32 %v5427_v0, %v5425_v54  ;;  %v5010_v43 = vld [vmem:[%s5556_s18 + $0x640] sm:$0xff]  ;;  %v5011_v0 = vld [vmem:[%s5556_s18 + $0x648] sm:$0xff] }
 0xcec   : > { %3508 = vrot.lane.b32.xlu0 %v3500_v57, %s5455_s16 }
 0xd2e   : > { %v3511_v34 = vpop.permute.xlu2 %3510 }
 0xd2f   : > { %v7186_v63 = vsel %vm1236_vm3, %v3497_v26, %v3511_v34  ;;  %v5018_v26 = vld [vmem:[%s5556_s18 + $0x680] sm:$0xff] }
 0xd4e   : > { %v3513_v16 = vpop.permute.xlu1 %3512 }
 0xd4f   : > { %v7182_v47 = vsel %vm1236_vm3, %v3498_v50, %v3513_v16  ;;  %v5017_v50 = vld [vmem:[%s5556_s18 + $0x678] sm:$0xff] }
 0xd56   : > { %v3515_v17 = vpop.permute.xlu0 %3514 }
 0xd57   : > { %v7177_v24 = vsel %vm1236_vm3, %v3499_v15, %v3515_v17  ;;  %v5104_v15 = vld [vmem:[%s7642_s3 + $0x670] sm:$0xff] }
 0xd58   : > { %3713 = vmatpush.msra.mxu0 %v7177_v24  ;;  %4102 = vmatpush.msrb.mxu1 %v5104_v15  ;;  %v5016_v17 = vld [vmem:[%s5556_s18 + $0x670] sm:$0xff] }
 0xd5a   : > { %3714 = vmatpush.msra.mxu0 %v7182_v47 }
 0xd5c   : > { %3715 = vmatpush.msra.mxu0 %v7186_v63 }
 0xd5e   : > { %v3509_v40 = vpop.permute.xlu0 %3508 }
 0xd5f   : > { %v7191_v3 = vsel %vm1236_vm3, %v3496_v38, %v3509_v40  ;;  %v5103_v38 = vld [vmem:[%s7642_s3 + $0x668] sm:$0xff] }
 0xd60   : > { %3716 = vmatpush.msra.mxu0 %v7191_v3  ;;  %4103 = vmatpush.msrb.mxu1 %v5103_v38 }
 0xd61   : > { %5030 = vmatmul.msk.f32.vlgmr.msra.gmra.mxu0 %vm527_vm0, %v4986_v29  ;;  %v5019_v29 = vld [vmem:[%s5556_s18 + $0x688] sm:$0xff] }
 0xd69   : > { %5031 = vmatmul.msk.f32.gmra.mxu0 %vm527_vm0, %v4987_v37 }
 0xd71   : > { %5032 = vmatmul.msk.f32.gmra.mxu0 %vm527_vm0, %v4988_v20  ;;  %v5020_v20 = vld [vmem:[%s5556_s18 + $0x690] sm:$0xff] }
 0xd79   : > { %5033 = vmatmul.msk.f32.gmra.mxu0 %vm527_vm0, %v4989_v8 }
 0xd81   : > { %5034 = vmatmul.msk.f32.gmra.mxu0 %vm527_vm0, %v4990_v60  ;;  %v5021_v60 = vld [vmem:[%s5556_s18 + $0x698] sm:$0xff] }
 0xd89   : > { %5035 = vmatmul.msk.f32.gmra.mxu0 %vm527_vm0, %v4991_v19  ;;  %v5102_v19 = vld [vmem:[%s7642_s3 + $0x660] sm:$0xff] }
 0xd8a   : > { %4104 = vmatpush.msrb.mxu1 %v5102_v19 }
 0xd91   : > { %5036 = vmatmul.msk.f32.gmra.mxu0 %vm527_vm0, %v4992_v49 }
 0xd99   : > { %5037 = vmatmul.msk.f32.gmra.mxu0 %vm527_vm0, %v4993_v32  ;;  %v5022_v32 = vld [vmem:[%s5556_s18 + $0x6a0] sm:$0xff] }
 0xda1   : > { %5038 = vmatmul.msk.f32.gmra.mxu0 %vm527_vm0, %v4994_v51  ;;  %v5089_v51 = vld [vmem:[%s7642_s3 + $0x5f8] sm:$0xff] }
 0xda2   : > { %4072 = vmatpush.msrb.mxu2 %v5089_v51 }
 0xda9   : > { %5039 = vmatmul.msk.f32.gmra.mxu0 %vm527_vm0, %v4995_v14  ;;  %v5088_v14 = vld [vmem:[%s7642_s3 + $0x5f0] sm:$0xff] }
 0xdaa   : > { %4073 = vmatpush.msrb.mxu2 %v5088_v14 }
 0xdb1   : > { %5040 = vmatmul.msk.f32.gmra.mxu0 %vm527_vm0, %v4996_v30  ;;  %v5087_v30 = vld [vmem:[%s7642_s3 + $0x5e8] sm:$0xff] }
 0xdb2   : > { %4074 = vmatpush.msrb.mxu2 %v5087_v30 }
 0xdb9   : > { %5041 = vmatmul.msk.f32.gmra.mxu0 %vm527_vm0, %v4997_v28  ;;  %v5086_v28 = vld [vmem:[%s7642_s3 + $0x5e0] sm:$0xff] }
 0xdba   : > { %4075 = vmatpush.msrb.mxu2 %v5086_v28 }
 0xdc1   : > { %5042 = vmatmul.msk.f32.gmra.mxu0 %vm527_vm0, %v4998_v23 }
 0xdc9   : > { %5043 = vmatmul.msk.f32.gmra.mxu0 %vm527_vm0, %v4999_v41  ;;  %v5023_v41 = vld [vmem:[%s5556_s18 + $0x6a8] sm:$0xff] }
 0xdd1   : > { %5044 = vmatmul.msk.f32.gmra.mxu0 %vm527_vm0, %v5000_v18 }
 0xdd9   : > { %5045 = vmatmul.msk.f32.gmra.mxu0 %vm527_vm0, %v5001_v33  ;;  %v5085_v33 = vld [vmem:[%s7642_s3 + $0x5d8] sm:$0xff] }
 0xdda   : > { %4076 = vmatpush.msrb.mxu2 %v5085_v33 }
 0xdde   : > { %v7225_v45 = vpop.f32.mrf.mxu0 }
 0xde1   : > { %5046 = vmatmul.msk.f32.gmra.mxu0 %vm527_vm0, %v5002_v48  ;;  %v5084_v48 = vld [vmem:[%s7642_s3 + $0x5d0] sm:$0xff] }
 0xde2   : > { %4077 = vmatpush.msrb.mxu2 %v5084_v48 }
 0xde6   : > { %v7229_v6 = vpop.f32.mrf.mxu0 }
 0xde9   : > { %5047 = vmatmul.msk.f32.gmra.mxu0 %vm527_vm0, %v5003_v27  ;;  %v5083_v27 = vld [vmem:[%s7642_s3 + $0x5c8] sm:$0xff] }
 0xdea   : > { %4078 = vmatpush.msrb.mxu2 %v5083_v27  ;;  %v5098_v27 = vld [vmem:[%s7642_s3 + $0x640] sm:$0xff] }
 0xdee   : > { %v7233_v35 = vpop.f32.mrf.mxu0 }
 0xdf1   : > { %5048 = vmatmul.msk.f32.gmra.mxu0 %vm527_vm0, %v5004_v2  ;;  %v5101_v2 = vld [vmem:[%s7642_s3 + $0x658] sm:$0xff] }
 0xdf2   : > { %4105 = vmatpush.msrb.mxu1 %v5101_v2 }
 0xdf6   : > { %v7237_v52 = vpop.f32.mrf.mxu0 }
 0xdf9   : > { %5049 = vmatmul.msk.f32.gmra.mxu0 %vm527_vm0, %v5005_v4  ;;  %v5082_v4 = vld [vmem:[%s7642_s3 + $0x5c0] sm:$0xff] }
 0xdfa   : > { %4079 = vmatpush.msrb.mxu2 %v5082_v4 }
 0xdfe   : > { %v3730_v53 = vpop.f32.mrf.mxu0 }
 0xe01   : > { %5050 = vmatmul.msk.f32.gmra.mxu0 %vm527_vm0, %v5006_v12  ;;  %v5024_v12 = vld [vmem:[%s5556_s18 + $0x6b0] sm:$0xff] }
 0xe06   : > { %v3733_v1 = vpop.f32.mrf.mxu0 }
 0xe07   : > { %v5301_v9 = vpack.i.bf16 %v3733_v1, %v3730_v53  ;;  %v5081_v1 = vld [vmem:[%s7642_s3 + $0x5b8] sm:$0xff] }
 0xe08   : > { %4080 = vmatpush.msrb.mxu2 %v5081_v1 }
 0xe09   : > { %5051 = vmatmul.msk.f32.gmra.mxu0 %vm527_vm0, %v5007_v58  ;;  %5302 = vrot.lane.b32.xlu1 %v5301_v9, %s5452_s19  ;;  %v5080_v58 = vld [vmem:[%s7642_s3 + $0x5b0] sm:$0xff]  ;;  %v5079_v9 = vld [vmem:[%s7642_s3 + $0x5a8] sm:$0xff] }
 0xe0a   : > { %4081 = vmatpush.msrb.mxu2 %v5080_v58 }
 0xe0c   : > { %4082 = vmatpush.msrb.mxu2 %v5079_v9 }
 0xe0e   : > { %v3736_v39 = vpop.f32.mrf.mxu0 }
 0xe11   : > { %5052 = vmatmul.msk.f32.gmra.mxu0 %vm527_vm0, %v5008_v55 }
 0xe16   : > { %v3739_v36 = vpop.f32.mrf.mxu0 }
 0xe17   : > { %v5316_v56 = vpack.i.bf16 %v3739_v36, %v3736_v39  ;;  %v5078_v39 = vld [vmem:[%s7642_s3 + $0x5a0] sm:$0xff]  ;;  %v5025_v36 = vld [vmem:[%s5556_s18 + $0x6b8] sm:$0xff] }
 0xe18   : > { %4083 = vmatpush.msrb.mxu2 %v5078_v39 }
 0xe19   : > { %5053 = vmatmul.msk.f32.gmra.mxu0 %vm527_vm0, %v5009_v21  ;;  %5317 = vrot.lane.b32.xlu1 %v5316_v56, %s5452_s19  ;;  %v5077_v21 = vld [vmem:[%s7642_s3 + $0x598] sm:$0xff]  ;;  %v5076_v56 = vld [vmem:[%s7642_s3 + $0x590] sm:$0xff] }
 0xe1a   : > { %4084 = vmatpush.msrb.mxu2 %v5077_v21 }
 0xe1c   : > { %4085 = vmatpush.msrb.mxu2 %v5076_v56 }
 0xe1e   : > { %v3742_v46 = vpop.f32.mrf.mxu0 }
 0xe21   : > { %5054 = vmatmul.msk.f32.gmra.mxu0 %vm527_vm0, %v5010_v43  ;;  %v5074_v43 = vld [vmem:[%s7642_s3 + $0x580] sm:$0xff] }
 0xe26   : > { %v3745_v54 = vpop.f32.mrf.mxu0 }
 0xe27   : > { %v5306_v57 = vpack.i.bf16 %v3745_v54, %v3742_v46  ;;  %v5075_v46 = vld [vmem:[%s7642_s3 + $0x588] sm:$0xff] }
 0xe28   : > { %4086 = vmatpush.msrb.mxu2 %v5075_v46 }
 0xe29   : > { %5055 = vmatmul.msk.f32.gmra.mxu0 %vm527_vm0, %v5011_v0  ;;  %5307 = vrot.lane.b32.xlu2 %v5306_v57, %s5453_s20  ;;  %v5026_v0 = vld [vmem:[%s5556_s18 + $0x6c0] sm:$0xff]  ;;  %v5100_v57 = vld [vmem:[%s7642_s3 + $0x650] sm:$0xff] }
 0xe2a   : > { %4087 = vmatpush.msrb.mxu2 %v5074_v43  ;;  %4106 = vmatpush.msrb.mxu1 %v5100_v57  ;;  %v5095_v43 = vld [vmem:[%s7642_s3 + $0x628] sm:$0xff]  ;;  %v5093_v57 = vld [vmem:[%s7642_s3 + $0x618] sm:$0xff] }
 0xe2e   : > { %v3748_v42 = vpop.f32.mrf.mxu0 }
 0xe31   : > { %5056 = vmatmul.msk.f32.gmra.mxu0 %vm527_vm0, %v5012_v59  ;;  %v5027_v59 = vld [vmem:[%s5556_s18 + $0x6c8] sm:$0xff] }
 0xe36   : > { %v3751_v62 = vpop.f32.mrf.mxu0 }
 0xe37   : > { %v5321_v7 = vpack.i.bf16 %v3751_v62, %v3748_v42 }
 0xe39   : > { %5057 = vmatmul.msk.f32.gmra.mxu0 %vm527_vm0, %v5013_v5  ;;  %5322 = vrot.lane.b32.xlu2 %v5321_v7, %s5453_s20  ;;  %v5028_v5 = vld [vmem:[%s5556_s18 + $0x6d0] sm:$0xff] }
 0xe3e   : > { %v3754_v10 = vpop.f32.mrf.mxu0 }
 0xe41   : > { %5058 = vmatmul.msk.f32.gmra.mxu0 %vm527_vm0, %v5014_v11 }
 0xe46   : > { %v3757_v25 = vpop.f32.mrf.mxu0 }
 0xe47   : > { %v5311_v44 = vpack.i.bf16 %v3757_v25, %v3754_v10  ;;  %v5029_v25 = vld [vmem:[%s5556_s18 + $0x6d8] sm:$0xff]  ;;  %s478_s18 = scalar_lea.vmem %s7652_s13, %s7654_s28 }
 0xe49   : > { %5059 = vmatmul.msk.f32.gmra.mxu0 %vm527_vm0, %v5015_v13  ;;  %5312 = vrot.lane.b32.xlu0 %v5311_v44, %s5454_s21  ;;  %v5099_v13 = vld [vmem:[%s7642_s3 + $0x648] sm:$0xff] }
 0xe4a   : > { %4107 = vmatpush.msrb.mxu1 %v5099_v13 }
 0xe4c   : > { %4108 = vmatpush.msrb.mxu1 %v5098_v27 }
 0xe4e   : > { %v3760_v16 = vpop.f32.mrf.mxu0 }
 0xe51   : > { %5060 = vmatmul.msk.f32.gmra.mxu0 %vm527_vm0, %v5016_v17 }
 0xe56   : > { %v3763_v22 = vpop.f32.mrf.mxu0 }
 0xe57   : > { %v5326_v34 = vpack.i.bf16 %v3763_v22, %v3760_v16 }
 0xe59   : > { %5061 = vmatmul.msk.f32.gmra.mxu0 %vm527_vm0, %v5017_v50  ;;  %5327 = vrot.lane.b32.xlu0 %v5326_v34, %s5454_s21 }
 0xe5e   : > { %v7277_v31 = vpop.f32.mrf.mxu0 }
 0xe61   : > { %5062 = vmatmul.msk.f32.gmra.mxu0 %vm527_vm0, %v5018_v26 }
 0xe66   : > { %v7284_v40 = vpop.f32.mrf.mxu0 }
 0xe69   : > { %5063 = vmatmul.msk.f32.gmra.mxu0 %vm527_vm0, %v5019_v29 }
 0xe6e   : > { %v7288_v37 = vpop.f32.mrf.mxu0 }
 0xe71   : > { %5064 = vmatmul.msk.f32.gmra.mxu0 %vm527_vm0, %v5020_v20 }
 0xe76   : > { %v7292_v8 = vpop.f32.mrf.mxu0 }
 0xe79   : > { %5065 = vmatmul.msk.f32.gmra.mxu0 %vm527_vm0, %v5021_v60 }
 0xe7b   : > { %v5303_v7 = vpop.permute.xlu1 %5302 }
 0xe7c   : > { %v5304_v44 = vunpack.i.l.bf16 %v5303_v7  ;;  %v5305_v38 = vunpack.i.h.bf16 %v5303_v7 }
 0xe7e   : > { %v3778_v49 = vpop.f32.mrf.mxu0  ;;  %v3978_v17 = vsel %vm527_vm0, %v7225_v45, %v5304_v44  ;;  %v3979_v60 = vsel %vm527_vm0, %v7229_v6, %v5305_v38 }
 0xe81   : > { %5066 = vmatmul.msk.f32.gmra.mxu0 %vm527_vm0, %v5022_v32 }
 0xe83   : > { %v5308_v10 = vpop.permute.xlu2 %5307 }
 0xe84   : > { %v5309_v15 = vunpack.i.l.bf16 %v5308_v10  ;;  %v5310_v29 = vunpack.i.h.bf16 %v5308_v10 }
 0xe86   : > { %v3781_v23 = vpop.f32.mrf.mxu0  ;;  %v3982_v50 = vsel %vm941_vm1, %v3978_v17, %v5309_v15 }
 0xe87   : > { %v5331_v18 = vpack.i.bf16 %v3781_v23, %v3778_v49  ;;  %v3983_v49 = vsel %vm941_vm1, %v3979_v60, %v5310_v29 }
 0xe89   : > { %5067 = vmatmul.msk.f32.gmra.mxu0 %vm527_vm0, %v5023_v41  ;;  %5332 = vrot.lane.b32.xlu0 %v5331_v18, %s5452_s19 }
 0xe8b   : > { %v5318_v19 = vpop.permute.xlu1 %5317 }
 0xe8c   : > { %v5319_v30 = vunpack.i.l.bf16 %v5318_v19  ;;  %v5320_v2 = vunpack.i.h.bf16 %v5318_v19 }
 0xe8e   : > { %v7331_v53 = vpop.f32.mrf.mxu0  ;;  %v3980_v18 = vsel %vm527_vm0, %v7233_v35, %v5319_v30  ;;  %v3981_v1 = vsel %vm527_vm0, %v7237_v52, %v5320_v2  ;;  %v5096_v52 = vld [vmem:[%s7642_s3 + $0x630] sm:$0xff]  ;;  %v5135_v2 = vld [vmem:[%s7646_s7 + $0x98] sm:$0xff] }
 0xe8f   : > { %v5112_v30 = vld [vmem:[%s7642_s3 + $0x6b0] sm:$0xff] }
 0xe91   : > { %5068 = vmatmul.msk.f32.gmra.mxu0 %vm527_vm0, %v5024_v12 }
 0xe93   : > { %v5323_v32 = vpop.permute.xlu2 %5322 }
 0xe94   : > { %v5324_v28 = vunpack.i.l.bf16 %v5323_v32  ;;  %v5325_v4 = vunpack.i.h.bf16 %v5323_v32 }
 0xe96   : > { %v7347_v55 = vpop.f32.mrf.mxu0  ;;  %v3984_v6 = vsel %vm941_vm1, %v3980_v18, %v5324_v28  ;;  %v3985_v35 = vsel %vm941_vm1, %v3981_v1, %v5325_v4  ;;  %v5109_v28 = vld [vmem:[%s7642_s3 + $0x698] sm:$0xff]  ;;  %v5106_v18 = vld [vmem:[%s7642_s3 + $0x680] sm:$0xff]  ;;  %v5134_v4 = vld [vmem:[%s7646_s7 + $0x90] sm:$0xff] }
 0xe97   : > { %v5132_v1 = vld [vmem:[%s7646_s7 + $0x80] sm:$0xff] }
 0xe99   : > { %5069 = vmatmul.msk.f32.gmra.mxu0 %vm527_vm0, %v5025_v36  ;;  %v5097_v36 = vld [vmem:[%s7642_s3 + $0x638] sm:$0xff] }
 0xe9a   : > { %4109 = vmatpush.msrb.mxu1 %v5097_v36 }
 0xe9c   : > { %4110 = vmatpush.msrb.mxu1 %v5096_v52  ;;  %v5123_v52 = vld [vmem:[%s7644_s5 + $0x80] sm:$0xff] }
 0xe9e   : > { %v3790_v54 = vpop.f32.mrf.mxu0  ;;  %4111 = vmatpush.msrb.mxu1 %v5095_v43 }
 0xea1   : > { %5070 = vmatmul.msk.f32.gmra.mxu0 %vm527_vm0, %v5026_v0 }
 0xea6   : > { %v3793_v42 = vpop.f32.mrf.mxu0 }
 0xea7   : > { %v5336_v61 = vpack.i.bf16 %v3793_v42, %v3790_v54  ;;  %v5094_v54 = vld [vmem:[%s7642_s3 + $0x620] sm:$0xff]  ;;  %v5092_v42 = vld [vmem:[%s7642_s3 + $0x610] sm:$0xff] }
 0xea8   : > { %4112 = vmatpush.msrb.mxu1 %v5094_v54 }
 0xea9   : > { %5071 = vmatmul.msk.f32.gmra.mxu0 %vm527_vm0, %v5027_v59  ;;  %5337 = vrot.lane.b32.xlu1 %v5336_v61, %s5453_s20  ;;  %v5091_v59 = vld [vmem:[%s7642_s3 + $0x608] sm:$0xff]  ;;  %v5090_v61 = vld [vmem:[%s7642_s3 + $0x600] sm:$0xff] }
 0xeaa   : > { %4113 = vmatpush.msrb.mxu1 %v5093_v57  ;;  %v5361_v57 = vld [vmem:[%s7643_s4 + $0x4] ss:$0 sm:$0xff] }
 0xeac   : > { %4114 = vmatpush.msrb.mxu1 %v5092_v42 }
 0xeae   : > { %v7371_v62 = vpop.f32.mrf.mxu0  ;;  %4115 = vmatpush.msrb.mxu1 %v5091_v59 }
 0xeb0   : > { %4116 = vmatpush.msrb.mxu1 %v5090_v61 }
 0xeb1   : > { %5072 = vmatmul.msk.f32.gmra.mxu0 %vm527_vm0, %v5028_v5 }
 0xeb6   : > { %v7375_v11 = vpop.f32.mrf.mxu0 }
 0xeb9   : > { %5073 = vmatmul.msk.f32.gmra.mxu0 %vm527_vm0, %v5029_v25 }
 0xebb   : > { %v5313_v16 = vpop.permute.xlu0 %5312 }
 0xebc   : > { %v5314_v22 = vunpack.i.l.bf16 %v5313_v16  ;;  %v5315_v20 = vunpack.i.h.bf16 %v5313_v16 }
 0xebe   : > { %v3802_v34 = vpop.f32.mrf.mxu0  ;;  %v3986_v26 = vsel %vm946_vm2, %v3982_v50, %v5314_v22  ;;  %v3987_v45 = vsel %vm946_vm2, %v3983_v49, %v5315_v20 }
 0xebf   : > { %4088 = vmatmul.f32.vlgmr.msrb.gmra.mxu2 %v3986_v26 }
 0xec6   : > { %v3805_v51 = vpop.f32.mrf.mxu0 }
 0xec7   : > { %v5341_v14 = vpack.i.bf16 %v3805_v51, %v3802_v34  ;;  %4091 = vmatmul.f32.gmra.mxu2 %v3987_v45  ;;  %v5114_v45 = vld [vmem:[%s7642_s3 + $0x6c0] sm:$0xff] }
 0xec9   : > { %5342 = vrot.lane.b32.xlu2 %v5341_v14, %s5454_s21  ;;  %v5113_v14 = vld [vmem:[%s7642_s3 + $0x6b8] sm:$0xff] }
 0xecb   : > { %v5328_v23 = vpop.permute.xlu0 %5327 }
 0xecc   : > { %v5329_v41 = vunpack.i.l.bf16 %v5328_v23  ;;  %v5330_v12 = vunpack.i.h.bf16 %v5328_v23  ;;  %v5108_v23 = vld [vmem:[%s7642_s3 + $0x690] sm:$0xff] }
 0xece   : > { %v7394_v33 = vpop.f32.mrf.mxu0  ;;  %v3988_v48 = vsel %vm946_vm2, %v3984_v6, %v5329_v41  ;;  %v3989_v9 = vsel %vm946_vm2, %v3985_v35, %v5330_v12  ;;  %v5107_v41 = vld [vmem:[%s7642_s3 + $0x688] sm:$0xff]  ;;  %v5126_v35 = vld [vmem:[%s7644_s5 + $0x98] sm:$0xff] }
 0xecf   : > { %4094 = vmatmul.f32.gmra.mxu2 %v3988_v48  ;;  %v5133_v12 = vld [vmem:[%s7646_s7 + $0x88] sm:$0xff]  ;;  %4193 = vmatpush.msra.mxu1 %v5126_v35 }
 0xed6   : > { %v7403_v58 = vpop.f32.mrf.mxu0 }
 0xed7   : > { %4097 = vmatmul.f32.gmra.mxu2 %v3989_v9  ;;  %v5125_v9 = vld [vmem:[%s7644_s5 + $0x90] sm:$0xff] }
 0xed8   : > { %4194 = vmatpush.msra.mxu1 %v5125_v9 }
 0xede   : > { %v7406_v39 = vpop.f32.mrf.mxu0 }
 0xee6   : > { %v7411_v21 = vpop.f32.mrf.mxu0 }
 0xeee   : > { %v7413_v56 = vpop.f32.mrf.mxu0 }
 0xef6   : > { %v7415_v46 = vpop.f32.mrf.mxu0 }
 0xefb   : > { %v5333_v25 = vpop.permute.xlu0 %5332 }
 0xefc   : > { %v5334_v15 = vunpack.i.l.bf16 %v5333_v25  ;;  %v5335_v29 = vunpack.i.h.bf16 %v5333_v25 }
 0xefe   : > { %v3826_v0 = vpop.f32.mrf.mxu0  ;;  %v3990_v22 = vsel %vm527_vm0, %v7277_v31, %v5334_v15  ;;  %v3991_v19 = vsel %vm527_vm0, %v7284_v40, %v5335_v29  ;;  %v5117_v40 = vld [vmem:[%s7642_s3 + $0x6d8] sm:$0xff] }
 0xeff   : > { %3950 = vrot.lane.b32.xlu1 %v3826_v0, %s5452_s19  ;;  %4134 = vmatpush.msra.mxu2 %v5117_v40 }
 0xf06   : > { %v3829_v5 = vpop.f32.mrf.mxu0 }
 0xf07   : > { %3952 = vrot.lane.b32.xlu0 %v3829_v5, %s5452_s19 }
 0xf0e   : > { %v3832_v7 = vpop.f32.mrf.mxu0 }
 0xf16   : > { %v3835_v10 = vpop.f32.mrf.mxu0 }
 0xf1b   : > { %v5338_v13 = vpop.permute.xlu1 %5337 }
 0xf1c   : > { %v5339_v16 = vunpack.i.l.bf16 %v5338_v13  ;;  %v5340_v20 = vunpack.i.h.bf16 %v5338_v13 }
 0xf1e   : > { %v3838_v44 = vpop.f32.mrf.mxu0  ;;  %v3994_v34 = vsel %vm941_vm1, %v3990_v22, %v5339_v16  ;;  %v3995_v49 = vsel %vm941_vm1, %v3991_v19, %v5340_v20 }
 0xf1f   : > { %3966 = vrot.lane.b32.xlu2 %v3838_v44, %s5453_s20 }
 0xf23   : > { %v5343_v17 = vpop.permute.xlu2 %5342 }
 0xf24   : > { %v5344_v50 = vunpack.i.l.bf16 %v5343_v17  ;;  %v5345_v60 = vunpack.i.h.bf16 %v5343_v17 }
 0xf26   : > { %v3841_v26 = vpop.f32.mrf.mxu0  ;;  %v3998_v38 = vsel %vm946_vm2, %v3994_v34, %v5344_v50  ;;  %v3999_v32 = vsel %vm946_vm2, %v3995_v49, %v5345_v60 }
 0xf27   : > { %4117 = vmatmul.f32.vlgmr.msrb.gmra.mxu1 %v3998_v38  ;;  %3954 = vrot.lane.b32.xlu2 %v3832_v7, %s5452_s19 }
 0xf28   : > { %3968 = vrot.lane.b32.xlu1 %v3841_v26, %s5453_s20 }
 0xf2e   : > { %v3844_v31 = vpop.f32.mrf.mxu0 }
 0xf2f   : > { %4120 = vmatmul.f32.gmra.mxu1 %v3999_v32  ;;  %3922 = vrot.lane.b32.xlu2 %v7371_v62, %s5453_s20  ;;  %v5116_v62 = vld [vmem:[%s7642_s3 + $0x6d0] sm:$0xff] }
 0xf30   : > { %3906 = vrot.lane.b32.xlu1 %v7331_v53, %s5452_s19  ;;  %3970 = vrot.lane.b32.xlu0 %v3844_v31, %s5453_s20  ;;  %v5115_v53 = vld [vmem:[%s7642_s3 + $0x6c8] sm:$0xff] }
 0xf31   : > { %4135 = vmatpush.msra.mxu2 %v5116_v62  ;;  %v4285_v62 = vld [vmem:[%s7578_s12] sm:$0xff] }
 0xf33   : > { %4136 = vmatpush.msra.mxu2 %v5115_v53 }
 0xf35   : > { %4137 = vmatpush.msra.mxu2 %v5114_v45 }
 0xf36   : > { %v3847_v51 = vpop.f32.mrf.mxu0 }
 0xf37   : > { %3972 = vrot.lane.b32.xlu2 %v3847_v51, %s5453_s20  ;;  %4138 = vmatpush.msra.mxu2 %v5113_v14 }
 0xf38   : > { %3956 = vrot.lane.b32.xlu1 %v3835_v10, %s5452_s19  ;;  %3938 = vrot.lane.b32.xlu0 %v7394_v33, %s5454_s21 }
 0xf39   : > { %4139 = vmatpush.msra.mxu2 %v5112_v30 }
 0xf3f   : > { %3940 = vrot.lane.b32.xlu2 %v7403_v58, %s5454_s21 }
 0xf40   : > { %3924 = vrot.lane.b32.xlu1 %v7375_v11, %s5453_s20  ;;  %3908 = vrot.lane.b32.xlu0 %v7347_v55, %s5452_s19  ;;  %v5111_v11 = vld [vmem:[%s7642_s3 + $0x6a8] sm:$0xff]  ;;  %v5110_v55 = vld [vmem:[%s7642_s3 + $0x6a0] sm:$0xff] }
 0xf41   : > { %4140 = vmatpush.msra.mxu2 %v5111_v11 }
 0xf42   : > { %v4089_v59 = vpop.f32.mrf.mxu2 }
 0xf43   : > { %4141 = vmatpush.msra.mxu2 %v5110_v55  ;;  %v4090_v10 = vadd.f32 %v5361_v57, %v4089_v59 }
 0xf45   : > { %4142 = vmatpush.msra.mxu2 %v5109_v28 }
 0xf47   : > { %4143 = vmatpush.msra.mxu2 %v5108_v23 }
 0xf49   : > { %4144 = vmatpush.msra.mxu2 %v5107_v41  ;;  %v5362_v41 = vld [vmem:[%s7647_s8 + $0x4] ss:$0 sm:$0xff] }
 0xf4b   : > { %4145 = vmatpush.msra.mxu2 %v5106_v18 }
 0xf4d   : > { %4236 = vmatpush.msrb.mxu2 %v5135_v2 }
 0xf4f   : > { %4237 = vmatpush.msrb.mxu2 %v5134_v4 }
 0xf51   : > { %4238 = vmatpush.msrb.mxu2 %v5133_v12 }
 0xf53   : > { %4239 = vmatpush.msrb.mxu2 %v5132_v1 }
 0xf71   : > { %v3951_v6 = vpop.permute.xlu1 %3950 }
 0xf72   : > { %v4002_v33 = vsel %vm527_vm0, %v7406_v39, %v3951_v6  ;;  %v5124_v39 = vld [vmem:[%s7644_s5 + $0x88] sm:$0xff] }
 0xf73   : > { %4195 = vmatpush.msra.mxu1 %v5124_v39 }
 0xf75   : > { %4196 = vmatpush.msra.mxu1 %v5123_v52 }
 0xf79   : > { %v3967_v48 = vpop.permute.xlu2 %3966  ;;  %v3953_v36 = vpop.permute.xlu0 %3952 }
 0xf7a   : > { %v4006_v27 = vsel %vm941_vm1, %v4002_v33, %v3967_v48  ;;  %v4003_v43 = vsel %vm527_vm0, %v7411_v21, %v3953_v36  ;;  %v5363_v33 = vld [vmem:[%s7645_s6 + $0x4] ss:$0 sm:$0xff] }
 0xf7b   : > { %5119 = vmatmul.msk.f32.vlgmr.msra.gmra.mxu2 %vm946_vm2, %v4006_v27 }
 0xf81   : > { %v3955_v58 = vpop.permute.xlu2 %3954 }
 0xf82   : > { %v4004_v61 = vsel %vm527_vm0, %v7413_v56, %v3955_v58 }
 0xf89   : > { %v3923_v42 = vpop.permute.xlu2 %3922 }
 0xf91   : > { %v3973_v15 = vpop.permute.xlu2 %3972 }
 0xf99   : > { %v3941_v29 = vpop.permute.xlu2 %3940 }
 0xf9a   : > { %v3969_v54 = vpop.permute.xlu1 %3968 }
 0xf9b   : > { %v4007_v0 = vsel %vm941_vm1, %v4003_v43, %v3969_v54 }
 0xf9c   : > { %5120 = vmatmul.msk.f32.gmra.mxu2 %vm946_vm2, %v4007_v0 }
 0xfa2   : > { %v3907_v5 = vpop.permute.xlu1 %3906  ;;  %v3971_v7 = vpop.permute.xlu0 %3970 }
 0xfa3   : > { %v4008_v21 = vsel %vm941_vm1, %v4004_v61, %v3971_v7  ;;  %v3992_v44 = vsel %vm527_vm0, %v7288_v37, %v3907_v5 }
 0xfa4   : > { %5121 = vmatmul.msk.f32.gmra.mxu2 %vm946_vm2, %v4008_v21  ;;  %v4118_v25 = vpop.f32.mrf.mxu1  ;;  %v3996_v22 = vsel %vm941_vm1, %v3992_v44, %v3923_v42  ;;  %v4286_v42 = vld [vmem:[%s7578_s12 + $0x8] sm:$0xff] }
 0xfa5   : > { %v4119_v13 = vadd.f32 %v4118_v25, %v4090_v10 }
 0xfaa   : > { %v3957_v16 = vpop.permute.xlu1 %3956  ;;  %v3939_v17 = vpop.permute.xlu0 %3938 }
 0xfab   : > { %v4005_v56 = vsel %vm527_vm0, %v7415_v46, %v3957_v16  ;;  %v4000_v50 = vsel %vm946_vm2, %v3996_v22, %v3939_v17  ;;  %v4288_v17 = vld [vmem:[%s7578_s12 + $0x18] sm:$0xff] }
 0xfac   : > { %4123 = vmatmul.f32.gmra.mxu1 %v4000_v50  ;;  %v4009_v34 = vsel %vm941_vm1, %v4005_v56, %v3973_v15  ;;  %v4121_v31 = vpop.f32.mrf.mxu1  ;;  %v4316_v56 = vld [vmem:[%s7648_s9 + $0x18] sm:$0xff]  ;;  %v4315_v50 = vld [vmem:[%s7648_s9 + $0x10] sm:$0xff] }
 0xfad   : > { %5122 = vmatmul.msk.f32.gmra.mxu2 %vm946_vm2, %v4009_v34  ;;  %4341 = vmatpush.msrb.mxu1 %v4316_v56  ;;  %v4314_v34 = vld [vmem:[%s7648_s9 + $0x8] sm:$0xff] }
 0xfaf   : > { %4342 = vmatpush.msrb.mxu1 %v4315_v50 }
 0xfb1   : > { %4343 = vmatpush.msrb.mxu1 %v4314_v34 }
 0xfb2   : > { %v3925_v26 = vpop.permute.xlu1 %3924  ;;  %v3909_v38 = vpop.permute.xlu0 %3908 }
 0xfb3   : > { %v3993_v37 = vsel %vm527_vm0, %v7292_v8, %v3909_v38  ;;  %v4092_v8 = vpop.f32.mrf.mxu2 }
 0xfb4   : > { %v3997_v20 = vsel %vm941_vm1, %v3993_v37, %v3925_v26  ;;  %v4093_v32 = vadd.f32 %v5361_v57, %v4092_v8  ;;  %v4313_v26 = vld [vmem:[%s7648_s9] sm:$0xff] }
 0xfb5   : > { %5137 = vmatmul.msk.f32.vlgmr.msrb.gmra.mxu2 %vm527_vm0, %v7191_v3  ;;  %v4001_v46 = vsel %vm946_vm2, %v3997_v20, %v3941_v29  ;;  %4344 = vmatpush.msrb.mxu1 %v4313_v26 }
 0xfb6   : > { %4126 = vmatmul.f32.gmra.mxu1 %v4001_v46  ;;  %v4122_v51 = vadd.f32 %v4121_v31, %v4093_v32 }
 0xfbb   : > { %v4095_v60 = vpop.f32.mrf.mxu2 }
 0xfbc   : > { %v4096_v53 = vadd.f32 %v5361_v57, %v4095_v60 }
 0xfbd   : > { %5138 = vmatmul.msk.f32.gmra.mxu2 %vm527_vm0, %v7186_v63 }
 0xfbe   : > { %5128 = vmatmul.msk.f32.vlgmr.msra.gmra.mxu1 %vm527_vm0, %v7191_v3 }
 0xfc3   : > { %v4098_v19 = vpop.f32.mrf.mxu2 }
 0xfc4   : > { %v4099_v55 = vadd.f32 %v5361_v57, %v4098_v19 }
 0xfc5   : > { %5139 = vmatmul.msk.f32.gmra.mxu2 %vm527_vm0, %v7182_v47 }
 0xfc6   : > { %5129 = vmatmul.msk.f32.gmra.mxu1 %vm527_vm0, %v7186_v63 }
 0xfcd   : > { %5140 = vmatmul.msk.f32.gmra.mxu2 %vm527_vm0, %v7177_v24 }
 0xfce   : > { %5130 = vmatmul.msk.f32.gmra.mxu1 %vm527_vm0, %v7182_v47  ;;  %v5456_v47 = vmov 0  }
 0xfcf   : > { %5346 = vset.pattern.permute.xlu1 %v5456_v47  ;;  %5347 = vset.pattern.permute.xlu0 %v5456_v47 }
 0xfd0   : > { %4291 = vperm.xlu1 %5346, %v4285_v62   ;;  %5348 = vset.pattern.permute.xlu2 %v5456_v47 }
 0xfd6   : > { %5131 = vmatmul.msk.f32.gmra.mxu1 %vm527_vm0, %v7177_v24 }
 0xffe   : > { %v4147_v3 = vpop.f32.mrf.mxu2 }
 0xfff   : > { %v7569_v49 = vadd.f32 %v4147_v3, %v4119_v13  ;;  %v4287_v13 = vld [vmem:[%s7578_s12 + $0x10] sm:$0xff] }
0x1001   : > { %v4257_v38 = vmax.f32 %v7569_v49, 0.0 }
0x101f   : > { %v4150_v40 = vpop.f32.mrf.mxu2 }
0x1020   : > { %v7571_v63 = vadd.f32 %v4150_v40, %v4122_v51 }
0x1022   : > { %v4258_v60 = vmax.f32 %v7571_v63, 0.0 }
0x1027   : > { %v4153_v24 = vpop.f32.mrf.mxu2 }
0x1029   : > { %v4124_v45 = vpop.f32.mrf.mxu1 }
0x102a   : > { %v4125_v14 = vadd.f32 %v4124_v45, %v4096_v53 }
0x102c   : > { %v7581_v30 = vadd.f32 %v4153_v24, %v4125_v14 }
0x102e   : > { %v4259_v32 = vmax.f32 %v7581_v30, 0.0 }
0x1030   : > { %v4156_v11 = vpop.f32.mrf.mxu2 }
0x1033   : > { %v4127_v28 = vpop.f32.mrf.mxu1 }
0x1034   : > { %v4128_v23 = vadd.f32 %v4127_v28, %v4099_v55 }
0x1036   : > { %v7586_v18 = vadd.f32 %v4156_v11, %v4128_v23 }
0x1038   : > { %v4241_v6 = vpop.f32.mrf.mxu2  ;;  %v4260_v47 = vmax.f32 %v7586_v18, 0.0 }
0x1039   : > { %v4242_v48 = vadd.f32 %v5362_v41, %v4241_v6 }
0x103b   : > { %v4198_v27 = vpop.f32.mrf.mxu1  ;;  %5428 = vtanh.f32 %v4242_v48 }
0x103c   : > { %v4199_v2 = vadd.f32 %v5363_v33, %v4198_v27 }
0x103e   : > { %5430 = vtanh.f32 %v4199_v2 }
0x1040   : > { %v4244_v4 = vpop.f32.mrf.mxu2 }
0x1041   : > { %v4245_v12 = vadd.f32 %v5362_v41, %v4244_v4  ;;  %v5429_v1 = vpop.eup %5428 }
0x1042   : > { %v4292_v37 = vpop.permute.xlu1 %4291 }
0x1043   : > { %v4201_v35 = vpop.f32.mrf.mxu1  ;;  %5432 = vtanh.f32 %v4245_v12 }
0x1044   : > { %v5431_v58 = vpop.eup %5430  ;;  %v4202_v9 = vadd.f32 %v5363_v33, %v4201_v35  ;;  %v4371_v35 = vld [vmem:[%s7649_s10] sm:$0x1] }
0x1045   : > { %v4261_v39 = vmul.f32 %v5431_v58, %v5429_v1 }
0x1046   : > { %5434 = vtanh.f32 %v4202_v9 }
0x1047   : > { %4269 = vrot.lane.b32.xlu0 %v4261_v39, %s5455_s16  ;;  %v4374_v39 = vld [vmem:[%s7650_s11] sm:$0x1] }
0x1048   : > { %v4247_v36 = vpop.f32.mrf.mxu2 }
0x1049   : > { %v4248_v52 = vadd.f32 %v5362_v41, %v4247_v36  ;;  %v5433_v43 = vpop.eup %5432 }
0x104b   : > { %v4204_v54 = vpop.f32.mrf.mxu1  ;;  %5436 = vtanh.f32 %v4248_v52 }
0x104c   : > { %v5435_v0 = vpop.eup %5434  ;;  %v4205_v57 = vadd.f32 %v5363_v33, %v4204_v54  ;;  %v4380_v54 = vld [vmem:[#allocation2] sm:$0x1] }
0x104d   : > { %v4262_v59 = vmul.f32 %v5435_v0, %v5433_v43 }
0x104e   : > { %5438 = vtanh.f32 %v4205_v57 }
0x104f   : > { %4271 = vrot.lane.b32.xlu2 %v4262_v59, %s5455_s16  ;;  %4296 = vperm.xlu0 %5347, %v4286_v42  }
0x1050   : > { %v4250_v61 = vpop.f32.mrf.mxu2 }
0x1051   : > { %v4251_v5 = vadd.f32 %v5362_v41, %v4250_v61  ;;  %v5437_v7 = vpop.eup %5436 }
0x1053   : > { %v4207_v10 = vpop.f32.mrf.mxu1  ;;  %5440 = vtanh.f32 %v4251_v5 }
0x1054   : > { %v5439_v21 = vpop.eup %5438  ;;  %v4208_v25 = vadd.f32 %v5363_v33, %v4207_v10 }
0x1055   : > { %v4263_v44 = vmul.f32 %v5439_v21, %v5437_v7 }
0x1056   : > { %5442 = vtanh.f32 %v4208_v25 }
0x1057   : > { %4273 = vrot.lane.b32.xlu1 %v4263_v44, %s5455_s16  ;;  %4301 = vperm.xlu2 %5348, %v4287_v13  }
0x1059   : > { %v5441_v15 = vpop.eup %5440 }
0x105c   : > { %v5443_v16 = vpop.eup %5442 }
0x105d   : > { %v4264_v22 = vmul.f32 %v5443_v16, %v5441_v15 }
0x105f   : > { %4275 = vrot.lane.b32.xlu1 %v4264_v22, %s5455_s16  ;;  %4306 = vperm.xlu2 %5348, %v4288_v17  }
0x10a9   : > { %v4272_v8 = vpop.permute.xlu2 %4271 }
0x10aa   : > { %v4282_v19 = vsel %vm1236_vm3, %v4258_v60, %v4272_v8 }
0x10b1   : > { %v4302_v51 = vpop.permute.xlu2 %4301 }
0x10b9   : > { %v4270_v29 = vpop.permute.xlu0 %4269  ;;  %v4307_v53 = vpop.permute.xlu2 %4306 }
0x10ba   : > { %v4281_v20 = vsel %vm1236_vm3, %v4257_v38, %v4270_v29 }
0x10bb   : > { %v4309_v46 = vmul.f32 %v4292_v37, %v4281_v20 }
0x10bd   : > { %5141 = vmatmul.msk.f32.vlgmr.msrb.gmra.mxu1 %vm527_vm0, %v4309_v46 }
0x10c1   : > { %v4297_v3 = vpop.permute.xlu0 %4296 }
0x10c2   : > { %v4310_v31 = vmul.f32 %v4297_v3, %v4282_v19 }
0x10c5   : > { %5142 = vmatmul.msk.f32.gmra.mxu1 %vm527_vm0, %v4310_v31 }
0x10c9   : > { %v4274_v49 = vpop.permute.xlu1 %4273 }
0x10ca   : > { %v4283_v40 = vsel %vm1236_vm3, %v4259_v32, %v4274_v49 }
0x10cb   : > { %v4311_v24 = vmul.f32 %v4302_v51, %v4283_v40 }
0x10cd   : > { %5143 = vmatmul.msk.f32.gmra.mxu1 %vm527_vm0, %v4311_v24 }
0x10d1   : > { %v4276_v62 = vpop.permute.xlu1 %4275 }
0x10d2   : > { %v4284_v63 = vsel %vm1236_vm3, %v4260_v47, %v4276_v62 }
0x10d3   : > { %v4312_v45 = vmul.f32 %v4307_v53, %v4284_v63 }
0x10d5   : > { %5144 = vmatmul.msk.f32.gmra.mxu1 %vm527_vm0, %v4312_v45 }
0x113a   : > { %v4346_v14 = vpop.f32.mrf.mxu1 }
0x113b   : > { %v4358_v28 = vsel %vm527_vm0, %v4346_v14, 0.0 }
0x1142   : > { %v4349_v11 = vpop.f32.mrf.mxu1 }
0x1143   : > { %v4359_v30 = vsel %vm527_vm0, %v4349_v11, 0.0 }
0x1144   : > { %v4360_v41 = vadd.f32 %v4359_v30, %v4358_v28 }
0x114a   : > { %v4352_v55 = vpop.f32.mrf.mxu1 }
0x114b   : > { %v4361_v23 = vsel %vm527_vm0, %v4352_v55, 0.0 }
0x114c   : > { %v4362_v6 = vadd.f32 %v4361_v23, %v4360_v41 }
0x1152   : > { %v4355_v33 = vpop.f32.mrf.mxu1 }
0x1153   : > { %v4363_v18 = vsel %vm527_vm0, %v4355_v33, 0.0 }
0x1154   : > { %v4364_v48 = vadd.f32 %v4363_v18, %v4362_v6 }
0x1156   : > { %v4365_v27 = vrot.slane %v4364_v48, 4 }
0x1158   : > { %v4366_v2 = vadd.f32 %v4365_v27, %v4364_v48 }
0x115a   : > { %v4367_v4 = vrot.slane %v4366_v2, 2 }
0x115c   : > { %v4368_v12 = vadd.f32 %v4367_v4, %v4366_v2 }
0x115e   : > { %v4369_v1 = vrot.slane %v4368_v12, 1 }
0x1160   : > { %v4370_v58 = vadd.f32 %v4369_v1, %v4368_v12 }
0x1162   : > { %v4372_v9 = vadd.f32 %v4371_v35, %v4370_v58 }
0x1164   : > { %v4373_v36 = vmax.f32 %v4372_v9, 0.0 }
0x1166   : > { %v4375_v52 = vmul.f32 %v4374_v39, %v4373_v36 }
0x1168   : > { %v4377_v43 = vsel %vm4376_vm4, %v4375_v52, 0.0 }
0x1169   : > { %4378 = vadd.xlane.f32.xlu0 %v4377_v43 }
0x11dc   : > { %v4379_v0 = vpop.xlane.xlu0 %4378 }
0x11dd   : > { %v4381_v57 = vadd.f32 %v4380_v54, %v4379_v0 }
0x11df   : > { %4383 = vst.msk [vmem:[%s478_s18] sm:$0x1] %vm4382_vm5, %v4381_v57 }
0x11e0 PF: > { %s25_s27 = sadd.s32 1, %s5450_s27  }
0x11e1   : > { %p22_p4 = scmp.ge.s32.totalorder %s25_s27, 4  }
0x11e3   :  { %24 = sbr.rel (!%p22_p4) target bundleno = 3 (0x3), region = 136 }

</bundles_post_ra>
